<compile_context>
chip_gen: v7x
topology: tpu7x:2x2x1
jax: 0.10.0
libtpu: 0.0.40
codegen_flags: <defaults>
</compile_context>

<pallas_src>
import functools

import jax
import jax.numpy as jnp
from jax.experimental import pallas as pl
from jax.experimental.pallas import tpu as pltpu

NEG_SLOPE = 0.1          # FlowNetC uses LeakyReLU(0.1)
MAX_DISP = 3             # correlation max displacement -> (2*3+1)^2 = 49 channels
FUSED_C = 64             # corr(49) + redir(8) + zero pad -> 64-channel fused buffer
VMEM_LIMIT = 64 * 1024 * 1024


def _leaky(x):
    return jnp.maximum(x, NEG_SLOPE * x)


def _row_tile(h, cap):
    """Largest divisor of h that is <= cap (trace-time)."""
    t = min(h, cap)
    while h % t:
        t -= 1
    return t


# ----------------------------------------------------------------------------
# Pallas kernels
# ----------------------------------------------------------------------------
def _conv_mm_kernel(p_ref, w_ref, b_ref, o_ref, *, apply_act):
    """(tm, K) bf16 patches @ (K, Cout) bf16 weights -> f32 acc + bias (+ LeakyReLU)."""
    acc = jnp.dot(p_ref[...], w_ref[...], preferred_element_type=jnp.float32)
    acc = acc + b_ref[...]
    if apply_act:
        acc = _leaky(acc)
    o_ref[...] = acc.astype(o_ref.dtype)


def _corr_redir_kernel(f1_ref, f2p_ref, wr_ref, sel_ref, bias_ref, o_ref, *, max_disp):
    """FlowNetC correlation + fused conv_redir into one lane-dense 64-ch slab.

    f1_ref  : (th, W, C)            bf16 frame1 features (row tile)
    f2p_ref : (H+2d, W+2d, C)       bf16 spatially padded frame2 features (full)
    wr_ref  : (R, 1, C)             f32 conv_redir weights (1x1 conv)
    sel_ref : (64, 1, 64)           f32 one-hot lane placement (corr rows scaled by 1/C)
    bias_ref: (1, 1, 64)            f32 bias (redir columns only)
    o_ref   : (th, W, 64)           bf16 [0:49]=corr, [49:57]=redir, [57:64]=0
    """
    d = max_disp
    D = 2 * d + 1
    th, W, C = f1_ref.shape
    h0 = pl.program_id(1) * th

    f1 = f1_ref[...].astype(jnp.float32)                 # (th, W, C)
    sel = sel_ref[...]                                    # (64, 1, 64)
    wr = wr_ref[...]                                      # (R, 1, C)
    acc = jnp.zeros(o_ref.shape, jnp.float32)             # (th, W, 64)

    # Correlation: dx slice hoisted (7 sublane relayouts total, reused over dy);
    # dy slicing is a leading-axis slice of the loaded slab (free).
    for dx in range(D):
        f2dx = f2p_ref[pl.ds(h0, th + 2 * d), dx:dx + W, :].astype(jnp.float32)
        for dy in range(D):
            s = jnp.sum(f1 * f2dx[dy:dy + th], axis=-1, keepdims=True)   # (th, W, 1)
            acc = acc + s * sel[dy * D + dx]               # lane placement (incl. 1/C)

    # Fused conv_redir (1x1 conv): same reduce path, placed into columns 49..56.
    for r in range(wr.shape[0]):
        s = jnp.sum(f1 * wr[r], axis=-1, keepdims=True)
        acc = acc + s * sel[D * D + r]

    acc = _leaky(acc + bias_ref[...])                      # leaky(0)=0 keeps pad lanes zero
    o_ref[...] = acc.astype(o_ref.dtype)


# ----------------------------------------------------------------------------
# Pallas-backed batched ops (NHWC layout)
# ----------------------------------------------------------------------------
def _im2col(x, k, stride, pad):
    """x: (B, H, W, Cin) -> patches (B, Ho*Wo, k*k*Cin), feature order (ki, kj, cin)."""
    B, H, W, Cin = x.shape
    xp = jnp.pad(x, ((0, 0), (pad, pad), (pad, pad), (0, 0)))
    Ho = (H + 2 * pad - k) // stride + 1
    Wo = (W + 2 * pad - k) // stride + 1
    cols = []
    for di in range(k):
        for dj in range(k):
            cols.append(xp[:, di:di + (Ho - 1) * stride + 1:stride,
                           dj:dj + (Wo - 1) * stride + 1:stride, :])
    patches = jnp.concatenate(cols, axis=-1).reshape(B, Ho * Wo, k * k * Cin)
    return patches, Ho, Wo


def conv2d_pallas(x, layer, *, out_dtype=jnp.bfloat16):
    """x: (B, H, W, Cin).  Weights are pre-transposed bf16, true output width."""
    B = x.shape[0]
    k, stride, pad, cout = layer["k"], layer["stride"], layer["pad"], layer["cout"]
    patches, Ho, Wo = _im2col(x, k, stride, pad)
    patches = patches.astype(jnp.bfloat16)
    M, K = patches.shape[1], patches.shape[2]

    tm = min(M, 1024)                 # big tiles amortize per-step overhead
    nm = pl.cdiv(M, tm)               # ragged last block handled by Pallas (no pad pass)

    out = pl.pallas_call(
        functools.partial(_conv_mm_kernel, apply_act=layer["act"]),
        out_shape=jax.ShapeDtypeStruct((B, M, cout), out_dtype),
        grid=(B, nm),
        in_specs=[
            pl.BlockSpec((None, tm, K), lambda b, m: (b, m, 0)),
            pl.BlockSpec((K, cout), lambda b, m: (0, 0)),
            pl.BlockSpec((1, cout), lambda b, m: (0, 0)),
        ],
        out_specs=pl.BlockSpec((None, tm, cout), lambda b, m: (b, m, 0)),
        compiler_params=pltpu.CompilerParams(
            dimension_semantics=("parallel", "parallel"),
            vmem_limit_bytes=VMEM_LIMIT),
    )(patches, layer["w"], layer["b"])

    return out.reshape(B, Ho, Wo, cout)


def corr_redir_pallas(f1, f2, cr):
    """f1, f2: (B, H, W, C) bf16 features -> (B, H, W, 64) bf16 fused buffer."""
    B, H, W, C = f1.shape
    d = MAX_DISP
    f2p = jnp.pad(f2, ((0, 0), (d, d), (d, d), (0, 0)))
    Hp, Wp = H + 2 * d, W + 2 * d
    th = _row_tile(H, 16)             # bounds acc vreg/VMEM pressure across the 57-step loop
    wr, sel, bias = cr["w"], cr["sel"], cr["bias"]

    return pl.pallas_call(
        functools.partial(_corr_redir_kernel, max_disp=d),
        out_shape=jax.ShapeDtypeStruct((B, H, W, FUSED_C), jnp.bfloat16),
        grid=(B, H // th),
        in_specs=[
            pl.BlockSpec((None, th, W, C), lambda b, h: (b, h, 0, 0)),
            # full padded frame2: block index constant across row tiles -> not re-DMAed
            pl.BlockSpec((None, Hp, Wp, C), lambda b, h: (b, 0, 0, 0)),
            pl.BlockSpec(wr.shape, lambda b, h: (0, 0, 0)),
            pl.BlockSpec(sel.shape, lambda b, h: (0, 0, 0)),
            pl.BlockSpec(bias.shape, lambda b, h: (0, 0, 0)),
        ],
        out_specs=pl.BlockSpec((None, th, W, FUSED_C), lambda b, h: (b, h, 0, 0)),
        compiler_params=pltpu.CompilerParams(
            dimension_semantics=("parallel", "parallel"),
            vmem_limit_bytes=VMEM_LIMIT),
    )(f1, f2p, wr, sel, bias)


# ----------------------------------------------------------------------------
# Parameters (torch layout) + one-time prep into matmul-friendly layouts
# ----------------------------------------------------------------------------
def init_raw_params(key):
    def conv_init(k_, cout, cin, ksz):
        wkey, bkey = jax.random.split(k_)
        fan_in = cin * ksz * ksz
        w = jax.random.normal(wkey, (cout, cin, ksz, ksz), jnp.float32) * (2.0 / fan_in) ** 0.5
        b = jax.random.normal(bkey, (cout,), jnp.float32) * 0.01
        return w, b

    keys = jax.random.split(key, 6)
    return {
        "conv1":        conv_init(keys[0], 16, 3, 3),    # stride 2
        "conv2":        conv_init(keys[1], 32, 16, 3),   # stride 2
        "conv3":        conv_init(keys[2], 32, 32, 3),   # stride 2
        "conv_redir":   conv_init(keys[3], 8, 32, 1),
        "conv3_1":      conv_init(keys[4], 64, 49 + 8, 3),
        "predict_flow": conv_init(keys[5], 2, 64, 3),
    }


def _prep_conv_mm(w, b, *, stride, pad, act=True, cin_pad_to=None):
    cout, cin, k, _ = w.shape
    if cin_pad_to is not None and cin_pad_to > cin:
        w = jnp.pad(w, ((0, 0), (0, cin_pad_to - cin), (0, 0), (0, 0)))
        cin = cin_pad_to
    # patch feature order (ki, kj, cin): (Cout,Cin,k,k) -> (k,k,Cin,Cout) -> (K,Cout)
    w_mat = jnp.transpose(w, (2, 3, 1, 0)).reshape(k * k * cin, cout).astype(jnp.bfloat16)
    b_row = b.reshape(1, cout).astype(jnp.float32)
    return {"w": w_mat, "b": b_row, "k": k, "stride": stride, "pad": pad,
            "cout": cout, "act": act}


def _prep_corr_redir(w, b, *, d2, fused_c, true_c):
    cout, cin = w.shape[0], w.shape[1]                  # (8, 32, 1, 1)
    wr = w.reshape(cout, 1, cin).astype(jnp.float32)    # (R, 1, C)
    # one-hot lane placement rows; correlation rows pre-scaled by 1/C
    scale = jnp.concatenate([jnp.full((d2,), 1.0 / true_c, jnp.float32),
                             jnp.ones((fused_c - d2,), jnp.float32)])
    sel = (jnp.eye(fused_c, dtype=jnp.float32) * scale[:, None]).reshape(fused_c, 1, fused_c)
    bias = jnp.zeros((1, 1, fused_c), jnp.float32)
    bias = bias.at[0, 0, d2:d2 + cout].set(b.astype(jnp.float32))
    return {"w": wr, "sel": sel, "bias": bias, "cout": cout}


def prepare_params(raw):
    d2 = (2 * MAX_DISP + 1) ** 2
    true_c = raw["conv3"][0].shape[0]   # correlation normalizes by the real channel count
    return {
        "conv1":        _prep_conv_mm(*raw["conv1"], stride=2, pad=1),
        "conv2":        _prep_conv_mm(*raw["conv2"], stride=2, pad=1),
        "conv3":        _prep_conv_mm(*raw["conv3"], stride=2, pad=1),
        "corr_redir":   _prep_corr_redir(*raw["conv_redir"], d2=d2,
                                         fused_c=FUSED_C, true_c=true_c),
        # conv3_1 consumes the fused 64-channel buffer (channels 57..63 are zero)
        "conv3_1":      _prep_conv_mm(*raw["conv3_1"], stride=1, pad=1, cin_pad_to=FUSED_C),
        "predict_flow": _prep_conv_mm(*raw["predict_flow"], stride=1, pad=1, act=False),
    }


# ----------------------------------------------------------------------------
# FlowNetC core + FlowNetCWrapper forward semantics (batched, jitted)
# ----------------------------------------------------------------------------
def flownetc_batched(params, x1_nhwc, x2_nhwc):
    def feat(x):
        x = conv2d_pallas(x, params["conv1"])          # bf16, true channel width
        x = conv2d_pallas(x, params["conv2"])
        return conv2d_pallas(x, params["conv3"])       # (B, H/8, W/8, 32) bf16

    a = feat(x1_nhwc)
    b = feat(x2_nhwc)
    fused = corr_redir_pallas(a, b, params["corr_redir"])        # (B, H/8, W/8, 64) bf16
    x = conv2d_pallas(fused, params["conv3_1"])
    flow = conv2d_pallas(x, params["predict_flow"], out_dtype=jnp.float32)
    return flow   # (B, Hf, Wf, 2) f32


def make_forward(params):
    @jax.jit
    def forward(frames1, frames2):
        # FlowNetCWrapper.forward runs the model per sample and concatenates;
        # the network is per-sample independent, so batched execution (batch as
        # a parallel grid axis) is numerically identical and far cheaper.
        x1 = jnp.transpose(frames1, (0, 2, 3, 1))   # NCHW -> NHWC, once per batch
        x2 = jnp.transpose(frames2, (0, 2, 3, 1))
        flow = flownetc_batched(params, x1, x2)
        return jnp.transpose(flow, (0, 3, 1, 2))    # NHWC -> NCHW
    return forward


# ----------------------------------------------------------------------------
if __name__ == "__main__":
    key = jax.random.PRNGKey(0)
    k1, k2 = jax.random.split(key)

    B, C, H, W = 2, 3, 32, 32  # NCHW, PyTorch convention
    frames1 = jax.random.normal(k1, (B, C, H, W), jnp.float32)
    frames2 = jax.random.normal(k2, (B, C, H, W), jnp.float32)

    params = prepare_params(init_raw_params(jax.random.PRNGKey(1)))
    forward = make_forward(params)

    flow = jax.block_until_ready(forward(frames1, frames2))

    assert flow.shape == (B, 2, H // 8, W // 8), flow.shape
    assert flow.dtype == jnp.float32
    assert bool(jnp.all(jnp.isfinite(flow)))
    print("KERNEL_OK")
</pallas_src>

<mosaic_0001>
module attributes {stable_mosaic.version = 11 : i64} {
  func.func @_conv_mm_kernel(%arg0: i32, %arg1: i32, %arg2: memref<1x256x27xbf16, #tpu.memory_space<vmem>>, %arg3: memref<27x16xbf16, #tpu.memory_space<vmem>>, %arg4: memref<1x16xf32, #tpu.memory_space<vmem>>, %arg5: memref<1x256x16xbf16, #tpu.memory_space<vmem>>) attributes {dimension_semantics = [#tpu.dimension_semantics<parallel>, #tpu.dimension_semantics<parallel>], iteration_bounds = array<i64: 2, 1>, scalar_prefetch = 0 : i64, scratch_operands = 0 : i64, tpu.core_type = #tpu.core_type<tc>, window_params = [{transform_indices = @transform_0, window_bounds = array<i64: 1, 256, 27>}, {pipeline_mode = #tpu.pipeline_mode<synchronous>, transform_indices = @transform_1, window_bounds = array<i64: 27, 16>}, {pipeline_mode = #tpu.pipeline_mode<synchronous>, transform_indices = @transform_2, window_bounds = array<i64: 1, 16>}, {transform_indices = @transform_3, window_bounds = array<i64: 1, 256, 16>}]} {
    %c0 = arith.constant 0 : index
    %c0_0 = arith.constant 0 : index
    %c0_1 = arith.constant 0 : index
    %0 = vector.load %arg2[%c0, %c0_0, %c0_1] : memref<1x256x27xbf16, #tpu.memory_space<vmem>>, vector<1x256x27xbf16>
    %1 = vector.shape_cast %0 : vector<1x256x27xbf16> to vector<256x27xbf16>
    %c0_2 = arith.constant 0 : index
    %c0_3 = arith.constant 0 : index
    %2 = vector.load %arg3[%c0_2, %c0_3] : memref<27x16xbf16, #tpu.memory_space<vmem>>, vector<27x16xbf16>
    %cst = arith.constant dense<0.000000e+00> : vector<256x16xf32>
    %3 = tpu.matmul %1, %2, %cst {dimension_numbers = #tpu.dot_dimension_numbers<[1], [0], [0], [1], [0, 0, 1, 1], [], []>} : vector<256x27xbf16>, vector<27x16xbf16>, vector<256x16xf32> -> vector<256x16xf32>
    %c0_4 = arith.constant 0 : index
    %c0_5 = arith.constant 0 : index
    %4 = vector.load %arg4[%c0_4, %c0_5] : memref<1x16xf32, #tpu.memory_space<vmem>>, vector<1x16xf32>
    %5 = vector.broadcast %4 : vector<1x16xf32> to vector<256x16xf32>
    %6 = arith.addf %3, %5 : vector<256x16xf32>
    %cst_6 = arith.constant 1.000000e-01 : f32
    %7 = vector.broadcast %cst_6 : f32 to vector<256x16xf32>
    %8 = arith.mulf %7, %6 : vector<256x16xf32>
    %9 = arith.maximumf %6, %8 : vector<256x16xf32>
    %10 = arith.truncf %9 : vector<256x16xf32> to vector<256x16xbf16>
    %c0_7 = arith.constant 0 : index
    %c0_8 = arith.constant 0 : index
    %c0_9 = arith.constant 0 : index
    %11 = vector.load %arg5[%c0_7, %c0_8, %c0_9] : memref<1x256x16xbf16, #tpu.memory_space<vmem>>, vector<1x256x16xbf16>
    %12 = vector.shape_cast %11 : vector<1x256x16xbf16> to vector<256x16xbf16>
    %13 = vector.shape_cast %10 : vector<256x16xbf16> to vector<1x256x16xbf16>
    tpu.vector_store %arg5[%c0_7, %c0_8, %c0_9], %13 {strides = array<i32>} : memref<1x256x16xbf16, #tpu.memory_space<vmem>>, vector<1x256x16xbf16>,
    return
  }
  func.func @transform_0(%arg0: i32, %arg1: i32) -> (i32, i32, i32) {
    %c0_i32 = arith.constant 0 : i32
    %c0_i32_0 = arith.constant 0 : i32
    return %arg0, %arg1, %c0_i32 : i32, i32, i32
  }
  func.func @transform_1(%arg0: i32, %arg1: i32) -> (i32, i32) {
    %c0_i32 = arith.constant 0 : i32
    %c0_i32_0 = arith.constant 0 : i32
    %c0_i32_1 = arith.constant 0 : i32
    return %c0_i32, %c0_i32_0 : i32, i32
  }
  func.func @transform_2(%arg0: i32, %arg1: i32) -> (i32, i32) {
    %c0_i32 = arith.constant 0 : i32
    %c0_i32_0 = arith.constant 0 : i32
    %c0_i32_1 = arith.constant 0 : i32
    return %c0_i32, %c0_i32_0 : i32, i32
  }
  func.func @transform_3(%arg0: i32, %arg1: i32) -> (i32, i32, i32) {
    %c0_i32 = arith.constant 0 : i32
    %c0_i32_0 = arith.constant 0 : i32
    return %arg0, %arg1, %c0_i32 : i32, i32, i32
  }
}

module attributes {stable_mosaic.version = 11 : i64} {
  func.func @_conv_mm_kernel(%arg0: i32, %arg1: i32, %arg2: memref<1x64x144xbf16, #tpu.memory_space<vmem>>, %arg3: memref<144x32xbf16, #tpu.memory_space<vmem>>, %arg4: memref<1x32xf32, #tpu.memory_space<vmem>>, %arg5: memref<1x64x32xbf16, #tpu.memory_space<vmem>>) attributes {dimension_semantics = [#tpu.dimension_semantics<parallel>, #tpu.dimension_semantics<parallel>], iteration_bounds = array<i64: 2, 1>, scalar_prefetch = 0 : i64, scratch_operands = 0 : i64, tpu.core_type = #tpu.core_type<tc>, window_params = [{transform_indices = @transform_0, window_bounds = array<i64: 1, 64, 144>}, {pipeline_mode = #tpu.pipeline_mode<synchronous>, transform_indices = @transform_1, window_bounds = array<i64: 144, 32>}, {pipeline_mode = #tpu.pipeline_mode<synchronous>, transform_indices = @transform_2, window_bounds = array<i64: 1, 32>}, {transform_indices = @transform_3, window_bounds = array<i64: 1, 64, 32>}]} {
    %c0 = arith.constant 0 : index
    %c0_0 = arith.constant 0 : index
    %c0_1 = arith.constant 0 : index
    %0 = vector.load %arg2[%c0, %c0_0, %c0_1] : memref<1x64x144xbf16, #tpu.memory_space<vmem>>, vector<1x64x144xbf16>
    %1 = vector.shape_cast %0 : vector<1x64x144xbf16> to vector<64x144xbf16>
    %c0_2 = arith.constant 0 : index
    %c0_3 = arith.constant 0 : index
    %2 = vector.load %arg3[%c0_2, %c0_3] : memref<144x32xbf16, #tpu.memory_space<vmem>>, vector<144x32xbf16>
    %cst = arith.constant dense<0.000000e+00> : vector<64x32xf32>
    %3 = tpu.matmul %1, %2, %cst {dimension_numbers = #tpu.dot_dimension_numbers<[1], [0], [0], [1], [0, 0, 1, 1], [], []>} : vector<64x144xbf16>, vector<144x32xbf16>, vector<64x32xf32> -> vector<64x32xf32>
    %c0_4 = arith.constant 0 : index
    %c0_5 = arith.constant 0 : index
    %4 = vector.load %arg4[%c0_4, %c0_5] : memref<1x32xf32, #tpu.memory_space<vmem>>, vector<1x32xf32>
    %5 = vector.broadcast %4 : vector<1x32xf32> to vector<64x32xf32>
    %6 = arith.addf %3, %5 : vector<64x32xf32>
    %cst_6 = arith.constant 1.000000e-01 : f32
    %7 = vector.broadcast %cst_6 : f32 to vector<64x32xf32>
    %8 = arith.mulf %7, %6 : vector<64x32xf32>
    %9 = arith.maximumf %6, %8 : vector<64x32xf32>
    %10 = arith.truncf %9 : vector<64x32xf32> to vector<64x32xbf16>
    %c0_7 = arith.constant 0 : index
    %c0_8 = arith.constant 0 : index
    %c0_9 = arith.constant 0 : index
    %11 = vector.load %arg5[%c0_7, %c0_8, %c0_9] : memref<1x64x32xbf16, #tpu.memory_space<vmem>>, vector<1x64x32xbf16>
    %12 = vector.shape_cast %11 : vector<1x64x32xbf16> to vector<64x32xbf16>
    %13 = vector.shape_cast %10 : vector<64x32xbf16> to vector<1x64x32xbf16>
    tpu.vector_store %arg5[%c0_7, %c0_8, %c0_9], %13 {strides = array<i32>} : memref<1x64x32xbf16, #tpu.memory_space<vmem>>, vector<1x64x32xbf16>,
    return
  }
  func.func @transform_0(%arg0: i32, %arg1: i32) -> (i32, i32, i32) {
    %c0_i32 = arith.constant 0 : i32
    %c0_i32_0 = arith.constant 0 : i32
    return %arg0, %arg1, %c0_i32 : i32, i32, i32
  }
  func.func @transform_1(%arg0: i32, %arg1: i32) -> (i32, i32) {
    %c0_i32 = arith.constant 0 : i32
    %c0_i32_0 = arith.constant 0 : i32
    %c0_i32_1 = arith.constant 0 : i32
    return %c0_i32, %c0_i32_0 : i32, i32
  }
  func.func @transform_2(%arg0: i32, %arg1: i32) -> (i32, i32) {
    %c0_i32 = arith.constant 0 : i32
    %c0_i32_0 = arith.constant 0 : i32
    %c0_i32_1 = arith.constant 0 : i32
    return %c0_i32, %c0_i32_0 : i32, i32
  }
  func.func @transform_3(%arg0: i32, %arg1: i32) -> (i32, i32, i32) {
    %c0_i32 = arith.constant 0 : i32
    %c0_i32_0 = arith.constant 0 : i32
    return %arg0, %arg1, %c0_i32 : i32, i32, i32
  }
}

module attributes {stable_mosaic.version = 11 : i64} {
  func.func @_conv_mm_kernel(%arg0: i32, %arg1: i32, %arg2: memref<1x16x288xbf16, #tpu.memory_space<vmem>>, %arg3: memref<288x32xbf16, #tpu.memory_space<vmem>>, %arg4: memref<1x32xf32, #tpu.memory_space<vmem>>, %arg5: memref<1x16x32xbf16, #tpu.memory_space<vmem>>) attributes {dimension_semantics = [#tpu.dimension_semantics<parallel>, #tpu.dimension_semantics<parallel>], iteration_bounds = array<i64: 2, 1>, scalar_prefetch = 0 : i64, scratch_operands = 0 : i64, tpu.core_type = #tpu.core_type<tc>, window_params = [{transform_indices = @transform_0, window_bounds = array<i64: 1, 16, 288>}, {pipeline_mode = #tpu.pipeline_mode<synchronous>, transform_indices = @transform_1, window_bounds = array<i64: 288, 32>}, {pipeline_mode = #tpu.pipeline_mode<synchronous>, transform_indices = @transform_2, window_bounds = array<i64: 1, 32>}, {transform_indices = @transform_3, window_bounds = array<i64: 1, 16, 32>}]} {
    %c0 = arith.constant 0 : index
    %c0_0 = arith.constant 0 : index
    %c0_1 = arith.constant 0 : index
    %0 = vector.load %arg2[%c0, %c0_0, %c0_1] : memref<1x16x288xbf16, #tpu.memory_space<vmem>>, vector<1x16x288xbf16>
    %1 = vector.shape_cast %0 : vector<1x16x288xbf16> to vector<16x288xbf16>
    %c0_2 = arith.constant 0 : index
    %c0_3 = arith.constant 0 : index
    %2 = vector.load %arg3[%c0_2, %c0_3] : memref<288x32xbf16, #tpu.memory_space<vmem>>, vector<288x32xbf16>
    %cst = arith.constant dense<0.000000e+00> : vector<16x32xf32>
    %3 = tpu.matmul %1, %2, %cst {dimension_numbers = #tpu.dot_dimension_numbers<[1], [0], [0], [1], [0, 0, 1, 1], [], []>} : vector<16x288xbf16>, vector<288x32xbf16>, vector<16x32xf32> -> vector<16x32xf32>
    %c0_4 = arith.constant 0 : index
    %c0_5 = arith.constant 0 : index
    %4 = vector.load %arg4[%c0_4, %c0_5] : memref<1x32xf32, #tpu.memory_space<vmem>>, vector<1x32xf32>
    %5 = vector.broadcast %4 : vector<1x32xf32> to vector<16x32xf32>
    %6 = arith.addf %3, %5 : vector<16x32xf32>
    %cst_6 = arith.constant 1.000000e-01 : f32
    %7 = vector.broadcast %cst_6 : f32 to vector<16x32xf32>
    %8 = arith.mulf %7, %6 : vector<16x32xf32>
    %9 = arith.maximumf %6, %8 : vector<16x32xf32>
    %10 = arith.truncf %9 : vector<16x32xf32> to vector<16x32xbf16>
    %c0_7 = arith.constant 0 : index
    %c0_8 = arith.constant 0 : index
    %c0_9 = arith.constant 0 : index
    %11 = vector.load %arg5[%c0_7, %c0_8, %c0_9] : memref<1x16x32xbf16, #tpu.memory_space<vmem>>, vector<1x16x32xbf16>
    %12 = vector.shape_cast %11 : vector<1x16x32xbf16> to vector<16x32xbf16>
    %13 = vector.shape_cast %10 : vector<16x32xbf16> to vector<1x16x32xbf16>
    tpu.vector_store %arg5[%c0_7, %c0_8, %c0_9], %13 {strides = array<i32>} : memref<1x16x32xbf16, #tpu.memory_space<vmem>>, vector<1x16x32xbf16>,
    return
  }
  func.func @transform_0(%arg0: i32, %arg1: i32) -> (i32, i32, i32) {
    %c0_i32 = arith.constant 0 : i32
    %c0_i32_0 = arith.constant 0 : i32
    return %arg0, %arg1, %c0_i32 : i32, i32, i32
  }
  func.func @transform_1(%arg0: i32, %arg1: i32) -> (i32, i32) {
    %c0_i32 = arith.constant 0 : i32
    %c0_i32_0 = arith.constant 0 : i32
    %c0_i32_1 = arith.constant 0 : i32
    return %c0_i32, %c0_i32_0 : i32, i32
  }
  func.func @transform_2(%arg0: i32, %arg1: i32) -> (i32, i32) {
    %c0_i32 = arith.constant 0 : i32
    %c0_i32_0 = arith.constant 0 : i32
    %c0_i32_1 = arith.constant 0 : i32
    return %c0_i32, %c0_i32_0 : i32, i32
  }
  func.func @transform_3(%arg0: i32, %arg1: i32) -> (i32, i32, i32) {
    %c0_i32 = arith.constant 0 : i32
    %c0_i32_0 = arith.constant 0 : i32
    return %arg0, %arg1, %c0_i32 : i32, i32, i32
  }
}

module attributes {stable_mosaic.version = 11 : i64} {
  func.func @_corr_redir_kernel(%arg0: i32, %arg1: i32, %arg2: memref<1x4x4x32xbf16, #tpu.memory_space<vmem>>, %arg3: memref<1x10x10x32xbf16, #tpu.memory_space<vmem>>, %arg4: memref<8x1x32xf32, #tpu.memory_space<vmem>>, %arg5: memref<64x1x64xf32, #tpu.memory_space<vmem>>, %arg6: memref<1x1x64xf32, #tpu.memory_space<vmem>>, %arg7: memref<1x4x4x64xbf16, #tpu.memory_space<vmem>>) attributes {dimension_semantics = [#tpu.dimension_semantics<parallel>, #tpu.dimension_semantics<parallel>], iteration_bounds = array<i64: 2, 1>, scalar_prefetch = 0 : i64, scratch_operands = 0 : i64, tpu.core_type = #tpu.core_type<tc>, window_params = [{transform_indices = @transform_0, window_bounds = array<i64: 1, 4, 4, 32>}, {transform_indices = @transform_1, window_bounds = array<i64: 1, 10, 10, 32>}, {pipeline_mode = #tpu.pipeline_mode<synchronous>, transform_indices = @transform_2, window_bounds = array<i64: 8, 1, 32>}, {pipeline_mode = #tpu.pipeline_mode<synchronous>, transform_indices = @transform_3, window_bounds = array<i64: 64, 1, 64>}, {pipeline_mode = #tpu.pipeline_mode<synchronous>, transform_indices = @transform_4, window_bounds = array<i64: 1, 1, 64>}, {transform_indices = @transform_5, window_bounds = array<i64: 1, 4, 4, 64>}]} {
    %c4_i32 = arith.constant 4 : i32
    %0 = arith.muli %arg1, %c4_i32 : i32
    %c0 = arith.constant 0 : index
    %c0_0 = arith.constant 0 : index
    %c0_1 = arith.constant 0 : index
    %c0_2 = arith.constant 0 : index
    %1 = vector.load %arg2[%c0, %c0_0, %c0_1, %c0_2] : memref<1x4x4x32xbf16, #tpu.memory_space<vmem>>, vector<1x4x4x32xbf16>
    %2 = vector.shape_cast %1 : vector<1x4x4x32xbf16> to vector<4x4x32xbf16>
    %3 = arith.extf %2 : vector<4x4x32xbf16> to vector<4x4x32xf32>
    %c0_3 = arith.constant 0 : index
    %c0_4 = arith.constant 0 : index
    %c0_5 = arith.constant 0 : index
    %4 = vector.load %arg5[%c0_3, %c0_4, %c0_5] : memref<64x1x64xf32, #tpu.memory_space<vmem>>, vector<64x1x64xf32>
    %c0_6 = arith.constant 0 : index
    %c0_7 = arith.constant 0 : index
    %c0_8 = arith.constant 0 : index
    %5 = vector.load %arg4[%c0_6, %c0_7, %c0_8] : memref<8x1x32xf32, #tpu.memory_space<vmem>>, vector<8x1x32xf32>
    %cst = arith.constant 0.000000e+00 : f32
    %6 = vector.broadcast %cst : f32 to vector<4x4x64xf32>
    %c0_9 = arith.constant 0 : index
    %7 = arith.index_cast %0 : i32 to index
    %c0_10 = arith.constant 0 : index
    %c0_11 = arith.constant 0 : index
    %8 = vector.load %arg3[%c0_9, %7, %c0_10, %c0_11] : memref<1x10x10x32xbf16, #tpu.memory_space<vmem>>, vector<1x10x4x32xbf16>
    %9 = vector.shape_cast %8 : vector<1x10x4x32xbf16> to vector<10x4x32xbf16>
    %10 = arith.extf %9 : vector<10x4x32xbf16> to vector<10x4x32xf32>
    %11 = vector.extract_strided_slice %10 {offsets = [0, 0, 0], sizes = [4, 4, 32], strides = [1, 1, 1]} : vector<10x4x32xf32> to vector<4x4x32xf32>
    %12 = arith.mulf %3, %11 : vector<4x4x32xf32>
    %cst_12 = arith.constant dense<0.000000e+00> : vector<4x4xf32>
    %13 = vector.multi_reduction <add>, %12, %cst_12 [2] : vector<4x4x32xf32> to vector<4x4xf32>
    %14 = vector.shape_cast %13 : vector<4x4xf32> to vector<4x4x1xf32>
    %15 = vector.extract_strided_slice %4 {offsets = [0, 0, 0], sizes = [1, 1, 64], strides = [1, 1, 1]} : vector<64x1x64xf32> to vector<1x1x64xf32>
    %16 = vector.shape_cast %15 : vector<1x1x64xf32> to vector<1x64xf32>
    %17 = vector.shape_cast %16 : vector<1x64xf32> to vector<1x1x64xf32>
    %18 = vector.broadcast %14 : vector<4x4x1xf32> to vector<4x4x64xf32>
    %19 = vector.broadcast %17 : vector<1x1x64xf32> to vector<4x4x64xf32>
    %20 = arith.mulf %18, %19 : vector<4x4x64xf32>
    %21 = arith.addf %6, %20 : vector<4x4x64xf32>
    %22 = vector.extract_strided_slice %10 {offsets = [1, 0, 0], sizes = [4, 4, 32], strides = [1, 1, 1]} : vector<10x4x32xf32> to vector<4x4x32xf32>
    %23 = arith.mulf %3, %22 : vector<4x4x32xf32>
    %cst_13 = arith.constant dense<0.000000e+00> : vector<4x4xf32>
    %24 = vector.multi_reduction <add>, %23, %cst_13 [2] : vector<4x4x32xf32> to vector<4x4xf32>
    %25 = vector.shape_cast %24 : vector<4x4xf32> to vector<4x4x1xf32>
    %26 = vector.extract_strided_slice %4 {offsets = [7, 0, 0], sizes = [1, 1, 64], strides = [1, 1, 1]} : vector<64x1x64xf32> to vector<1x1x64xf32>
    %27 = vector.shape_cast %26 : vector<1x1x64xf32> to vector<1x64xf32>
    %28 = vector.shape_cast %27 : vector<1x64xf32> to vector<1x1x64xf32>
    %29 = vector.broadcast %25 : vector<4x4x1xf32> to vector<4x4x64xf32>
    %30 = vector.broadcast %28 : vector<1x1x64xf32> to vector<4x4x64xf32>
    %31 = arith.mulf %29, %30 : vector<4x4x64xf32>
    %32 = arith.addf %21, %31 : vector<4x4x64xf32>
    %33 = vector.extract_strided_slice %10 {offsets = [2, 0, 0], sizes = [4, 4, 32], strides = [1, 1, 1]} : vector<10x4x32xf32> to vector<4x4x32xf32>
    %34 = arith.mulf %3, %33 : vector<4x4x32xf32>
    %cst_14 = arith.constant dense<0.000000e+00> : vector<4x4xf32>
    %35 = vector.multi_reduction <add>, %34, %cst_14 [2] : vector<4x4x32xf32> to vector<4x4xf32>
    %36 = vector.shape_cast %35 : vector<4x4xf32> to vector<4x4x1xf32>
    %37 = vector.extract_strided_slice %4 {offsets = [14, 0, 0], sizes = [1, 1, 64], strides = [1, 1, 1]} : vector<64x1x64xf32> to vector<1x1x64xf32>
    %38 = vector.shape_cast %37 : vector<1x1x64xf32> to vector<1x64xf32>
    %39 = vector.shape_cast %38 : vector<1x64xf32> to vector<1x1x64xf32>
    %40 = vector.broadcast %36 : vector<4x4x1xf32> to vector<4x4x64xf32>
    %41 = vector.broadcast %39 : vector<1x1x64xf32> to vector<4x4x64xf32>
    %42 = arith.mulf %40, %41 : vector<4x4x64xf32>
    %43 = arith.addf %32, %42 : vector<4x4x64xf32>
    %44 = vector.extract_strided_slice %10 {offsets = [3, 0, 0], sizes = [4, 4, 32], strides = [1, 1, 1]} : vector<10x4x32xf32> to vector<4x4x32xf32>
    %45 = arith.mulf %3, %44 : vector<4x4x32xf32>
    %cst_15 = arith.constant dense<0.000000e+00> : vector<4x4xf32>
    %46 = vector.multi_reduction <add>, %45, %cst_15 [2] : vector<4x4x32xf32> to vector<4x4xf32>
    %47 = vector.shape_cast %46 : vector<4x4xf32> to vector<4x4x1xf32>
    %48 = vector.extract_strided_slice %4 {offsets = [21, 0, 0], sizes = [1, 1, 64], strides = [1, 1, 1]} : vector<64x1x64xf32> to vector<1x1x64xf32>
    %49 = vector.shape_cast %48 : vector<1x1x64xf32> to vector<1x64xf32>
    %50 = vector.shape_cast %49 : vector<1x64xf32> to vector<1x1x64xf32>
    %51 = vector.broadcast %47 : vector<4x4x1xf32> to vector<4x4x64xf32>
    %52 = vector.broadcast %50 : vector<1x1x64xf32> to vector<4x4x64xf32>
    %53 = arith.mulf %51, %52 : vector<4x4x64xf32>
    %54 = arith.addf %43, %53 : vector<4x4x64xf32>
    %55 = vector.extract_strided_slice %10 {offsets = [4, 0, 0], sizes = [4, 4, 32], strides = [1, 1, 1]} : vector<10x4x32xf32> to vector<4x4x32xf32>
    %56 = arith.mulf %3, %55 : vector<4x4x32xf32>
    %cst_16 = arith.constant dense<0.000000e+00> : vector<4x4xf32>
    %57 = vector.multi_reduction <add>, %56, %cst_16 [2] : vector<4x4x32xf32> to vector<4x4xf32>
    %58 = vector.shape_cast %57 : vector<4x4xf32> to vector<4x4x1xf32>
    %59 = vector.extract_strided_slice %4 {offsets = [28, 0, 0], sizes = [1, 1, 64], strides = [1, 1, 1]} : vector<64x1x64xf32> to vector<1x1x64xf32>
    %60 = vector.shape_cast %59 : vector<1x1x64xf32> to vector<1x64xf32>
    %61 = vector.shape_cast %60 : vector<1x64xf32> to vector<1x1x64xf32>
    %62 = vector.broadcast %58 : vector<4x4x1xf32> to vector<4x4x64xf32>
    %63 = vector.broadcast %61 : vector<1x1x64xf32> to vector<4x4x64xf32>
    %64 = arith.mulf %62, %63 : vector<4x4x64xf32>
    %65 = arith.addf %54, %64 : vector<4x4x64xf32>
    %66 = vector.extract_strided_slice %10 {offsets = [5, 0, 0], sizes = [4, 4, 32], strides = [1, 1, 1]} : vector<10x4x32xf32> to vector<4x4x32xf32>
    %67 = arith.mulf %3, %66 : vector<4x4x32xf32>
    %cst_17 = arith.constant dense<0.000000e+00> : vector<4x4xf32>
    %68 = vector.multi_reduction <add>, %67, %cst_17 [2] : vector<4x4x32xf32> to vector<4x4xf32>
    %69 = vector.shape_cast %68 : vector<4x4xf32> to vector<4x4x1xf32>
    %70 = vector.extract_strided_slice %4 {offsets = [35, 0, 0], sizes = [1, 1, 64], strides = [1, 1, 1]} : vector<64x1x64xf32> to vector<1x1x64xf32>
    %71 = vector.shape_cast %70 : vector<1x1x64xf32> to vector<1x64xf32>
    %72 = vector.shape_cast %71 : vector<1x64xf32> to vector<1x1x64xf32>
    %73 = vector.broadcast %69 : vector<4x4x1xf32> to vector<4x4x64xf32>
    %74 = vector.broadcast %72 : vector<1x1x64xf32> to vector<4x4x64xf32>
    %75 = arith.mulf %73, %74 : vector<4x4x64xf32>
    %76 = arith.addf %65, %75 : vector<4x4x64xf32>
    %77 = vector.extract_strided_slice %10 {offsets = [6, 0, 0], sizes = [4, 4, 32], strides = [1, 1, 1]} : vector<10x4x32xf32> to vector<4x4x32xf32>
    %78 = arith.mulf %3, %77 : vector<4x4x32xf32>
    %cst_18 = arith.constant dense<0.000000e+00> : vector<4x4xf32>
    %79 = vector.multi_reduction <add>, %78, %cst_18 [2] : vector<4x4x32xf32> to vector<4x4xf32>
    %80 = vector.shape_cast %79 : vector<4x4xf32> to vector<4x4x1xf32>
    %81 = vector.extract_strided_slice %4 {offsets = [42, 0, 0], sizes = [1, 1, 64], strides = [1, 1, 1]} : vector<64x1x64xf32> to vector<1x1x64xf32>
    %82 = vector.shape_cast %81 : vector<1x1x64xf32> to vector<1x64xf32>
    %83 = vector.shape_cast %82 : vector<1x64xf32> to vector<1x1x64xf32>
    %84 = vector.broadcast %80 : vector<4x4x1xf32> to vector<4x4x64xf32>
    %85 = vector.broadcast %83 : vector<1x1x64xf32> to vector<4x4x64xf32>
    %86 = arith.mulf %84, %85 : vector<4x4x64xf32>
    %87 = arith.addf %76, %86 : vector<4x4x64xf32>
    %c0_19 = arith.constant 0 : index
    %88 = arith.index_cast %0 : i32 to index
    %c1 = arith.constant 1 : index
    %c0_20 = arith.constant 0 : index
    %89 = vector.load %arg3[%c0_19, %88, %c1, %c0_20] : memref<1x10x10x32xbf16, #tpu.memory_space<vmem>>, vector<1x10x4x32xbf16>
    %90 = vector.shape_cast %89 : vector<1x10x4x32xbf16> to vector<10x4x32xbf16>
    %91 = arith.extf %90 : vector<10x4x32xbf16> to vector<10x4x32xf32>
    %92 = vector.extract_strided_slice %91 {offsets = [0, 0, 0], sizes = [4, 4, 32], strides = [1, 1, 1]} : vector<10x4x32xf32> to vector<4x4x32xf32>
    %93 = arith.mulf %3, %92 : vector<4x4x32xf32>
    %cst_21 = arith.constant dense<0.000000e+00> : vector<4x4xf32>
    %94 = vector.multi_reduction <add>, %93, %cst_21 [2] : vector<4x4x32xf32> to vector<4x4xf32>
    %95 = vector.shape_cast %94 : vector<4x4xf32> to vector<4x4x1xf32>
    %96 = vector.extract_strided_slice %4 {offsets = [1, 0, 0], sizes = [1, 1, 64], strides = [1, 1, 1]} : vector<64x1x64xf32> to vector<1x1x64xf32>
    %97 = vector.shape_cast %96 : vector<1x1x64xf32> to vector<1x64xf32>
    %98 = vector.shape_cast %97 : vector<1x64xf32> to vector<1x1x64xf32>
    %99 = vector.broadcast %95 : vector<4x4x1xf32> to vector<4x4x64xf32>
    %100 = vector.broadcast %98 : vector<1x1x64xf32> to vector<4x4x64xf32>
    %101 = arith.mulf %99, %100 : vector<4x4x64xf32>
    %102 = arith.addf %87, %101 : vector<4x4x64xf32>
    %103 = vector.extract_strided_slice %91 {offsets = [1, 0, 0], sizes = [4, 4, 32], strides = [1, 1, 1]} : vector<10x4x32xf32> to vector<4x4x32xf32>
    %104 = arith.mulf %3, %103 : vector<4x4x32xf32>
    %cst_22 = arith.constant dense<0.000000e+00> : vector<4x4xf32>
    %105 = vector.multi_reduction <add>, %104, %cst_22 [2] : vector<4x4x32xf32> to vector<4x4xf32>
    %106 = vector.shape_cast %105 : vector<4x4xf32> to vector<4x4x1xf32>
    %107 = vector.extract_strided_slice %4 {offsets = [8, 0, 0], sizes = [1, 1, 64], strides = [1, 1, 1]} : vector<64x1x64xf32> to vector<1x1x64xf32>
    %108 = vector.shape_cast %107 : vector<1x1x64xf32> to vector<1x64xf32>
    %109 = vector.shape_cast %108 : vector<1x64xf32> to vector<1x1x64xf32>
    %110 = vector.broadcast %106 : vector<4x4x1xf32> to vector<4x4x64xf32>
    %111 = vector.broadcast %109 : vector<1x1x64xf32> to vector<4x4x64xf32>
    %112 = arith.mulf %110, %111 : vector<4x4x64xf32>
    %113 = arith.addf %102, %112 : vector<4x4x64xf32>
    %114 = vector.extract_strided_slice %91 {offsets = [2, 0, 0], sizes = [4, 4, 32], strides = [1, 1, 1]} : vector<10x4x32xf32> to vector<4x4x32xf32>
    %115 = arith.mulf %3, %114 : vector<4x4x32xf32>
    %cst_23 = arith.constant dense<0.000000e+00> : vector<4x4xf32>
    %116 = vector.multi_reduction <add>, %115, %cst_23 [2] : vector<4x4x32xf32> to vector<4x4xf32>
    %117 = vector.shape_cast %116 : vector<4x4xf32> to vector<4x4x1xf32>
    %118 = vector.extract_strided_slice %4 {offsets = [15, 0, 0], sizes = [1, 1, 64], strides = [1, 1, 1]} : vector<64x1x64xf32> to vector<1x1x64xf32>
    %119 = vector.shape_cast %118 : vector<1x1x64xf32> to vector<1x64xf32>
    %120 = vector.shape_cast %119 : vector<1x64xf32> to vector<1x1x64xf32>
    %121 = vector.broadcast %117 : vector<4x4x1xf32> to vector<4x4x64xf32>
    %122 = vector.broadcast %120 : vector<1x1x64xf32> to vector<4x4x64xf32>
    %123 = arith.mulf %121, %122 : vector<4x4x64xf32>
    %124 = arith.addf %113, %123 : vector<4x4x64xf32>
    %125 = vector.extract_strided_slice %91 {offsets = [3, 0, 0], sizes = [4, 4, 32], strides = [1, 1, 1]} : vector<10x4x32xf32> to vector<4x4x32xf32>
    %126 = arith.mulf %3, %125 : vector<4x4x32xf32>
    %cst_24 = arith.constant dense<0.000000e+00> : vector<4x4xf32>
    %127 = vector.multi_reduction <add>, %126, %cst_24 [2] : vector<4x4x32xf32> to vector<4x4xf32>
    %128 = vector.shape_cast %127 : vector<4x4xf32> to vector<4x4x1xf32>
    %129 = vector.extract_strided_slice %4 {offsets = [22, 0, 0], sizes = [1, 1, 64], strides = [1, 1, 1]} : vector<64x1x64xf32> to vector<1x1x64xf32>
    %130 = vector.shape_cast %129 : vector<1x1x64xf32> to vector<1x64xf32>
    %131 = vector.shape_cast %130 : vector<1x64xf32> to vector<1x1x64xf32>
    %132 = vector.broadcast %128 : vector<4x4x1xf32> to vector<4x4x64xf32>
    %133 = vector.broadcast %131 : vector<1x1x64xf32> to vector<4x4x64xf32>
    %134 = arith.mulf %132, %133 : vector<4x4x64xf32>
    %135 = arith.addf %124, %134 : vector<4x4x64xf32>
    %136 = vector.extract_strided_slice %91 {offsets = [4, 0, 0], sizes = [4, 4, 32], strides = [1, 1, 1]} : vector<10x4x32xf32> to vector<4x4x32xf32>
    %137 = arith.mulf %3, %136 : vector<4x4x32xf32>
    %cst_25 = arith.constant dense<0.000000e+00> : vector<4x4xf32>
    %138 = vector.multi_reduction <add>, %137, %cst_25 [2] : vector<4x4x32xf32> to vector<4x4xf32>
    %139 = vector.shape_cast %138 : vector<4x4xf32> to vector<4x4x1xf32>
    %140 = vector.extract_strided_slice %4 {offsets = [29, 0, 0], sizes = [1, 1, 64], strides = [1, 1, 1]} : vector<64x1x64xf32> to vector<1x1x64xf32>
    %141 = vector.shape_cast %140 : vector<1x1x64xf32> to vector<1x64xf32>
    %142 = vector.shape_cast %141 : vector<1x64xf32> to vector<1x1x64xf32>
    %143 = vector.broadcast %139 : vector<4x4x1xf32> to vector<4x4x64xf32>
    %144 = vector.broadcast %142 : vector<1x1x64xf32> to vector<4x4x64xf32>
    %145 = arith.mulf %143, %144 : vector<4x4x64xf32>
    %146 = arith.addf %135, %145 : vector<4x4x64xf32>
    %147 = vector.extract_strided_slice %91 {offsets = [5, 0, 0], sizes = [4, 4, 32], strides = [1, 1, 1]} : vector<10x4x32xf32> to vector<4x4x32xf32>
    %148 = arith.mulf %3, %147 : vector<4x4x32xf32>
    %cst_26 = arith.constant dense<0.000000e+00> : vector<4x4xf32>
    %149 = vector.multi_reduction <add>, %148, %cst_26 [2] : vector<4x4x32xf32> to vector<4x4xf32>
    %150 = vector.shape_cast %149 : vector<4x4xf32> to vector<4x4x1xf32>
    %151 = vector.extract_strided_slice %4 {offsets = [36, 0, 0], sizes = [1, 1, 64], strides = [1, 1, 1]} : vector<64x1x64xf32> to vector<1x1x64xf32>
    %152 = vector.shape_cast %151 : vector<1x1x64xf32> to vector<1x64xf32>
    %153 = vector.shape_cast %152 : vector<1x64xf32> to vector<1x1x64xf32>
    %154 = vector.broadcast %150 : vector<4x4x1xf32> to vector<4x4x64xf32>
    %155 = vector.broadcast %153 : vector<1x1x64xf32> to vector<4x4x64xf32>
    %156 = arith.mulf %154, %155 : vector<4x4x64xf32>
    %157 = arith.addf %146, %156 : vector<4x4x64xf32>
    %158 = vector.extract_strided_slice %91 {offsets = [6, 0, 0], sizes = [4, 4, 32], strides = [1, 1, 1]} : vector<10x4x32xf32> to vector<4x4x32xf32>
    %159 = arith.mulf %3, %158 : vector<4x4x32xf32>
    %cst_27 = arith.constant dense<0.000000e+00> : vector<4x4xf32>
    %160 = vector.multi_reduction <add>, %159, %cst_27 [2] : vector<4x4x32xf32> to vector<4x4xf32>
    %161 = vector.shape_cast %160 : vector<4x4xf32> to vector<4x4x1xf32>
    %162 = vector.extract_strided_slice %4 {offsets = [43, 0, 0], sizes = [1, 1, 64], strides = [1, 1, 1]} : vector<64x1x64xf32> to vector<1x1x64xf32>
    %163 = vector.shape_cast %162 : vector<1x1x64xf32> to vector<1x64xf32>
    %164 = vector.shape_cast %163 : vector<1x64xf32> to vector<1x1x64xf32>
    %165 = vector.broadcast %161 : vector<4x4x1xf32> to vector<4x4x64xf32>
    %166 = vector.broadcast %164 : vector<1x1x64xf32> to vector<4x4x64xf32>
    %167 = arith.mulf %165, %166 : vector<4x4x64xf32>
    %168 = arith.addf %157, %167 : vector<4x4x64xf32>
    %c0_28 = arith.constant 0 : index
    %169 = arith.index_cast %0 : i32 to index
    %c2 = arith.constant 2 : index
    %c0_29 = arith.constant 0 : index
    %170 = vector.load %arg3[%c0_28, %169, %c2, %c0_29] : memref<1x10x10x32xbf16, #tpu.memory_space<vmem>>, vector<1x10x4x32xbf16>
    %171 = vector.shape_cast %170 : vector<1x10x4x32xbf16> to vector<10x4x32xbf16>
    %172 = arith.extf %171 : vector<10x4x32xbf16> to vector<10x4x32xf32>
    %173 = vector.extract_strided_slice %172 {offsets = [0, 0, 0], sizes = [4, 4, 32], strides = [1, 1, 1]} : vector<10x4x32xf32> to vector<4x4x32xf32>
    %174 = arith.mulf %3, %173 : vector<4x4x32xf32>
    %cst_30 = arith.constant dense<0.000000e+00> : vector<4x4xf32>
    %175 = vector.multi_reduction <add>, %174, %cst_30 [2] : vector<4x4x32xf32> to vector<4x4xf32>
    %176 = vector.shape_cast %175 : vector<4x4xf32> to vector<4x4x1xf32>
    %177 = vector.extract_strided_slice %4 {offsets = [2, 0, 0], sizes = [1, 1, 64], strides = [1, 1, 1]} : vector<64x1x64xf32> to vector<1x1x64xf32>
    %178 = vector.shape_cast %177 : vector<1x1x64xf32> to vector<1x64xf32>
    %179 = vector.shape_cast %178 : vector<1x64xf32> to vector<1x1x64xf32>
    %180 = vector.broadcast %176 : vector<4x4x1xf32> to vector<4x4x64xf32>
    %181 = vector.broadcast %179 : vector<1x1x64xf32> to vector<4x4x64xf32>
    %182 = arith.mulf %180, %181 : vector<4x4x64xf32>
    %183 = arith.addf %168, %182 : vector<4x4x64xf32>
    %184 = vector.extract_strided_slice %172 {offsets = [1, 0, 0], sizes = [4, 4, 32], strides = [1, 1, 1]} : vector<10x4x32xf32> to vector<4x4x32xf32>
    %185 = arith.mulf %3, %184 : vector<4x4x32xf32>
    %cst_31 = arith.constant dense<0.000000e+00> : vector<4x4xf32>
    %186 = vector.multi_reduction <add>, %185, %cst_31 [2] : vector<4x4x32xf32> to vector<4x4xf32>
    %187 = vector.shape_cast %186 : vector<4x4xf32> to vector<4x4x1xf32>
    %188 = vector.extract_strided_slice %4 {offsets = [9, 0, 0], sizes = [1, 1, 64], strides = [1, 1, 1]} : vector<64x1x64xf32> to vector<1x1x64xf32>
    %189 = vector.shape_cast %188 : vector<1x1x64xf32> to vector<1x64xf32>
    %190 = vector.shape_cast %189 : vector<1x64xf32> to vector<1x1x64xf32>
    %191 = vector.broadcast %187 : vector<4x4x1xf32> to vector<4x4x64xf32>
    %192 = vector.broadcast %190 : vector<1x1x64xf32> to vector<4x4x64xf32>
    %193 = arith.mulf %191, %192 : vector<4x4x64xf32>
    %194 = arith.addf %183, %193 : vector<4x4x64xf32>
    %195 = vector.extract_strided_slice %172 {offsets = [2, 0, 0], sizes = [4, 4, 32], strides = [1, 1, 1]} : vector<10x4x32xf32> to vector<4x4x32xf32>
    %196 = arith.mulf %3, %195 : vector<4x4x32xf32>
    %cst_32 = arith.constant dense<0.000000e+00> : vector<4x4xf32>
    %197 = vector.multi_reduction <add>, %196, %cst_32 [2] : vector<4x4x32xf32> to vector<4x4xf32>
    %198 = vector.shape_cast %197 : vector<4x4xf32> to vector<4x4x1xf32>
    %199 = vector.extract_strided_slice %4 {offsets = [16, 0, 0], sizes = [1, 1, 64], strides = [1, 1, 1]} : vector<64x1x64xf32> to vector<1x1x64xf32>
    %200 = vector.shape_cast %199 : vector<1x1x64xf32> to vector<1x64xf32>
    %201 = vector.shape_cast %200 : vector<1x64xf32> to vector<1x1x64xf32>
    %202 = vector.broadcast %198 : vector<4x4x1xf32> to vector<4x4x64xf32>
    %203 = vector.broadcast %201 : vector<1x1x64xf32> to vector<4x4x64xf32>
    %204 = arith.mulf %202, %203 : vector<4x4x64xf32>
    %205 = arith.addf %194, %204 : vector<4x4x64xf32>
    %206 = vector.extract_strided_slice %172 {offsets = [3, 0, 0], sizes = [4, 4, 32], strides = [1, 1, 1]} : vector<10x4x32xf32> to vector<4x4x32xf32>
    %207 = arith.mulf %3, %206 : vector<4x4x32xf32>
    %cst_33 = arith.constant dense<0.000000e+00> : vector<4x4xf32>
    %208 = vector.multi_reduction <add>, %207, %cst_33 [2] : vector<4x4x32xf32> to vector<4x4xf32>
    %209 = vector.shape_cast %208 : vector<4x4xf32> to vector<4x4x1xf32>
    %210 = vector.extract_strided_slice %4 {offsets = [23, 0, 0], sizes = [1, 1, 64], strides = [1, 1, 1]} : vector<64x1x64xf32> to vector<1x1x64xf32>
    %211 = vector.shape_cast %210 : vector<1x1x64xf32> to vector<1x64xf32>
    %212 = vector.shape_cast %211 : vector<1x64xf32> to vector<1x1x64xf32>
    %213 = vector.broadcast %209 : vector<4x4x1xf32> to vector<4x4x64xf32>
    %214 = vector.broadcast %212 : vector<1x1x64xf32> to vector<4x4x64xf32>
    %215 = arith.mulf %213, %214 : vector<4x4x64xf32>
    %216 = arith.addf %205, %215 : vector<4x4x64xf32>
    %217 = vector.extract_strided_slice %172 {offsets = [4, 0, 0], sizes = [4, 4, 32], strides = [1, 1, 1]} : vector<10x4x32xf32> to vector<4x4x32xf32>
    %218 = arith.mulf %3, %217 : vector<4x4x32xf32>
    %cst_34 = arith.constant dense<0.000000e+00> : vector<4x4xf32>
    %219 = vector.multi_reduction <add>, %218, %cst_34 [2] : vector<4x4x32xf32> to vector<4x4xf32>
    %220 = vector.shape_cast %219 : vector<4x4xf32> to vector<4x4x1xf32>
    %221 = vector.extract_strided_slice %4 {offsets = [30, 0, 0], sizes = [1, 1, 64], strides = [1, 1, 1]} : vector<64x1x64xf32> to vector<1x1x64xf32>
    %222 = vector.shape_cast %221 : vector<1x1x64xf32> to vector<1x64xf32>
    %223 = vector.shape_cast %222 : vector<1x64xf32> to vector<1x1x64xf32>
    %224 = vector.broadcast %220 : vector<4x4x1xf32> to vector<4x4x64xf32>
    %225 = vector.broadcast %223 : vector<1x1x64xf32> to vector<4x4x64xf32>
    %226 = arith.mulf %224, %225 : vector<4x4x64xf32>
    %227 = arith.addf %216, %226 : vector<4x4x64xf32>
    %228 = vector.extract_strided_slice %172 {offsets = [5, 0, 0], sizes = [4, 4, 32], strides = [1, 1, 1]} : vector<10x4x32xf32> to vector<4x4x32xf32>
    %229 = arith.mulf %3, %228 : vector<4x4x32xf32>
    %cst_35 = arith.constant dense<0.000000e+00> : vector<4x4xf32>
    %230 = vector.multi_reduction <add>, %229, %cst_35 [2] : vector<4x4x32xf32> to vector<4x4xf32>
    %231 = vector.shape_cast %230 : vector<4x4xf32> to vector<4x4x1xf32>
    %232 = vector.extract_strided_slice %4 {offsets = [37, 0, 0], sizes = [1, 1, 64], strides = [1, 1, 1]} : vector<64x1x64xf32> to vector<1x1x64xf32>
    %233 = vector.shape_cast %232 : vector<1x1x64xf32> to vector<1x64xf32>
    %234 = vector.shape_cast %233 : vector<1x64xf32> to vector<1x1x64xf32>
    %235 = vector.broadcast %231 : vector<4x4x1xf32> to vector<4x4x64xf32>
    %236 = vector.broadcast %234 : vector<1x1x64xf32> to vector<4x4x64xf32>
    %237 = arith.mulf %235, %236 : vector<4x4x64xf32>
    %238 = arith.addf %227, %237 : vector<4x4x64xf32>
    %239 = vector.extract_strided_slice %172 {offsets = [6, 0, 0], sizes = [4, 4, 32], strides = [1, 1, 1]} : vector<10x4x32xf32> to vector<4x4x32xf32>
    %240 = arith.mulf %3, %239 : vector<4x4x32xf32>
    %cst_36 = arith.constant dense<0.000000e+00> : vector<4x4xf32>
    %241 = vector.multi_reduction <add>, %240, %cst_36 [2] : vector<4x4x32xf32> to vector<4x4xf32>
    %242 = vector.shape_cast %241 : vector<4x4xf32> to vector<4x4x1xf32>
    %243 = vector.extract_strided_slice %4 {offsets = [44, 0, 0], sizes = [1, 1, 64], strides = [1, 1, 1]} : vector<64x1x64xf32> to vector<1x1x64xf32>
    %244 = vector.shape_cast %243 : vector<1x1x64xf32> to vector<1x64xf32>
    %245 = vector.shape_cast %244 : vector<1x64xf32> to vector<1x1x64xf32>
    %246 = vector.broadcast %242 : vector<4x4x1xf32> to vector<4x4x64xf32>
    %247 = vector.broadcast %245 : vector<1x1x64xf32> to vector<4x4x64xf32>
    %248 = arith.mulf %246, %247 : vector<4x4x64xf32>
    %249 = arith.addf %238, %248 : vector<4x4x64xf32>
    %c0_37 = arith.constant 0 : index
    %250 = arith.index_cast %0 : i32 to index
    %c3 = arith.constant 3 : index
    %c0_38 = arith.constant 0 : index
    %251 = vector.load %arg3[%c0_37, %250, %c3, %c0_38] : memref<1x10x10x32xbf16, #tpu.memory_space<vmem>>, vector<1x10x4x32xbf16>
    %252 = vector.shape_cast %251 : vector<1x10x4x32xbf16> to vector<10x4x32xbf16>
    %253 = arith.extf %252 : vector<10x4x32xbf16> to vector<10x4x32xf32>
    %254 = vector.extract_strided_slice %253 {offsets = [0, 0, 0], sizes = [4, 4, 32], strides = [1, 1, 1]} : vector<10x4x32xf32> to vector<4x4x32xf32>
    %255 = arith.mulf %3, %254 : vector<4x4x32xf32>
    %cst_39 = arith.constant dense<0.000000e+00> : vector<4x4xf32>
    %256 = vector.multi_reduction <add>, %255, %cst_39 [2] : vector<4x4x32xf32> to vector<4x4xf32>
    %257 = vector.shape_cast %256 : vector<4x4xf32> to vector<4x4x1xf32>
    %258 = vector.extract_strided_slice %4 {offsets = [3, 0, 0], sizes = [1, 1, 64], strides = [1, 1, 1]} : vector<64x1x64xf32> to vector<1x1x64xf32>
    %259 = vector.shape_cast %258 : vector<1x1x64xf32> to vector<1x64xf32>
    %260 = vector.shape_cast %259 : vector<1x64xf32> to vector<1x1x64xf32>
    %261 = vector.broadcast %257 : vector<4x4x1xf32> to vector<4x4x64xf32>
    %262 = vector.broadcast %260 : vector<1x1x64xf32> to vector<4x4x64xf32>
    %263 = arith.mulf %261, %262 : vector<4x4x64xf32>
    %264 = arith.addf %249, %263 : vector<4x4x64xf32>
    %265 = vector.extract_strided_slice %253 {offsets = [1, 0, 0], sizes = [4, 4, 32], strides = [1, 1, 1]} : vector<10x4x32xf32> to vector<4x4x32xf32>
    %266 = arith.mulf %3, %265 : vector<4x4x32xf32>
    %cst_40 = arith.constant dense<0.000000e+00> : vector<4x4xf32>
    %267 = vector.multi_reduction <add>, %266, %cst_40 [2] : vector<4x4x32xf32> to vector<4x4xf32>
    %268 = vector.shape_cast %267 : vector<4x4xf32> to vector<4x4x1xf32>
    %269 = vector.extract_strided_slice %4 {offsets = [10, 0, 0], sizes = [1, 1, 64], strides = [1, 1, 1]} : vector<64x1x64xf32> to vector<1x1x64xf32>
    %270 = vector.shape_cast %269 : vector<1x1x64xf32> to vector<1x64xf32>
    %271 = vector.shape_cast %270 : vector<1x64xf32> to vector<1x1x64xf32>
    %272 = vector.broadcast %268 : vector<4x4x1xf32> to vector<4x4x64xf32>
    %273 = vector.broadcast %271 : vector<1x1x64xf32> to vector<4x4x64xf32>
    %274 = arith.mulf %272, %273 : vector<4x4x64xf32>
    %275 = arith.addf %264, %274 : vector<4x4x64xf32>
    %276 = vector.extract_strided_slice %253 {offsets = [2, 0, 0], sizes = [4, 4, 32], strides = [1, 1, 1]} : vector<10x4x32xf32> to vector<4x4x32xf32>
    %277 = arith.mulf %3, %276 : vector<4x4x32xf32>
    %cst_41 = arith.constant dense<0.000000e+00> : vector<4x4xf32>
    %278 = vector.multi_reduction <add>, %277, %cst_41 [2] : vector<4x4x32xf32> to vector<4x4xf32>
    %279 = vector.shape_cast %278 : vector<4x4xf32> to vector<4x4x1xf32>
    %280 = vector.extract_strided_slice %4 {offsets = [17, 0, 0], sizes = [1, 1, 64], strides = [1, 1, 1]} : vector<64x1x64xf32> to vector<1x1x64xf32>
    %281 = vector.shape_cast %280 : vector<1x1x64xf32> to vector<1x64xf32>
    %282 = vector.shape_cast %281 : vector<1x64xf32> to vector<1x1x64xf32>
    %283 = vector.broadcast %279 : vector<4x4x1xf32> to vector<4x4x64xf32>
    %284 = vector.broadcast %282 : vector<1x1x64xf32> to vector<4x4x64xf32>
    %285 = arith.mulf %283, %284 : vector<4x4x64xf32>
    %286 = arith.addf %275, %285 : vector<4x4x64xf32>
    %287 = vector.extract_strided_slice %253 {offsets = [3, 0, 0], sizes = [4, 4, 32], strides = [1, 1, 1]} : vector<10x4x32xf32> to vector<4x4x32xf32>
    %288 = arith.mulf %3, %287 : vector<4x4x32xf32>
    %cst_42 = arith.constant dense<0.000000e+00> : vector<4x4xf32>
    %289 = vector.multi_reduction <add>, %288, %cst_42 [2] : vector<4x4x32xf32> to vector<4x4xf32>
    %290 = vector.shape_cast %289 : vector<4x4xf32> to vector<4x4x1xf32>
    %291 = vector.extract_strided_slice %4 {offsets = [24, 0, 0], sizes = [1, 1, 64], strides = [1, 1, 1]} : vector<64x1x64xf32> to vector<1x1x64xf32>
    %292 = vector.shape_cast %291 : vector<1x1x64xf32> to vector<1x64xf32>
    %293 = vector.shape_cast %292 : vector<1x64xf32> to vector<1x1x64xf32>
    %294 = vector.broadcast %290 : vector<4x4x1xf32> to vector<4x4x64xf32>
    %295 = vector.broadcast %293 : vector<1x1x64xf32> to vector<4x4x64xf32>
    %296 = arith.mulf %294, %295 : vector<4x4x64xf32>
    %297 = arith.addf %286, %296 : vector<4x4x64xf32>
    %298 = vector.extract_strided_slice %253 {offsets = [4, 0, 0], sizes = [4, 4, 32], strides = [1, 1, 1]} : vector<10x4x32xf32> to vector<4x4x32xf32>
    %299 = arith.mulf %3, %298 : vector<4x4x32xf32>
    %cst_43 = arith.constant dense<0.000000e+00> : vector<4x4xf32>
    %300 = vector.multi_reduction <add>, %299, %cst_43 [2] : vector<4x4x32xf32> to vector<4x4xf32>
    %301 = vector.shape_cast %300 : vector<4x4xf32> to vector<4x4x1xf32>
    %302 = vector.extract_strided_slice %4 {offsets = [31, 0, 0], sizes = [1, 1, 64], strides = [1, 1, 1]} : vector<64x1x64xf32> to vector<1x1x64xf32>
    %303 = vector.shape_cast %302 : vector<1x1x64xf32> to vector<1x64xf32>
    %304 = vector.shape_cast %303 : vector<1x64xf32> to vector<1x1x64xf32>
    %305 = vector.broadcast %301 : vector<4x4x1xf32> to vector<4x4x64xf32>
    %306 = vector.broadcast %304 : vector<1x1x64xf32> to vector<4x4x64xf32>
    %307 = arith.mulf %305, %306 : vector<4x4x64xf32>
    %308 = arith.addf %297, %307 : vector<4x4x64xf32>
    %309 = vector.extract_strided_slice %253 {offsets = [5, 0, 0], sizes = [4, 4, 32], strides = [1, 1, 1]} : vector<10x4x32xf32> to vector<4x4x32xf32>
    %310 = arith.mulf %3, %309 : vector<4x4x32xf32>
    %cst_44 = arith.constant dense<0.000000e+00> : vector<4x4xf32>
    %311 = vector.multi_reduction <add>, %310, %cst_44 [2] : vector<4x4x32xf32> to vector<4x4xf32>
    %312 = vector.shape_cast %311 : vector<4x4xf32> to vector<4x4x1xf32>
    %313 = vector.extract_strided_slice %4 {offsets = [38, 0, 0], sizes = [1, 1, 64], strides = [1, 1, 1]} : vector<64x1x64xf32> to vector<1x1x64xf32>
    %314 = vector.shape_cast %313 : vector<1x1x64xf32> to vector<1x64xf32>
    %315 = vector.shape_cast %314 : vector<1x64xf32> to vector<1x1x64xf32>
    %316 = vector.broadcast %312 : vector<4x4x1xf32> to vector<4x4x64xf32>
    %317 = vector.broadcast %315 : vector<1x1x64xf32> to vector<4x4x64xf32>
    %318 = arith.mulf %316, %317 : vector<4x4x64xf32>
    %319 = arith.addf %308, %318 : vector<4x4x64xf32>
    %320 = vector.extract_strided_slice %253 {offsets = [6, 0, 0], sizes = [4, 4, 32], strides = [1, 1, 1]} : vector<10x4x32xf32> to vector<4x4x32xf32>
    %321 = arith.mulf %3, %320 : vector<4x4x32xf32>
    %cst_45 = arith.constant dense<0.000000e+00> : vector<4x4xf32>
    %322 = vector.multi_reduction <add>, %321, %cst_45 [2] : vector<4x4x32xf32> to vector<4x4xf32>
    %323 = vector.shape_cast %322 : vector<4x4xf32> to vector<4x4x1xf32>
    %324 = vector.extract_strided_slice %4 {offsets = [45, 0, 0], sizes = [1, 1, 64], strides = [1, 1, 1]} : vector<64x1x64xf32> to vector<1x1x64xf32>
    %325 = vector.shape_cast %324 : vector<1x1x64xf32> to vector<1x64xf32>
    %326 = vector.shape_cast %325 : vector<1x64xf32> to vector<1x1x64xf32>
    %327 = vector.broadcast %323 : vector<4x4x1xf32> to vector<4x4x64xf32>
    %328 = vector.broadcast %326 : vector<1x1x64xf32> to vector<4x4x64xf32>
    %329 = arith.mulf %327, %328 : vector<4x4x64xf32>
    %330 = arith.addf %319, %329 : vector<4x4x64xf32>
    %c0_46 = arith.constant 0 : index
    %331 = arith.index_cast %0 : i32 to index
    %c4 = arith.constant 4 : index
    %c0_47 = arith.constant 0 : index
    %332 = vector.load %arg3[%c0_46, %331, %c4, %c0_47] : memref<1x10x10x32xbf16, #tpu.memory_space<vmem>>, vector<1x10x4x32xbf16>
    %333 = vector.shape_cast %332 : vector<1x10x4x32xbf16> to vector<10x4x32xbf16>
    %334 = arith.extf %333 : vector<10x4x32xbf16> to vector<10x4x32xf32>
    %335 = vector.extract_strided_slice %334 {offsets = [0, 0, 0], sizes = [4, 4, 32], strides = [1, 1, 1]} : vector<10x4x32xf32> to vector<4x4x32xf32>
    %336 = arith.mulf %3, %335 : vector<4x4x32xf32>
    %cst_48 = arith.constant dense<0.000000e+00> : vector<4x4xf32>
    %337 = vector.multi_reduction <add>, %336, %cst_48 [2] : vector<4x4x32xf32> to vector<4x4xf32>
    %338 = vector.shape_cast %337 : vector<4x4xf32> to vector<4x4x1xf32>
    %339 = vector.extract_strided_slice %4 {offsets = [4, 0, 0], sizes = [1, 1, 64], strides = [1, 1, 1]} : vector<64x1x64xf32> to vector<1x1x64xf32>
    %340 = vector.shape_cast %339 : vector<1x1x64xf32> to vector<1x64xf32>
    %341 = vector.shape_cast %340 : vector<1x64xf32> to vector<1x1x64xf32>
    %342 = vector.broadcast %338 : vector<4x4x1xf32> to vector<4x4x64xf32>
    %343 = vector.broadcast %341 : vector<1x1x64xf32> to vector<4x4x64xf32>
    %344 = arith.mulf %342, %343 : vector<4x4x64xf32>
    %345 = arith.addf %330, %344 : vector<4x4x64xf32>
    %346 = vector.extract_strided_slice %334 {offsets = [1, 0, 0], sizes = [4, 4, 32], strides = [1, 1, 1]} : vector<10x4x32xf32> to vector<4x4x32xf32>
    %347 = arith.mulf %3, %346 : vector<4x4x32xf32>
    %cst_49 = arith.constant dense<0.000000e+00> : vector<4x4xf32>
    %348 = vector.multi_reduction <add>, %347, %cst_49 [2] : vector<4x4x32xf32> to vector<4x4xf32>
    %349 = vector.shape_cast %348 : vector<4x4xf32> to vector<4x4x1xf32>
    %350 = vector.extract_strided_slice %4 {offsets = [11, 0, 0], sizes = [1, 1, 64], strides = [1, 1, 1]} : vector<64x1x64xf32> to vector<1x1x64xf32>
    %351 = vector.shape_cast %350 : vector<1x1x64xf32> to vector<1x64xf32>
    %352 = vector.shape_cast %351 : vector<1x64xf32> to vector<1x1x64xf32>
    %353 = vector.broadcast %349 : vector<4x4x1xf32> to vector<4x4x64xf32>
    %354 = vector.broadcast %352 : vector<1x1x64xf32> to vector<4x4x64xf32>
    %355 = arith.mulf %353, %354 : vector<4x4x64xf32>
    %356 = arith.addf %345, %355 : vector<4x4x64xf32>
    %357 = vector.extract_strided_slice %334 {offsets = [2, 0, 0], sizes = [4, 4, 32], strides = [1, 1, 1]} : vector<10x4x32xf32> to vector<4x4x32xf32>
    %358 = arith.mulf %3, %357 : vector<4x4x32xf32>
    %cst_50 = arith.constant dense<0.000000e+00> : vector<4x4xf32>
    %359 = vector.multi_reduction <add>, %358, %cst_50 [2] : vector<4x4x32xf32> to vector<4x4xf32>
    %360 = vector.shape_cast %359 : vector<4x4xf32> to vector<4x4x1xf32>
    %361 = vector.extract_strided_slice %4 {offsets = [18, 0, 0], sizes = [1, 1, 64], strides = [1, 1, 1]} : vector<64x1x64xf32> to vector<1x1x64xf32>
    %362 = vector.shape_cast %361 : vector<1x1x64xf32> to vector<1x64xf32>
    %363 = vector.shape_cast %362 : vector<1x64xf32> to vector<1x1x64xf32>
    %364 = vector.broadcast %360 : vector<4x4x1xf32> to vector<4x4x64xf32>
    %365 = vector.broadcast %363 : vector<1x1x64xf32> to vector<4x4x64xf32>
    %366 = arith.mulf %364, %365 : vector<4x4x64xf32>
    %367 = arith.addf %356, %366 : vector<4x4x64xf32>
    %368 = vector.extract_strided_slice %334 {offsets = [3, 0, 0], sizes = [4, 4, 32], strides = [1, 1, 1]} : vector<10x4x32xf32> to vector<4x4x32xf32>
    %369 = arith.mulf %3, %368 : vector<4x4x32xf32>
    %cst_51 = arith.constant dense<0.000000e+00> : vector<4x4xf32>
    %370 = vector.multi_reduction <add>, %369, %cst_51 [2] : vector<4x4x32xf32> to vector<4x4xf32>
    %371 = vector.shape_cast %370 : vector<4x4xf32> to vector<4x4x1xf32>
    %372 = vector.extract_strided_slice %4 {offsets = [25, 0, 0], sizes = [1, 1, 64], strides = [1, 1, 1]} : vector<64x1x64xf32> to vector<1x1x64xf32>
    %373 = vector.shape_cast %372 : vector<1x1x64xf32> to vector<1x64xf32>
    %374 = vector.shape_cast %373 : vector<1x64xf32> to vector<1x1x64xf32>
    %375 = vector.broadcast %371 : vector<4x4x1xf32> to vector<4x4x64xf32>
    %376 = vector.broadcast %374 : vector<1x1x64xf32> to vector<4x4x64xf32>
    %377 = arith.mulf %375, %376 : vector<4x4x64xf32>
    %378 = arith.addf %367, %377 : vector<4x4x64xf32>
    %379 = vector.extract_strided_slice %334 {offsets = [4, 0, 0], sizes = [4, 4, 32], strides = [1, 1, 1]} : vector<10x4x32xf32> to vector<4x4x32xf32>
    %380 = arith.mulf %3, %379 : vector<4x4x32xf32>
    %cst_52 = arith.constant dense<0.000000e+00> : vector<4x4xf32>
    %381 = vector.multi_reduction <add>, %380, %cst_52 [2] : vector<4x4x32xf32> to vector<4x4xf32>
    %382 = vector.shape_cast %381 : vector<4x4xf32> to vector<4x4x1xf32>
    %383 = vector.extract_strided_slice %4 {offsets = [32, 0, 0], sizes = [1, 1, 64], strides = [1, 1, 1]} : vector<64x1x64xf32> to vector<1x1x64xf32>
    %384 = vector.shape_cast %383 : vector<1x1x64xf32> to vector<1x64xf32>
    %385 = vector.shape_cast %384 : vector<1x64xf32> to vector<1x1x64xf32>
    %386 = vector.broadcast %382 : vector<4x4x1xf32> to vector<4x4x64xf32>
    %387 = vector.broadcast %385 : vector<1x1x64xf32> to vector<4x4x64xf32>
    %388 = arith.mulf %386, %387 : vector<4x4x64xf32>
    %389 = arith.addf %378, %388 : vector<4x4x64xf32>
    %390 = vector.extract_strided_slice %334 {offsets = [5, 0, 0], sizes = [4, 4, 32], strides = [1, 1, 1]} : vector<10x4x32xf32> to vector<4x4x32xf32>
    %391 = arith.mulf %3, %390 : vector<4x4x32xf32>
    %cst_53 = arith.constant dense<0.000000e+00> : vector<4x4xf32>
    %392 = vector.multi_reduction <add>, %391, %cst_53 [2] : vector<4x4x32xf32> to vector<4x4xf32>
    %393 = vector.shape_cast %392 : vector<4x4xf32> to vector<4x4x1xf32>
    %394 = vector.extract_strided_slice %4 {offsets = [39, 0, 0], sizes = [1, 1, 64], strides = [1, 1, 1]} : vector<64x1x64xf32> to vector<1x1x64xf32>
    %395 = vector.shape_cast %394 : vector<1x1x64xf32> to vector<1x64xf32>
    %396 = vector.shape_cast %395 : vector<1x64xf32> to vector<1x1x64xf32>
    %397 = vector.broadcast %393 : vector<4x4x1xf32> to vector<4x4x64xf32>
    %398 = vector.broadcast %396 : vector<1x1x64xf32> to vector<4x4x64xf32>
    %399 = arith.mulf %397, %398 : vector<4x4x64xf32>
    %400 = arith.addf %389, %399 : vector<4x4x64xf32>
    %401 = vector.extract_strided_slice %334 {offsets = [6, 0, 0], sizes = [4, 4, 32], strides = [1, 1, 1]} : vector<10x4x32xf32> to vector<4x4x32xf32>
    %402 = arith.mulf %3, %401 : vector<4x4x32xf32>
    %cst_54 = arith.constant dense<0.000000e+00> : vector<4x4xf32>
    %403 = vector.multi_reduction <add>, %402, %cst_54 [2] : vector<4x4x32xf32> to vector<4x4xf32>
    %404 = vector.shape_cast %403 : vector<4x4xf32> to vector<4x4x1xf32>
    %405 = vector.extract_strided_slice %4 {offsets = [46, 0, 0], sizes = [1, 1, 64], strides = [1, 1, 1]} : vector<64x1x64xf32> to vector<1x1x64xf32>
    %406 = vector.shape_cast %405 : vector<1x1x64xf32> to vector<1x64xf32>
    %407 = vector.shape_cast %406 : vector<1x64xf32> to vector<1x1x64xf32>
    %408 = vector.broadcast %404 : vector<4x4x1xf32> to vector<4x4x64xf32>
    %409 = vector.broadcast %407 : vector<1x1x64xf32> to vector<4x4x64xf32>
    %410 = arith.mulf %408, %409 : vector<4x4x64xf32>
    %411 = arith.addf %400, %410 : vector<4x4x64xf32>
    %c0_55 = arith.constant 0 : index
    %412 = arith.index_cast %0 : i32 to index
    %c5 = arith.constant 5 : index
    %c0_56 = arith.constant 0 : index
    %413 = vector.load %arg3[%c0_55, %412, %c5, %c0_56] : memref<1x10x10x32xbf16, #tpu.memory_space<vmem>>, vector<1x10x4x32xbf16>
    %414 = vector.shape_cast %413 : vector<1x10x4x32xbf16> to vector<10x4x32xbf16>
    %415 = arith.extf %414 : vector<10x4x32xbf16> to vector<10x4x32xf32>
    %416 = vector.extract_strided_slice %415 {offsets = [0, 0, 0], sizes = [4, 4, 32], strides = [1, 1, 1]} : vector<10x4x32xf32> to vector<4x4x32xf32>
    %417 = arith.mulf %3, %416 : vector<4x4x32xf32>
    %cst_57 = arith.constant dense<0.000000e+00> : vector<4x4xf32>
    %418 = vector.multi_reduction <add>, %417, %cst_57 [2] : vector<4x4x32xf32> to vector<4x4xf32>
    %419 = vector.shape_cast %418 : vector<4x4xf32> to vector<4x4x1xf32>
    %420 = vector.extract_strided_slice %4 {offsets = [5, 0, 0], sizes = [1, 1, 64], strides = [1, 1, 1]} : vector<64x1x64xf32> to vector<1x1x64xf32>
    %421 = vector.shape_cast %420 : vector<1x1x64xf32> to vector<1x64xf32>
    %422 = vector.shape_cast %421 : vector<1x64xf32> to vector<1x1x64xf32>
    %423 = vector.broadcast %419 : vector<4x4x1xf32> to vector<4x4x64xf32>
    %424 = vector.broadcast %422 : vector<1x1x64xf32> to vector<4x4x64xf32>
    %425 = arith.mulf %423, %424 : vector<4x4x64xf32>
    %426 = arith.addf %411, %425 : vector<4x4x64xf32>
    %427 = vector.extract_strided_slice %415 {offsets = [1, 0, 0], sizes = [4, 4, 32], strides = [1, 1, 1]} : vector<10x4x32xf32> to vector<4x4x32xf32>
    %428 = arith.mulf %3, %427 : vector<4x4x32xf32>
    %cst_58 = arith.constant dense<0.000000e+00> : vector<4x4xf32>
    %429 = vector.multi_reduction <add>, %428, %cst_58 [2] : vector<4x4x32xf32> to vector<4x4xf32>
    %430 = vector.shape_cast %429 : vector<4x4xf32> to vector<4x4x1xf32>
    %431 = vector.extract_strided_slice %4 {offsets = [12, 0, 0], sizes = [1, 1, 64], strides = [1, 1, 1]} : vector<64x1x64xf32> to vector<1x1x64xf32>
    %432 = vector.shape_cast %431 : vector<1x1x64xf32> to vector<1x64xf32>
    %433 = vector.shape_cast %432 : vector<1x64xf32> to vector<1x1x64xf32>
    %434 = vector.broadcast %430 : vector<4x4x1xf32> to vector<4x4x64xf32>
    %435 = vector.broadcast %433 : vector<1x1x64xf32> to vector<4x4x64xf32>
    %436 = arith.mulf %434, %435 : vector<4x4x64xf32>
    %437 = arith.addf %426, %436 : vector<4x4x64xf32>
    %438 = vector.extract_strided_slice %415 {offsets = [2, 0, 0], sizes = [4, 4, 32], strides = [1, 1, 1]} : vector<10x4x32xf32> to vector<4x4x32xf32>
    %439 = arith.mulf %3, %438 : vector<4x4x32xf32>
    %cst_59 = arith.constant dense<0.000000e+00> : vector<4x4xf32>
    %440 = vector.multi_reduction <add>, %439, %cst_59 [2] : vector<4x4x32xf32> to vector<4x4xf32>
    %441 = vector.shape_cast %440 : vector<4x4xf32> to vector<4x4x1xf32>
    %442 = vector.extract_strided_slice %4 {offsets = [19, 0, 0], sizes = [1, 1, 64], strides = [1, 1, 1]} : vector<64x1x64xf32> to vector<1x1x64xf32>
    %443 = vector.shape_cast %442 : vector<1x1x64xf32> to vector<1x64xf32>
    %444 = vector.shape_cast %443 : vector<1x64xf32> to vector<1x1x64xf32>
    %445 = vector.broadcast %441 : vector<4x4x1xf32> to vector<4x4x64xf32>
    %446 = vector.broadcast %444 : vector<1x1x64xf32> to vector<4x4x64xf32>
    %447 = arith.mulf %445, %446 : vector<4x4x64xf32>
    %448 = arith.addf %437, %447 : vector<4x4x64xf32>
    %449 = vector.extract_strided_slice %415 {offsets = [3, 0, 0], sizes = [4, 4, 32], strides = [1, 1, 1]} : vector<10x4x32xf32> to vector<4x4x32xf32>
    %450 = arith.mulf %3, %449 : vector<4x4x32xf32>
    %cst_60 = arith.constant dense<0.000000e+00> : vector<4x4xf32>
    %451 = vector.multi_reduction <add>, %450, %cst_60 [2] : vector<4x4x32xf32> to vector<4x4xf32>
    %452 = vector.shape_cast %451 : vector<4x4xf32> to vector<4x4x1xf32>
    %453 = vector.extract_strided_slice %4 {offsets = [26, 0, 0], sizes = [1, 1, 64], strides = [1, 1, 1]} : vector<64x1x64xf32> to vector<1x1x64xf32>
    %454 = vector.shape_cast %453 : vector<1x1x64xf32> to vector<1x64xf32>
    %455 = vector.shape_cast %454 : vector<1x64xf32> to vector<1x1x64xf32>
    %456 = vector.broadcast %452 : vector<4x4x1xf32> to vector<4x4x64xf32>
    %457 = vector.broadcast %455 : vector<1x1x64xf32> to vector<4x4x64xf32>
    %458 = arith.mulf %456, %457 : vector<4x4x64xf32>
    %459 = arith.addf %448, %458 : vector<4x4x64xf32>
    %460 = vector.extract_strided_slice %415 {offsets = [4, 0, 0], sizes = [4, 4, 32], strides = [1, 1, 1]} : vector<10x4x32xf32> to vector<4x4x32xf32>
    %461 = arith.mulf %3, %460 : vector<4x4x32xf32>
    %cst_61 = arith.constant dense<0.000000e+00> : vector<4x4xf32>
    %462 = vector.multi_reduction <add>, %461, %cst_61 [2] : vector<4x4x32xf32> to vector<4x4xf32>
    %463 = vector.shape_cast %462 : vector<4x4xf32> to vector<4x4x1xf32>
    %464 = vector.extract_strided_slice %4 {offsets = [33, 0, 0], sizes = [1, 1, 64], strides = [1, 1, 1]} : vector<64x1x64xf32> to vector<1x1x64xf32>
    %465 = vector.shape_cast %464 : vector<1x1x64xf32> to vector<1x64xf32>
    %466 = vector.shape_cast %465 : vector<1x64xf32> to vector<1x1x64xf32>
    %467 = vector.broadcast %463 : vector<4x4x1xf32> to vector<4x4x64xf32>
    %468 = vector.broadcast %466 : vector<1x1x64xf32> to vector<4x4x64xf32>
    %469 = arith.mulf %467, %468 : vector<4x4x64xf32>
    %470 = arith.addf %459, %469 : vector<4x4x64xf32>
    %471 = vector.extract_strided_slice %415 {offsets = [5, 0, 0], sizes = [4, 4, 32], strides = [1, 1, 1]} : vector<10x4x32xf32> to vector<4x4x32xf32>
    %472 = arith.mulf %3, %471 : vector<4x4x32xf32>
    %cst_62 = arith.constant dense<0.000000e+00> : vector<4x4xf32>
    %473 = vector.multi_reduction <add>, %472, %cst_62 [2] : vector<4x4x32xf32> to vector<4x4xf32>
    %474 = vector.shape_cast %473 : vector<4x4xf32> to vector<4x4x1xf32>
    %475 = vector.extract_strided_slice %4 {offsets = [40, 0, 0], sizes = [1, 1, 64], strides = [1, 1, 1]} : vector<64x1x64xf32> to vector<1x1x64xf32>
    %476 = vector.shape_cast %475 : vector<1x1x64xf32> to vector<1x64xf32>
    %477 = vector.shape_cast %476 : vector<1x64xf32> to vector<1x1x64xf32>
    %478 = vector.broadcast %474 : vector<4x4x1xf32> to vector<4x4x64xf32>
    %479 = vector.broadcast %477 : vector<1x1x64xf32> to vector<4x4x64xf32>
    %480 = arith.mulf %478, %479 : vector<4x4x64xf32>
    %481 = arith.addf %470, %480 : vector<4x4x64xf32>
    %482 = vector.extract_strided_slice %415 {offsets = [6, 0, 0], sizes = [4, 4, 32], strides = [1, 1, 1]} : vector<10x4x32xf32> to vector<4x4x32xf32>
    %483 = arith.mulf %3, %482 : vector<4x4x32xf32>
    %cst_63 = arith.constant dense<0.000000e+00> : vector<4x4xf32>
    %484 = vector.multi_reduction <add>, %483, %cst_63 [2] : vector<4x4x32xf32> to vector<4x4xf32>
    %485 = vector.shape_cast %484 : vector<4x4xf32> to vector<4x4x1xf32>
    %486 = vector.extract_strided_slice %4 {offsets = [47, 0, 0], sizes = [1, 1, 64], strides = [1, 1, 1]} : vector<64x1x64xf32> to vector<1x1x64xf32>
    %487 = vector.shape_cast %486 : vector<1x1x64xf32> to vector<1x64xf32>
    %488 = vector.shape_cast %487 : vector<1x64xf32> to vector<1x1x64xf32>
    %489 = vector.broadcast %485 : vector<4x4x1xf32> to vector<4x4x64xf32>
    %490 = vector.broadcast %488 : vector<1x1x64xf32> to vector<4x4x64xf32>
    %491 = arith.mulf %489, %490 : vector<4x4x64xf32>
    %492 = arith.addf %481, %491 : vector<4x4x64xf32>
    %c0_64 = arith.constant 0 : index
    %493 = arith.index_cast %0 : i32 to index
    %c6 = arith.constant 6 : index
    %c0_65 = arith.constant 0 : index
    %494 = vector.load %arg3[%c0_64, %493, %c6, %c0_65] : memref<1x10x10x32xbf16, #tpu.memory_space<vmem>>, vector<1x10x4x32xbf16>
    %495 = vector.shape_cast %494 : vector<1x10x4x32xbf16> to vector<10x4x32xbf16>
    %496 = arith.extf %495 : vector<10x4x32xbf16> to vector<10x4x32xf32>
    %497 = vector.extract_strided_slice %496 {offsets = [0, 0, 0], sizes = [4, 4, 32], strides = [1, 1, 1]} : vector<10x4x32xf32> to vector<4x4x32xf32>
    %498 = arith.mulf %3, %497 : vector<4x4x32xf32>
    %cst_66 = arith.constant dense<0.000000e+00> : vector<4x4xf32>
    %499 = vector.multi_reduction <add>, %498, %cst_66 [2] : vector<4x4x32xf32> to vector<4x4xf32>
    %500 = vector.shape_cast %499 : vector<4x4xf32> to vector<4x4x1xf32>
    %501 = vector.extract_strided_slice %4 {offsets = [6, 0, 0], sizes = [1, 1, 64], strides = [1, 1, 1]} : vector<64x1x64xf32> to vector<1x1x64xf32>
    %502 = vector.shape_cast %501 : vector<1x1x64xf32> to vector<1x64xf32>
    %503 = vector.shape_cast %502 : vector<1x64xf32> to vector<1x1x64xf32>
    %504 = vector.broadcast %500 : vector<4x4x1xf32> to vector<4x4x64xf32>
    %505 = vector.broadcast %503 : vector<1x1x64xf32> to vector<4x4x64xf32>
    %506 = arith.mulf %504, %505 : vector<4x4x64xf32>
    %507 = arith.addf %492, %506 : vector<4x4x64xf32>
    %508 = vector.extract_strided_slice %496 {offsets = [1, 0, 0], sizes = [4, 4, 32], strides = [1, 1, 1]} : vector<10x4x32xf32> to vector<4x4x32xf32>
    %509 = arith.mulf %3, %508 : vector<4x4x32xf32>
    %cst_67 = arith.constant dense<0.000000e+00> : vector<4x4xf32>
    %510 = vector.multi_reduction <add>, %509, %cst_67 [2] : vector<4x4x32xf32> to vector<4x4xf32>
    %511 = vector.shape_cast %510 : vector<4x4xf32> to vector<4x4x1xf32>
    %512 = vector.extract_strided_slice %4 {offsets = [13, 0, 0], sizes = [1, 1, 64], strides = [1, 1, 1]} : vector<64x1x64xf32> to vector<1x1x64xf32>
    %513 = vector.shape_cast %512 : vector<1x1x64xf32> to vector<1x64xf32>
    %514 = vector.shape_cast %513 : vector<1x64xf32> to vector<1x1x64xf32>
    %515 = vector.broadcast %511 : vector<4x4x1xf32> to vector<4x4x64xf32>
    %516 = vector.broadcast %514 : vector<1x1x64xf32> to vector<4x4x64xf32>
    %517 = arith.mulf %515, %516 : vector<4x4x64xf32>
    %518 = arith.addf %507, %517 : vector<4x4x64xf32>
    %519 = vector.extract_strided_slice %496 {offsets = [2, 0, 0], sizes = [4, 4, 32], strides = [1, 1, 1]} : vector<10x4x32xf32> to vector<4x4x32xf32>
    %520 = arith.mulf %3, %519 : vector<4x4x32xf32>
    %cst_68 = arith.constant dense<0.000000e+00> : vector<4x4xf32>
    %521 = vector.multi_reduction <add>, %520, %cst_68 [2] : vector<4x4x32xf32> to vector<4x4xf32>
    %522 = vector.shape_cast %521 : vector<4x4xf32> to vector<4x4x1xf32>
    %523 = vector.extract_strided_slice %4 {offsets = [20, 0, 0], sizes = [1, 1, 64], strides = [1, 1, 1]} : vector<64x1x64xf32> to vector<1x1x64xf32>
    %524 = vector.shape_cast %523 : vector<1x1x64xf32> to vector<1x64xf32>
    %525 = vector.shape_cast %524 : vector<1x64xf32> to vector<1x1x64xf32>
    %526 = vector.broadcast %522 : vector<4x4x1xf32> to vector<4x4x64xf32>
    %527 = vector.broadcast %525 : vector<1x1x64xf32> to vector<4x4x64xf32>
    %528 = arith.mulf %526, %527 : vector<4x4x64xf32>
    %529 = arith.addf %518, %528 : vector<4x4x64xf32>
    %530 = vector.extract_strided_slice %496 {offsets = [3, 0, 0], sizes = [4, 4, 32], strides = [1, 1, 1]} : vector<10x4x32xf32> to vector<4x4x32xf32>
    %531 = arith.mulf %3, %530 : vector<4x4x32xf32>
    %cst_69 = arith.constant dense<0.000000e+00> : vector<4x4xf32>
    %532 = vector.multi_reduction <add>, %531, %cst_69 [2] : vector<4x4x32xf32> to vector<4x4xf32>
    %533 = vector.shape_cast %532 : vector<4x4xf32> to vector<4x4x1xf32>
    %534 = vector.extract_strided_slice %4 {offsets = [27, 0, 0], sizes = [1, 1, 64], strides = [1, 1, 1]} : vector<64x1x64xf32> to vector<1x1x64xf32>
    %535 = vector.shape_cast %534 : vector<1x1x64xf32> to vector<1x64xf32>
    %536 = vector.shape_cast %535 : vector<1x64xf32> to vector<1x1x64xf32>
    %537 = vector.broadcast %533 : vector<4x4x1xf32> to vector<4x4x64xf32>
    %538 = vector.broadcast %536 : vector<1x1x64xf32> to vector<4x4x64xf32>
    %539 = arith.mulf %537, %538 : vector<4x4x64xf32>
    %540 = arith.addf %529, %539 : vector<4x4x64xf32>
    %541 = vector.extract_strided_slice %496 {offsets = [4, 0, 0], sizes = [4, 4, 32], strides = [1, 1, 1]} : vector<10x4x32xf32> to vector<4x4x32xf32>
    %542 = arith.mulf %3, %541 : vector<4x4x32xf32>
    %cst_70 = arith.constant dense<0.000000e+00> : vector<4x4xf32>
    %543 = vector.multi_reduction <add>, %542, %cst_70 [2] : vector<4x4x32xf32> to vector<4x4xf32>
    %544 = vector.shape_cast %543 : vector<4x4xf32> to vector<4x4x1xf32>
    %545 = vector.extract_strided_slice %4 {offsets = [34, 0, 0], sizes = [1, 1, 64], strides = [1, 1, 1]} : vector<64x1x64xf32> to vector<1x1x64xf32>
    %546 = vector.shape_cast %545 : vector<1x1x64xf32> to vector<1x64xf32>
    %547 = vector.shape_cast %546 : vector<1x64xf32> to vector<1x1x64xf32>
    %548 = vector.broadcast %544 : vector<4x4x1xf32> to vector<4x4x64xf32>
    %549 = vector.broadcast %547 : vector<1x1x64xf32> to vector<4x4x64xf32>
    %550 = arith.mulf %548, %549 : vector<4x4x64xf32>
    %551 = arith.addf %540, %550 : vector<4x4x64xf32>
    %552 = vector.extract_strided_slice %496 {offsets = [5, 0, 0], sizes = [4, 4, 32], strides = [1, 1, 1]} : vector<10x4x32xf32> to vector<4x4x32xf32>
    %553 = arith.mulf %3, %552 : vector<4x4x32xf32>
    %cst_71 = arith.constant dense<0.000000e+00> : vector<4x4xf32>
    %554 = vector.multi_reduction <add>, %553, %cst_71 [2] : vector<4x4x32xf32> to vector<4x4xf32>
    %555 = vector.shape_cast %554 : vector<4x4xf32> to vector<4x4x1xf32>
    %556 = vector.extract_strided_slice %4 {offsets = [41, 0, 0], sizes = [1, 1, 64], strides = [1, 1, 1]} : vector<64x1x64xf32> to vector<1x1x64xf32>
    %557 = vector.shape_cast %556 : vector<1x1x64xf32> to vector<1x64xf32>
    %558 = vector.shape_cast %557 : vector<1x64xf32> to vector<1x1x64xf32>
    %559 = vector.broadcast %555 : vector<4x4x1xf32> to vector<4x4x64xf32>
    %560 = vector.broadcast %558 : vector<1x1x64xf32> to vector<4x4x64xf32>
    %561 = arith.mulf %559, %560 : vector<4x4x64xf32>
    %562 = arith.addf %551, %561 : vector<4x4x64xf32>
    %563 = vector.extract_strided_slice %496 {offsets = [6, 0, 0], sizes = [4, 4, 32], strides = [1, 1, 1]} : vector<10x4x32xf32> to vector<4x4x32xf32>
    %564 = arith.mulf %3, %563 : vector<4x4x32xf32>
    %cst_72 = arith.constant dense<0.000000e+00> : vector<4x4xf32>
    %565 = vector.multi_reduction <add>, %564, %cst_72 [2] : vector<4x4x32xf32> to vector<4x4xf32>
    %566 = vector.shape_cast %565 : vector<4x4xf32> to vector<4x4x1xf32>
    %567 = vector.extract_strided_slice %4 {offsets = [48, 0, 0], sizes = [1, 1, 64], strides = [1, 1, 1]} : vector<64x1x64xf32> to vector<1x1x64xf32>
    %568 = vector.shape_cast %567 : vector<1x1x64xf32> to vector<1x64xf32>
    %569 = vector.shape_cast %568 : vector<1x64xf32> to vector<1x1x64xf32>
    %570 = vector.broadcast %566 : vector<4x4x1xf32> to vector<4x4x64xf32>
    %571 = vector.broadcast %569 : vector<1x1x64xf32> to vector<4x4x64xf32>
    %572 = arith.mulf %570, %571 : vector<4x4x64xf32>
    %573 = arith.addf %562, %572 : vector<4x4x64xf32>
    %574 = vector.extract_strided_slice %5 {offsets = [0, 0, 0], sizes = [1, 1, 32], strides = [1, 1, 1]} : vector<8x1x32xf32> to vector<1x1x32xf32>
    %575 = vector.shape_cast %574 : vector<1x1x32xf32> to vector<1x32xf32>
    %576 = vector.shape_cast %575 : vector<1x32xf32> to vector<1x1x32xf32>
    %577 = vector.broadcast %576 : vector<1x1x32xf32> to vector<4x4x32xf32>
    %578 = arith.mulf %3, %577 : vector<4x4x32xf32>
    %cst_73 = arith.constant dense<0.000000e+00> : vector<4x4xf32>
    %579 = vector.multi_reduction <add>, %578, %cst_73 [2] : vector<4x4x32xf32> to vector<4x4xf32>
    %580 = vector.shape_cast %579 : vector<4x4xf32> to vector<4x4x1xf32>
    %581 = vector.extract_strided_slice %4 {offsets = [49, 0, 0], sizes = [1, 1, 64], strides = [1, 1, 1]} : vector<64x1x64xf32> to vector<1x1x64xf32>
    %582 = vector.shape_cast %581 : vector<1x1x64xf32> to vector<1x64xf32>
    %583 = vector.shape_cast %582 : vector<1x64xf32> to vector<1x1x64xf32>
    %584 = vector.broadcast %580 : vector<4x4x1xf32> to vector<4x4x64xf32>
    %585 = vector.broadcast %583 : vector<1x1x64xf32> to vector<4x4x64xf32>
    %586 = arith.mulf %584, %585 : vector<4x4x64xf32>
    %587 = arith.addf %573, %586 : vector<4x4x64xf32>
    %588 = vector.extract_strided_slice %5 {offsets = [1, 0, 0], sizes = [1, 1, 32], strides = [1, 1, 1]} : vector<8x1x32xf32> to vector<1x1x32xf32>
    %589 = vector.shape_cast %588 : vector<1x1x32xf32> to vector<1x32xf32>
    %590 = vector.shape_cast %589 : vector<1x32xf32> to vector<1x1x32xf32>
    %591 = vector.broadcast %590 : vector<1x1x32xf32> to vector<4x4x32xf32>
    %592 = arith.mulf %3, %591 : vector<4x4x32xf32>
    %cst_74 = arith.constant dense<0.000000e+00> : vector<4x4xf32>
    %593 = vector.multi_reduction <add>, %592, %cst_74 [2] : vector<4x4x32xf32> to vector<4x4xf32>
    %594 = vector.shape_cast %593 : vector<4x4xf32> to vector<4x4x1xf32>
    %595 = vector.extract_strided_slice %4 {offsets = [50, 0, 0], sizes = [1, 1, 64], strides = [1, 1, 1]} : vector<64x1x64xf32> to vector<1x1x64xf32>
    %596 = vector.shape_cast %595 : vector<1x1x64xf32> to vector<1x64xf32>
    %597 = vector.shape_cast %596 : vector<1x64xf32> to vector<1x1x64xf32>
    %598 = vector.broadcast %594 : vector<4x4x1xf32> to vector<4x4x64xf32>
    %599 = vector.broadcast %597 : vector<1x1x64xf32> to vector<4x4x64xf32>
    %600 = arith.mulf %598, %599 : vector<4x4x64xf32>
    %601 = arith.addf %587, %600 : vector<4x4x64xf32>
    %602 = vector.extract_strided_slice %5 {offsets = [2, 0, 0], sizes = [1, 1, 32], strides = [1, 1, 1]} : vector<8x1x32xf32> to vector<1x1x32xf32>
    %603 = vector.shape_cast %602 : vector<1x1x32xf32> to vector<1x32xf32>
    %604 = vector.shape_cast %603 : vector<1x32xf32> to vector<1x1x32xf32>
    %605 = vector.broadcast %604 : vector<1x1x32xf32> to vector<4x4x32xf32>
    %606 = arith.mulf %3, %605 : vector<4x4x32xf32>
    %cst_75 = arith.constant dense<0.000000e+00> : vector<4x4xf32>
    %607 = vector.multi_reduction <add>, %606, %cst_75 [2] : vector<4x4x32xf32> to vector<4x4xf32>
    %608 = vector.shape_cast %607 : vector<4x4xf32> to vector<4x4x1xf32>
    %609 = vector.extract_strided_slice %4 {offsets = [51, 0, 0], sizes = [1, 1, 64], strides = [1, 1, 1]} : vector<64x1x64xf32> to vector<1x1x64xf32>
    %610 = vector.shape_cast %609 : vector<1x1x64xf32> to vector<1x64xf32>
    %611 = vector.shape_cast %610 : vector<1x64xf32> to vector<1x1x64xf32>
    %612 = vector.broadcast %608 : vector<4x4x1xf32> to vector<4x4x64xf32>
    %613 = vector.broadcast %611 : vector<1x1x64xf32> to vector<4x4x64xf32>
    %614 = arith.mulf %612, %613 : vector<4x4x64xf32>
    %615 = arith.addf %601, %614 : vector<4x4x64xf32>
    %616 = vector.extract_strided_slice %5 {offsets = [3, 0, 0], sizes = [1, 1, 32], strides = [1, 1, 1]} : vector<8x1x32xf32> to vector<1x1x32xf32>
    %617 = vector.shape_cast %616 : vector<1x1x32xf32> to vector<1x32xf32>
    %618 = vector.shape_cast %617 : vector<1x32xf32> to vector<1x1x32xf32>
    %619 = vector.broadcast %618 : vector<1x1x32xf32> to vector<4x4x32xf32>
    %620 = arith.mulf %3, %619 : vector<4x4x32xf32>
    %cst_76 = arith.constant dense<0.000000e+00> : vector<4x4xf32>
    %621 = vector.multi_reduction <add>, %620, %cst_76 [2] : vector<4x4x32xf32> to vector<4x4xf32>
    %622 = vector.shape_cast %621 : vector<4x4xf32> to vector<4x4x1xf32>
    %623 = vector.extract_strided_slice %4 {offsets = [52, 0, 0], sizes = [1, 1, 64], strides = [1, 1, 1]} : vector<64x1x64xf32> to vector<1x1x64xf32>
    %624 = vector.shape_cast %623 : vector<1x1x64xf32> to vector<1x64xf32>
    %625 = vector.shape_cast %624 : vector<1x64xf32> to vector<1x1x64xf32>
    %626 = vector.broadcast %622 : vector<4x4x1xf32> to vector<4x4x64xf32>
    %627 = vector.broadcast %625 : vector<1x1x64xf32> to vector<4x4x64xf32>
    %628 = arith.mulf %626, %627 : vector<4x4x64xf32>
    %629 = arith.addf %615, %628 : vector<4x4x64xf32>
    %630 = vector.extract_strided_slice %5 {offsets = [4, 0, 0], sizes = [1, 1, 32], strides = [1, 1, 1]} : vector<8x1x32xf32> to vector<1x1x32xf32>
    %631 = vector.shape_cast %630 : vector<1x1x32xf32> to vector<1x32xf32>
    %632 = vector.shape_cast %631 : vector<1x32xf32> to vector<1x1x32xf32>
    %633 = vector.broadcast %632 : vector<1x1x32xf32> to vector<4x4x32xf32>
    %634 = arith.mulf %3, %633 : vector<4x4x32xf32>
    %cst_77 = arith.constant dense<0.000000e+00> : vector<4x4xf32>
    %635 = vector.multi_reduction <add>, %634, %cst_77 [2] : vector<4x4x32xf32> to vector<4x4xf32>
    %636 = vector.shape_cast %635 : vector<4x4xf32> to vector<4x4x1xf32>
    %637 = vector.extract_strided_slice %4 {offsets = [53, 0, 0], sizes = [1, 1, 64], strides = [1, 1, 1]} : vector<64x1x64xf32> to vector<1x1x64xf32>
    %638 = vector.shape_cast %637 : vector<1x1x64xf32> to vector<1x64xf32>
    %639 = vector.shape_cast %638 : vector<1x64xf32> to vector<1x1x64xf32>
    %640 = vector.broadcast %636 : vector<4x4x1xf32> to vector<4x4x64xf32>
    %641 = vector.broadcast %639 : vector<1x1x64xf32> to vector<4x4x64xf32>
    %642 = arith.mulf %640, %641 : vector<4x4x64xf32>
    %643 = arith.addf %629, %642 : vector<4x4x64xf32>
    %644 = vector.extract_strided_slice %5 {offsets = [5, 0, 0], sizes = [1, 1, 32], strides = [1, 1, 1]} : vector<8x1x32xf32> to vector<1x1x32xf32>
    %645 = vector.shape_cast %644 : vector<1x1x32xf32> to vector<1x32xf32>
    %646 = vector.shape_cast %645 : vector<1x32xf32> to vector<1x1x32xf32>
    %647 = vector.broadcast %646 : vector<1x1x32xf32> to vector<4x4x32xf32>
    %648 = arith.mulf %3, %647 : vector<4x4x32xf32>
    %cst_78 = arith.constant dense<0.000000e+00> : vector<4x4xf32>
    %649 = vector.multi_reduction <add>, %648, %cst_78 [2] : vector<4x4x32xf32> to vector<4x4xf32>
    %650 = vector.shape_cast %649 : vector<4x4xf32> to vector<4x4x1xf32>
    %651 = vector.extract_strided_slice %4 {offsets = [54, 0, 0], sizes = [1, 1, 64], strides = [1, 1, 1]} : vector<64x1x64xf32> to vector<1x1x64xf32>
    %652 = vector.shape_cast %651 : vector<1x1x64xf32> to vector<1x64xf32>
    %653 = vector.shape_cast %652 : vector<1x64xf32> to vector<1x1x64xf32>
    %654 = vector.broadcast %650 : vector<4x4x1xf32> to vector<4x4x64xf32>
    %655 = vector.broadcast %653 : vector<1x1x64xf32> to vector<4x4x64xf32>
    %656 = arith.mulf %654, %655 : vector<4x4x64xf32>
    %657 = arith.addf %643, %656 : vector<4x4x64xf32>
    %658 = vector.extract_strided_slice %5 {offsets = [6, 0, 0], sizes = [1, 1, 32], strides = [1, 1, 1]} : vector<8x1x32xf32> to vector<1x1x32xf32>
    %659 = vector.shape_cast %658 : vector<1x1x32xf32> to vector<1x32xf32>
    %660 = vector.shape_cast %659 : vector<1x32xf32> to vector<1x1x32xf32>
    %661 = vector.broadcast %660 : vector<1x1x32xf32> to vector<4x4x32xf32>
    %662 = arith.mulf %3, %661 : vector<4x4x32xf32>
    %cst_79 = arith.constant dense<0.000000e+00> : vector<4x4xf32>
    %663 = vector.multi_reduction <add>, %662, %cst_79 [2] : vector<4x4x32xf32> to vector<4x4xf32>
    %664 = vector.shape_cast %663 : vector<4x4xf32> to vector<4x4x1xf32>
    %665 = vector.extract_strided_slice %4 {offsets = [55, 0, 0], sizes = [1, 1, 64], strides = [1, 1, 1]} : vector<64x1x64xf32> to vector<1x1x64xf32>
    %666 = vector.shape_cast %665 : vector<1x1x64xf32> to vector<1x64xf32>
    %667 = vector.shape_cast %666 : vector<1x64xf32> to vector<1x1x64xf32>
    %668 = vector.broadcast %664 : vector<4x4x1xf32> to vector<4x4x64xf32>
    %669 = vector.broadcast %667 : vector<1x1x64xf32> to vector<4x4x64xf32>
    %670 = arith.mulf %668, %669 : vector<4x4x64xf32>
    %671 = arith.addf %657, %670 : vector<4x4x64xf32>
    %672 = vector.extract_strided_slice %5 {offsets = [7, 0, 0], sizes = [1, 1, 32], strides = [1, 1, 1]} : vector<8x1x32xf32> to vector<1x1x32xf32>
    %673 = vector.shape_cast %672 : vector<1x1x32xf32> to vector<1x32xf32>
    %674 = vector.shape_cast %673 : vector<1x32xf32> to vector<1x1x32xf32>
    %675 = vector.broadcast %674 : vector<1x1x32xf32> to vector<4x4x32xf32>
    %676 = arith.mulf %3, %675 : vector<4x4x32xf32>
    %cst_80 = arith.constant dense<0.000000e+00> : vector<4x4xf32>
    %677 = vector.multi_reduction <add>, %676, %cst_80 [2] : vector<4x4x32xf32> to vector<4x4xf32>
    %678 = vector.shape_cast %677 : vector<4x4xf32> to vector<4x4x1xf32>
    %679 = vector.extract_strided_slice %4 {offsets = [56, 0, 0], sizes = [1, 1, 64], strides = [1, 1, 1]} : vector<64x1x64xf32> to vector<1x1x64xf32>
    %680 = vector.shape_cast %679 : vector<1x1x64xf32> to vector<1x64xf32>
    %681 = vector.shape_cast %680 : vector<1x64xf32> to vector<1x1x64xf32>
    %682 = vector.broadcast %678 : vector<4x4x1xf32> to vector<4x4x64xf32>
    %683 = vector.broadcast %681 : vector<1x1x64xf32> to vector<4x4x64xf32>
    %684 = arith.mulf %682, %683 : vector<4x4x64xf32>
    %685 = arith.addf %671, %684 : vector<4x4x64xf32>
    %c0_81 = arith.constant 0 : index
    %c0_82 = arith.constant 0 : index
    %c0_83 = arith.constant 0 : index
    %686 = vector.load %arg6[%c0_81, %c0_82, %c0_83] : memref<1x1x64xf32, #tpu.memory_space<vmem>>, vector<1x1x64xf32>
    %687 = vector.broadcast %686 : vector<1x1x64xf32> to vector<4x4x64xf32>
    %688 = arith.addf %685, %687 : vector<4x4x64xf32>
    %cst_84 = arith.constant 1.000000e-01 : f32
    %689 = vector.broadcast %cst_84 : f32 to vector<4x4x64xf32>
    %690 = arith.mulf %689, %688 : vector<4x4x64xf32>
    %691 = arith.maximumf %688, %690 : vector<4x4x64xf32>
    %692 = arith.truncf %691 : vector<4x4x64xf32> to vector<4x4x64xbf16>
    %c0_85 = arith.constant 0 : index
    %c0_86 = arith.constant 0 : index
    %c0_87 = arith.constant 0 : index
    %c0_88 = arith.constant 0 : index
    %693 = vector.load %arg7[%c0_85, %c0_86, %c0_87, %c0_88] : memref<1x4x4x64xbf16, #tpu.memory_space<vmem>>, vector<1x4x4x64xbf16>
    %694 = vector.shape_cast %693 : vector<1x4x4x64xbf16> to vector<4x4x64xbf16>
    %695 = vector.shape_cast %692 : vector<4x4x64xbf16> to vector<1x4x4x64xbf16>
    tpu.vector_store %arg7[%c0_85, %c0_86, %c0_87, %c0_88], %695 {strides = array<i32>} : memref<1x4x4x64xbf16, #tpu.memory_space<vmem>>, vector<1x4x4x64xbf16>,
    return
  }
  func.func @transform_0(%arg0: i32, %arg1: i32) -> (i32, i32, i32, i32) {
    %c0_i32 = arith.constant 0 : i32
    %c0_i32_0 = arith.constant 0 : i32
    %c0_i32_1 = arith.constant 0 : i32
    return %arg0, %arg1, %c0_i32, %c0_i32_0 : i32, i32, i32, i32
  }
  func.func @transform_1(%arg0: i32, %arg1: i32) -> (i32, i32, i32, i32) {
    %c0_i32 = arith.constant 0 : i32
    %c0_i32_0 = arith.constant 0 : i32
    %c0_i32_1 = arith.constant 0 : i32
    %c0_i32_2 = arith.constant 0 : i32
    return %arg0, %c0_i32, %c0_i32_0, %c0_i32_1 : i32, i32, i32, i32
  }
  func.func @transform_2(%arg0: i32, %arg1: i32) -> (i32, i32, i32) {
    %c0_i32 = arith.constant 0 : i32
    %c0_i32_0 = arith.constant 0 : i32
    %c0_i32_1 = arith.constant 0 : i32
    %c0_i32_2 = arith.constant 0 : i32
    return %c0_i32, %c0_i32_0, %c0_i32_1 : i32, i32, i32
  }
  func.func @transform_3(%arg0: i32, %arg1: i32) -> (i32, i32, i32) {
    %c0_i32 = arith.constant 0 : i32
    %c0_i32_0 = arith.constant 0 : i32
    %c0_i32_1 = arith.constant 0 : i32
    %c0_i32_2 = arith.constant 0 : i32
    return %c0_i32, %c0_i32_0, %c0_i32_1 : i32, i32, i32
  }
  func.func @transform_4(%arg0: i32, %arg1: i32) -> (i32, i32, i32) {
    %c0_i32 = arith.constant 0 : i32
    %c0_i32_0 = arith.constant 0 : i32
    %c0_i32_1 = arith.constant 0 : i32
    %c0_i32_2 = arith.constant 0 : i32
    return %c0_i32, %c0_i32_0, %c0_i32_1 : i32, i32, i32
  }
  func.func @transform_5(%arg0: i32, %arg1: i32) -> (i32, i32, i32, i32) {
    %c0_i32 = arith.constant 0 : i32
    %c0_i32_0 = arith.constant 0 : i32
    %c0_i32_1 = arith.constant 0 : i32
    return %arg0, %arg1, %c0_i32, %c0_i32_0 : i32, i32, i32, i32
  }
}

module attributes {stable_mosaic.version = 11 : i64} {
  func.func @_conv_mm_kernel(%arg0: i32, %arg1: i32, %arg2: memref<1x16x576xbf16, #tpu.memory_space<vmem>>, %arg3: memref<576x64xbf16, #tpu.memory_space<vmem>>, %arg4: memref<1x64xf32, #tpu.memory_space<vmem>>, %arg5: memref<1x16x64xbf16, #tpu.memory_space<vmem>>) attributes {dimension_semantics = [#tpu.dimension_semantics<parallel>, #tpu.dimension_semantics<parallel>], iteration_bounds = array<i64: 2, 1>, scalar_prefetch = 0 : i64, scratch_operands = 0 : i64, tpu.core_type = #tpu.core_type<tc>, window_params = [{transform_indices = @transform_0, window_bounds = array<i64: 1, 16, 576>}, {pipeline_mode = #tpu.pipeline_mode<synchronous>, transform_indices = @transform_1, window_bounds = array<i64: 576, 64>}, {pipeline_mode = #tpu.pipeline_mode<synchronous>, transform_indices = @transform_2, window_bounds = array<i64: 1, 64>}, {transform_indices = @transform_3, window_bounds = array<i64: 1, 16, 64>}]} {
    %c0 = arith.constant 0 : index
    %c0_0 = arith.constant 0 : index
    %c0_1 = arith.constant 0 : index
    %0 = vector.load %arg2[%c0, %c0_0, %c0_1] : memref<1x16x576xbf16, #tpu.memory_space<vmem>>, vector<1x16x576xbf16>
    %1 = vector.shape_cast %0 : vector<1x16x576xbf16> to vector<16x576xbf16>
    %c0_2 = arith.constant 0 : index
    %c0_3 = arith.constant 0 : index
    %2 = vector.load %arg3[%c0_2, %c0_3] : memref<576x64xbf16, #tpu.memory_space<vmem>>, vector<576x64xbf16>
    %cst = arith.constant dense<0.000000e+00> : vector<16x64xf32>
    %3 = tpu.matmul %1, %2, %cst {dimension_numbers = #tpu.dot_dimension_numbers<[1], [0], [0], [1], [0, 0, 1, 1], [], []>} : vector<16x576xbf16>, vector<576x64xbf16>, vector<16x64xf32> -> vector<16x64xf32>
    %c0_4 = arith.constant 0 : index
    %c0_5 = arith.constant 0 : index
    %4 = vector.load %arg4[%c0_4, %c0_5] : memref<1x64xf32, #tpu.memory_space<vmem>>, vector<1x64xf32>
    %5 = vector.broadcast %4 : vector<1x64xf32> to vector<16x64xf32>
    %6 = arith.addf %3, %5 : vector<16x64xf32>
    %cst_6 = arith.constant 1.000000e-01 : f32
    %7 = vector.broadcast %cst_6 : f32 to vector<16x64xf32>
    %8 = arith.mulf %7, %6 : vector<16x64xf32>
    %9 = arith.maximumf %6, %8 : vector<16x64xf32>
    %10 = arith.truncf %9 : vector<16x64xf32> to vector<16x64xbf16>
    %c0_7 = arith.constant 0 : index
    %c0_8 = arith.constant 0 : index
    %c0_9 = arith.constant 0 : index
    %11 = vector.load %arg5[%c0_7, %c0_8, %c0_9] : memref<1x16x64xbf16, #tpu.memory_space<vmem>>, vector<1x16x64xbf16>
    %12 = vector.shape_cast %11 : vector<1x16x64xbf16> to vector<16x64xbf16>
    %13 = vector.shape_cast %10 : vector<16x64xbf16> to vector<1x16x64xbf16>
    tpu.vector_store %arg5[%c0_7, %c0_8, %c0_9], %13 {strides = array<i32>} : memref<1x16x64xbf16, #tpu.memory_space<vmem>>, vector<1x16x64xbf16>,
    return
  }
  func.func @transform_0(%arg0: i32, %arg1: i32) -> (i32, i32, i32) {
    %c0_i32 = arith.constant 0 : i32
    %c0_i32_0 = arith.constant 0 : i32
    return %arg0, %arg1, %c0_i32 : i32, i32, i32
  }
  func.func @transform_1(%arg0: i32, %arg1: i32) -> (i32, i32) {
    %c0_i32 = arith.constant 0 : i32
    %c0_i32_0 = arith.constant 0 : i32
    %c0_i32_1 = arith.constant 0 : i32
    return %c0_i32, %c0_i32_0 : i32, i32
  }
  func.func @transform_2(%arg0: i32, %arg1: i32) -> (i32, i32) {
    %c0_i32 = arith.constant 0 : i32
    %c0_i32_0 = arith.constant 0 : i32
    %c0_i32_1 = arith.constant 0 : i32
    return %c0_i32, %c0_i32_0 : i32, i32
  }
  func.func @transform_3(%arg0: i32, %arg1: i32) -> (i32, i32, i32) {
    %c0_i32 = arith.constant 0 : i32
    %c0_i32_0 = arith.constant 0 : i32
    return %arg0, %arg1, %c0_i32 : i32, i32, i32
  }
}

module attributes {stable_mosaic.version = 11 : i64} {
  func.func @_conv_mm_kernel(%arg0: i32, %arg1: i32, %arg2: memref<1x16x576xbf16, #tpu.memory_space<vmem>>, %arg3: memref<576x2xbf16, #tpu.memory_space<vmem>>, %arg4: memref<1x2xf32, #tpu.memory_space<vmem>>, %arg5: memref<1x16x2xf32, #tpu.memory_space<vmem>>) attributes {dimension_semantics = [#tpu.dimension_semantics<parallel>, #tpu.dimension_semantics<parallel>], iteration_bounds = array<i64: 2, 1>, scalar_prefetch = 0 : i64, scratch_operands = 0 : i64, tpu.core_type = #tpu.core_type<tc>, window_params = [{transform_indices = @transform_0, window_bounds = array<i64: 1, 16, 576>}, {pipeline_mode = #tpu.pipeline_mode<synchronous>, transform_indices = @transform_1, window_bounds = array<i64: 576, 2>}, {pipeline_mode = #tpu.pipeline_mode<synchronous>, transform_indices = @transform_2, window_bounds = array<i64: 1, 2>}, {transform_indices = @transform_3, window_bounds = array<i64: 1, 16, 2>}]} {
    %c0 = arith.constant 0 : index
    %c0_0 = arith.constant 0 : index
    %c0_1 = arith.constant 0 : index
    %0 = vector.load %arg2[%c0, %c0_0, %c0_1] : memref<1x16x576xbf16, #tpu.memory_space<vmem>>, vector<1x16x576xbf16>
    %1 = vector.shape_cast %0 : vector<1x16x576xbf16> to vector<16x576xbf16>
    %c0_2 = arith.constant 0 : index
    %c0_3 = arith.constant 0 : index
    %2 = vector.load %arg3[%c0_2, %c0_3] : memref<576x2xbf16, #tpu.memory_space<vmem>>, vector<576x2xbf16>
    %cst = arith.constant dense<0.000000e+00> : vector<16x2xf32>
    %3 = tpu.matmul %1, %2, %cst {dimension_numbers = #tpu.dot_dimension_numbers<[1], [0], [0], [1], [0, 0, 1, 1], [], []>} : vector<16x576xbf16>, vector<576x2xbf16>, vector<16x2xf32> -> vector<16x2xf32>
    %c0_4 = arith.constant 0 : index
    %c0_5 = arith.constant 0 : index
    %4 = vector.load %arg4[%c0_4, %c0_5] : memref<1x2xf32, #tpu.memory_space<vmem>>, vector<1x2xf32>
    %5 = vector.broadcast %4 : vector<1x2xf32> to vector<16x2xf32>
    %6 = arith.addf %3, %5 : vector<16x2xf32>
    %c0_6 = arith.constant 0 : index
    %c0_7 = arith.constant 0 : index
    %c0_8 = arith.constant 0 : index
    %7 = vector.load %arg5[%c0_6, %c0_7, %c0_8] : memref<1x16x2xf32, #tpu.memory_space<vmem>>, vector<1x16x2xf32>
    %8 = vector.shape_cast %7 : vector<1x16x2xf32> to vector<16x2xf32>
    %9 = vector.shape_cast %6 : vector<16x2xf32> to vector<1x16x2xf32>
    tpu.vector_store %arg5[%c0_6, %c0_7, %c0_8], %9 {strides = array<i32>} : memref<1x16x2xf32, #tpu.memory_space<vmem>>, vector<1x16x2xf32>,
    return
  }
  func.func @transform_0(%arg0: i32, %arg1: i32) -> (i32, i32, i32) {
    %c0_i32 = arith.constant 0 : i32
    %c0_i32_0 = arith.constant 0 : i32
    return %arg0, %arg1, %c0_i32 : i32, i32, i32
  }
  func.func @transform_1(%arg0: i32, %arg1: i32) -> (i32, i32) {
    %c0_i32 = arith.constant 0 : i32
    %c0_i32_0 = arith.constant 0 : i32
    %c0_i32_1 = arith.constant 0 : i32
    return %c0_i32, %c0_i32_0 : i32, i32
  }
  func.func @transform_2(%arg0: i32, %arg1: i32) -> (i32, i32) {
    %c0_i32 = arith.constant 0 : i32
    %c0_i32_0 = arith.constant 0 : i32
    %c0_i32_1 = arith.constant 0 : i32
    return %c0_i32, %c0_i32_0 : i32, i32
  }
  func.func @transform_3(%arg0: i32, %arg1: i32) -> (i32, i32, i32) {
    %c0_i32 = arith.constant 0 : i32
    %c0_i32_0 = arith.constant 0 : i32
    return %arg0, %arg1, %c0_i32 : i32, i32, i32
  }
}

</mosaic_0001>

<bundles_post_ra>
// kernel: forward.9
= control target key start
LH: loop header
LB: loop body
LE: loop exit
PB: predicated region body
PF: predicated region fallthrough
CT: control target
= control target key end

     0   :  { %8 = vsyncpa [#allocation3], 0  ;;  %s1823_s0 = inlined_call_operand.hbm [shape: bf16[2,256,27], index: 0, kind: input, shape index: {}]   ;;  %s1824_s1 = inlined_call_operand.hbm [shape: bf16[27,16], index: 1, kind: input, shape index: {}]   ;;  %s1825_s2 = inlined_call_operand.hbm [shape: f32[1,16], index: 2, kind: input, shape index: {}]   ;;  %s1826_s3 = inlined_call_operand.hbm [shape: bf16[2,256,16], index: 3, kind: output, shape index: {}]  }
   0x1   :  { %10 = vsyncpa [#allocation3 + $0x1], 0 }
   0x2   :  { %11 = vsyncpa [#allocation6], 0 }
   0x3   :  { %12 = vsyncpa [#allocation4], 0 }
   0x4   :  { %14 = vsyncpa [#allocation4 + $0x1], 0  ;;  %s1422_s12 = smov 0   ;;  %s1424_s13 = smov 0  }
   0x5   :  { %s1426_s14 = smov 0   ;;  %s1428_s15 = smov 0  }
   0x6   :  { %s1430_s16 = smov 0   ;;  %s1432_s17 = smov 0  }
   0x7 LB: > { %s935_s18 = sadd.s32 4294967295, %s1391_s17   ;;  %s936_s19 = sadd.s32 4294967294, %s1391_s17   ;;  %s1391_s17 = sphi %s1432_s17, %s20_s17   ;;  %s1387_s16 = sphi %s1430_s16, %s1848_s16   ;;  %s1383_s15 = sphi %s1428_s15, %s1847_s15   ;;  %s1379_s14 = sphi %s1426_s14, %s1846_s14   ;;  %s1375_s13 = sphi %s1424_s13, %s1845_s13   ;;  %s1371_s12 = sphi %s1422_s12, %s1844_s12  }
   0x8   : > { %p54_p0 = scmp.ne.s32.totalorder %s1375_s13, %s1371_s12  ;;  %p1456_p1 = scmp.eq.s32.totalorder %s935_s18, 0 }
   0x9   : > { %p1460_p2 = scmp.eq.s32.totalorder %s935_s18, 1  ;;  %p128_p3 = scmp.eq.s32.totalorder %s936_s19, 1 }
   0xa   : > { %s1831_s20 = scalar_select %p1456_p1, 1, 0 }
   0xb   : > { %p1466_p4 = por %p1456_p1, %p54_p0  ;;  %p937_p5 = scmp.ge.s32.totalorder %s1391_s17, 1 }
   0xc   : > { %p1471_p6 = por %p128_p3, %p54_p0  ;;  %p135_p7 = scmp.lt.s32.totalorder %s1391_s17, 3 }
   0xd   : > { %s1833_s22 = scalar_select %p1466_p4, 1, 0 }
   0xe   : > { %s1834_s23 = scalar_select %p1471_p6, 1, 0 }
   0xf   : > { %p1476_p8 = pnand %p937_p5, %p135_p7  ;;  %s1393_s25 = smov [#allocation5]  }
  0x10   : > { %s147_s26 = sshll.u32 %s1393_s25, 4  ;;  %s1394_s28 = smov [#allocation7]   ;;  %s1480_s26 = int_to_ptr.vmem [resolvable:$true] %s147_s26 }
  0x11   : > { %p1125_p9 = pneg %p1476_p8  ;;  %s161_s29 = sshll.u32 %s1394_s28, 4  ;;  %s1491_s29 = int_to_ptr.vmem [resolvable:$true] %s161_s29 }
  0x12   : > { %s1219_s5 = scalar_lea.hbm %s1824_s1, 256 }
  0x13   : > { %p1487_p11 = pnand %p1125_p9, %p1456_p1  ;;  %p1220_p12 = scmp.ne.s32.totalorder %s1824_s1, %s1219_s5 }
  0x14   : > { %p1226_p5 = scmp.lt.u32.totalorder %s1219_s5, %s1824_s1 }
  0x15   : > { %p1221_p13 = pneg %p1487_p11 }
  0x17   : > { %p1222_p0 = pnand %p1221_p13, %p1220_p12 }
  0x19   : > { %p1223_p3 = pneg %p1222_p0 }
  0x1b   : > { %p1228_p7 = pnand %p1226_p5, %p1223_p3 }
  0x1d   : > { %1231 = shalt.err (!%p1228_p7)
}
  0x1e   : > { %s1232_s10 = scalar_lea.vmem %s1480_s26, 256  ;;  %p1240_p1 = scmp.lt.s32.totalorder %s1480_s26, %s1480_s26 }
  0x1f   : > { %p1233_p9 = scmp.ne.s32.totalorder %s1480_s26, %s1232_s10  ;;  %p1241_p12 = scmp.lt.s32.totalorder %s1232_s10, %s1232_s10 }
  0x21   : > { %p1235_p10 = pnand %p1233_p9, %p1221_p13  ;;  %p1242_p0 = por %p1241_p12, %p1240_p1 }
  0x23   : > { %p1236_p6 = pneg %p1235_p10 }
  0x25   : > { %p1243_p4 = pnand %p1242_p0, %p1236_p6 }
  0x27   : > { %1246 = shalt.err (!%p1243_p4)
}
  0x28   : > { %s1395_s11 = smov 64   ;;  %s1396_s18 = smov 4  }
  0x29   : > { %1128 = dma.hbm_to_vmem [thread:$0]  (!%p1487_p11), %s1824_s1, 256, %s1480_s26, [#allocation6], %s1395_s11, %s1395_s11, %s1396_s18  }
  0x2a   : > { %s1247_s4 = scalar_lea.hbm %s1825_s2, 16 }
  0x2b   : > { %p1248_p1 = scmp.ne.s32.totalorder %s1825_s2, %s1247_s4  ;;  %p1254_p10 = scmp.lt.u32.totalorder %s1247_s4, %s1825_s2 }
  0x2d   : > { %p1250_p4 = pnand %p1248_p1, %p1221_p13 }
  0x2f   : > { %p1251_p6 = pneg %p1250_p4 }
  0x31   : > { %p1256_p3 = pnand %p1254_p10, %p1251_p6 }
  0x33   : > { %1259 = shalt.err (!%p1256_p3)
}
  0x34   : > { %s1260_s26 = scalar_lea.vmem %s1491_s29, 16  ;;  %s1267_s9 = scalar_lea.vmem %s1491_s29, 32 }
  0x35   : > { %p1261_p5 = scmp.ne.s32.totalorder %s1491_s29, %s1260_s26  ;;  %p1268_p12 = scmp.lt.s32.totalorder %s1491_s29, %s1491_s29 }
  0x36   : > { %p1269_p0 = scmp.lt.s32.totalorder %s1267_s9, %s1260_s26 }
  0x37   : > { %p1263_p7 = pnand %p1261_p5, %p1221_p13 }
  0x38   : > { %p1270_p1 = por %p1269_p0, %p1268_p12 }
  0x39   : > { %p1264_p9 = pneg %p1263_p7 }
  0x3b   : > { %p1271_p4 = pnand %p1270_p1, %p1264_p9 }
  0x3d   : > { %1274 = shalt.err (!%p1271_p4)
}
  0x3e   : > { %1131 = dma.hbm_to_vmem [thread:$0]  (!%p1487_p11), %s1825_s2, 16, %s1491_s29, [#allocation6]  }
  0x3f   : > { %s32_s25 = sadd.s32 1, %s1387_s16  ;;  %s41_s28 = sadd.s32 1, %s1379_s14 }
  0x40   : > { %p34_p13 = scmp.ge.s32.totalorder %s32_s25, 2  ;;  %p48_p6 = scmp.ne.s32.totalorder %s1379_s14, %s1375_s13 }
  0x41   : > { %p49_p10 = scmp.eq.s32.totalorder %s1391_s17, 0  ;;  %p1142_p3 = scmp.lt.s32.totalorder %s1391_s17, 2 }
  0x42   : > { %s1850_s25 = smov (%p34_p13, %s32_s25), 0  ;;  %p1559_p7 = por %p1460_p2, %p48_p6 }
  0x43   : > { %p50_p5 = por %p49_p10, %p48_p6  ;;  %s36_s30 = ssub.s32 %s1387_s16, %s1850_s25 }
  0x44   : > { %s1837_s27 = scalar_select %p1559_p7, 1, 0 }
  0x45   : > { %s172_s4 = sand.u32 1, %s1379_s14   ;;  %p39_p9 = scmp.eq.s32.totalorder %s36_s30, 0 }
  0x46   : > { %s941_s29 = sshll.u32 %s172_s4, 7  ;;  %s1021_s5 = sshll.u32 %s1387_s16, 11 }
  0x47   : > { %s1568_s6 = scalar_select %p39_p9, %s1379_s14, %s41_s28  }
  0x48   : > { %s1573_s26 = scalar_lea.hbm %s1823_s0, %s1021_s5  ;;  %s176_s21 = scalar_lea.vmem [#allocation2], %s941_s29 }
  0x49   : > { %s185_s9 = sshll.u32 %s176_s21, 4  ;;  %p1577_p2 = pnand %p1142_p3, %p50_p5  ;;  %s1581_s9 = int_to_ptr.vmem [resolvable:$true] %s185_s9 }
  0x4a   : > { %s1583_s19 = scalar_lea.sflag [#allocation3], %s172_s4  ;;  %s1275_s28 = scalar_lea.hbm %s1573_s26, 2048 }
  0x4b   : > { %p1276_p11 = scmp.ne.s32.totalorder %s1573_s26, %s1275_s28  ;;  %p1277_p12 = pneg %p1577_p2 }
  0x4c   : > { %s1280_s5 = scalar_lea.hbm %s1823_s0, 4096  ;;  %p1281_p4 = scmp.lt.u32.totalorder %s1573_s26, %s1823_s0 }
  0x4d   : > { %p1278_p0 = pnand %p1277_p12, %p1276_p11  ;;  %p1282_p13 = scmp.lt.u32.totalorder %s1280_s5, %s1275_s28 }
  0x4e   : > { %p1284_p10 = scmp.lt.u32.totalorder %s1275_s28, %s1573_s26 }
  0x4f   : > { %p1279_p1 = pneg %p1278_p0  ;;  %p1283_p6 = por %p1282_p13, %p1281_p4 }
  0x51   : > { %p1285_p3 = por %p1284_p10, %p1283_p6 }
  0x53   : > { %p1286_p5 = pnand %p1285_p3, %p1279_p1 }
  0x55   : > { %1289 = shalt.err (!%p1286_p5)
}
  0x56   : > { %s1290_s4 = scalar_lea.vmem %s1581_s9, 2048  ;;  %s1397_s21 = smov [#allocation2]  }
  0x57   : > { %p1291_p9 = scmp.ne.s32.totalorder %s1581_s9, %s1290_s4  ;;  %s1295_s30 = sshll.u32 %s1397_s21, 4  ;;  %s1296_s30 = int_to_ptr.vmem [resolvable:$false] %s1295_s30 }
  0x58   : > { %s1297_s29 = scalar_lea.vmem %s1296_s30, 4096  ;;  %p1298_p7 = scmp.lt.s32.totalorder %s1581_s9, %s1296_s30 }
  0x59   : > { %p1293_p11 = pnand %p1291_p9, %p1277_p12  ;;  %p1299_p4 = scmp.lt.s32.totalorder %s1297_s29, %s1290_s4 }
  0x5b   : > { %p1294_p0 = pneg %p1293_p11  ;;  %p1300_p13 = por %p1299_p4, %p1298_p7 }
  0x5d   : > { %p1301_p6 = pnand %p1300_p13, %p1294_p0 }
  0x5f   : > { %1304 = shalt.err (!%p1301_p6)
}
  0x60   : > { %1135 = dma.hbm_to_vmem [thread:$0]  (!%p1577_p2), %s1573_s26, 2048, %s1581_s9, %s1583_s19, %s1395_s11, %s1395_s11, %s1396_s18  }
  0x61   : > { %197 = sbr.rel (%p1476_p8) target bundleno = 383 (0x17f), region = 32  ;;  %s1617_s28 = sand.u32 (!%p1476_p8), 1, %s1375_s13  }
  0x62   : > { %s945_s5 = sshll.u32 (!%p1476_p8), %s1617_s28, 7  ;;  %s200_s7 = scalar_lea.sflag (!%p1476_p8), [#allocation3], %s1617_s28 }
  0x63   : > { %s1623_s10 = scalar_lea.vmem (!%p1476_p8), [#allocation2], %s945_s5  ;;  %p1839_p7 = scmp.ne.s32.totalorder (!%p1476_p8), %s1833_s22, 0 }
  0x68   : > { %1358 = dma.done.wait (%p1839_p7), %s200_s7, 2048  }
  0x69   : > { %1360 = vsyncadd (%p1839_p7), %s200_s7, 4294965248  ;;  %p1840_p2 = scmp.ne.s32.totalorder %s1831_s20, 0 }
  0x6b   : > { %1362 = dma.done.wait (%p1840_p2), [#allocation6], 272  }
  0x6c   : > { %1364 = vsyncadd (%p1840_p2), [#allocation6], 4294967024  ;;  %vm420_vm0 = vcmask 1044480   ;;  %vm421_vm1 = vcmask 1045504   ;;  %v1398_v0 = vmov 65535   ;;  %vm371_vm2 = vcmask 220160  }
  0x6d   : > { %v422_v1 = vsel %vm420_vm0, 4294967295, %v1398_v0  ;;  %v1201_v2 = vld [vmem:[#allocation5] sm:$0xff]   ;;  %v1202_v4 = vld [vmem:[#allocation5 + $0x8] sm:$0x3f]   ;;  %v1207_v10 = vld [vmem:[%s1623_s10 + $0x10] sm:$0xff]   ;;  %vm780_vm3 = vcmask 125952  }
  0x6e   : > { %v423_v3 = vsel %vm421_vm1, %v422_v1, 0  ;;  %1073 = vmatprep.subr.bf16.mxu0 %v1201_v2  ;;  %1109 = vmatprep.subr.bf16.mxu1 %v1201_v2  ;;  %v1203_v5 = vld [vmem:[%s1623_s10] sm:$0xff]   ;;  %v1205_v8 = vld [vmem:[%s1623_s10 + $0x8] sm:$0xff]   ;;  %v1208_v11 = vld [vmem:[%s1623_s10 + $0x50] sm:$0xff]   ;;  %s1677_s20 = scalar_lea.vmem [#allocation8], %s945_s5  ;;  %s1054_s22 = sshll.u32 %s1383_s15, 11 }
  0x6f   : > { %1074 = vmatpush3.bf16.msra.mxu0 %v1201_v2  ;;  %1111 = vmatpush3.bf16.msra.mxu1 %v1201_v2  ;;  %v425_v6 = vand.u32 %v1202_v4, %v423_v3  ;;  %v1204_v7 = vld [vmem:[%s1623_s10 + $0x40] sm:$0xff]   ;;  %v1206_v9 = vld [vmem:[%s1623_s10 + $0x48] sm:$0xff]   ;;  %v1209_v12 = vld [vmem:[%s1623_s10 + $0x18] sm:$0xff]   ;;  %s829_s24 = sshll.u32 %s1677_s20, 4  ;;  %s1760_s18 = scalar_lea.hbm %s1826_s3, %s1054_s22  ;;  %s1762_s24 = int_to_ptr.vmem [resolvable:$true] %s829_s24 }
  0x70   : > { %1077 = vmatprep.mubr.msk.bf16.mxu0 %vm371_vm2, %v1203_v5  ;;  %1093 = vmatprep.mubr.msk.bf16.mxu1 %vm371_vm2, %v1204_v7  ;;  %v1210_v13 = vld [vmem:[%s1623_s10 + $0x58] sm:$0xff]   ;;  %v1211_v14 = vld [vmem:[%s1623_s10 + $0x20] sm:$0xff]   ;;  %v1213_v16 = vld [vmem:[%s1623_s10 + $0x28] sm:$0xff]   ;;  %s814_s26 = scalar_lea.sflag [#allocation4], %s1617_s28  ;;  %s1305_s9 = scalar_lea.vmem %s1762_s24, 2048 }
  0x71   : > { %1075 = vmatprep.subr.bf16.mxu0 %v425_v6  ;;  %1110 = vmatprep.subr.bf16.mxu1 %v425_v6  ;;  %v1212_v15 = vld [vmem:[%s1623_s10 + $0x60] sm:$0xff]   ;;  %v1214_v17 = vld [vmem:[%s1623_s10 + $0x68] sm:$0xff]   ;;  %v1215_v18 = vld [vmem:[%s1623_s10 + $0x30] sm:$0xff]   ;;  %p1306_p8 = scmp.ne.s32.totalorder %s1762_s24, %s1305_s9  ;;  %p1841_p12 = scmp.ne.s32.totalorder %s1837_s27, 0 }
  0x72   : > { %v1216_v19 = vld [vmem:[%s1623_s10 + $0x70] sm:$0xff]   ;;  %v1217_v20 = vld [vmem:[%s1623_s10 + $0x38] sm:$0xff]   ;;  %s1399_s19 = smov [#allocation8]  }
  0x73   : > { %1076 = vmatpush3.bf16.msra.mxu0 %v425_v6  ;;  %1112 = vmatpush3.bf16.msra.mxu1 %v425_v6  ;;  %v1218_v21 = vld [vmem:[%s1623_s10 + $0x78] sm:$0xff]   ;;  %v1665_v22 = vld [vmem:[#allocation7] ss:$0 sm:$0xff]  ;;  %p1307_p1 = pnand %p1306_p8, %p1841_p12  ;;  %s1309_s8 = sshll.u32 %s1399_s19, 4  ;;  %s1310_s8 = int_to_ptr.vmem [resolvable:$false] %s1309_s8 }
  0x74   : > { %s1311_s4 = scalar_lea.vmem %s1310_s8, 4096  ;;  %p1312_p3 = scmp.lt.s32.totalorder %s1762_s24, %s1310_s8 }
  0x75   : > { %p1308_p10 = pneg %p1307_p1  ;;  %p1313_p5 = scmp.lt.s32.totalorder %s1311_s4, %s1305_s9 }
  0x76   : > { %1078 = vmatmul.mubr.msk.bf16.vlgmr.msra.gmra.mrb[0].mxu0 %vm371_vm2, %v1205_v8  ;;  %1094 = vmatmul.mubr.msk.bf16.vlgmr.msra.gmra.mrb[0].mxu1 %vm371_vm2, %v1206_v9 }
  0x77   : > { %1081 = vmatprep.mubr.msk.bf16.mxu0 %vm371_vm2, %v1207_v10  ;;  %1097 = vmatprep.mubr.msk.bf16.mxu1 %vm371_vm2, %v1208_v11  ;;  %p1314_p9 = por %p1313_p5, %p1312_p3 }
  0x79   : > { %p1315_p11 = pnand %p1314_p9, %p1308_p10 }
  0x7e   : > { %1082 = vmatmul.mubr.msk.bf16.gmra.mrb[4].mxu0 %vm371_vm2, %v1209_v12  ;;  %1098 = vmatmul.mubr.msk.bf16.gmra.mrb[4].mxu1 %vm371_vm2, %v1210_v13 }
  0x7f   : > { %1085 = vmatprep.mubr.msk.bf16.mxu0 %vm371_vm2, %v1211_v14  ;;  %1101 = vmatprep.mubr.msk.bf16.mxu1 %vm371_vm2, %v1212_v15 }
  0x86   : > { %1086 = vmatmul.mubr.msk.bf16.gmra.mrb[8].mxu0 %vm371_vm2, %v1213_v16  ;;  %1102 = vmatmul.mubr.msk.bf16.gmra.mrb[8].mxu1 %vm371_vm2, %v1214_v17 }
  0x87   : > { %1089 = vmatprep.mubr.msk.bf16.mxu0 %vm371_vm2, %v1215_v18  ;;  %1105 = vmatprep.mubr.msk.bf16.mxu1 %vm371_vm2, %v1216_v19 }
  0x8e   : > { %1090 = vmatmul.mubr.msk.bf16.gmra.mrb[12].mxu0 %vm371_vm2, %v1217_v20  ;;  %1106 = vmatmul.mubr.msk.bf16.gmra.mrb[12].mxu1 %vm371_vm2, %v1218_v21 }
 0x149   : > { %v1079_v23 = vpop.f32.mrb[0].mxu0  ;;  %v1095_v24 = vpop.f32.mrb[0].mxu1 }
 0x14a   : > { %v470_v25 = vadd.f32 %v1079_v23, %v1665_v22  ;;  %v534_v26 = vadd.f32 %v1095_v24, %v1665_v22  ;;  %v461_v27 = vpop.f32.mrb[1].mxu0  ;;  %v525_v28 = vpop.f32.mrb[1].mxu1 }
 0x14b   : > { %v462_v29 = vadd.f32 %v1665_v22, %v461_v27  ;;  %v526_v30 = vadd.f32 %v1665_v22, %v525_v28  ;;  %v1080_v31 = vpop.f32.mrb[2].mxu0  ;;  %v1096_v32 = vpop.f32.mrb[2].mxu1 }
 0x14c   : > { %v590_v33 = vmul.f32 0.1, %v470_v25  ;;  %v606_v34 = vmul.f32 0.1, %v534_v26  ;;  %v473_v35 = vadd.f32 %v1080_v31, %v1665_v22  ;;  %v537_v36 = vadd.f32 %v1096_v32, %v1665_v22  ;;  %v464_v37 = vpop.f32.mrb[3].mxu0  ;;  %v528_v38 = vpop.f32.mrb[3].mxu1 }
 0x14d   : > { %v588_v39 = vmul.f32 0.1, %v462_v29  ;;  %v604_v40 = vmul.f32 0.1, %v526_v30  ;;  %v465_v41 = vadd.f32 %v1665_v22, %v464_v37  ;;  %v529_v42 = vadd.f32 %v1665_v22, %v528_v38 }
 0x14e   : > { %v622_v43 = vmax.f32 %v470_v25, %v590_v33  ;;  %v638_v44 = vmax.f32 %v534_v26, %v606_v34  ;;  %v591_v45 = vmul.f32 0.1, %v473_v35  ;;  %v607_v46 = vmul.f32 0.1, %v537_v36 }
 0x14f   : > { %v620_v47 = vmax.f32 %v462_v29, %v588_v39  ;;  %v636_v48 = vmax.f32 %v526_v30, %v604_v40  ;;  %v589_v49 = vmul.f32 0.1, %v465_v41  ;;  %v605_v50 = vmul.f32 0.1, %v529_v42 }
 0x150   : > { %v1024_v51 = vpack.c.bf16 %v622_v43, %v622_v43  ;;  %v1040_v52 = vpack.c.bf16 %v638_v44, %v638_v44  ;;  %v623_v53 = vmax.f32 %v473_v35, %v591_v45  ;;  %v639_v54 = vmax.f32 %v537_v36, %v607_v46 }
 0x151   : > { %v1022_v55 = vpack.c.bf16 %v620_v47, %v620_v47  ;;  %v1038_v56 = vpack.c.bf16 %v636_v48, %v636_v48  ;;  %v621_v57 = vmax.f32 %v465_v41, %v589_v49  ;;  %v637_v58 = vmax.f32 %v529_v42, %v605_v50  ;;  %v1083_v59 = vpop.f32.mrb[4].mxu0  ;;  %v1099_v60 = vpop.f32.mrb[4].mxu1 }
 0x152   : > { %783 = vst.msk [vmem:[%s1677_s20 + $0x8] sm:$0xf] %vm780_vm3, %v1024_v51  ;;  %799 = vst.msk [vmem:[%s1677_s20 + $0x48] sm:$0xf] %vm780_vm3, %v1040_v52  ;;  %v1025_v61 = vpack.c.bf16 %v623_v53, %v623_v53  ;;  %v1041_v62 = vpack.c.bf16 %v639_v54, %v639_v54  ;;  %v486_v63 = vadd.f32 %v1083_v59, %v1665_v22  ;;  %v477_v1 = vpop.f32.mrb[5].mxu0  ;;  %v541_v2 = vpop.f32.mrb[5].mxu1 }
 0x153   : > { %v550_v0 = vadd.f32 %v1099_v60, %v1665_v22  ;;  %781 = vst.msk [vmem:[%s1677_s20] sm:$0xf] %vm780_vm3, %v1022_v55  ;;  %797 = vst.msk [vmem:[%s1677_s20 + $0x40] sm:$0xf] %vm780_vm3, %v1038_v56  ;;  %v1023_v3 = vpack.c.bf16 %v621_v57, %v621_v57  ;;  %v1039_v4 = vpack.c.bf16 %v637_v58, %v637_v58  ;;  %v1084_v7 = vpop.f32.mrb[6].mxu0  ;;  %v1100_v8 = vpop.f32.mrb[6].mxu1 }
 0x154   : > { %v478_v5 = vadd.f32 %v1665_v22, %v477_v1  ;;  %v542_v6 = vadd.f32 %v1665_v22, %v541_v2  ;;  %784 = vst.msk [vmem:[%s1677_s20 + $0xc] sm:$0xf] %vm780_vm3, %v1025_v61  ;;  %800 = vst.msk [vmem:[%s1677_s20 + $0x4c] sm:$0xf] %vm780_vm3, %v1041_v62  ;;  %v594_v9 = vmul.f32 0.1, %v486_v63  ;;  %v489_v11 = vadd.f32 %v1084_v7, %v1665_v22 }
 0x155   : > { %v610_v10 = vmul.f32 0.1, %v550_v0  ;;  %v553_v12 = vadd.f32 %v1100_v8, %v1665_v22  ;;  %v480_v13 = vpop.f32.mrb[7].mxu0  ;;  %v544_v14 = vpop.f32.mrb[7].mxu1  ;;  %782 = vst.msk [vmem:[%s1677_s20 + $0x4] sm:$0xf] %vm780_vm3, %v1023_v3 }
 0x156   : > { %798 = vst.msk [vmem:[%s1677_s20 + $0x44] sm:$0xf] %vm780_vm3, %v1039_v4  ;;  %v592_v15 = vmul.f32 0.1, %v478_v5  ;;  %v608_v16 = vmul.f32 0.1, %v542_v6  ;;  %v481_v17 = vadd.f32 %v1665_v22, %v480_v13  ;;  %v545_v18 = vadd.f32 %v1665_v22, %v544_v14 }
 0x157   : > { %v626_v19 = vmax.f32 %v486_v63, %v594_v9  ;;  %v642_v20 = vmax.f32 %v550_v0, %v610_v10  ;;  %v595_v21 = vmul.f32 0.1, %v489_v11  ;;  %v611_v23 = vmul.f32 0.1, %v553_v12 }
 0x158   : > { %v624_v24 = vmax.f32 %v478_v5, %v592_v15  ;;  %v640_v25 = vmax.f32 %v542_v6, %v608_v16  ;;  %v593_v26 = vmul.f32 0.1, %v481_v17  ;;  %v609_v27 = vmul.f32 0.1, %v545_v18 }
 0x159   : > { %v1028_v28 = vpack.c.bf16 %v626_v19, %v626_v19  ;;  %v1044_v29 = vpack.c.bf16 %v642_v20, %v642_v20  ;;  %v627_v30 = vmax.f32 %v489_v11, %v595_v21  ;;  %v643_v31 = vmax.f32 %v553_v12, %v611_v23  ;;  %v1087_v36 = vpop.f32.mrb[8].mxu0  ;;  %v1103_v37 = vpop.f32.mrb[8].mxu1 }
 0x15a   : > { %v1026_v32 = vpack.c.bf16 %v624_v24, %v624_v24  ;;  %v1042_v33 = vpack.c.bf16 %v640_v25, %v640_v25  ;;  %v625_v34 = vmax.f32 %v481_v17, %v593_v26  ;;  %v641_v35 = vmax.f32 %v545_v18, %v609_v27  ;;  %v493_v42 = vpop.f32.mrb[9].mxu0  ;;  %v557_v43 = vpop.f32.mrb[9].mxu1 }
 0x15b   : > { %787 = vst.msk [vmem:[%s1677_s20 + $0x18] sm:$0xf] %vm780_vm3, %v1028_v28  ;;  %803 = vst.msk [vmem:[%s1677_s20 + $0x58] sm:$0xf] %vm780_vm3, %v1044_v29  ;;  %v1029_v38 = vpack.c.bf16 %v627_v30, %v627_v30  ;;  %v1045_v39 = vpack.c.bf16 %v643_v31, %v643_v31  ;;  %v502_v40 = vadd.f32 %v1087_v36, %v1665_v22  ;;  %v1088_v48 = vpop.f32.mrb[10].mxu0  ;;  %v1104_v49 = vpop.f32.mrb[10].mxu1 }
 0x15c   : > { %v566_v41 = vadd.f32 %v1103_v37, %v1665_v22  ;;  %785 = vst.msk [vmem:[%s1677_s20 + $0x10] sm:$0xf] %vm780_vm3, %v1026_v32  ;;  %801 = vst.msk [vmem:[%s1677_s20 + $0x50] sm:$0xf] %vm780_vm3, %v1042_v33  ;;  %v1027_v44 = vpack.c.bf16 %v625_v34, %v625_v34  ;;  %v1043_v45 = vpack.c.bf16 %v641_v35, %v641_v35  ;;  %v496_v54 = vpop.f32.mrb[11].mxu0  ;;  %v560_v55 = vpop.f32.mrb[11].mxu1 }
 0x15d   : > { %v494_v46 = vadd.f32 %v1665_v22, %v493_v42  ;;  %v558_v47 = vadd.f32 %v1665_v22, %v557_v43  ;;  %788 = vst.msk [vmem:[%s1677_s20 + $0x1c] sm:$0xf] %vm780_vm3, %v1029_v38  ;;  %804 = vst.msk [vmem:[%s1677_s20 + $0x5c] sm:$0xf] %vm780_vm3, %v1045_v39  ;;  %v598_v50 = vmul.f32 0.1, %v502_v40  ;;  %v505_v52 = vadd.f32 %v1088_v48, %v1665_v22 }
 0x15e   : > { %v614_v51 = vmul.f32 0.1, %v566_v41  ;;  %v569_v53 = vadd.f32 %v1104_v49, %v1665_v22  ;;  %786 = vst.msk [vmem:[%s1677_s20 + $0x14] sm:$0xf] %vm780_vm3, %v1027_v44  ;;  %802 = vst.msk [vmem:[%s1677_s20 + $0x54] sm:$0xf] %vm780_vm3, %v1043_v45  ;;  %v497_v58 = vadd.f32 %v1665_v22, %v496_v54  ;;  %v561_v59 = vadd.f32 %v1665_v22, %v560_v55 }
 0x15f   : > { %v596_v56 = vmul.f32 0.1, %v494_v46  ;;  %v612_v57 = vmul.f32 0.1, %v558_v47  ;;  %v630_v60 = vmax.f32 %v502_v40, %v598_v50  ;;  %v599_v62 = vmul.f32 0.1, %v505_v52 }
 0x160   : > { %v646_v61 = vmax.f32 %v566_v41, %v614_v51  ;;  %v615_v63 = vmul.f32 0.1, %v569_v53  ;;  %v597_v2 = vmul.f32 0.1, %v497_v58  ;;  %v613_v3 = vmul.f32 0.1, %v561_v59 }
 0x161   : > { %v628_v0 = vmax.f32 %v494_v46, %v596_v56  ;;  %v644_v1 = vmax.f32 %v558_v47, %v612_v57  ;;  %v1032_v4 = vpack.c.bf16 %v630_v60, %v630_v60  ;;  %v631_v6 = vmax.f32 %v505_v52, %v599_v62  ;;  %v1091_v12 = vpop.f32.mrb[12].mxu0  ;;  %v1107_v13 = vpop.f32.mrb[12].mxu1 }
 0x162   : > { %v1048_v5 = vpack.c.bf16 %v646_v61, %v646_v61  ;;  %v647_v7 = vmax.f32 %v569_v53, %v615_v63  ;;  %v629_v10 = vmax.f32 %v497_v58, %v597_v2  ;;  %v645_v11 = vmax.f32 %v561_v59, %v613_v3  ;;  %v509_v18 = vpop.f32.mrb[13].mxu0  ;;  %v573_v19 = vpop.f32.mrb[13].mxu1 }
 0x163   : > { %v1030_v8 = vpack.c.bf16 %v628_v0, %v628_v0  ;;  %v1046_v9 = vpack.c.bf16 %v644_v1, %v644_v1  ;;  %791 = vst.msk [vmem:[%s1677_s20 + $0x28] sm:$0xf] %vm780_vm3, %v1032_v4  ;;  %v1033_v14 = vpack.c.bf16 %v631_v6, %v631_v6  ;;  %v518_v16 = vadd.f32 %v1091_v12, %v1665_v22  ;;  %v1092_v25 = vpop.f32.mrb[14].mxu0  ;;  %v1108_v26 = vpop.f32.mrb[14].mxu1 }
 0x164   : > { %807 = vst.msk [vmem:[%s1677_s20 + $0x68] sm:$0xf] %vm780_vm3, %v1048_v5  ;;  %v1049_v15 = vpack.c.bf16 %v647_v7, %v647_v7  ;;  %v582_v17 = vadd.f32 %v1107_v13, %v1665_v22  ;;  %v1031_v20 = vpack.c.bf16 %v629_v10, %v629_v10  ;;  %v1047_v21 = vpack.c.bf16 %v645_v11, %v645_v11  ;;  %v512_v31 = vpop.f32.mrb[15].mxu0  ;;  %v576_v32 = vpop.f32.mrb[15].mxu1 }
 0x165   : > { %789 = vst.msk [vmem:[%s1677_s20 + $0x20] sm:$0xf] %vm780_vm3, %v1030_v8  ;;  %805 = vst.msk [vmem:[%s1677_s20 + $0x60] sm:$0xf] %vm780_vm3, %v1046_v9  ;;  %v510_v23 = vadd.f32 %v1665_v22, %v509_v18  ;;  %v574_v24 = vadd.f32 %v1665_v22, %v573_v19  ;;  %v602_v27 = vmul.f32 0.1, %v518_v16  ;;  %v521_v29 = vadd.f32 %v1092_v25, %v1665_v22 }
 0x166   : > { %792 = vst.msk [vmem:[%s1677_s20 + $0x2c] sm:$0xf] %vm780_vm3, %v1033_v14  ;;  %808 = vst.msk [vmem:[%s1677_s20 + $0x6c] sm:$0xf] %vm780_vm3, %v1049_v15  ;;  %v618_v28 = vmul.f32 0.1, %v582_v17  ;;  %v585_v30 = vadd.f32 %v1108_v26, %v1665_v22  ;;  %v513_v35 = vadd.f32 %v1665_v22, %v512_v31  ;;  %v577_v36 = vadd.f32 %v1665_v22, %v576_v32 }
 0x167   : > { %790 = vst.msk [vmem:[%s1677_s20 + $0x24] sm:$0xf] %vm780_vm3, %v1031_v20  ;;  %806 = vst.msk [vmem:[%s1677_s20 + $0x64] sm:$0xf] %vm780_vm3, %v1047_v21  ;;  %v600_v33 = vmul.f32 0.1, %v510_v23  ;;  %v634_v37 = vmax.f32 %v518_v16, %v602_v27 }
 0x168   : > { %v616_v34 = vmul.f32 0.1, %v574_v24  ;;  %v650_v38 = vmax.f32 %v582_v17, %v618_v28  ;;  %v603_v39 = vmul.f32 0.1, %v521_v29  ;;  %v619_v40 = vmul.f32 0.1, %v585_v30 }
 0x169   : > { %v632_v41 = vmax.f32 %v510_v23, %v600_v33  ;;  %v601_v43 = vmul.f32 0.1, %v513_v35  ;;  %v617_v44 = vmul.f32 0.1, %v577_v36  ;;  %v1036_v45 = vpack.c.bf16 %v634_v37, %v634_v37 }
 0x16a   : > { %v648_v42 = vmax.f32 %v574_v24, %v616_v34  ;;  %v1052_v46 = vpack.c.bf16 %v650_v38, %v650_v38  ;;  %v635_v47 = vmax.f32 %v521_v29, %v603_v39  ;;  %v651_v48 = vmax.f32 %v585_v30, %v619_v40 }
 0x16b   : > { %v1034_v22 = vpack.c.bf16 %v632_v41, %v632_v41  ;;  %v633_v50 = vmax.f32 %v513_v35, %v601_v43  ;;  %v649_v51 = vmax.f32 %v577_v36, %v617_v44  ;;  %795 = vst.msk [vmem:[%s1677_s20 + $0x38] sm:$0xf] %vm780_vm3, %v1036_v45 }
 0x16c   : > { %v1050_v49 = vpack.c.bf16 %v648_v42, %v648_v42  ;;  %811 = vst.msk [vmem:[%s1677_s20 + $0x78] sm:$0xf] %vm780_vm3, %v1052_v46  ;;  %v1037_v52 = vpack.c.bf16 %v635_v47, %v635_v47  ;;  %v1053_v53 = vpack.c.bf16 %v651_v48, %v651_v48 }
 0x16d   : > { %793 = vst.msk [vmem:[%s1677_s20 + $0x30] sm:$0xf] %vm780_vm3, %v1034_v22  ;;  %v1035_v54 = vpack.c.bf16 %v633_v50, %v633_v50  ;;  %v1051_v55 = vpack.c.bf16 %v649_v51, %v649_v51 }
 0x16e   : > { %809 = vst.msk [vmem:[%s1677_s20 + $0x70] sm:$0xf] %vm780_vm3, %v1050_v49  ;;  %796 = vst.msk [vmem:[%s1677_s20 + $0x3c] sm:$0xf] %vm780_vm3, %v1037_v52 }
 0x16f   : > { %812 = vst.msk [vmem:[%s1677_s20 + $0x7c] sm:$0xf] %vm780_vm3, %v1053_v53  ;;  %794 = vst.msk [vmem:[%s1677_s20 + $0x34] sm:$0xf] %vm780_vm3, %v1035_v54 }
 0x170   : > { %810 = vst.msk [vmem:[%s1677_s20 + $0x74] sm:$0xf] %vm780_vm3, %v1051_v55 }
 0x171   : > { %1318 = shalt.err (!%p1315_p11)
}
 0x172   : > { %s1319_s21 = scalar_lea.hbm %s1760_s18, 2048  ;;  %s1323_s5 = scalar_lea.hbm %s1826_s3, 4096 }
 0x173   : > { %p1320_p0 = scmp.ne.s32.totalorder %s1760_s18, %s1319_s21  ;;  %p1324_p6 = scmp.lt.u32.totalorder %s1760_s18, %s1826_s3 }
 0x174   : > { %p1325_p7 = scmp.lt.u32.totalorder %s1323_s5, %s1319_s21  ;;  %p1327_p8 = scmp.lt.u32.totalorder %s1319_s21, %s1760_s18 }
 0x175   : > { %p1321_p4 = pnand %p1320_p0, %p1841_p12 }
 0x176   : > { %p1326_p2 = por %p1325_p7, %p1324_p6 }
 0x177   : > { %p1322_p13 = pneg %p1321_p4 }
 0x178   : > { %p1328_p1 = por %p1327_p8, %p1326_p2 }
 0x17a   : > { %p1329_p10 = pnand %p1328_p1, %p1322_p13 }
 0x17c   : > { %1332 = shalt.err (!%p1329_p10)
}
 0x17d   : > { %s1400_s20 = smov 64   ;;  %s1401_s22 = smov 4  }
 0x17e   : > { %1123 = dma.vmem_to_hbm [thread:$0]  (%p1841_p12), %s1762_s24, 2048, %s1760_s18, %s814_s26, %s1400_s20, %s1400_s20, %s1401_s22  }
 0x17f PF: > { %s844_s15 = sand.u32 1, %s1371_s12   ;;  %p1842_p3 = scmp.ne.s32.totalorder %s1834_s23, 0 }
 0x180   : > { %p1843_p5 = scmp.ge.s32.totalorder %s1391_s17, 2  ;;  %s845_s11 = scalar_lea.sflag [#allocation4], %s844_s15 }
 0x182   : > { %p1137_p9 = pnand %p1843_p5, %p1842_p3 }
 0x184   : > { %1366 = dma.done.wait (!%p1137_p9), %s845_s11, 2048  }
 0x185   : > { %1368 = vsyncadd (!%p1137_p9), %s845_s11, 4294965248  ;;  %s20_s17 = sadd.s32 1, %s1391_s17   ;;  %s1844_s12 = smov %s1375_s13 }
 0x186   : > { %p17_p11 = scmp.ge.s32.totalorder %s20_s17, 4   ;;  %s1845_s13 = smov %s1379_s14 }
 0x187   : > { %s1846_s14 = smov %s1568_s6  ;;  %s1847_s15 = smov %s1387_s16 }
 0x188   : > { %s1848_s16 = smov %s1850_s25  ;;  %19 = sbr.rel (!%p17_p11) target bundleno = 7 (0x7), region = 85 }
 0x18f   :  { %850 = vsyncpa [#allocation3], 1 }
 0x190   :  { %852 = vsyncpa [#allocation3 + $0x1], 1 }
 0x191   :  { %853 = vsyncpa [#allocation6], 1 }
 0x192   :  { %854 = vsyncpa [#allocation4], 1 }
 0x193   :  { %856 = vsyncpa [#allocation4 + $0x1], 1 }

// kernel: forward.10
= control target key start
LH: loop header
LB: loop body
LE: loop exit
PB: predicated region body
PF: predicated region fallthrough
CT: control target
= control target key end

     0   :  { %8 = vsyncpa [#allocation3], 0  ;;  %s1301_s0 = inlined_call_operand.hbm [shape: bf16[2,64,144], index: 0, kind: input, shape index: {}]   ;;  %s1302_s1 = inlined_call_operand.hbm [shape: bf16[144,32], index: 1, kind: input, shape index: {}]   ;;  %s1303_s2 = inlined_call_operand.hbm [shape: f32[1,32], index: 2, kind: input, shape index: {}]   ;;  %s1304_s3 = inlined_call_operand.hbm [shape: bf16[2,64,32], index: 3, kind: output, shape index: {}]  }
   0x1   :  { %10 = vsyncpa [#allocation3 + $0x1], 0 }
   0x2   :  { %11 = vsyncpa [#allocation6], 0 }
   0x3   :  { %12 = vsyncpa [#allocation4], 0 }
   0x4   :  { %14 = vsyncpa [#allocation4 + $0x1], 0  ;;  %s1011_s12 = smov 0   ;;  %s1013_s13 = smov 0  }
   0x5   :  { %s1015_s14 = smov 0   ;;  %s1017_s15 = smov 0  }
   0x6   :  { %s1019_s16 = smov 0   ;;  %s1021_s17 = smov 0  }
   0x7 LB: > { %s618_s18 = sadd.s32 4294967295, %s978_s17   ;;  %s619_s19 = sadd.s32 4294967294, %s978_s17   ;;  %s978_s17 = sphi %s1021_s17, %s20_s17   ;;  %s974_s16 = sphi %s1019_s16, %s1326_s16   ;;  %s970_s15 = sphi %s1017_s15, %s1325_s15   ;;  %s966_s14 = sphi %s1015_s14, %s1324_s14   ;;  %s962_s13 = sphi %s1013_s13, %s1323_s13   ;;  %s958_s12 = sphi %s1011_s12, %s1322_s12  }
   0x8   : > { %p54_p0 = scmp.ne.s32.totalorder %s962_s13, %s958_s12  ;;  %p1045_p1 = scmp.eq.s32.totalorder %s618_s18, 0 }
   0x9   : > { %p1049_p2 = scmp.eq.s32.totalorder %s618_s18, 1  ;;  %p128_p3 = scmp.eq.s32.totalorder %s619_s19, 1 }
   0xa   : > { %s1309_s20 = scalar_select %p1045_p1, 1, 0 }
   0xb   : > { %p1055_p4 = por %p1045_p1, %p54_p0  ;;  %p620_p5 = scmp.ge.s32.totalorder %s978_s17, 1 }
   0xc   : > { %p1060_p6 = por %p128_p3, %p54_p0  ;;  %p135_p7 = scmp.lt.s32.totalorder %s978_s17, 3 }
   0xd   : > { %s1311_s22 = scalar_select %p1055_p4, 1, 0 }
   0xe   : > { %s1312_s23 = scalar_select %p1060_p6, 1, 0 }
   0xf   : > { %p1065_p8 = pnand %p620_p5, %p135_p7  ;;  %s980_s25 = smov [#allocation5]  }
  0x10   : > { %s147_s26 = sshll.u32 %s980_s25, 4  ;;  %s981_s28 = smov [#allocation7]   ;;  %s1069_s26 = int_to_ptr.vmem [resolvable:$true] %s147_s26 }
  0x11   : > { %p707_p9 = pneg %p1065_p8  ;;  %s161_s29 = sshll.u32 %s981_s28, 4  ;;  %s1080_s29 = int_to_ptr.vmem [resolvable:$true] %s161_s29 }
  0x12   : > { %s806_s5 = scalar_lea.hbm %s1302_s1, 1152 }
  0x13   : > { %p1076_p11 = pnand %p707_p9, %p1045_p1  ;;  %p807_p12 = scmp.ne.s32.totalorder %s1302_s1, %s806_s5 }
  0x14   : > { %p813_p5 = scmp.lt.u32.totalorder %s806_s5, %s1302_s1 }
  0x15   : > { %p808_p13 = pneg %p1076_p11 }
  0x17   : > { %p809_p0 = pnand %p808_p13, %p807_p12 }
  0x19   : > { %p810_p3 = pneg %p809_p0 }
  0x1b   : > { %p815_p7 = pnand %p813_p5, %p810_p3 }
  0x1d   : > { %818 = shalt.err (!%p815_p7)
}
  0x1e   : > { %s819_s10 = scalar_lea.vmem %s1069_s26, 1152  ;;  %p827_p1 = scmp.lt.s32.totalorder %s1069_s26, %s1069_s26 }
  0x1f   : > { %p820_p9 = scmp.ne.s32.totalorder %s1069_s26, %s819_s10  ;;  %p828_p12 = scmp.lt.s32.totalorder %s819_s10, %s819_s10 }
  0x21   : > { %p822_p10 = pnand %p820_p9, %p808_p13  ;;  %p829_p0 = por %p828_p12, %p827_p1 }
  0x23   : > { %p823_p6 = pneg %p822_p10 }
  0x25   : > { %p830_p4 = pnand %p829_p0, %p823_p6 }
  0x27   : > { %833 = shalt.err (!%p830_p4)
}
  0x28   : > { %s982_s11 = smov 64   ;;  %s983_s18 = smov 4  }
  0x29   : > { %710 = dma.hbm_to_vmem [thread:$0]  (!%p1076_p11), %s1302_s1, 1152, %s1069_s26, [#allocation6], %s982_s11, %s982_s11, %s983_s18  }
  0x2a   : > { %s834_s4 = scalar_lea.hbm %s1303_s2, 16 }
  0x2b   : > { %p835_p1 = scmp.ne.s32.totalorder %s1303_s2, %s834_s4  ;;  %p841_p10 = scmp.lt.u32.totalorder %s834_s4, %s1303_s2 }
  0x2d   : > { %p837_p4 = pnand %p835_p1, %p808_p13 }
  0x2f   : > { %p838_p6 = pneg %p837_p4 }
  0x31   : > { %p843_p3 = pnand %p841_p10, %p838_p6 }
  0x33   : > { %846 = shalt.err (!%p843_p3)
}
  0x34   : > { %s847_s26 = scalar_lea.vmem %s1080_s29, 16  ;;  %s854_s9 = scalar_lea.vmem %s1080_s29, 32 }
  0x35   : > { %p848_p5 = scmp.ne.s32.totalorder %s1080_s29, %s847_s26  ;;  %p855_p12 = scmp.lt.s32.totalorder %s1080_s29, %s1080_s29 }
  0x36   : > { %p856_p0 = scmp.lt.s32.totalorder %s854_s9, %s847_s26 }
  0x37   : > { %p850_p7 = pnand %p848_p5, %p808_p13 }
  0x38   : > { %p857_p1 = por %p856_p0, %p855_p12 }
  0x39   : > { %p851_p9 = pneg %p850_p7 }
  0x3b   : > { %p858_p4 = pnand %p857_p1, %p851_p9 }
  0x3d   : > { %861 = shalt.err (!%p858_p4)
}
  0x3e   : > { %713 = dma.hbm_to_vmem [thread:$0]  (!%p1076_p11), %s1303_s2, 16, %s1080_s29, [#allocation6]  }
  0x3f   : > { %s32_s18 = sadd.s32 1, %s974_s16  ;;  %s41_s19 = sadd.s32 1, %s966_s14 }
  0x40   : > { %p34_p13 = scmp.ge.s32.totalorder %s32_s18, 2  ;;  %p48_p6 = scmp.ne.s32.totalorder %s966_s14, %s962_s13 }
  0x41   : > { %p49_p10 = scmp.eq.s32.totalorder %s978_s17, 0  ;;  %p724_p3 = scmp.lt.s32.totalorder %s978_s17, 2 }
  0x42   : > { %s1328_s18 = smov (%p34_p13, %s32_s18), 0  ;;  %p1145_p7 = por %p1049_p2, %p48_p6 }
  0x43   : > { %p50_p5 = por %p49_p10, %p48_p6  ;;  %s36_s25 = ssub.s32 %s974_s16, %s1328_s18 }
  0x44   : > { %s1315_s27 = scalar_select %p1145_p7, 1, 0 }
  0x45   : > { %s172_s28 = sand.u32 1, %s966_s14   ;;  %p39_p9 = scmp.eq.s32.totalorder %s36_s25, 0 }
  0x46   : > { %s624_s29 = sshll.u32 %s172_s28, 6  ;;  %s667_s30 = sshll.u32 %s974_s16, 10 }
  0x47   : > { %s1154_s4 = scalar_select %p39_p9, %s966_s14, %s41_s19  }
  0x48   : > { %s1159_s7 = scalar_lea.hbm %s1301_s0, %s667_s30  ;;  %s176_s21 = scalar_lea.vmem [#allocation2], %s624_s29 }
  0x49   : > { %s186_s8 = sshll.u32 %s176_s21, 4  ;;  %p1163_p2 = pnand %p724_p3, %p50_p5  ;;  %s1167_s8 = int_to_ptr.vmem [resolvable:$true] %s186_s8 }
  0x4a   : > { %s1169_s9 = scalar_lea.sflag [#allocation3], %s172_s28  ;;  %s862_s10 = scalar_lea.hbm %s1159_s7, 1024 }
  0x4b   : > { %p863_p11 = scmp.ne.s32.totalorder %s1159_s7, %s862_s10  ;;  %p864_p12 = pneg %p1163_p2 }
  0x4c   : > { %s867_s25 = scalar_lea.hbm %s1301_s0, 2048  ;;  %p868_p4 = scmp.lt.u32.totalorder %s1159_s7, %s1301_s0 }
  0x4d   : > { %p865_p0 = pnand %p864_p12, %p863_p11  ;;  %p869_p13 = scmp.lt.u32.totalorder %s867_s25, %s862_s10 }
  0x4e   : > { %p871_p10 = scmp.lt.u32.totalorder %s862_s10, %s1159_s7 }
  0x4f   : > { %p866_p1 = pneg %p865_p0  ;;  %p870_p6 = por %p869_p13, %p868_p4 }
  0x51   : > { %p872_p3 = por %p871_p10, %p870_p6 }
  0x53   : > { %p873_p5 = pnand %p872_p3, %p866_p1 }
  0x55   : > { %876 = shalt.err (!%p873_p5)
}
  0x56   : > { %s877_s28 = scalar_lea.vmem %s1167_s8, 1024  ;;  %s984_s5 = smov [#allocation2]  }
  0x57   : > { %p878_p9 = scmp.ne.s32.totalorder %s1167_s8, %s877_s28  ;;  %s882_s6 = sshll.u32 %s984_s5, 4  ;;  %s883_s6 = int_to_ptr.vmem [resolvable:$false] %s882_s6 }
  0x58   : > { %s884_s21 = scalar_lea.vmem %s883_s6, 2048  ;;  %p885_p7 = scmp.lt.s32.totalorder %s1167_s8, %s883_s6 }
  0x59   : > { %p880_p11 = pnand %p878_p9, %p864_p12  ;;  %p886_p4 = scmp.lt.s32.totalorder %s884_s21, %s877_s28 }
  0x5b   : > { %p881_p0 = pneg %p880_p11  ;;  %p887_p13 = por %p886_p4, %p885_p7 }
  0x5d   : > { %p888_p6 = pnand %p887_p13, %p881_p0 }
  0x5f   : > { %891 = shalt.err (!%p888_p6)
}
  0x60   : > { %s985_s10 = smov 128   ;;  %s986_s11 = smov 8  }
  0x61   : > { %717 = dma.hbm_to_vmem [thread:$0]  (!%p1163_p2), %s1159_s7, 1024, %s1167_s8, %s1169_s9, %s985_s10, %s985_s10, %s986_s11  }
  0x62   : > { %198 = sbr.rel (%p1065_p8) target bundleno = 391 (0x187), region = 32  ;;  %s1200_s19 = sand.u32 (!%p1065_p8), 1, %s962_s13  }
  0x63   : > { %s628_s25 = sshll.u32 (!%p1065_p8), %s1200_s19, 6  ;;  %s201_s29 = scalar_lea.sflag (!%p1065_p8), [#allocation3], %s1200_s19 }
  0x64   : > { %s1204_s30 = scalar_lea.vmem (!%p1065_p8), [#allocation2], %s628_s25  ;;  %p1317_p7 = scmp.ne.s32.totalorder (!%p1065_p8), %s1311_s22, 0 }
  0x69   : > { %945 = dma.done.wait (%p1317_p7), %s201_s29, 1024  }
  0x6a   : > { %947 = vsyncadd (%p1317_p7), %s201_s29, 4294966272  ;;  %p1318_p2 = scmp.ne.s32.totalorder %s1309_s20, 0 }
  0x6c   : > { %949 = dma.done.wait (%p1318_p2), [#allocation6], 1168  }
  0x6d   : > { %951 = vsyncadd (%p1318_p2), [#allocation6], 4294966128  ;;  %v987_v0 = vmov 0   ;;  %v785_v1 = vld [vmem:[#allocation5] sm:$0xff]   ;;  %v786_v2 = vld [vmem:[#allocation5 + $0x8] sm:$0xff]   ;;  %vm361_vm0 = vcmask 130048  }
  0x6e   : > { %374 = vmatprep.subr.bf16.mxu0 %v987_v0  ;;  %677 = vmatprep.subr.bf16.mxu1 %v987_v0  ;;  %v787_v3 = vld [vmem:[#allocation5 + $0x10] sm:$0xff]   ;;  %v788_v4 = vld [vmem:[#allocation5 + $0x18] sm:$0xff]   ;;  %v796_v5 = vld [vmem:[%s1204_s30 + $0x4] ss:$8 sps:$4 sm:$0xff]   ;;  %s631_s20 = sshll.u32 %s1200_s19, 5  ;;  %vm487_vm1 = vcmask 257024  }
  0x6f   : > { %375 = vmatpush1.bf16.msra.mxu0 %v785_v1  ;;  %686 = vmatpush1.bf16.msra.mxu1 %v785_v1  ;;  %v799_v6 = vld [vmem:[%s1204_s30 + $0x24] ss:$8 sps:$4 sm:$0xff]   ;;  %v791_v9 = vld [vmem:[#allocation5 + $0x30] sm:$0xff]   ;;  %v792_v10 = vld [vmem:[#allocation5 + $0x38] sm:$0xff]   ;;  %s1227_s22 = scalar_lea.vmem [#allocation8], %s631_s20  ;;  %s676_s24 = sshll.u32 %s970_s15, 9 }
  0x70   : > { %376 = vmatprep.subr.bf16.mxu0 %v987_v0  ;;  %678 = vmatprep.subr.bf16.mxu1 %v987_v0  ;;  %v789_v7 = vld [vmem:[#allocation5 + $0x20] sm:$0xff]   ;;  %v790_v8 = vld [vmem:[#allocation5 + $0x28] sm:$0xff]   ;;  %v800_v14 = vld [vmem:[%s1204_s30 + $0x14] ss:$8 sps:$4 sm:$0xff]   ;;  %s512_s7 = sshll.u32 %s1227_s22, 4  ;;  %s1242_s9 = scalar_lea.hbm %s1304_s3, %s676_s24  ;;  %s1244_s7 = int_to_ptr.vmem [resolvable:$true] %s512_s7 }
  0x71   : > { %650 = vmatprep.mubr.msk.bf16.mxu0 %vm361_vm0, %v796_v5  ;;  %652 = vmatprep.mubr.msk.bf16.mxu1 %vm361_vm0, %v799_v6  ;;  %v793_v11 = vld [vmem:[#allocation5 + $0x40] sm:$0xff]   ;;  %v802_v15 = vld [vmem:[%s1204_s30 + $0x34] ss:$8 sps:$4 sm:$0xff]   ;;  %v804_v16 = vld [vmem:[%s1204_s30 + $0x10] ss:$8 sps:$4 sm:$0xff]   ;;  %s497_s15 = scalar_lea.sflag [#allocation4], %s1200_s19 }
  0x72   : > { %v794_v12 = vld [vmem:[%s1204_s30] ss:$8 sps:$4 sm:$0xff]   ;;  %v805_v17 = vld [vmem:[%s1204_s30 + $0x30] ss:$8 sps:$4 sm:$0xff]   ;;  %s892_s28 = scalar_lea.vmem %s1244_s7, 512  ;;  %p1319_p12 = scmp.ne.s32.totalorder %s1315_s27, 0 }
  0x73   : > { %377 = vmatpush1.bf16.msra.mxu0 %v786_v2  ;;  %687 = vmatpush1.bf16.msra.mxu1 %v786_v2  ;;  %v797_v13 = vld [vmem:[%s1204_s30 + $0x20] ss:$8 sps:$4 sm:$0xff]   ;;  %p893_p8 = scmp.ne.s32.totalorder %s1244_s7, %s892_s28  ;;  %s988_s5 = smov [#allocation8]  }
  0x74   : > { %378 = vmatprep.subr.bf16.mxu0 %v987_v0  ;;  %679 = vmatprep.subr.bf16.mxu1 %v987_v0  ;;  %v632_v18 = vld [vmem:[#allocation7] ss:$0 sm:$0xff]  ;;  %s896_s6 = sshll.u32 %s988_s5, 4  ;;  %s897_s6 = int_to_ptr.vmem [resolvable:$false] %s896_s6 }
  0x75   : > { %p894_p1 = pnand %p893_p8, %p1319_p12  ;;  %s898_s21 = scalar_lea.vmem %s897_s6, 1024 }
  0x76   : > { %p899_p3 = scmp.lt.s32.totalorder %s1244_s7, %s897_s6  ;;  %p900_p5 = scmp.lt.s32.totalorder %s898_s21, %s892_s28 }
  0x77   : > { %379 = vmatpush1.bf16.msra.mxu0 %v787_v3  ;;  %688 = vmatpush1.bf16.msra.mxu1 %v787_v3  ;;  %p895_p10 = pneg %p894_p1 }
  0x78   : > { %380 = vmatprep.subr.bf16.mxu0 %v987_v0  ;;  %680 = vmatprep.subr.bf16.mxu1 %v987_v0  ;;  %p901_p9 = por %p900_p5, %p899_p3 }
  0x7a   : > { %p902_p11 = pnand %p901_p9, %p895_p10 }
  0x7b   : > { %381 = vmatpush1.bf16.msra.mxu0 %v788_v4  ;;  %689 = vmatpush1.bf16.msra.mxu1 %v788_v4 }
  0x7c   : > { %382 = vmatprep.subr.bf16.mxu0 %v987_v0  ;;  %681 = vmatprep.subr.bf16.mxu1 %v987_v0 }
  0x7f   : > { %383 = vmatpush1.bf16.msra.mxu0 %v789_v7  ;;  %690 = vmatpush1.bf16.msra.mxu1 %v789_v7 }
  0x80   : > { %384 = vmatprep.subr.bf16.mxu0 %v987_v0  ;;  %682 = vmatprep.subr.bf16.mxu1 %v987_v0 }
  0x83   : > { %385 = vmatpush1.bf16.msra.mxu0 %v790_v8  ;;  %691 = vmatpush1.bf16.msra.mxu1 %v790_v8 }
  0x84   : > { %386 = vmatprep.subr.bf16.mxu0 %v987_v0  ;;  %683 = vmatprep.subr.bf16.mxu1 %v987_v0 }
  0x87   : > { %387 = vmatpush1.bf16.msra.mxu0 %v791_v9  ;;  %692 = vmatpush1.bf16.msra.mxu1 %v791_v9 }
  0x88   : > { %388 = vmatprep.subr.bf16.mxu0 %v987_v0  ;;  %684 = vmatprep.subr.bf16.mxu1 %v987_v0 }
  0x8b   : > { %389 = vmatpush1.bf16.msra.mxu0 %v792_v10  ;;  %693 = vmatpush1.bf16.msra.mxu1 %v792_v10 }
  0x8c   : > { %390 = vmatprep.subr.bf16.mxu0 %v987_v0  ;;  %685 = vmatprep.subr.bf16.mxu1 %v987_v0 }
  0x8f   : > { %391 = vmatpush1.bf16.msra.mxu0 %v793_v11  ;;  %694 = vmatpush1.bf16.msra.mxu1 %v793_v11 }
  0x92   : > { %407 = vmatmul.mubr.bf16.vlgmr.msra.gmra.mrb[0].mxu0 %v794_v12  ;;  %423 = vmatmul.mubr.bf16.vlgmr.msra.gmra.mrb[0].mxu1 %v797_v13 }
  0x93   : > { %651 = vmatprep.mubr.msk.bf16.mxu0 %vm361_vm0, %v800_v14  ;;  %653 = vmatprep.mubr.msk.bf16.mxu1 %vm361_vm0, %v802_v15 }
  0x9a   : > { %415 = vmatmul.mubr.bf16.gmra.mrb[4].mxu0 %v804_v16  ;;  %431 = vmatmul.mubr.bf16.gmra.mrb[4].mxu1 %v805_v17 }
 0x165   : > { %v408_v19 = vpop.f32.mrb[0].mxu0  ;;  %v424_v20 = vpop.f32.mrb[0].mxu1 }
 0x166   : > { %v409_v21 = vadd.f32 %v632_v18, %v408_v19  ;;  %v425_v22 = vadd.f32 %v632_v18, %v424_v20  ;;  %v410_v23 = vpop.f32.mrb[1].mxu0  ;;  %v426_v24 = vpop.f32.mrb[1].mxu1 }
 0x167   : > { %v411_v25 = vpop.f32.mrb[2].mxu0  ;;  %v427_v26 = vpop.f32.mrb[2].mxu1 }
 0x168   : > { %v439_v27 = vmul.f32 0.1, %v409_v21  ;;  %v443_v28 = vmul.f32 0.1, %v425_v22  ;;  %v412_v29 = vadd.f32 %v632_v18, %v411_v25  ;;  %v428_v30 = vadd.f32 %v632_v18, %v427_v26  ;;  %v413_v31 = vpop.f32.mrb[3].mxu0  ;;  %v429_v32 = vpop.f32.mrb[3].mxu1 }
 0x16a   : > { %v447_v33 = vmax.f32 %v409_v21, %v439_v27  ;;  %v451_v34 = vmax.f32 %v425_v22, %v443_v28  ;;  %v440_v35 = vmul.f32 0.1, %v412_v29  ;;  %v444_v36 = vmul.f32 0.1, %v428_v30 }
 0x16c   : > { %v668_v37 = vpack.c.bf16 %v447_v33, %v447_v33  ;;  %v672_v38 = vpack.c.bf16 %v451_v34, %v451_v34  ;;  %v448_v39 = vmax.f32 %v412_v29, %v440_v35  ;;  %v452_v40 = vmax.f32 %v428_v30, %v444_v36 }
 0x16d   : > { %v416_v41 = vpop.f32.mrb[4].mxu0  ;;  %v432_v42 = vpop.f32.mrb[4].mxu1 }
 0x16e   : > { %488 = vst.msk [vmem:[%s1227_s22] sm:$0xf] %vm487_vm1, %v668_v37  ;;  %492 = vst.msk [vmem:[%s1227_s22 + $0x10] sm:$0xf] %vm487_vm1, %v672_v38  ;;  %v669_v43 = vpack.c.bf16 %v448_v39, %v448_v39  ;;  %v673_v44 = vpack.c.bf16 %v452_v40, %v452_v40  ;;  %v417_v45 = vadd.f32 %v632_v18, %v416_v41  ;;  %v418_v47 = vpop.f32.mrb[5].mxu0  ;;  %v434_v48 = vpop.f32.mrb[5].mxu1 }
 0x16f   : > { %v433_v46 = vadd.f32 %v632_v18, %v432_v42  ;;  %v419_v49 = vpop.f32.mrb[6].mxu0  ;;  %v435_v50 = vpop.f32.mrb[6].mxu1 }
 0x170   : > { %489 = vst.msk [vmem:[%s1227_s22 + $0x4] sm:$0xf] %vm487_vm1, %v669_v43  ;;  %493 = vst.msk [vmem:[%s1227_s22 + $0x14] sm:$0xf] %vm487_vm1, %v673_v44  ;;  %v441_v51 = vmul.f32 0.1, %v417_v45  ;;  %v420_v53 = vadd.f32 %v632_v18, %v419_v49  ;;  %v436_v54 = vadd.f32 %v632_v18, %v435_v50 }
 0x171   : > { %v445_v52 = vmul.f32 0.1, %v433_v46  ;;  %v421_v55 = vpop.f32.mrb[7].mxu0  ;;  %v437_v56 = vpop.f32.mrb[7].mxu1 }
 0x172   : > { %v449_v57 = vmax.f32 %v417_v45, %v441_v51  ;;  %v442_v59 = vmul.f32 0.1, %v420_v53  ;;  %v446_v60 = vmul.f32 0.1, %v436_v54 }
 0x173   : > { %v453_v58 = vmax.f32 %v433_v46, %v445_v52 }
 0x174   : > { %v670_v61 = vpack.c.bf16 %v449_v57, %v449_v57  ;;  %v450_v63 = vmax.f32 %v420_v53, %v442_v59  ;;  %v454_v0 = vmax.f32 %v436_v54, %v446_v60 }
 0x175   : > { %v674_v62 = vpack.c.bf16 %v453_v58, %v453_v58 }
 0x176   : > { %490 = vst.msk [vmem:[%s1227_s22 + $0x8] sm:$0xf] %vm487_vm1, %v670_v61  ;;  %v671_v1 = vpack.c.bf16 %v450_v63, %v450_v63  ;;  %v675_v2 = vpack.c.bf16 %v454_v0, %v454_v0 }
 0x177   : > { %494 = vst.msk [vmem:[%s1227_s22 + $0x18] sm:$0xf] %vm487_vm1, %v674_v62 }
 0x178   : > { %491 = vst.msk [vmem:[%s1227_s22 + $0xc] sm:$0xf] %vm487_vm1, %v671_v1  ;;  %495 = vst.msk [vmem:[%s1227_s22 + $0x1c] sm:$0xf] %vm487_vm1, %v675_v2 }
 0x179   : > { %905 = shalt.err (!%p902_p11)
}
 0x17a   : > { %s906_s10 = scalar_lea.hbm %s1242_s9, 512  ;;  %s910_s29 = scalar_lea.hbm %s1304_s3, 1024 }
 0x17b   : > { %p907_p0 = scmp.ne.s32.totalorder %s1242_s9, %s906_s10  ;;  %p911_p6 = scmp.lt.u32.totalorder %s1242_s9, %s1304_s3 }
 0x17c   : > { %p912_p7 = scmp.lt.u32.totalorder %s910_s29, %s906_s10  ;;  %p914_p8 = scmp.lt.u32.totalorder %s906_s10, %s1242_s9 }
 0x17d   : > { %p908_p4 = pnand %p907_p0, %p1319_p12 }
 0x17e   : > { %p913_p2 = por %p912_p7, %p911_p6 }
 0x17f   : > { %p909_p13 = pneg %p908_p4 }
 0x180   : > { %p915_p1 = por %p914_p8, %p913_p2 }
 0x182   : > { %p916_p10 = pnand %p915_p1, %p909_p13 }
 0x184   : > { %919 = shalt.err (!%p916_p10)
}
 0x185   : > { %s989_s22 = smov 64   ;;  %s990_s24 = smov 4  }
 0x186   : > { %705 = dma.vmem_to_hbm [thread:$0]  (%p1319_p12), %s1244_s7, 512, %s1242_s9, %s497_s15, %s989_s22, %s989_s22, %s990_s24  }
 0x187 PF: > { %s527_s8 = sand.u32 1, %s958_s12   ;;  %p1320_p3 = scmp.ne.s32.totalorder %s1312_s23, 0 }
 0x188   : > { %p1321_p5 = scmp.ge.s32.totalorder %s978_s17, 2  ;;  %s528_s26 = scalar_lea.sflag [#allocation4], %s527_s8 }
 0x18a   : > { %p719_p9 = pnand %p1321_p5, %p1320_p3 }
 0x18c   : > { %953 = dma.done.wait (!%p719_p9), %s528_s26, 512  }
 0x18d   : > { %955 = vsyncadd (!%p719_p9), %s528_s26, 4294966784  ;;  %s20_s17 = sadd.s32 1, %s978_s17   ;;  %s1322_s12 = smov %s962_s13 }
 0x18e   : > { %p17_p11 = scmp.ge.s32.totalorder %s20_s17, 4   ;;  %s1323_s13 = smov %s966_s14 }
 0x18f   : > { %s1324_s14 = smov %s1154_s4  ;;  %s1325_s15 = smov %s974_s16 }
 0x190   : > { %s1326_s16 = smov %s1328_s18  ;;  %19 = sbr.rel (!%p17_p11) target bundleno = 7 (0x7), region = 85 }
 0x197   :  { %533 = vsyncpa [#allocation3], 1 }
 0x198   :  { %535 = vsyncpa [#allocation3 + $0x1], 1 }
 0x199   :  { %536 = vsyncpa [#allocation6], 1 }
 0x19a   :  { %537 = vsyncpa [#allocation4], 1 }
 0x19b   :  { %539 = vsyncpa [#allocation4 + $0x1], 1 }

// kernel: forward.11
= control target key start
LH: loop header
LB: loop body
LE: loop exit
PB: predicated region body
PF: predicated region fallthrough
CT: control target
= control target key end

     0   :  { %8 = vsyncpa [#allocation3], 0  ;;  %s1290_s0 = inlined_call_operand.hbm [shape: bf16[2,16,288], index: 0, kind: input, shape index: {}]   ;;  %s1291_s1 = inlined_call_operand.hbm [shape: bf16[288,32], index: 1, kind: input, shape index: {}]   ;;  %s1292_s2 = inlined_call_operand.hbm [shape: f32[1,32], index: 2, kind: input, shape index: {}]   ;;  %s1293_s3 = inlined_call_operand.hbm [shape: bf16[2,16,32], index: 3, kind: output, shape index: {}]  }
   0x1   :  { %10 = vsyncpa [#allocation3 + $0x1], 0 }
   0x2   :  { %11 = vsyncpa [#allocation6], 0 }
   0x3   :  { %12 = vsyncpa [#allocation4], 0 }
   0x4   :  { %14 = vsyncpa [#allocation4 + $0x1], 0  ;;  %s1030_s12 = smov 0   ;;  %s1032_s13 = smov 0  }
   0x5   :  { %s1034_s14 = smov 0   ;;  %s1036_s15 = smov 0  }
   0x6   :  { %s1038_s16 = smov 0   ;;  %s1040_s17 = smov 0  }
   0x7 LB: > { %s631_s18 = sadd.s32 4294967295, %s996_s17   ;;  %s632_s19 = sadd.s32 4294967294, %s996_s17   ;;  %s996_s17 = sphi %s1040_s17, %s20_s17   ;;  %s992_s16 = sphi %s1038_s16, %s1315_s16   ;;  %s988_s15 = sphi %s1036_s15, %s1314_s15   ;;  %s984_s14 = sphi %s1034_s14, %s1313_s14   ;;  %s980_s13 = sphi %s1032_s13, %s1312_s13   ;;  %s976_s12 = sphi %s1030_s12, %s1311_s12  }
   0x8   : > { %p54_p0 = scmp.ne.s32.totalorder %s980_s13, %s976_s12  ;;  %p1064_p1 = scmp.eq.s32.totalorder %s631_s18, 0 }
   0x9   : > { %p1068_p2 = scmp.eq.s32.totalorder %s631_s18, 1  ;;  %p128_p3 = scmp.eq.s32.totalorder %s632_s19, 1 }
   0xa   : > { %s1298_s20 = scalar_select %p1064_p1, 1, 0 }
   0xb   : > { %p1074_p4 = por %p1064_p1, %p54_p0  ;;  %p633_p5 = scmp.ge.s32.totalorder %s996_s17, 1 }
   0xc   : > { %p1079_p6 = por %p128_p3, %p54_p0  ;;  %p135_p7 = scmp.lt.s32.totalorder %s996_s17, 3 }
   0xd   : > { %s1300_s22 = scalar_select %p1074_p4, 1, 0 }
   0xe   : > { %s1301_s23 = scalar_select %p1079_p6, 1, 0 }
   0xf   : > { %p1084_p8 = pnand %p633_p5, %p135_p7  ;;  %s998_s25 = smov [#allocation5]  }
  0x10   : > { %s147_s26 = sshll.u32 %s998_s25, 4  ;;  %s999_s28 = smov [#allocation7]   ;;  %s1088_s26 = int_to_ptr.vmem [resolvable:$true] %s147_s26 }
  0x11   : > { %p723_p9 = pneg %p1084_p8  ;;  %s161_s29 = sshll.u32 %s999_s28, 4  ;;  %s1099_s29 = int_to_ptr.vmem [resolvable:$true] %s161_s29 }
  0x12   : > { %s824_s5 = scalar_lea.hbm %s1291_s1, 2304 }
  0x13   : > { %p1095_p11 = pnand %p723_p9, %p1064_p1  ;;  %p825_p12 = scmp.ne.s32.totalorder %s1291_s1, %s824_s5 }
  0x14   : > { %p831_p5 = scmp.lt.u32.totalorder %s824_s5, %s1291_s1 }
  0x15   : > { %p826_p13 = pneg %p1095_p11 }
  0x17   : > { %p827_p0 = pnand %p826_p13, %p825_p12 }
  0x19   : > { %p828_p3 = pneg %p827_p0 }
  0x1b   : > { %p833_p7 = pnand %p831_p5, %p828_p3 }
  0x1d   : > { %836 = shalt.err (!%p833_p7)
}
  0x1e   : > { %s837_s10 = scalar_lea.vmem %s1088_s26, 2304  ;;  %p845_p1 = scmp.lt.s32.totalorder %s1088_s26, %s1088_s26 }
  0x1f   : > { %p838_p9 = scmp.ne.s32.totalorder %s1088_s26, %s837_s10  ;;  %p846_p12 = scmp.lt.s32.totalorder %s837_s10, %s837_s10 }
  0x21   : > { %p840_p10 = pnand %p838_p9, %p826_p13  ;;  %p847_p0 = por %p846_p12, %p845_p1 }
  0x23   : > { %p841_p6 = pneg %p840_p10 }
  0x25   : > { %p848_p4 = pnand %p847_p0, %p841_p6 }
  0x27   : > { %851 = shalt.err (!%p848_p4)
}
  0x28   : > { %s1000_s11 = smov 64   ;;  %s1001_s18 = smov 4  }
  0x29   : > { %726 = dma.hbm_to_vmem [thread:$0]  (!%p1095_p11), %s1291_s1, 2304, %s1088_s26, [#allocation6], %s1000_s11, %s1000_s11, %s1001_s18  }
  0x2a   : > { %s852_s4 = scalar_lea.hbm %s1292_s2, 16 }
  0x2b   : > { %p853_p1 = scmp.ne.s32.totalorder %s1292_s2, %s852_s4  ;;  %p859_p10 = scmp.lt.u32.totalorder %s852_s4, %s1292_s2 }
  0x2d   : > { %p855_p4 = pnand %p853_p1, %p826_p13 }
  0x2f   : > { %p856_p6 = pneg %p855_p4 }
  0x31   : > { %p861_p3 = pnand %p859_p10, %p856_p6 }
  0x33   : > { %864 = shalt.err (!%p861_p3)
}
  0x34   : > { %s865_s26 = scalar_lea.vmem %s1099_s29, 16  ;;  %s872_s9 = scalar_lea.vmem %s1099_s29, 32 }
  0x35   : > { %p866_p5 = scmp.ne.s32.totalorder %s1099_s29, %s865_s26  ;;  %p873_p12 = scmp.lt.s32.totalorder %s1099_s29, %s1099_s29 }
  0x36   : > { %p874_p0 = scmp.lt.s32.totalorder %s872_s9, %s865_s26 }
  0x37   : > { %p868_p7 = pnand %p866_p5, %p826_p13 }
  0x38   : > { %p875_p1 = por %p874_p0, %p873_p12 }
  0x39   : > { %p869_p9 = pneg %p868_p7 }
  0x3b   : > { %p876_p4 = pnand %p875_p1, %p869_p9 }
  0x3d   : > { %879 = shalt.err (!%p876_p4)
}
  0x3e   : > { %729 = dma.hbm_to_vmem [thread:$0]  (!%p1095_p11), %s1292_s2, 16, %s1099_s29, [#allocation6]  }
  0x3f   : > { %s32_s18 = sadd.s32 1, %s992_s16  ;;  %s41_s19 = sadd.s32 1, %s984_s14 }
  0x40   : > { %p34_p13 = scmp.ge.s32.totalorder %s32_s18, 2  ;;  %p48_p6 = scmp.ne.s32.totalorder %s984_s14, %s980_s13 }
  0x41   : > { %p49_p10 = scmp.eq.s32.totalorder %s996_s17, 0  ;;  %p740_p3 = scmp.lt.s32.totalorder %s996_s17, 2 }
  0x42   : > { %s1317_s18 = smov (%p34_p13, %s32_s18), 0  ;;  %p1164_p7 = por %p1068_p2, %p48_p6 }
  0x43   : > { %p50_p5 = por %p49_p10, %p48_p6  ;;  %s36_s25 = ssub.s32 %s992_s16, %s1317_s18 }
  0x44   : > { %s1304_s27 = scalar_select %p1164_p7, 1, 0 }
  0x45   : > { %s172_s28 = sand.u32 1, %s984_s14   ;;  %p39_p9 = scmp.eq.s32.totalorder %s36_s25, 0 }
  0x46   : > { %s708_s29 = smul.u32 24, %s172_s28  ;;  %p1171_p11 = pnand %p740_p3, %p50_p5 }
  0x47   : > { %s1176_s4 = scalar_select %p39_p9, %s984_s14, %s41_s19  }
  0x48   : > { %s709_s5 = smul.u32 384, %s992_s16  ;;  %s176_s6 = scalar_lea.vmem [#allocation2], %s708_s29 }
  0x49   : > { %s186_s7 = sshll.u32 %s176_s6, 4  ;;  %s1186_s9 = scalar_lea.sflag [#allocation3], %s172_s28  ;;  %s1184_s7 = int_to_ptr.vmem [resolvable:$true] %s186_s7 }
  0x4a   : > { %s1182_s26 = scalar_lea.hbm %s1290_s0, %s709_s5  ;;  %p882_p12 = pneg %p1171_p11 }
  0x4b   : > { %s880_s10 = scalar_lea.hbm %s1182_s26, 384  ;;  %s885_s25 = scalar_lea.hbm %s1290_s0, 768 }
  0x4c   : > { %p881_p2 = scmp.ne.s32.totalorder %s1182_s26, %s880_s10  ;;  %p886_p4 = scmp.lt.u32.totalorder %s1182_s26, %s1290_s0 }
  0x4d   : > { %p887_p13 = scmp.lt.u32.totalorder %s885_s25, %s880_s10  ;;  %p889_p10 = scmp.lt.u32.totalorder %s880_s10, %s1182_s26 }
  0x4e   : > { %p883_p0 = pnand %p882_p12, %p881_p2 }
  0x4f   : > { %p888_p6 = por %p887_p13, %p886_p4 }
  0x50   : > { %p884_p1 = pneg %p883_p0 }
  0x51   : > { %p890_p3 = por %p889_p10, %p888_p6 }
  0x53   : > { %p891_p5 = pnand %p890_p3, %p884_p1 }
  0x55   : > { %894 = shalt.err (!%p891_p5)
}
  0x56   : > { %s895_s28 = scalar_lea.vmem %s1184_s7, 384  ;;  %s1002_s6 = smov [#allocation2]  }
  0x57   : > { %p896_p9 = scmp.ne.s32.totalorder %s1184_s7, %s895_s28  ;;  %s900_s21 = sshll.u32 %s1002_s6, 4  ;;  %s901_s21 = int_to_ptr.vmem [resolvable:$false] %s900_s21 }
  0x58   : > { %s902_s8 = scalar_lea.vmem %s901_s21, 768  ;;  %p903_p7 = scmp.lt.s32.totalorder %s1184_s7, %s901_s21 }
  0x59   : > { %p898_p2 = pnand %p896_p9, %p882_p12  ;;  %p904_p4 = scmp.lt.s32.totalorder %s902_s8, %s895_s28 }
  0x5b   : > { %p899_p0 = pneg %p898_p2  ;;  %p905_p13 = por %p904_p4, %p903_p7 }
  0x5d   : > { %p906_p6 = pnand %p905_p13, %p899_p0 }
  0x5f   : > { %909 = shalt.err (!%p906_p6)
}
  0x60   : > { %s1003_s10 = smov 192   ;;  %s1004_s11 = smov 12  }
  0x61   : > { %733 = dma.hbm_to_vmem [thread:$0]  (!%p1171_p11), %s1182_s26, 384, %s1184_s7, %s1186_s9, %s1003_s10, %s1003_s10, %s1004_s11  }
  0x62   : > { %198 = sbr.rel (%p1084_p8) target bundleno = 385 (0x181), region = 32  ;;  %s1217_s19 = sand.u32 (!%p1084_p8), 1, %s980_s13  }
  0x63   : > { %s710_s25 = smul.u32 (!%p1084_p8), 24, %s1217_s19  ;;  %s201_s29 = scalar_lea.sflag (!%p1084_p8), [#allocation3], %s1217_s19 }
  0x64   : > { %p1306_p7 = scmp.ne.s32.totalorder (!%p1084_p8), %s1300_s22, 0 }
  0x65   : > { %s1221_s5 = scalar_lea.vmem (!%p1084_p8), [#allocation2], %s710_s25 }
  0x69   : > { %963 = dma.done.wait (%p1306_p7), %s201_s29, 384  }
  0x6a   : > { %965 = vsyncadd (%p1306_p7), %s201_s29, 4294966912  ;;  %p1307_p11 = scmp.ne.s32.totalorder %s1298_s20, 0 }
  0x6c   : > { %967 = dma.done.wait (%p1307_p11), [#allocation6], 2320  }
  0x6d   : > { %969 = vsyncadd (%p1307_p11), [#allocation6], 4294964976  ;;  %v1005_v0 = vmov 0.0   ;;  %vm1006_vm0 = vmmov 0   ;;  %v802_v1 = vld [vmem:[#allocation5 + $0x40] sm:$0xff]   ;;  %v804_v3 = vld [vmem:[#allocation5 + $0x48] sm:$0xff]  }
  0x6e   : > { %700 = vmatprep.subr.bf16.mxu1 %v1005_v0  ;;  %704 = vmatprep.mubr.msk.bf16.mxu1 %vm1006_vm0, %v1005_v0  ;;  %v803_v2 = vld [vmem:[#allocation5] sm:$0xff]   ;;  %v805_v4 = vld [vmem:[#allocation5 + $0x8] sm:$0xff]   ;;  %v806_v5 = vld [vmem:[#allocation5 + $0x50] sm:$0xff]   ;;  %vm408_vm1 = vcmask 261120   ;;  %s641_s20 = sshll.u32 %s1217_s19, 3  ;;  %s674_s22 = sshll.u32 %s988_s15, 7 }
  0x6f   : > { %675 = vmatprep.subr.bf16.mxu0 %v802_v1  ;;  %v807_v6 = vld [vmem:[#allocation5 + $0x10] sm:$0xff]   ;;  %v808_v7 = vld [vmem:[#allocation5 + $0x58] sm:$0xff]   ;;  %v810_v9 = vld [vmem:[#allocation5 + $0x60] sm:$0xff]   ;;  %s234_s24 = scalar_lea.vmem [#allocation8], %s641_s20  ;;  %vm506_vm2 = vcmask 257024   ;;  %s1239_s9 = scalar_lea.hbm %s1293_s3, %s674_s22 }
  0x70   : > { %676 = vmatpush3.bf16.msra.mxu0 %v803_v2  ;;  %v809_v8 = vld [vmem:[#allocation5 + $0x18] sm:$0xff]   ;;  %v816_v10 = vld [vmem:[#allocation5 + $0x80] sm:$0xff]   ;;  %v812_v12 = vld [vmem:[#allocation5 + $0x68] sm:$0xff]   ;;  %s525_s30 = sshll.u32 %s234_s24, 4  ;;  %s510_s28 = scalar_lea.sflag [#allocation4], %s1217_s19  ;;  %s1241_s30 = int_to_ptr.vmem [resolvable:$true] %s525_s30 }
  0x71   : > { %677 = vmatprep.subr.bf16.mxu0 %v804_v3  ;;  %v811_v11 = vld [vmem:[#allocation5 + $0x20] sm:$0xff]   ;;  %701 = vmatpush3.bf16.msra.mxu1 %v816_v10  ;;  %v813_v13 = vld [vmem:[#allocation5 + $0x28] sm:$0xff]   ;;  %v814_v16 = vld [vmem:[#allocation5 + $0x70] sm:$0xff]   ;;  %s910_s15 = scalar_lea.vmem %s1241_s30, 128  ;;  %p1308_p12 = scmp.ne.s32.totalorder %s1304_s27, 0 }
  0x72   : > { %702 = vmatprep.subr.bf16.mxu1 %v1005_v0  ;;  %v821_v14 = vld [vmem:[%s1221_s5 + $0x4] ss:$12 sps:$4 sm:$0xff]   ;;  %v823_v17 = vld [vmem:[%s1221_s5 + $0x8] ss:$12 sps:$4 sm:$0xff]   ;;  %v819_v21 = vld [vmem:[%s1221_s5] ss:$12 sps:$4 sm:$0xff]   ;;  %p911_p8 = scmp.ne.s32.totalorder %s1241_s30, %s910_s15 }
  0x73   : > { %v822_v15 = vld [vmem:[#allocation5 + $0x88] sm:$0xff]   ;;  %444 = vmatprep.mubr.bf16.mxu0 %v821_v14  ;;  %v815_v18 = vld [vmem:[#allocation5 + $0x30] sm:$0xff]   ;;  %v817_v19 = vld [vmem:[#allocation5 + $0x78] sm:$0xff]   ;;  %s1007_s6 = smov [#allocation8]  }
  0x74   : > { %678 = vmatpush3.bf16.msra.mxu0 %v805_v4  ;;  %v818_v20 = vld [vmem:[#allocation5 + $0x38] sm:$0xff]   ;;  %v642_v28 = vld [vmem:[#allocation7] ss:$0 sm:$0xff]  ;;  %p912_p1 = pnand %p911_p8, %p1308_p12  ;;  %s914_s21 = sshll.u32 %s1007_s6, 4  ;;  %s915_s21 = int_to_ptr.vmem [resolvable:$false] %s914_s21 }
  0x75   : > { %679 = vmatprep.subr.bf16.mxu0 %v806_v5  ;;  %703 = vmatpush3.bf16.msra.mxu1 %v822_v15  ;;  %s916_s8 = scalar_lea.vmem %s915_s21, 256  ;;  %p917_p3 = scmp.lt.s32.totalorder %s1241_s30, %s915_s21 }
  0x76   : > { %p913_p10 = pneg %p912_p1  ;;  %p918_p5 = scmp.lt.s32.totalorder %s916_s8, %s910_s15 }
  0x78   : > { %680 = vmatpush3.bf16.msra.mxu0 %v807_v6  ;;  %705 = vmatmul.mubr.msk.bf16.vlgmr.msra.gmra.mrb[0].mxu1 %vm408_vm1, %v823_v17  ;;  %p919_p9 = por %p918_p5, %p917_p3 }
  0x79   : > { %681 = vmatprep.subr.bf16.mxu0 %v808_v7 }
  0x7a   : > { %p920_p2 = pnand %p919_p9, %p913_p10 }
  0x7c   : > { %682 = vmatpush3.bf16.msra.mxu0 %v809_v8 }
  0x7d   : > { %683 = vmatprep.subr.bf16.mxu0 %v810_v9 }
  0x80   : > { %684 = vmatpush3.bf16.msra.mxu0 %v811_v11 }
  0x81   : > { %685 = vmatprep.subr.bf16.mxu0 %v812_v12 }
  0x84   : > { %686 = vmatpush3.bf16.msra.mxu0 %v813_v13 }
  0x85   : > { %687 = vmatprep.subr.bf16.mxu0 %v814_v16 }
  0x88   : > { %688 = vmatpush3.bf16.msra.mxu0 %v815_v18 }
  0x89   : > { %689 = vmatprep.subr.bf16.mxu0 %v817_v19 }
  0x8c   : > { %690 = vmatpush3.bf16.msra.mxu0 %v818_v20 }
  0x8f   : > { %445 = vmatmul.mubr.bf16.vlgmr.msra.gmra.mrb[0].mxu0 %v819_v21 }
 0x14b   : > { %v487_v22 = vpop.f32.mrb[0].mxu1 }
 0x14c   : > { %v706_v23 = vpop.f32.mrb[1].mxu1 }
 0x14d   : > { %v490_v24 = vpop.f32.mrb[2].mxu1 }
 0x14e   : > { %v707_v25 = vpop.f32.mrb[3].mxu1 }
 0x162   : > { %v691_v26 = vpop.f32.mrb[0].mxu0 }
 0x163   : > { %v692_v27 = vpop.f32.mrb[1].mxu0 }
 0x164   : > { %v693_v29 = vadd.f32 %v692_v27, %v691_v26  ;;  %v694_v30 = vpop.f32.mrb[2].mxu0 }
 0x165   : > { %v695_v31 = vpop.f32.mrb[3].mxu0 }
 0x166   : > { %v447_v32 = vadd.f32 %v693_v29, %v642_v28  ;;  %v696_v33 = vadd.f32 %v695_v31, %v694_v30 }
 0x168   : > { %v488_v34 = vadd.f32 %v487_v22, %v447_v32  ;;  %v450_v35 = vadd.f32 %v696_v33, %v642_v28 }
 0x16a   : > { %v494_v36 = vmul.f32 0.1, %v488_v34  ;;  %v491_v37 = vadd.f32 %v490_v24, %v450_v35 }
 0x16c   : > { %v496_v38 = vmax.f32 %v488_v34, %v494_v36  ;;  %v495_v39 = vmul.f32 0.1, %v491_v37 }
 0x16e   : > { %v672_v40 = vpack.c.bf16 %v496_v38, %v496_v38  ;;  %v497_v41 = vmax.f32 %v491_v37, %v495_v39 }
 0x170   : > { %507 = vst.msk [vmem:[%s234_s24] sm:$0xf] %vm506_vm2, %v672_v40  ;;  %v673_v42 = vpack.c.bf16 %v497_v41, %v497_v41 }
 0x172   : > { %508 = vst.msk [vmem:[%s234_s24 + $0x4] sm:$0xf] %vm506_vm2, %v673_v42 }
 0x173   : > { %923 = shalt.err (!%p920_p2)
}
 0x174   : > { %s924_s10 = scalar_lea.hbm %s1239_s9, 128  ;;  %s928_s29 = scalar_lea.hbm %s1293_s3, 256 }
 0x175   : > { %p925_p0 = scmp.ne.s32.totalorder %s1239_s9, %s924_s10  ;;  %p929_p6 = scmp.lt.u32.totalorder %s1239_s9, %s1293_s3 }
 0x176   : > { %p930_p7 = scmp.lt.u32.totalorder %s928_s29, %s924_s10  ;;  %p932_p8 = scmp.lt.u32.totalorder %s924_s10, %s1239_s9 }
 0x177   : > { %p926_p4 = pnand %p925_p0, %p1308_p12 }
 0x178   : > { %p931_p11 = por %p930_p7, %p929_p6 }
 0x179   : > { %p927_p13 = pneg %p926_p4 }
 0x17a   : > { %p933_p1 = por %p932_p8, %p931_p11 }
 0x17c   : > { %p934_p10 = pnand %p933_p1, %p927_p13 }
 0x17e   : > { %937 = shalt.err (!%p934_p10)
}
 0x17f   : > { %s1008_s22 = smov 64   ;;  %s1009_s24 = smov 4  }
 0x180   : > { %721 = dma.vmem_to_hbm [thread:$0]  (%p1308_p12), %s1241_s30, 128, %s1239_s9, %s510_s28, %s1008_s22, %s1008_s22, %s1009_s24  }
 0x181 PF: > { %s540_s7 = sand.u32 1, %s976_s12   ;;  %p1309_p3 = scmp.ne.s32.totalorder %s1301_s23, 0 }
 0x182   : > { %p1310_p5 = scmp.ge.s32.totalorder %s996_s17, 2  ;;  %s541_s26 = scalar_lea.sflag [#allocation4], %s540_s7 }
 0x184   : > { %p735_p9 = pnand %p1310_p5, %p1309_p3 }
 0x186   : > { %971 = dma.done.wait (!%p735_p9), %s541_s26, 128  }
 0x187   : > { %973 = vsyncadd (!%p735_p9), %s541_s26, 4294967168  ;;  %s20_s17 = sadd.s32 1, %s996_s17   ;;  %s1311_s12 = smov %s980_s13 }
 0x188   : > { %p17_p2 = scmp.ge.s32.totalorder %s20_s17, 4   ;;  %s1312_s13 = smov %s984_s14 }
 0x189   : > { %s1313_s14 = smov %s1176_s4  ;;  %s1314_s15 = smov %s992_s16 }
 0x18a   : > { %s1315_s16 = smov %s1317_s18  ;;  %19 = sbr.rel (!%p17_p2) target bundleno = 7 (0x7), region = 85 }
 0x191   :  { %546 = vsyncpa [#allocation3], 1 }
 0x192   :  { %548 = vsyncpa [#allocation3 + $0x1], 1 }
 0x193   :  { %549 = vsyncpa [#allocation6], 1 }
 0x194   :  { %550 = vsyncpa [#allocation4], 1 }
 0x195   :  { %552 = vsyncpa [#allocation4 + $0x1], 1 }

// kernel: forward.16
= control target key start
LH: loop header
LB: loop body
LE: loop exit
PB: predicated region body
PF: predicated region fallthrough
CT: control target
= control target key end

     0   :  { %8 = vsyncpa [#allocation3], 0  ;;  %s1558_s0 = inlined_call_operand.hbm [shape: bf16[2,16,576], index: 0, kind: input, shape index: {}]   ;;  %s1559_s1 = inlined_call_operand.hbm [shape: bf16[576,64], index: 1, kind: input, shape index: {}]   ;;  %s1560_s2 = inlined_call_operand.hbm [shape: f32[1,64], index: 2, kind: input, shape index: {}]   ;;  %s1561_s3 = inlined_call_operand.hbm [shape: bf16[2,16,64], index: 3, kind: output, shape index: {}]  }
   0x1   :  { %10 = vsyncpa [#allocation3 + $0x1], 0 }
   0x2   :  { %11 = vsyncpa [#allocation6], 0 }
   0x3   :  { %12 = vsyncpa [#allocation4], 0 }
   0x4   :  { %14 = vsyncpa [#allocation4 + $0x1], 0  ;;  %s1296_s12 = smov 0   ;;  %s1298_s13 = smov 0  }
   0x5   :  { %s1300_s14 = smov 0   ;;  %s1302_s15 = smov 0  }
   0x6   :  { %s1304_s16 = smov 0   ;;  %s1306_s17 = smov 0  }
   0x7 LB: > { %s828_s18 = sadd.s32 4294967295, %s1262_s17   ;;  %s829_s19 = sadd.s32 4294967294, %s1262_s17   ;;  %s1262_s17 = sphi %s1306_s17, %s20_s17   ;;  %s1258_s16 = sphi %s1304_s16, %s1583_s16   ;;  %s1254_s15 = sphi %s1302_s15, %s1582_s15   ;;  %s1250_s14 = sphi %s1300_s14, %s1581_s14   ;;  %s1246_s13 = sphi %s1298_s13, %s1580_s13   ;;  %s1242_s12 = sphi %s1296_s12, %s1579_s12  }
   0x8   : > { %p54_p0 = scmp.ne.s32.totalorder %s1246_s13, %s1242_s12  ;;  %p1330_p1 = scmp.eq.s32.totalorder %s828_s18, 0 }
   0x9   : > { %p1334_p2 = scmp.eq.s32.totalorder %s828_s18, 1  ;;  %p128_p3 = scmp.eq.s32.totalorder %s829_s19, 1 }
   0xa   : > { %s1566_s20 = scalar_select %p1330_p1, 1, 0 }
   0xb   : > { %p1340_p4 = por %p1330_p1, %p54_p0  ;;  %p830_p5 = scmp.ge.s32.totalorder %s1262_s17, 1 }
   0xc   : > { %p1345_p6 = por %p128_p3, %p54_p0  ;;  %p135_p7 = scmp.lt.s32.totalorder %s1262_s17, 3 }
   0xd   : > { %s1568_s22 = scalar_select %p1340_p4, 1, 0 }
   0xe   : > { %s1569_s23 = scalar_select %p1345_p6, 1, 0 }
   0xf   : > { %p1350_p8 = pnand %p830_p5, %p135_p7  ;;  %s1264_s25 = smov [#allocation5]  }
  0x10   : > { %s147_s26 = sshll.u32 %s1264_s25, 4  ;;  %s1265_s28 = smov [#allocation7]   ;;  %s1354_s26 = int_to_ptr.vmem [resolvable:$true] %s147_s26 }
  0x11   : > { %p968_p9 = pneg %p1350_p8  ;;  %s161_s29 = sshll.u32 %s1265_s28, 4  ;;  %s1365_s29 = int_to_ptr.vmem [resolvable:$true] %s161_s29 }
  0x12   : > { %s1090_s5 = scalar_lea.hbm %s1559_s1, 4608 }
  0x13   : > { %p1361_p11 = pnand %p968_p9, %p1330_p1  ;;  %p1091_p12 = scmp.ne.s32.totalorder %s1559_s1, %s1090_s5 }
  0x14   : > { %p1097_p5 = scmp.lt.u32.totalorder %s1090_s5, %s1559_s1 }
  0x15   : > { %p1092_p13 = pneg %p1361_p11 }
  0x17   : > { %p1093_p0 = pnand %p1092_p13, %p1091_p12 }
  0x19   : > { %p1094_p3 = pneg %p1093_p0 }
  0x1b   : > { %p1099_p7 = pnand %p1097_p5, %p1094_p3 }
  0x1d   : > { %1102 = shalt.err (!%p1099_p7)
}
  0x1e   : > { %s1103_s10 = scalar_lea.vmem %s1354_s26, 4608  ;;  %p1111_p1 = scmp.lt.s32.totalorder %s1354_s26, %s1354_s26 }
  0x1f   : > { %p1104_p9 = scmp.ne.s32.totalorder %s1354_s26, %s1103_s10  ;;  %p1112_p12 = scmp.lt.s32.totalorder %s1103_s10, %s1103_s10 }
  0x21   : > { %p1106_p10 = pnand %p1104_p9, %p1092_p13  ;;  %p1113_p0 = por %p1112_p12, %p1111_p1 }
  0x23   : > { %p1107_p6 = pneg %p1106_p10 }
  0x25   : > { %p1114_p4 = pnand %p1113_p0, %p1107_p6 }
  0x27   : > { %1117 = shalt.err (!%p1114_p4)
}
  0x28   : > { %s1266_s11 = smov 64   ;;  %s1267_s18 = smov 4  }
  0x29   : > { %971 = dma.hbm_to_vmem [thread:$0]  (!%p1361_p11), %s1559_s1, 4608, %s1354_s26, [#allocation6], %s1266_s11, %s1266_s11, %s1267_s18  }
  0x2a   : > { %s1118_s4 = scalar_lea.hbm %s1560_s2, 16 }
  0x2b   : > { %p1119_p1 = scmp.ne.s32.totalorder %s1560_s2, %s1118_s4  ;;  %p1125_p10 = scmp.lt.u32.totalorder %s1118_s4, %s1560_s2 }
  0x2d   : > { %p1121_p4 = pnand %p1119_p1, %p1092_p13 }
  0x2f   : > { %p1122_p6 = pneg %p1121_p4 }
  0x31   : > { %p1127_p3 = pnand %p1125_p10, %p1122_p6 }
  0x33   : > { %1130 = shalt.err (!%p1127_p3)
}
  0x34   : > { %s1131_s26 = scalar_lea.vmem %s1365_s29, 16  ;;  %s1138_s9 = scalar_lea.vmem %s1365_s29, 32 }
  0x35   : > { %p1132_p5 = scmp.ne.s32.totalorder %s1365_s29, %s1131_s26  ;;  %p1139_p12 = scmp.lt.s32.totalorder %s1365_s29, %s1365_s29 }
  0x36   : > { %p1140_p0 = scmp.lt.s32.totalorder %s1138_s9, %s1131_s26 }
  0x37   : > { %p1134_p7 = pnand %p1132_p5, %p1092_p13 }
  0x38   : > { %p1141_p1 = por %p1140_p0, %p1139_p12 }
  0x39   : > { %p1135_p9 = pneg %p1134_p7 }
  0x3b   : > { %p1142_p4 = pnand %p1141_p1, %p1135_p9 }
  0x3d   : > { %1145 = shalt.err (!%p1142_p4)
}
  0x3e   : > { %974 = dma.hbm_to_vmem [thread:$0]  (!%p1361_p11), %s1560_s2, 16, %s1365_s29, [#allocation6]  }
  0x3f   : > { %s32_s18 = sadd.s32 1, %s1258_s16  ;;  %s41_s19 = sadd.s32 1, %s1250_s14 }
  0x40   : > { %p34_p13 = scmp.ge.s32.totalorder %s32_s18, 2  ;;  %p48_p6 = scmp.ne.s32.totalorder %s1250_s14, %s1246_s13 }
  0x41   : > { %p49_p10 = scmp.eq.s32.totalorder %s1262_s17, 0  ;;  %p985_p3 = scmp.lt.s32.totalorder %s1262_s17, 2 }
  0x42   : > { %s1585_s18 = smov (%p34_p13, %s32_s18), 0  ;;  %p1430_p7 = por %p1334_p2, %p48_p6 }
  0x43   : > { %p50_p5 = por %p49_p10, %p48_p6  ;;  %s36_s25 = ssub.s32 %s1258_s16, %s1585_s18 }
  0x44   : > { %s1572_s27 = scalar_select %p1430_p7, 1, 0 }
  0x45   : > { %s172_s28 = sand.u32 1, %s1250_s14   ;;  %p39_p9 = scmp.eq.s32.totalorder %s36_s25, 0 }
  0x46   : > { %s953_s29 = smul.u32 40, %s172_s28  ;;  %p1437_p11 = pnand %p985_p3, %p50_p5 }
  0x47   : > { %s1442_s4 = scalar_select %p39_p9, %s1250_s14, %s41_s19  }
  0x48   : > { %s954_s5 = smul.u32 640, %s1258_s16  ;;  %s176_s6 = scalar_lea.vmem [#allocation2], %s953_s29 }
  0x49   : > { %s186_s7 = sshll.u32 %s176_s6, 4  ;;  %s1452_s9 = scalar_lea.sflag [#allocation3], %s172_s28  ;;  %s1450_s7 = int_to_ptr.vmem [resolvable:$true] %s186_s7 }
  0x4a   : > { %s1448_s26 = scalar_lea.hbm %s1558_s0, %s954_s5  ;;  %p1148_p12 = pneg %p1437_p11 }
  0x4b   : > { %s1146_s10 = scalar_lea.hbm %s1448_s26, 640  ;;  %s1151_s25 = scalar_lea.hbm %s1558_s0, 1280 }
  0x4c   : > { %p1147_p2 = scmp.ne.s32.totalorder %s1448_s26, %s1146_s10  ;;  %p1152_p4 = scmp.lt.u32.totalorder %s1448_s26, %s1558_s0 }
  0x4d   : > { %p1153_p13 = scmp.lt.u32.totalorder %s1151_s25, %s1146_s10  ;;  %p1155_p10 = scmp.lt.u32.totalorder %s1146_s10, %s1448_s26 }
  0x4e   : > { %p1149_p0 = pnand %p1148_p12, %p1147_p2 }
  0x4f   : > { %p1154_p6 = por %p1153_p13, %p1152_p4 }
  0x50   : > { %p1150_p1 = pneg %p1149_p0 }
  0x51   : > { %p1156_p3 = por %p1155_p10, %p1154_p6 }
  0x53   : > { %p1157_p5 = pnand %p1156_p3, %p1150_p1 }
  0x55   : > { %1160 = shalt.err (!%p1157_p5)
}
  0x56   : > { %s1161_s28 = scalar_lea.vmem %s1450_s7, 640  ;;  %s1268_s6 = smov [#allocation2]  }
  0x57   : > { %p1162_p9 = scmp.ne.s32.totalorder %s1450_s7, %s1161_s28  ;;  %s1166_s21 = sshll.u32 %s1268_s6, 4  ;;  %s1167_s21 = int_to_ptr.vmem [resolvable:$false] %s1166_s21 }
  0x58   : > { %s1168_s8 = scalar_lea.vmem %s1167_s21, 1280  ;;  %p1169_p7 = scmp.lt.s32.totalorder %s1450_s7, %s1167_s21 }
  0x59   : > { %p1164_p2 = pnand %p1162_p9, %p1148_p12  ;;  %p1170_p4 = scmp.lt.s32.totalorder %s1168_s8, %s1161_s28 }
  0x5b   : > { %p1165_p0 = pneg %p1164_p2  ;;  %p1171_p13 = por %p1170_p4, %p1169_p7 }
  0x5d   : > { %p1172_p6 = pnand %p1171_p13, %p1165_p0 }
  0x5f   : > { %1175 = shalt.err (!%p1172_p6)
}
  0x60   : > { %s1269_s10 = smov 320   ;;  %s1270_s11 = smov 20  }
  0x61   : > { %978 = dma.hbm_to_vmem [thread:$0]  (!%p1437_p11), %s1448_s26, 640, %s1450_s7, %s1452_s9, %s1269_s10, %s1269_s10, %s1270_s11  }
  0x62   : > { %198 = sbr.rel (%p1350_p8) target bundleno = 395 (0x18b), region = 32  ;;  %s1483_s19 = sand.u32 (!%p1350_p8), 1, %s1246_s13  }
  0x63   : > { %s955_s25 = smul.u32 (!%p1350_p8), 40, %s1483_s19  ;;  %s201_s29 = scalar_lea.sflag (!%p1350_p8), [#allocation3], %s1483_s19 }
  0x64   : > { %p1574_p7 = scmp.ne.s32.totalorder (!%p1350_p8), %s1568_s22, 0 }
  0x65   : > { %s1487_s5 = scalar_lea.vmem (!%p1350_p8), [#allocation2], %s955_s25 }
  0x69   : > { %1229 = dma.done.wait (%p1574_p7), %s201_s29, 640  }
  0x6a   : > { %1231 = vsyncadd (%p1574_p7), %s201_s29, 4294966656  ;;  %p1575_p11 = scmp.ne.s32.totalorder %s1566_s20, 0 }
  0x6c   : > { %1233 = dma.done.wait (%p1575_p11), [#allocation6], 4624  }
  0x6d   : > { %1235 = vsyncadd (%p1575_p11), [#allocation6], 4294962672  ;;  %v1047_v0 = vld [vmem:[#allocation5 + $0x40] sm:$0xff]   ;;  %v1051_v4 = vld [vmem:[#allocation5 + $0x48] sm:$0xff]   ;;  %v1271_v33 = vmov 0.0   ;;  %vm1272_vm0 = vmmov 0  }
  0x6e   : > { %v1048_v1 = vld [vmem:[#allocation5] sm:$0xff]   ;;  %892 = vmatprep.subr.bf16.mxu0 %v1047_v0  ;;  %v1052_v5 = vld [vmem:[#allocation5 + $0x8] sm:$0xff]   ;;  %v1055_v8 = vld [vmem:[#allocation5 + $0x50] sm:$0xff]   ;;  %vm564_vm1 = vcmask 523264   ;;  %s838_s20 = sshll.u32 %s1483_s19, 3  ;;  %s891_s22 = sshll.u32 %s1254_s15, 7 }
  0x6f   : > { %v1049_v2 = vld [vmem:[#allocation5 + $0xc0] sm:$0xff]   ;;  %893 = vmatpush3.bf16.msra.mxu0 %v1048_v1  ;;  %v1053_v6 = vld [vmem:[#allocation5 + $0xc8] sm:$0xff]   ;;  %v1056_v9 = vld [vmem:[#allocation5 + $0x10] sm:$0xff]   ;;  %s234_s24 = scalar_lea.vmem [#allocation8], %s838_s20  ;;  %vm703_vm2 = vcmask 519168   ;;  %s1507_s9 = scalar_lea.hbm %s1561_s3, %s891_s22 }
  0x70   : > { %v1050_v3 = vld [vmem:[#allocation5 + $0x80] sm:$0xff]   ;;  %914 = vmatprep.subr.bf16.mxu1 %v1049_v2  ;;  %894 = vmatprep.subr.bf16.mxu0 %v1051_v4  ;;  %v1054_v7 = vld [vmem:[#allocation5 + $0x88] sm:$0xff]   ;;  %v1057_v10 = vld [vmem:[#allocation5 + $0xd0] sm:$0xff]   ;;  %s722_s30 = sshll.u32 %s234_s24, 4  ;;  %s707_s28 = scalar_lea.sflag [#allocation4], %s1483_s19  ;;  %s1509_s30 = int_to_ptr.vmem [resolvable:$true] %s722_s30 }
  0x71   : > { %915 = vmatpush3.bf16.msra.mxu1 %v1050_v3  ;;  %v1058_v11 = vld [vmem:[#allocation5 + $0x90] sm:$0xff]   ;;  %v1059_v12 = vld [vmem:[#allocation5 + $0x58] sm:$0xff]   ;;  %v1063_v16 = vld [vmem:[#allocation5 + $0x60] sm:$0xff]   ;;  %s1176_s15 = scalar_lea.vmem %s1509_s30, 128  ;;  %p1576_p12 = scmp.ne.s32.totalorder %s1572_s27, 0 }
  0x72   : > { %916 = vmatprep.subr.bf16.mxu1 %v1053_v6  ;;  %v1060_v13 = vld [vmem:[#allocation5 + $0x18] sm:$0xff]   ;;  %v1064_v17 = vld [vmem:[#allocation5 + $0x20] sm:$0xff]   ;;  %v1067_v20 = vld [vmem:[#allocation5 + $0x68] sm:$0xff]   ;;  %p1177_p8 = scmp.ne.s32.totalorder %s1509_s30, %s1176_s15  ;;  %s1273_s6 = smov [#allocation8]  }
  0x73   : > { %895 = vmatpush3.bf16.msra.mxu0 %v1052_v5  ;;  %v1061_v14 = vld [vmem:[#allocation5 + $0xd8] sm:$0xff]   ;;  %v1065_v18 = vld [vmem:[#allocation5 + $0xe0] sm:$0xff]   ;;  %v1068_v21 = vld [vmem:[#allocation5 + $0x28] sm:$0xff]   ;;  %s1180_s21 = sshll.u32 %s1273_s6, 4  ;;  %s1181_s21 = int_to_ptr.vmem [resolvable:$false] %s1180_s21 }
  0x74   : > { %896 = vmatprep.subr.bf16.mxu0 %v1055_v8  ;;  %v1062_v15 = vld [vmem:[#allocation5 + $0x98] sm:$0xff]   ;;  %v1066_v19 = vld [vmem:[#allocation5 + $0xa0] sm:$0xff]   ;;  %v1069_v22 = vld [vmem:[#allocation5 + $0xe8] sm:$0xff]   ;;  %p1178_p1 = pnand %p1177_p8, %p1576_p12  ;;  %s1182_s8 = scalar_lea.vmem %s1181_s21, 256 }
  0x75   : > { %917 = vmatpush3.bf16.msra.mxu1 %v1054_v7  ;;  %v1070_v23 = vld [vmem:[#allocation5 + $0xa8] sm:$0xff]   ;;  %v1071_v24 = vld [vmem:[#allocation5 + $0x70] sm:$0xff]   ;;  %v1075_v28 = vld [vmem:[#allocation5 + $0x78] sm:$0xff]   ;;  %p1183_p3 = scmp.lt.s32.totalorder %s1509_s30, %s1181_s21  ;;  %p1184_p5 = scmp.lt.s32.totalorder %s1182_s8, %s1176_s15 }
  0x76   : > { %918 = vmatprep.subr.bf16.mxu1 %v1057_v10  ;;  %v1072_v25 = vld [vmem:[#allocation5 + $0x30] sm:$0xff]   ;;  %v1076_v29 = vld [vmem:[#allocation5 + $0x38] sm:$0xff]   ;;  %v1085_v37 = vld [vmem:[#allocation5 + $0x100] sm:$0xff]   ;;  %p1179_p10 = pneg %p1178_p1 }
  0x77   : > { %897 = vmatpush3.bf16.msra.mxu0 %v1056_v9  ;;  %v1073_v26 = vld [vmem:[#allocation5 + $0xf0] sm:$0xff]   ;;  %v1077_v30 = vld [vmem:[#allocation5 + $0xf8] sm:$0xff]   ;;  %v1086_v38 = vld [vmem:[#allocation5 + $0x108] sm:$0xff]   ;;  %p1185_p9 = por %p1184_p5, %p1183_p3 }
  0x78   : > { %898 = vmatprep.subr.bf16.mxu0 %v1059_v12  ;;  %v1074_v27 = vld [vmem:[#allocation5 + $0xb0] sm:$0xff]   ;;  %v1081_v34 = vld [vmem:[#allocation5 + $0xb8] sm:$0xff]   ;;  %v839_v43 = vld [vmem:[#allocation7] ss:$0 sm:$0xff] }
  0x79   : > { %919 = vmatpush3.bf16.msra.mxu1 %v1058_v11  ;;  %v1078_v31 = vld [vmem:[%s1487_s5] ss:$20 sps:$4 sm:$0xff]   ;;  %v1080_v32 = vld [vmem:[%s1487_s5 + $0x4] ss:$20 sps:$4 sm:$0xff]   ;;  %v1082_v35 = vld [vmem:[%s1487_s5 + $0x8] ss:$20 sps:$4 sm:$0xff]   ;;  %p1186_p2 = pnand %p1185_p9, %p1179_p10 }
  0x7a   : > { %920 = vmatprep.subr.bf16.mxu1 %v1061_v14  ;;  %600 = vmatprep.mubr.bf16.mxu0 %v1080_v32  ;;  %v1084_v36 = vld [vmem:[%s1487_s5 + $0xc] ss:$20 sps:$4 sm:$0xff]   ;;  %v1089_v41 = vld [vmem:[%s1487_s5 + $0x10] ss:$20 sps:$4 sm:$0xff]  }
  0x7b   : > { %899 = vmatpush3.bf16.msra.mxu0 %v1060_v13  ;;  %641 = vmatprep.mubr.bf16.mxu1 %v1084_v36  ;;  %v1087_v39 = vld [vmem:[#allocation5 + $0x110] sm:$0xff]   ;;  %v1088_v40 = vld [vmem:[#allocation5 + $0x118] sm:$0xff]  }
  0x7c   : > { %900 = vmatprep.subr.bf16.mxu0 %v1063_v16 }
  0x7d   : > { %921 = vmatpush3.bf16.msra.mxu1 %v1062_v15 }
  0x7e   : > { %922 = vmatprep.subr.bf16.mxu1 %v1065_v18 }
  0x7f   : > { %901 = vmatpush3.bf16.msra.mxu0 %v1064_v17 }
  0x80   : > { %902 = vmatprep.subr.bf16.mxu0 %v1067_v20 }
  0x81   : > { %923 = vmatpush3.bf16.msra.mxu1 %v1066_v19 }
  0x82   : > { %924 = vmatprep.subr.bf16.mxu1 %v1069_v22 }
  0x83   : > { %903 = vmatpush3.bf16.msra.mxu0 %v1068_v21 }
  0x84   : > { %904 = vmatprep.subr.bf16.mxu0 %v1071_v24 }
  0x85   : > { %925 = vmatpush3.bf16.msra.mxu1 %v1070_v23 }
  0x86   : > { %926 = vmatprep.subr.bf16.mxu1 %v1073_v26 }
  0x87   : > { %905 = vmatpush3.bf16.msra.mxu0 %v1072_v25 }
  0x88   : > { %906 = vmatprep.subr.bf16.mxu0 %v1075_v28 }
  0x89   : > { %927 = vmatpush3.bf16.msra.mxu1 %v1074_v27 }
  0x8a   : > { %928 = vmatprep.subr.bf16.mxu1 %v1077_v30 }
  0x8b   : > { %907 = vmatpush3.bf16.msra.mxu0 %v1076_v29 }
  0x8c   : > { %941 = vmatprep.subr.bf16.mxu0 %v1271_v33 }
  0x8d   : > { %929 = vmatpush3.bf16.msra.mxu1 %v1081_v34 }
  0x8e   : > { %601 = vmatmul.mubr.bf16.vlgmr.msra.gmra.mrb[0].mxu0 %v1078_v31 }
  0x8f   : > { %949 = vmatprep.mubr.msk.bf16.mxu0 %vm1272_vm0, %v1271_v33  ;;  %942 = vmatpush3.bf16.msra.mxu0 %v1085_v37 }
  0x90   : > { %642 = vmatmul.mubr.bf16.vlgmr.msra.gmra.mrb[0].mxu1 %v1082_v35  ;;  %943 = vmatprep.subr.bf16.mxu0 %v1271_v33 }
  0x93   : > { %944 = vmatpush3.bf16.msra.mxu0 %v1086_v38 }
  0x94   : > { %945 = vmatprep.subr.bf16.mxu0 %v1271_v33 }
  0x97   : > { %946 = vmatpush3.bf16.msra.mxu0 %v1087_v39 }
  0x98   : > { %947 = vmatprep.subr.bf16.mxu0 %v1271_v33 }
  0x9b   : > { %948 = vmatpush3.bf16.msra.mxu0 %v1088_v40 }
  0x9e   : > { %950 = vmatmul.mubr.msk.bf16.vlgmr.msra.gmra.mrb[4].mxu0 %vm564_vm1, %v1089_v41 }
 0x161   : > { %v908_v42 = vpop.f32.mrb[0].mxu0 }
 0x162   : > { %v909_v44 = vpop.f32.mrb[1].mxu0 }
 0x163   : > { %v910_v45 = vadd.f32 %v909_v44, %v908_v42  ;;  %v911_v46 = vpop.f32.mrb[2].mxu0  ;;  %v930_v47 = vpop.f32.mrb[0].mxu1 }
 0x164   : > { %v912_v48 = vpop.f32.mrb[3].mxu0  ;;  %v931_v51 = vpop.f32.mrb[1].mxu1 }
 0x165   : > { %v603_v49 = vadd.f32 %v910_v45, %v839_v43  ;;  %v913_v50 = vadd.f32 %v912_v48, %v911_v46  ;;  %v932_v52 = vadd.f32 %v931_v51, %v930_v47  ;;  %v933_v53 = vpop.f32.mrb[2].mxu1 }
 0x166   : > { %v934_v55 = vpop.f32.mrb[3].mxu1 }
 0x167   : > { %v606_v54 = vadd.f32 %v913_v50, %v839_v43  ;;  %v935_v56 = vadd.f32 %v934_v55, %v933_v53  ;;  %v644_v57 = vadd.f32 %v932_v52, %v603_v49 }
 0x169   : > { %v647_v58 = vadd.f32 %v935_v56, %v606_v54 }
 0x171   : > { %v684_v59 = vpop.f32.mrb[4].mxu0 }
 0x172   : > { %v685_v60 = vadd.f32 %v684_v59, %v644_v57  ;;  %v951_v61 = vpop.f32.mrb[5].mxu0 }
 0x173   : > { %v687_v62 = vpop.f32.mrb[6].mxu0 }
 0x174   : > { %v691_v63 = vmul.f32 0.1, %v685_v60  ;;  %v688_v0 = vadd.f32 %v687_v62, %v647_v58  ;;  %v952_v1 = vpop.f32.mrb[7].mxu0 }
 0x176   : > { %v693_v2 = vmax.f32 %v685_v60, %v691_v63  ;;  %v692_v3 = vmul.f32 0.1, %v688_v0 }
 0x178   : > { %v889_v4 = vpack.c.bf16 %v693_v2, %v693_v2  ;;  %v694_v5 = vmax.f32 %v688_v0, %v692_v3 }
 0x17a   : > { %704 = vst.msk [vmem:[%s234_s24] sm:$0xf] %vm703_vm2, %v889_v4  ;;  %v890_v6 = vpack.c.bf16 %v694_v5, %v694_v5 }
 0x17c   : > { %705 = vst.msk [vmem:[%s234_s24 + $0x4] sm:$0xf] %vm703_vm2, %v890_v6 }
 0x17d   : > { %1189 = shalt.err (!%p1186_p2)
}
 0x17e   : > { %s1190_s10 = scalar_lea.hbm %s1507_s9, 128  ;;  %s1194_s29 = scalar_lea.hbm %s1561_s3, 256 }
 0x17f   : > { %p1191_p0 = scmp.ne.s32.totalorder %s1507_s9, %s1190_s10  ;;  %p1195_p6 = scmp.lt.u32.totalorder %s1507_s9, %s1561_s3 }
 0x180   : > { %p1196_p7 = scmp.lt.u32.totalorder %s1194_s29, %s1190_s10  ;;  %p1198_p8 = scmp.lt.u32.totalorder %s1190_s10, %s1507_s9 }
 0x181   : > { %p1192_p4 = pnand %p1191_p0, %p1576_p12 }
 0x182   : > { %p1197_p11 = por %p1196_p7, %p1195_p6 }
 0x183   : > { %p1193_p13 = pneg %p1192_p4 }
 0x184   : > { %p1199_p1 = por %p1198_p8, %p1197_p11 }
 0x186   : > { %p1200_p10 = pnand %p1199_p1, %p1193_p13 }
 0x188   : > { %1203 = shalt.err (!%p1200_p10)
}
 0x189   : > { %s1274_s22 = smov 64   ;;  %s1275_s24 = smov 4  }
 0x18a   : > { %966 = dma.vmem_to_hbm [thread:$0]  (%p1576_p12), %s1509_s30, 128, %s1507_s9, %s707_s28, %s1274_s22, %s1274_s22, %s1275_s24  }
 0x18b PF: > { %s737_s7 = sand.u32 1, %s1242_s12   ;;  %p1577_p3 = scmp.ne.s32.totalorder %s1569_s23, 0 }
 0x18c   : > { %p1578_p5 = scmp.ge.s32.totalorder %s1262_s17, 2  ;;  %s738_s26 = scalar_lea.sflag [#allocation4], %s737_s7 }
 0x18e   : > { %p980_p9 = pnand %p1578_p5, %p1577_p3 }
 0x190   : > { %1237 = dma.done.wait (!%p980_p9), %s738_s26, 128  }
 0x191   : > { %1239 = vsyncadd (!%p980_p9), %s738_s26, 4294967168  ;;  %s20_s17 = sadd.s32 1, %s1262_s17   ;;  %s1579_s12 = smov %s1246_s13 }
 0x192   : > { %p17_p2 = scmp.ge.s32.totalorder %s20_s17, 4   ;;  %s1580_s13 = smov %s1250_s14 }
 0x193   : > { %s1581_s14 = smov %s1442_s4  ;;  %s1582_s15 = smov %s1258_s16 }
 0x194   : > { %s1583_s16 = smov %s1585_s18  ;;  %19 = sbr.rel (!%p17_p2) target bundleno = 7 (0x7), region = 85 }
 0x19b   :  { %743 = vsyncpa [#allocation3], 1 }
 0x19c   :  { %745 = vsyncpa [#allocation3 + $0x1], 1 }
 0x19d   :  { %746 = vsyncpa [#allocation6], 1 }
 0x19e   :  { %747 = vsyncpa [#allocation4], 1 }
 0x19f   :  { %749 = vsyncpa [#allocation4 + $0x1], 1 }

// kernel: forward.17
= control target key start
LH: loop header
LB: loop body
LE: loop exit
PB: predicated region body
PF: predicated region fallthrough
CT: control target
= control target key end

     0   :  { %8 = vsyncpa [#allocation3], 0  ;;  %s1542_s0 = inlined_call_operand.hbm [shape: bf16[2,16,576], index: 0, kind: input, shape index: {}]   ;;  %s1543_s1 = inlined_call_operand.hbm [shape: bf16[576,2], index: 1, kind: input, shape index: {}]   ;;  %s1544_s2 = inlined_call_operand.hbm [shape: f32[1,2], index: 2, kind: input, shape index: {}]   ;;  %s1545_s3 = inlined_call_operand.hbm [shape: f32[2,16,2], index: 3, kind: output, shape index: {}]  }
   0x1   :  { %10 = vsyncpa [#allocation3 + $0x1], 0 }
   0x2   :  { %11 = vsyncpa [#allocation6], 0 }
   0x3   :  { %12 = vsyncpa [#allocation4], 0 }
   0x4   :  { %14 = vsyncpa [#allocation4 + $0x1], 0  ;;  %s1280_s12 = smov 0   ;;  %s1282_s13 = smov 0  }
   0x5   :  { %s1284_s14 = smov 0   ;;  %s1286_s15 = smov 0  }
   0x6   :  { %s1288_s16 = smov 0   ;;  %s1290_s17 = smov 0  }
   0x7 LB: > { %s816_s18 = sadd.s32 4294967295, %s1246_s17   ;;  %s817_s19 = sadd.s32 4294967294, %s1246_s17   ;;  %s1246_s17 = sphi %s1290_s17, %s20_s17   ;;  %s1242_s16 = sphi %s1288_s16, %s1567_s16   ;;  %s1238_s15 = sphi %s1286_s15, %s1566_s15   ;;  %s1234_s14 = sphi %s1284_s14, %s1565_s14   ;;  %s1230_s13 = sphi %s1282_s13, %s1564_s13   ;;  %s1226_s12 = sphi %s1280_s12, %s1563_s12  }
   0x8   : > { %p54_p0 = scmp.ne.s32.totalorder %s1230_s13, %s1226_s12  ;;  %p1314_p1 = scmp.eq.s32.totalorder %s816_s18, 0 }
   0x9   : > { %p1318_p2 = scmp.eq.s32.totalorder %s816_s18, 1  ;;  %p128_p3 = scmp.eq.s32.totalorder %s817_s19, 1 }
   0xa   : > { %s1550_s20 = scalar_select %p1314_p1, 1, 0 }
   0xb   : > { %p1324_p4 = por %p1314_p1, %p54_p0  ;;  %p818_p5 = scmp.ge.s32.totalorder %s1246_s17, 1 }
   0xc   : > { %p1329_p6 = por %p128_p3, %p54_p0  ;;  %p135_p7 = scmp.lt.s32.totalorder %s1246_s17, 3 }
   0xd   : > { %s1552_s22 = scalar_select %p1324_p4, 1, 0 }
   0xe   : > { %s1553_s23 = scalar_select %p1329_p6, 1, 0 }
   0xf   : > { %p1334_p8 = pnand %p818_p5, %p135_p7  ;;  %s1248_s25 = smov [#allocation5]  }
  0x10   : > { %s147_s26 = sshll.u32 %s1248_s25, 4  ;;  %s1249_s28 = smov [#allocation7]   ;;  %s1338_s26 = int_to_ptr.vmem [resolvable:$true] %s147_s26 }
  0x11   : > { %p952_p9 = pneg %p1334_p8  ;;  %s161_s29 = sshll.u32 %s1249_s28, 4  ;;  %s1349_s29 = int_to_ptr.vmem [resolvable:$true] %s161_s29 }
  0x12   : > { %s1074_s5 = scalar_lea.hbm %s1543_s1, 4608 }
  0x13   : > { %p1345_p11 = pnand %p952_p9, %p1314_p1  ;;  %p1075_p12 = scmp.ne.s32.totalorder %s1543_s1, %s1074_s5 }
  0x14   : > { %p1081_p5 = scmp.lt.u32.totalorder %s1074_s5, %s1543_s1 }
  0x15   : > { %p1076_p13 = pneg %p1345_p11 }
  0x17   : > { %p1077_p0 = pnand %p1076_p13, %p1075_p12 }
  0x19   : > { %p1078_p3 = pneg %p1077_p0 }
  0x1b   : > { %p1083_p7 = pnand %p1081_p5, %p1078_p3 }
  0x1d   : > { %1086 = shalt.err (!%p1083_p7)
}
  0x1e   : > { %s1087_s10 = scalar_lea.vmem %s1338_s26, 4608  ;;  %p1095_p1 = scmp.lt.s32.totalorder %s1338_s26, %s1338_s26 }
  0x1f   : > { %p1088_p9 = scmp.ne.s32.totalorder %s1338_s26, %s1087_s10  ;;  %p1096_p12 = scmp.lt.s32.totalorder %s1087_s10, %s1087_s10 }
  0x21   : > { %p1090_p10 = pnand %p1088_p9, %p1076_p13  ;;  %p1097_p0 = por %p1096_p12, %p1095_p1 }
  0x23   : > { %p1091_p6 = pneg %p1090_p10 }
  0x25   : > { %p1098_p4 = pnand %p1097_p0, %p1091_p6 }
  0x27   : > { %1101 = shalt.err (!%p1098_p4)
}
  0x28   : > { %s1250_s11 = smov 64   ;;  %s1251_s18 = smov 4  }
  0x29   : > { %955 = dma.hbm_to_vmem [thread:$0]  (!%p1345_p11), %s1543_s1, 4608, %s1338_s26, [#allocation6], %s1250_s11, %s1250_s11, %s1251_s18  }
  0x2a   : > { %s1102_s4 = scalar_lea.hbm %s1544_s2, 16 }
  0x2b   : > { %p1103_p1 = scmp.ne.s32.totalorder %s1544_s2, %s1102_s4  ;;  %p1109_p10 = scmp.lt.u32.totalorder %s1102_s4, %s1544_s2 }
  0x2d   : > { %p1105_p4 = pnand %p1103_p1, %p1076_p13 }
  0x2f   : > { %p1106_p6 = pneg %p1105_p4 }
  0x31   : > { %p1111_p3 = pnand %p1109_p10, %p1106_p6 }
  0x33   : > { %1114 = shalt.err (!%p1111_p3)
}
  0x34   : > { %s1115_s26 = scalar_lea.vmem %s1349_s29, 16  ;;  %s1122_s9 = scalar_lea.vmem %s1349_s29, 32 }
  0x35   : > { %p1116_p5 = scmp.ne.s32.totalorder %s1349_s29, %s1115_s26  ;;  %p1123_p12 = scmp.lt.s32.totalorder %s1349_s29, %s1349_s29 }
  0x36   : > { %p1124_p0 = scmp.lt.s32.totalorder %s1122_s9, %s1115_s26 }
  0x37   : > { %p1118_p7 = pnand %p1116_p5, %p1076_p13 }
  0x38   : > { %p1125_p1 = por %p1124_p0, %p1123_p12 }
  0x39   : > { %p1119_p9 = pneg %p1118_p7 }
  0x3b   : > { %p1126_p4 = pnand %p1125_p1, %p1119_p9 }
  0x3d   : > { %1129 = shalt.err (!%p1126_p4)
}
  0x3e   : > { %958 = dma.hbm_to_vmem [thread:$0]  (!%p1345_p11), %s1544_s2, 16, %s1349_s29, [#allocation6]  }
  0x3f   : > { %s32_s18 = sadd.s32 1, %s1242_s16  ;;  %s41_s19 = sadd.s32 1, %s1234_s14 }
  0x40   : > { %p34_p13 = scmp.ge.s32.totalorder %s32_s18, 2  ;;  %p48_p6 = scmp.ne.s32.totalorder %s1234_s14, %s1230_s13 }
  0x41   : > { %p49_p10 = scmp.eq.s32.totalorder %s1246_s17, 0  ;;  %p969_p3 = scmp.lt.s32.totalorder %s1246_s17, 2 }
  0x42   : > { %s1569_s18 = smov (%p34_p13, %s32_s18), 0  ;;  %p1414_p7 = por %p1318_p2, %p48_p6 }
  0x43   : > { %p50_p5 = por %p49_p10, %p48_p6  ;;  %s36_s25 = ssub.s32 %s1242_s16, %s1569_s18 }
  0x44   : > { %s1556_s27 = scalar_select %p1414_p7, 1, 0 }
  0x45   : > { %s172_s28 = sand.u32 1, %s1234_s14   ;;  %p39_p9 = scmp.eq.s32.totalorder %s36_s25, 0 }
  0x46   : > { %s937_s29 = smul.u32 40, %s172_s28  ;;  %p1421_p11 = pnand %p969_p3, %p50_p5 }
  0x47   : > { %s1426_s4 = scalar_select %p39_p9, %s1234_s14, %s41_s19  }
  0x48   : > { %s938_s5 = smul.u32 640, %s1242_s16  ;;  %s176_s6 = scalar_lea.vmem [#allocation2], %s937_s29 }
  0x49   : > { %s186_s7 = sshll.u32 %s176_s6, 4  ;;  %s1436_s9 = scalar_lea.sflag [#allocation3], %s172_s28  ;;  %s1434_s7 = int_to_ptr.vmem [resolvable:$true] %s186_s7 }
  0x4a   : > { %s1432_s26 = scalar_lea.hbm %s1542_s0, %s938_s5  ;;  %p1132_p12 = pneg %p1421_p11 }
  0x4b   : > { %s1130_s10 = scalar_lea.hbm %s1432_s26, 640  ;;  %s1135_s25 = scalar_lea.hbm %s1542_s0, 1280 }
  0x4c   : > { %p1131_p2 = scmp.ne.s32.totalorder %s1432_s26, %s1130_s10  ;;  %p1136_p4 = scmp.lt.u32.totalorder %s1432_s26, %s1542_s0 }
  0x4d   : > { %p1137_p13 = scmp.lt.u32.totalorder %s1135_s25, %s1130_s10  ;;  %p1139_p10 = scmp.lt.u32.totalorder %s1130_s10, %s1432_s26 }
  0x4e   : > { %p1133_p0 = pnand %p1132_p12, %p1131_p2 }
  0x4f   : > { %p1138_p6 = por %p1137_p13, %p1136_p4 }
  0x50   : > { %p1134_p1 = pneg %p1133_p0 }
  0x51   : > { %p1140_p3 = por %p1139_p10, %p1138_p6 }
  0x53   : > { %p1141_p5 = pnand %p1140_p3, %p1134_p1 }
  0x55   : > { %1144 = shalt.err (!%p1141_p5)
}
  0x56   : > { %s1145_s28 = scalar_lea.vmem %s1434_s7, 640  ;;  %s1252_s6 = smov [#allocation2]  }
  0x57   : > { %p1146_p9 = scmp.ne.s32.totalorder %s1434_s7, %s1145_s28  ;;  %s1150_s21 = sshll.u32 %s1252_s6, 4  ;;  %s1151_s21 = int_to_ptr.vmem [resolvable:$false] %s1150_s21 }
  0x58   : > { %s1152_s8 = scalar_lea.vmem %s1151_s21, 1280  ;;  %p1153_p7 = scmp.lt.s32.totalorder %s1434_s7, %s1151_s21 }
  0x59   : > { %p1148_p2 = pnand %p1146_p9, %p1132_p12  ;;  %p1154_p4 = scmp.lt.s32.totalorder %s1152_s8, %s1145_s28 }
  0x5b   : > { %p1149_p0 = pneg %p1148_p2  ;;  %p1155_p13 = por %p1154_p4, %p1153_p7 }
  0x5d   : > { %p1156_p6 = pnand %p1155_p13, %p1149_p0 }
  0x5f   : > { %1159 = shalt.err (!%p1156_p6)
}
  0x60   : > { %s1253_s10 = smov 320   ;;  %s1254_s11 = smov 20  }
  0x61   : > { %962 = dma.hbm_to_vmem [thread:$0]  (!%p1421_p11), %s1432_s26, 640, %s1434_s7, %s1436_s9, %s1253_s10, %s1253_s10, %s1254_s11  }
  0x62   : > { %198 = sbr.rel (%p1334_p8) target bundleno = 389 (0x185), region = 32  ;;  %s1467_s19 = sand.u32 (!%p1334_p8), 1, %s1230_s13  }
  0x63   : > { %s939_s25 = smul.u32 (!%p1334_p8), 40, %s1467_s19  ;;  %s201_s29 = scalar_lea.sflag (!%p1334_p8), [#allocation3], %s1467_s19 }
  0x64   : > { %p1558_p7 = scmp.ne.s32.totalorder (!%p1334_p8), %s1552_s22, 0 }
  0x65   : > { %s1471_s5 = scalar_lea.vmem (!%p1334_p8), [#allocation2], %s939_s25 }
  0x69   : > { %1213 = dma.done.wait (%p1558_p7), %s201_s29, 640  }
  0x6a   : > { %1215 = vsyncadd (%p1558_p7), %s201_s29, 4294966656  ;;  %p1559_p11 = scmp.ne.s32.totalorder %s1550_s20, 0 }
  0x6c   : > { %1217 = dma.done.wait (%p1559_p11), [#allocation6], 4624  }
  0x6d   : > { %1219 = vsyncadd (%p1559_p11), [#allocation6], 4294962672  ;;  %v1031_v0 = vld [vmem:[#allocation5 + $0x40] sm:$0xff]   ;;  %v1035_v4 = vld [vmem:[#allocation5 + $0x48] sm:$0xff]   ;;  %v1255_v33 = vmov 0.0   ;;  %vm1256_vm0 = vmmov 0  }
  0x6e   : > { %v1032_v1 = vld [vmem:[#allocation5] sm:$0xff]   ;;  %876 = vmatprep.subr.bf16.mxu0 %v1031_v0  ;;  %v1036_v5 = vld [vmem:[#allocation5 + $0x8] sm:$0xff]   ;;  %v1039_v8 = vld [vmem:[#allocation5 + $0x50] sm:$0xff]   ;;  %vm564_vm1 = vcmask 523264   ;;  %s826_s20 = sshll.u32 %s1467_s19, 4  ;;  %s875_s30 = sshll.u32 %s1238_s15, 8 }
  0x6f   : > { %v1033_v2 = vld [vmem:[#allocation5 + $0xc0] sm:$0xff]   ;;  %877 = vmatpush3.bf16.msra.mxu0 %v1032_v1  ;;  %v1037_v6 = vld [vmem:[#allocation5 + $0xc8] sm:$0xff]   ;;  %v1040_v9 = vld [vmem:[#allocation5 + $0x10] sm:$0xff]   ;;  %s234_s22 = scalar_lea.vmem [#allocation8], %s826_s20  ;;  %vm691_vm2 = vcmask 15360   ;;  %s1493_s9 = scalar_lea.hbm %s1545_s3, %s875_s30 }
  0x70   : > { %v1034_v3 = vld [vmem:[#allocation5 + $0x80] sm:$0xff]   ;;  %898 = vmatprep.subr.bf16.mxu1 %v1033_v2  ;;  %878 = vmatprep.subr.bf16.mxu0 %v1035_v4  ;;  %v1038_v7 = vld [vmem:[#allocation5 + $0x88] sm:$0xff]   ;;  %v1041_v10 = vld [vmem:[#allocation5 + $0xd0] sm:$0xff]   ;;  %s710_s24 = sshll.u32 %s234_s22, 4  ;;  %s695_s15 = scalar_lea.sflag [#allocation4], %s1467_s19  ;;  %s1488_s24 = int_to_ptr.vmem [resolvable:$true] %s710_s24 }
  0x71   : > { %899 = vmatpush3.bf16.msra.mxu1 %v1034_v3  ;;  %v1042_v11 = vld [vmem:[#allocation5 + $0x90] sm:$0xff]   ;;  %v1043_v12 = vld [vmem:[#allocation5 + $0x58] sm:$0xff]   ;;  %v1047_v16 = vld [vmem:[#allocation5 + $0x60] sm:$0xff]   ;;  %s1160_s28 = scalar_lea.vmem %s1488_s24, 256  ;;  %p1560_p12 = scmp.ne.s32.totalorder %s1556_s27, 0 }
  0x72   : > { %900 = vmatprep.subr.bf16.mxu1 %v1037_v6  ;;  %v1044_v13 = vld [vmem:[#allocation5 + $0x18] sm:$0xff]   ;;  %v1048_v17 = vld [vmem:[#allocation5 + $0x20] sm:$0xff]   ;;  %v1051_v20 = vld [vmem:[#allocation5 + $0x68] sm:$0xff]   ;;  %p1161_p8 = scmp.ne.s32.totalorder %s1488_s24, %s1160_s28  ;;  %s1257_s6 = smov [#allocation8]  }
  0x73   : > { %879 = vmatpush3.bf16.msra.mxu0 %v1036_v5  ;;  %v1045_v14 = vld [vmem:[#allocation5 + $0xd8] sm:$0xff]   ;;  %v1049_v18 = vld [vmem:[#allocation5 + $0xe0] sm:$0xff]   ;;  %v1052_v21 = vld [vmem:[#allocation5 + $0x28] sm:$0xff]   ;;  %s1164_s21 = sshll.u32 %s1257_s6, 4  ;;  %s1165_s21 = int_to_ptr.vmem [resolvable:$false] %s1164_s21 }
  0x74   : > { %880 = vmatprep.subr.bf16.mxu0 %v1039_v8  ;;  %v1046_v15 = vld [vmem:[#allocation5 + $0x98] sm:$0xff]   ;;  %v1050_v19 = vld [vmem:[#allocation5 + $0xa0] sm:$0xff]   ;;  %v1053_v22 = vld [vmem:[#allocation5 + $0xe8] sm:$0xff]   ;;  %p1162_p1 = pnand %p1161_p8, %p1560_p12  ;;  %s1166_s8 = scalar_lea.vmem %s1165_s21, 512 }
  0x75   : > { %901 = vmatpush3.bf16.msra.mxu1 %v1038_v7  ;;  %v1054_v23 = vld [vmem:[#allocation5 + $0xa8] sm:$0xff]   ;;  %v1055_v24 = vld [vmem:[#allocation5 + $0x70] sm:$0xff]   ;;  %v1059_v28 = vld [vmem:[#allocation5 + $0x78] sm:$0xff]   ;;  %p1167_p3 = scmp.lt.s32.totalorder %s1488_s24, %s1165_s21  ;;  %p1168_p5 = scmp.lt.s32.totalorder %s1166_s8, %s1160_s28 }
  0x76   : > { %902 = vmatprep.subr.bf16.mxu1 %v1041_v10  ;;  %v1056_v25 = vld [vmem:[#allocation5 + $0x30] sm:$0xff]   ;;  %v1060_v29 = vld [vmem:[#allocation5 + $0x38] sm:$0xff]   ;;  %v1069_v37 = vld [vmem:[#allocation5 + $0x100] sm:$0xff]   ;;  %p1163_p10 = pneg %p1162_p1 }
  0x77   : > { %881 = vmatpush3.bf16.msra.mxu0 %v1040_v9  ;;  %v1057_v26 = vld [vmem:[#allocation5 + $0xf0] sm:$0xff]   ;;  %v1061_v30 = vld [vmem:[#allocation5 + $0xf8] sm:$0xff]   ;;  %v1070_v38 = vld [vmem:[#allocation5 + $0x108] sm:$0xff]   ;;  %p1169_p9 = por %p1168_p5, %p1167_p3 }
  0x78   : > { %882 = vmatprep.subr.bf16.mxu0 %v1043_v12  ;;  %v1058_v27 = vld [vmem:[#allocation5 + $0xb0] sm:$0xff]   ;;  %v1065_v34 = vld [vmem:[#allocation5 + $0xb8] sm:$0xff]   ;;  %v827_v43 = vld [vmem:[#allocation7] ss:$0 sm:$0xff] }
  0x79   : > { %903 = vmatpush3.bf16.msra.mxu1 %v1042_v11  ;;  %v1062_v31 = vld [vmem:[%s1471_s5] ss:$20 sps:$4 sm:$0xff]   ;;  %v1064_v32 = vld [vmem:[%s1471_s5 + $0x4] ss:$20 sps:$4 sm:$0xff]   ;;  %v1066_v35 = vld [vmem:[%s1471_s5 + $0x8] ss:$20 sps:$4 sm:$0xff]   ;;  %p1170_p2 = pnand %p1169_p9, %p1163_p10 }
  0x7a   : > { %904 = vmatprep.subr.bf16.mxu1 %v1045_v14  ;;  %600 = vmatprep.mubr.bf16.mxu0 %v1064_v32  ;;  %v1068_v36 = vld [vmem:[%s1471_s5 + $0xc] ss:$20 sps:$4 sm:$0xff]   ;;  %v1073_v41 = vld [vmem:[%s1471_s5 + $0x10] ss:$20 sps:$4 sm:$0xff]  }
  0x7b   : > { %883 = vmatpush3.bf16.msra.mxu0 %v1044_v13  ;;  %641 = vmatprep.mubr.bf16.mxu1 %v1068_v36  ;;  %v1071_v39 = vld [vmem:[#allocation5 + $0x110] sm:$0xff]   ;;  %v1072_v40 = vld [vmem:[#allocation5 + $0x118] sm:$0xff]  }
  0x7c   : > { %884 = vmatprep.subr.bf16.mxu0 %v1047_v16 }
  0x7d   : > { %905 = vmatpush3.bf16.msra.mxu1 %v1046_v15 }
  0x7e   : > { %906 = vmatprep.subr.bf16.mxu1 %v1049_v18 }
  0x7f   : > { %885 = vmatpush3.bf16.msra.mxu0 %v1048_v17 }
  0x80   : > { %886 = vmatprep.subr.bf16.mxu0 %v1051_v20 }
  0x81   : > { %907 = vmatpush3.bf16.msra.mxu1 %v1050_v19 }
  0x82   : > { %908 = vmatprep.subr.bf16.mxu1 %v1053_v22 }
  0x83   : > { %887 = vmatpush3.bf16.msra.mxu0 %v1052_v21 }
  0x84   : > { %888 = vmatprep.subr.bf16.mxu0 %v1055_v24 }
  0x85   : > { %909 = vmatpush3.bf16.msra.mxu1 %v1054_v23 }
  0x86   : > { %910 = vmatprep.subr.bf16.mxu1 %v1057_v26 }
  0x87   : > { %889 = vmatpush3.bf16.msra.mxu0 %v1056_v25 }
  0x88   : > { %890 = vmatprep.subr.bf16.mxu0 %v1059_v28 }
  0x89   : > { %911 = vmatpush3.bf16.msra.mxu1 %v1058_v27 }
  0x8a   : > { %912 = vmatprep.subr.bf16.mxu1 %v1061_v30 }
  0x8b   : > { %891 = vmatpush3.bf16.msra.mxu0 %v1060_v29 }
  0x8c   : > { %925 = vmatprep.subr.bf16.mxu0 %v1255_v33 }
  0x8d   : > { %913 = vmatpush3.bf16.msra.mxu1 %v1065_v34 }
  0x8e   : > { %601 = vmatmul.mubr.bf16.vlgmr.msra.gmra.mrb[0].mxu0 %v1062_v31 }
  0x8f   : > { %933 = vmatprep.mubr.msk.bf16.mxu0 %vm1256_vm0, %v1255_v33  ;;  %926 = vmatpush3.bf16.msra.mxu0 %v1069_v37 }
  0x90   : > { %642 = vmatmul.mubr.bf16.vlgmr.msra.gmra.mrb[0].mxu1 %v1066_v35  ;;  %927 = vmatprep.subr.bf16.mxu0 %v1255_v33 }
  0x93   : > { %928 = vmatpush3.bf16.msra.mxu0 %v1070_v38 }
  0x94   : > { %929 = vmatprep.subr.bf16.mxu0 %v1255_v33 }
  0x97   : > { %930 = vmatpush3.bf16.msra.mxu0 %v1071_v39 }
  0x98   : > { %931 = vmatprep.subr.bf16.mxu0 %v1255_v33 }
  0x9b   : > { %932 = vmatpush3.bf16.msra.mxu0 %v1072_v40 }
  0x9e   : > { %934 = vmatmul.mubr.msk.bf16.vlgmr.msra.gmra.mrb[4].mxu0 %vm564_vm1, %v1073_v41 }
 0x161   : > { %v892_v42 = vpop.f32.mrb[0].mxu0 }
 0x162   : > { %v893_v44 = vpop.f32.mrb[1].mxu0 }
 0x163   : > { %v894_v45 = vadd.f32 %v893_v44, %v892_v42  ;;  %v895_v46 = vpop.f32.mrb[2].mxu0  ;;  %v914_v47 = vpop.f32.mrb[0].mxu1 }
 0x164   : > { %v896_v48 = vpop.f32.mrb[3].mxu0  ;;  %v915_v51 = vpop.f32.mrb[1].mxu1 }
 0x165   : > { %v603_v49 = vadd.f32 %v894_v45, %v827_v43  ;;  %v897_v50 = vadd.f32 %v896_v48, %v895_v46  ;;  %v916_v52 = vadd.f32 %v915_v51, %v914_v47  ;;  %v917_v53 = vpop.f32.mrb[2].mxu1 }
 0x166   : > { %v918_v55 = vpop.f32.mrb[3].mxu1 }
 0x167   : > { %v606_v54 = vadd.f32 %v897_v50, %v827_v43  ;;  %v919_v56 = vadd.f32 %v918_v55, %v917_v53  ;;  %v644_v57 = vadd.f32 %v916_v52, %v603_v49 }
 0x169   : > { %v647_v58 = vadd.f32 %v919_v56, %v606_v54 }
 0x171   : > { %v684_v59 = vpop.f32.mrb[4].mxu0 }
 0x172   : > { %v685_v60 = vadd.f32 %v684_v59, %v644_v57  ;;  %v935_v61 = vpop.f32.mrb[5].mxu0 }
 0x173   : > { %v687_v62 = vpop.f32.mrb[6].mxu0 }
 0x174   : > { %692 = vst.msk [vmem:[%s234_s22] sm:$0xff] %vm691_vm2, %v685_v60  ;;  %v688_v63 = vadd.f32 %v687_v62, %v647_v58  ;;  %v936_v0 = vpop.f32.mrb[7].mxu0 }
 0x176   : > { %693 = vst.msk [vmem:[%s234_s22 + $0x8] sm:$0xff] %vm691_vm2, %v688_v63 }
 0x177   : > { %1173 = shalt.err (!%p1170_p2)
}
 0x178   : > { %s1174_s10 = scalar_lea.hbm %s1493_s9, 256  ;;  %s1178_s29 = scalar_lea.hbm %s1545_s3, 512 }
 0x179   : > { %p1175_p0 = scmp.ne.s32.totalorder %s1493_s9, %s1174_s10  ;;  %p1179_p6 = scmp.lt.u32.totalorder %s1493_s9, %s1545_s3 }
 0x17a   : > { %p1180_p7 = scmp.lt.u32.totalorder %s1178_s29, %s1174_s10  ;;  %p1182_p8 = scmp.lt.u32.totalorder %s1174_s10, %s1493_s9 }
 0x17b   : > { %p1176_p4 = pnand %p1175_p0, %p1560_p12 }
 0x17c   : > { %p1181_p11 = por %p1180_p7, %p1179_p6 }
 0x17d   : > { %p1177_p13 = pneg %p1176_p4 }
 0x17e   : > { %p1183_p1 = por %p1182_p8, %p1181_p11 }
 0x180   : > { %p1184_p10 = pnand %p1183_p1, %p1177_p13 }
 0x182   : > { %1187 = shalt.err (!%p1184_p10)
}
 0x183   : > { %s1258_s22 = smov 128   ;;  %s1259_s30 = smov 8  }
 0x184   : > { %950 = dma.vmem_to_hbm [thread:$0]  (%p1560_p12), %s1488_s24, 256, %s1493_s9, %s695_s15, %s1258_s22, %s1258_s22, %s1259_s30  }
 0x185 PF: > { %s725_s7 = sand.u32 1, %s1226_s12   ;;  %p1561_p3 = scmp.ne.s32.totalorder %s1553_s23, 0 }
 0x186   : > { %p1562_p5 = scmp.ge.s32.totalorder %s1246_s17, 2  ;;  %s726_s26 = scalar_lea.sflag [#allocation4], %s725_s7 }
 0x188   : > { %p964_p9 = pnand %p1562_p5, %p1561_p3 }
 0x18a   : > { %1221 = dma.done.wait (!%p964_p9), %s726_s26, 256  }
 0x18b   : > { %1223 = vsyncadd (!%p964_p9), %s726_s26, 4294967040  ;;  %s20_s17 = sadd.s32 1, %s1246_s17   ;;  %s1563_s12 = smov %s1230_s13 }
 0x18c   : > { %p17_p2 = scmp.ge.s32.totalorder %s20_s17, 4   ;;  %s1564_s13 = smov %s1234_s14 }
 0x18d   : > { %s1565_s14 = smov %s1426_s4  ;;  %s1566_s15 = smov %s1242_s16 }
 0x18e   : > { %s1567_s16 = smov %s1569_s18  ;;  %19 = sbr.rel (!%p17_p2) target bundleno = 7 (0x7), region = 85 }
 0x195   :  { %731 = vsyncpa [#allocation3], 1 }
 0x196   :  { %733 = vsyncpa [#allocation3 + $0x1], 1 }
 0x197   :  { %734 = vsyncpa [#allocation6], 1 }
 0x198   :  { %735 = vsyncpa [#allocation4], 1 }
 0x199   :  { %737 = vsyncpa [#allocation4 + $0x1], 1 }

// kernel: forward.15
= control target key start
LH: loop header
LB: loop body
LE: loop exit
PB: predicated region body
PF: predicated region fallthrough
CT: control target
= control target key end

     0   :  { %s4645_s0 = inlined_call_operand.hbm [shape: bf16[2,4,4,32], index: 0, kind: input, shape index: {}]   ;;  %s4646_s1 = inlined_call_operand.hbm [shape: bf16[2,10,10,32], index: 1, kind: input, shape index: {}]   ;;  %s4647_s2 = inlined_call_operand.hbm [shape: f32[8,1,32], index: 2, kind: input, shape index: {}]   ;;  %s4648_s3 = inlined_call_operand.hbm [shape: f32[64,1,64], index: 3, kind: input, shape index: {}]   ;;  %s4649_s4 = inlined_call_operand.hbm [shape: f32[1,1,64], index: 4, kind: input, shape index: {}]   ;;  %s4650_s5 = inlined_call_operand.hbm [shape: bf16[2,4,4,64], index: 5, kind: output, shape index: {}]  }
   0x1   :  { %4655 = sst [smem:[#allocation18_spill]] %s4645_s0 }
   0x2   :  { %4656 = sst [smem:[#allocation19_spill]] %s4647_s2 }
   0x3   :  { %4657 = sst [smem:[#allocation20_spill]] %s4648_s3 }
   0x4   :  { %4658 = sst [smem:[#allocation21_spill]] %s4649_s4 }
   0x5   :  { %10 = vsyncpa [#allocation3], 0 }
   0x6   :  { %12 = vsyncpa [#allocation3 + $0x1], 0 }
   0x7   :  { %13 = vsyncpa [#allocation6], 0 }
   0x8   :  { %15 = vsyncpa [#allocation6 + $0x1], 0 }
   0x9   :  { %16 = vsyncpa [#allocation9], 0 }
   0xa   :  { %17 = vsyncpa [#allocation4], 0 }
   0xb   :  { %19 = vsyncpa [#allocation4 + $0x1], 0  ;;  %s3416_s18 = smov 0   ;;  %s3418_s19 = smov 0  }
   0xc   :  { %s3420_s20 = smov 0   ;;  %s3422_s21 = smov 0  }
   0xd   :  { %s3424_s22 = smov 0   ;;  %s3426_s23 = smov 0  }
   0xe LB: > { %s3447_s24 = sadd.s32 4294967295, %s3370_s23   ;;  %s2884_s25 = sadd.s32 4294967294, %s3370_s23   ;;  %s3370_s23 = sphi %s3426_s23, %s25_s23   ;;  %s3366_s22 = sphi %s3424_s22, %s4692_s22   ;;  %s3362_s21 = sphi %s3422_s21, %s4691_s21   ;;  %s3358_s20 = sphi %s3420_s20, %s4690_s20   ;;  %s3354_s19 = sphi %s3418_s19, %s4689_s19   ;;  %s3350_s18 = sphi %s3416_s18, %s4688_s18  }
   0xf   : > { %p59_p0 = scmp.ne.s32.totalorder %s3354_s19, %s3350_s18  ;;  %p4651_p1 = scmp.eq.s32.totalorder %s3447_s24, 0 }
  0x10   : > { %p180_p3 = scmp.eq.s32.totalorder %s2884_s25, 1  ;;  %p2885_p5 = scmp.ge.s32.totalorder %s3370_s23, 1 }
  0x11   : > { %p3456_p4 = por %p4651_p1, %p59_p0  ;;  %p187_p7 = scmp.lt.s32.totalorder %s3370_s23, 3 }
  0x12   : > { %p3461_p6 = por %p180_p3, %p59_p0  ;;  %s3372_s29 = smov [#allocation7]  }
  0x13   : > { %s4659_s26 = scalar_select %p3456_p4, 1, 0 }
  0x14   : > { %s4660_s27 = scalar_select %p3461_p6, 1, 0 }
  0x15   : > { %p3466_p8 = pnand %p2885_p5, %p187_p7  ;;  %s199_s30 = sshll.u32 %s3372_s29, 4  ;;  %s3470_s30 = int_to_ptr.vmem [resolvable:$true] %s199_s30 }
  0x16   : > { %4661 = sst [smem:[#allocation17_spill]] %s4660_s27  ;;  %s3373_s7 = smov [#allocation8]  }
  0x17   : > { %s4662_s28 = scalar_select %p3466_p8, 1, 0 }
  0x18   : > { %p3044_p9 = pneg %p3466_p8  ;;  %s212_s8 = sshll.u32 %s3373_s7, 4  ;;  %s3481_s8 = int_to_ptr.vmem [resolvable:$true] %s212_s8 }
  0x19   : > { %s3374_s9 = smov [#allocation10]   ;;  %s4664_s2 = sld [smem:[#allocation19_spill]] }
  0x1a   : > { %p3477_p11 = pnand %p3044_p9, %p4651_p1  ;;  %s3483_s10 = sshll.u32 %s3374_s9, 4  ;;  %s227_s10 = int_to_ptr.vmem [resolvable:$true] %s3483_s10 }
  0x1c   : > { %p3493_p13 = pneg %p3477_p11 }
  0x1f   : > { %s3132_s13 = scalar_lea.hbm %s4664_s2, 128 }
  0x20   : > { %p3133_p12 = scmp.ne.s32.totalorder %s4664_s2, %s3132_s13  ;;  %p3139_p5 = scmp.lt.u32.totalorder %s3132_s13, %s4664_s2 }
  0x22   : > { %p3135_p0 = pnand %p3493_p13, %p3133_p12 }
  0x24   : > { %p3136_p3 = pneg %p3135_p0 }
  0x26   : > { %p3141_p7 = pnand %p3139_p5, %p3136_p3 }
  0x28   : > { %3144 = shalt.err (!%p3141_p7)
}
  0x29   : > { %s3145_s29 = scalar_lea.vmem %s3470_s30, 128  ;;  %p3153_p2 = scmp.lt.s32.totalorder %s3470_s30, %s3470_s30 }
  0x2a   : > { %p3146_p9 = scmp.ne.s32.totalorder %s3470_s30, %s3145_s29  ;;  %p3154_p6 = scmp.lt.s32.totalorder %s3145_s29, %s3145_s29 }
  0x2c   : > { %p3148_p10 = pnand %p3146_p9, %p3493_p13  ;;  %p3155_p12 = por %p3154_p6, %p3153_p2 }
  0x2e   : > { %p3149_p1 = pneg %p3148_p10 }
  0x30   : > { %p3156_p0 = pnand %p3155_p12, %p3149_p1 }
  0x32   : > { %3159 = shalt.err (!%p3156_p0)
}
  0x33   : > { %s3375_s7 = smov 16   ;;  %s3376_s9 = smov 1  }
  0x34   : > { %3047 = dma.hbm_to_vmem [thread:$0]  (!%p3477_p11), %s4664_s2, 128, %s3470_s30, [#allocation6], %s3375_s7, %s3375_s7, %s3376_s9  }
  0x35   : > { %s4666_s3 = sld [smem:[#allocation20_spill]] }
  0x3b   : > { %s3160_s15 = scalar_lea.hbm %s4666_s3, 1024 }
  0x3c   : > { %p3161_p2 = scmp.ne.s32.totalorder %s4666_s3, %s3160_s15  ;;  %p3167_p10 = scmp.lt.u32.totalorder %s3160_s15, %s4666_s3 }
  0x3e   : > { %p3163_p1 = pnand %p3161_p2, %p3493_p13 }
  0x40   : > { %p3164_p6 = pneg %p3163_p1 }
  0x42   : > { %p3169_p3 = pnand %p3167_p10, %p3164_p6 }
  0x44   : > { %3172 = shalt.err (!%p3169_p3)
}
  0x45   : > { %s3173_s30 = scalar_lea.vmem %s3481_s8, 1024  ;;  %p3181_p12 = scmp.lt.s32.totalorder %s3481_s8, %s3481_s8 }
  0x46   : > { %p3174_p5 = scmp.ne.s32.totalorder %s3481_s8, %s3173_s30  ;;  %p3182_p0 = scmp.lt.s32.totalorder %s3173_s30, %s3173_s30 }
  0x48   : > { %p3176_p7 = pnand %p3174_p5, %p3493_p13  ;;  %p3183_p2 = por %p3182_p0, %p3181_p12 }
  0x4a   : > { %p3177_p9 = pneg %p3176_p7 }
  0x4c   : > { %p3184_p1 = pnand %p3183_p2, %p3177_p9 }
  0x4e   : > { %3187 = shalt.err (!%p3184_p1)
}
  0x4f   : > { %3050 = dma.hbm_to_vmem [thread:$0]  (!%p3477_p11), %s4666_s3, 1024, %s3481_s8, [#allocation9], %s3375_s7, %s3375_s7, %s3376_s9  }
  0x50   : > { %s4667_s4 = sld [smem:[#allocation21_spill]] }
  0x56   : > { %s3188_s14 = scalar_lea.hbm %s4667_s4, 16 }
  0x57   : > { %p3189_p6 = scmp.ne.s32.totalorder %s4667_s4, %s3188_s14  ;;  %p3195_p5 = scmp.lt.u32.totalorder %s3188_s14, %s4667_s4 }
  0x59   : > { %p3191_p10 = pnand %p3189_p6, %p3493_p13 }
  0x5b   : > { %p3192_p3 = pneg %p3191_p10 }
  0x5d   : > { %p3197_p7 = pnand %p3195_p5, %p3192_p3 }
  0x5f   : > { %3200 = shalt.err (!%p3197_p7)
}
  0x60   : > { %s3201_s30 = scalar_lea.vmem %s227_s10, 16  ;;  %s3208_s8 = scalar_lea.vmem %s227_s10, 32 }
  0x61   : > { %p3202_p9 = scmp.ne.s32.totalorder %s227_s10, %s3201_s30  ;;  %p3209_p2 = scmp.lt.s32.totalorder %s227_s10, %s227_s10 }
  0x62   : > { %p3210_p1 = scmp.lt.s32.totalorder %s3208_s8, %s3201_s30 }
  0x63   : > { %p3204_p12 = pnand %p3202_p9, %p3493_p13 }
  0x64   : > { %p3211_p4 = por %p3210_p1, %p3209_p2 }
  0x65   : > { %p3205_p0 = pneg %p3204_p12 }
  0x67   : > { %p3212_p8 = pnand %p3211_p4, %p3205_p0 }
  0x69   : > { %3215 = shalt.err (!%p3212_p8)
}
  0x6a   : > { %3053 = dma.hbm_to_vmem [thread:$0]  (!%p3477_p11), %s4667_s4, 16, %s227_s10, [#allocation9]  }
  0x6b   : > { %s46_s16 = sadd.s32 1, %s3358_s20  ;;  %s37_s27 = sadd.s32 1, %s3366_s22 }
  0x6c   : > { %p53_p4 = scmp.ne.s32.totalorder %s3358_s20, %s3354_s19  ;;  %p39_p8 = scmp.ge.s32.totalorder %s37_s27, 2 }
  0x6d   : > { %p54_p13 = scmp.eq.s32.totalorder %s3370_s23, 0  ;;  %p4668_p6 = scmp.eq.s32.totalorder %s3447_s24, 1 }
  0x6e   : > { %p3068_p3 = scmp.lt.s32.totalorder %s3370_s23, 2  ;;  %s4694_s27 = smov (%p39_p8, %s37_s27), 0 }
  0x6f   : > { %p3563_p10 = por %p4668_p6, %p53_p4  ;;  %p55_p5 = por %p54_p13, %p53_p4 }
  0x70   : > { %s3571_s11 = sand.u32 1, %s3358_s20   ;;  %s41_s10 = ssub.s32 %s3366_s22, %s4694_s27 }
  0x71   : > { %p44_p11 = scmp.eq.s32.totalorder %s41_s10, 0  ;;  %s2890_s12 = sshll.u32 %s3571_s11, 3 }
  0x72   : > { %s3021_s13 = sshll.u32 %s3366_s22, 7  ;;  %s4670_s0 = sld [smem:[#allocation18_spill]] }
  0x73   : > { %s3578_s14 = scalar_select %p44_p11, %s3358_s20, %s46_s16  }
  0x74   : > { %s241_s29 = scalar_lea.vmem [#allocation2], %s2890_s12  ;;  %p3589_p7 = pnand %p3068_p3, %p55_p5 }
  0x75   : > { %s250_s30 = sshll.u32 %s241_s29, 4  ;;  %s238_s9 = scalar_lea.sflag [#allocation3], %s3571_s11  ;;  %s3585_s30 = int_to_ptr.vmem [resolvable:$true] %s250_s30 }
  0x76   : > { %p3218_p12 = pneg %p3589_p7 }
  0x78   : > { %s3583_s25 = scalar_lea.hbm %s4670_s0, %s3021_s13  ;;  %s3221_s13 = scalar_lea.hbm %s4670_s0, 256 }
  0x79   : > { %s3216_s16 = scalar_lea.hbm %s3583_s25, 128  ;;  %p3222_p1 = scmp.lt.u32.totalorder %s3583_s25, %s4670_s0 }
  0x7a   : > { %p3217_p9 = scmp.ne.s32.totalorder %s3583_s25, %s3216_s16  ;;  %p3223_p4 = scmp.lt.u32.totalorder %s3221_s13, %s3216_s16 }
  0x7b   : > { %p3225_p13 = scmp.lt.u32.totalorder %s3216_s16, %s3583_s25 }
  0x7c   : > { %p3219_p0 = pnand %p3218_p12, %p3217_p9  ;;  %p3224_p8 = por %p3223_p4, %p3222_p1 }
  0x7e   : > { %p3220_p2 = pneg %p3219_p0  ;;  %p3226_p6 = por %p3225_p13, %p3224_p8 }
  0x80   : > { %p3227_p3 = pnand %p3226_p6, %p3220_p2 }
  0x82   : > { %3230 = shalt.err (!%p3227_p3)
}
  0x83   : > { %s3231_s29 = scalar_lea.vmem %s3585_s30, 128  ;;  %s3377_s10 = smov [#allocation2]  }
  0x84   : > { %p3232_p5 = scmp.ne.s32.totalorder %s3585_s30, %s3231_s29  ;;  %s3236_s12 = sshll.u32 %s3377_s10, 4  ;;  %s3237_s12 = int_to_ptr.vmem [resolvable:$false] %s3236_s12 }
  0x85   : > { %s3238_s15 = scalar_lea.vmem %s3237_s12, 256  ;;  %p3239_p0 = scmp.lt.s32.totalorder %s3585_s30, %s3237_s12 }
  0x86   : > { %p3234_p11 = pnand %p3232_p5, %p3218_p12  ;;  %p3240_p1 = scmp.lt.s32.totalorder %s3238_s15, %s3231_s29 }
  0x88   : > { %p3235_p9 = pneg %p3234_p11  ;;  %p3241_p4 = por %p3240_p1, %p3239_p0 }
  0x8a   : > { %p3242_p8 = pnand %p3241_p4, %p3235_p9 }
  0x8c   : > { %3245 = shalt.err (!%p3242_p8)
}
  0x8d   : > { %s3378_s16 = smov 32   ;;  %s3379_s13 = smov 2  }
  0x8e   : > { %3057 = dma.hbm_to_vmem [thread:$0]  (!%p3589_p7), %s3583_s25, 128, %s3585_s30, %s238_s9, %s3378_s16, %s3378_s16, %s3379_s13  }
  0x8f   : > { %s3023_s17 = smul.u32 80, %s3571_s11  ;;  %s4672_s2 = sand.u32 1, %s3370_s23  }
  0x90   : > { %s3024_s10 = smul.u32 1280, %s3366_s22  ;;  %s3633_s3 = scalar_lea.sflag [#allocation6], %s4672_s2 }
  0x91   : > { %s264_s7 = scalar_lea.vmem [#allocation5], %s3023_s17  ;;  %s3251_s30 = scalar_lea.hbm %s4646_s1, 2560 }
  0x92   : > { %s3627_s15 = scalar_lea.hbm %s4646_s1, %s3024_s10  ;;  %s271_s0 = sshll.u32 %s264_s7, 4  ;;  %s3629_s0 = int_to_ptr.vmem [resolvable:$true] %s271_s0 }
  0x93   : > { %s3246_s4 = scalar_lea.hbm %s3627_s15, 1280  ;;  %p3252_p3 = scmp.lt.u32.totalorder %s3627_s15, %s4646_s1 }
  0x94   : > { %p3247_p2 = scmp.ne.s32.totalorder %s3627_s15, %s3246_s4  ;;  %p3253_p5 = scmp.lt.u32.totalorder %s3251_s30, %s3246_s4 }
  0x95   : > { %p3255_p9 = scmp.lt.u32.totalorder %s3246_s4, %s3627_s15 }
  0x96   : > { %p3249_p13 = pnand %p3247_p2, %p3218_p12  ;;  %p3254_p11 = por %p3253_p5, %p3252_p3 }
  0x98   : > { %p3250_p6 = pneg %p3249_p13  ;;  %p3256_p0 = por %p3255_p9, %p3254_p11 }
  0x9a   : > { %p3257_p1 = pnand %p3256_p0, %p3250_p6 }
  0x9c   : > { %3260 = shalt.err (!%p3257_p1)
}
  0x9d   : > { %s3261_s2 = scalar_lea.vmem %s3629_s0, 1280  ;;  %s3380_s7 = smov [#allocation5]  }
  0x9e   : > { %p3262_p4 = scmp.ne.s32.totalorder %s3629_s0, %s3261_s2  ;;  %s3266_s13 = sshll.u32 %s3380_s7, 4  ;;  %s3267_s13 = int_to_ptr.vmem [resolvable:$false] %s3266_s13 }
  0x9f   : > { %s3268_s17 = scalar_lea.vmem %s3267_s13, 2560  ;;  %p3269_p13 = scmp.lt.s32.totalorder %s3629_s0, %s3267_s13 }
  0xa0   : > { %p3264_p8 = pnand %p3262_p4, %p3218_p12  ;;  %p3270_p3 = scmp.lt.s32.totalorder %s3268_s17, %s3261_s2 }
  0xa2   : > { %p3265_p2 = pneg %p3264_p8  ;;  %p3271_p5 = por %p3270_p3, %p3269_p13 }
  0xa4   : > { %p3272_p11 = pnand %p3271_p5, %p3265_p2 }
  0xa6   : > { %3275 = shalt.err (!%p3272_p11)
}
  0xa7   : > { %s3381_s4 = smov 64   ;;  %s3382_s10 = smov 4  }
  0xa8   : > { %3060 = dma.hbm_to_vmem [thread:$0]  (!%p3589_p7), %s3627_s15, 1280, %s3629_s0, %s3633_s3, %s3381_s4, %s3381_s4, %s3382_s10  }
  0xa9   : > { %p4673_p12 = scmp.ne.s32.totalorder %s4662_s28, 0 }
  0xaa   : > { %s3662_s12 = sand.u32 (!%p4673_p12), 1, %s3354_s19   ;;  %p4674_p6 = scmp.ne.s32.totalorder (!%p4673_p12), %s4659_s26, 0 }
  0xab   : > { %283 = sbr.rel (%p4673_p12) target bundleno = 817 (0x331), region = 40  ;;  %s2895_s29 = sshll.u32 (!%p4673_p12), %s3662_s12, 3 }
  0xac   : > { %s286_s11 = scalar_lea.sflag (!%p4673_p12), [#allocation3], %s3662_s12  ;;  %s289_s25 = scalar_lea.vmem (!%p4673_p12), [#allocation2], %s2895_s29 }
  0xb2   : > { %3329 = dma.done.wait (%p4674_p6), %s286_s11, 128  }
  0xb3   : > { %3331 = vsyncadd (%p4674_p6), %s286_s11, 4294967168  ;;  %s294_s0 = sand.u32 1, %s3447_s24   ;;  %s3025_s3 = smul.u32 80, %s3662_s12 }
  0xb4   : > { %s295_s28 = scalar_lea.sflag [#allocation6], %s294_s0 }
  0xb5   : > { %s3674_s8 = scalar_lea.vmem [#allocation5], %s3025_s3 }
  0xb6   : > { %3333 = dma.done.wait (%p4674_p6), %s295_s28, 1280  }
  0xb7   : > { %3335 = vsyncadd (%p4674_p6), %s295_s28, 4294966016  ;;  %p4675_p7 = scmp.eq.s32.totalorder %s3447_s24, 0 }
  0xb9   : > { %3337 = dma.done.wait (%p4675_p7), [#allocation6], 128   ;;  %p4676_p9 = pmov %p4675_p7 }
  0xba   : > { %p4677_p0 = pmov %p4675_p7 }
  0xbb   : > { %3339 = vsyncadd (%p4676_p9), [#allocation6], 4294967168 }
  0xbc   : > { %3341 = dma.done.wait (%p4677_p0), [#allocation9], 1040   ;;  %p4678_p1 = pmov %p4677_p0 }
  0xbd   : > { %v347_v0 = vld [vmem:[%s289_s25 + $0x4] sm:$0x3]  ;;  %v423_v1 = vld [vmem:[%s3674_s8 + $0x10] sm:$0x3]  ;;  %v421_v6 = vld [vmem:[%s3674_s8] sm:$0x3] }
  0xbe   : > { %3343 = vsyncadd (%p4678_p1), [#allocation9], 4294966256  ;;  %v345_v2 = vld [vmem:[%s289_s25] sm:$0x3]  ;;  %v3689_v3 = vunpack.c.l.bf16 %v347_v0  ;;  %v433_v4 = vunpack.c.l.bf16 %v423_v1  ;;  %v348_v7 = vld [vmem:[%s289_s25 + $0x6] sm:$0x3]  ;;  %v431_v9 = vunpack.c.l.bf16 %v421_v6 }
  0xbf   : > { %v3691_v5 = vunpack.c.l.bf16 %v345_v2  ;;  %v424_v8 = vld [vmem:[%s3674_s8 + $0x18] sm:$0x3]  ;;  %vm445_vm0 = vcmask 257024   ;;  %v3695_v10 = vunpack.c.l.bf16 %v348_v7  ;;  %v346_v12 = vld [vmem:[%s289_s25 + $0x2] sm:$0x3]  ;;  %vm680_vm1 = vcmask 1042432  }
  0xc0   : > { %v434_v11 = vunpack.c.l.bf16 %v424_v8  ;;  %v422_v13 = vld [vmem:[%s3674_s8 + $0x8] sm:$0x3]  ;;  %v443_v14 = vmul.f32 %v433_v4, %v3689_v3  ;;  %v3699_v15 = vunpack.c.l.bf16 %v346_v12  ;;  %v425_v19 = vld [vmem:[%s3674_s8 + $0x20] sm:$0x3]  ;;  %v427_v42 = vld [vmem:[%s3674_s8 + $0x30] sm:$0x3] }
  0xc1   : > { %v432_v16 = vunpack.c.l.bf16 %v422_v13  ;;  %v441_v17 = vmul.f32 %v431_v9, %v3691_v5  ;;  %v435_v25 = vunpack.c.l.bf16 %v425_v19  ;;  %v426_v32 = vld [vmem:[%s3674_s8 + $0x28] sm:$0x3]  ;;  %v502_v37 = vmul.f32 %v433_v4, %v3691_v5  ;;  %v428_v52 = vld [vmem:[%s3674_s8 + $0x38] sm:$0x3]  ;;  %v429_v62 = vld [vmem:[%s3674_s8 + $0x40] sm:$0x3] }
  0xc2   : > { %v444_v18 = vmul.f32 %v434_v11, %v3695_v10  ;;  %v452_v20 = vsel %vm445_vm0, %v443_v14, 0.0  ;;  %v473_v24 = vmul.f32 %v433_v4, %v3699_v15  ;;  %v474_v31 = vmul.f32 %v434_v11, %v3689_v3  ;;  %v653_v63 = vld [vmem:[%s3674_s8 + $0x8] sm:$0x7]  ;;  %v652_v0 = vld [vmem:[%s3674_s8] sm:$0x7]  ;;  %s3022_s24 = sshll.u32 %s3362_s21, 7 }
  0xc3   : > { %v442_v21 = vmul.f32 %v432_v16, %v3699_v15  ;;  %453 = vadd.xlane.f32.xlu1 %v452_v20  ;;  %v446_v22 = vsel %vm445_vm0, %v441_v17, 0.0  ;;  %v472_v27 = vmul.f32 %v432_v16, %v3691_v5  ;;  %v475_v29 = vmul.f32 %v435_v25, %v3695_v10  ;;  %v654_v12 = vld [vmem:[%s3674_s8 + $0x10] sm:$0x7]  ;;  %s341_s26 = scalar_lea.vmem [#allocation11], %s2895_s29  ;;  %s4592_s16 = scalar_lea.hbm %s4650_s5, %s3022_s24 }
  0xc4   : > { %447 = vadd.xlane.f32.xlu0 %v446_v22  ;;  %v455_v23 = vsel %vm445_vm0, %v444_v18, 0.0  ;;  %v479_v28 = vsel %vm445_vm0, %v473_v24, 0.0  ;;  %v503_v34 = vmul.f32 %v434_v11, %v3699_v15  ;;  %v436_v35 = vunpack.c.l.bf16 %v426_v32  ;;  %v430_v18 = vld [vmem:[%s3674_s8 + $0x48] sm:$0x3]  ;;  %s2743_s15 = sshll.u32 %s341_s26, 4  ;;  %s2728_s21 = scalar_lea.sflag [#allocation4], %s3662_s12  ;;  %s4594_s15 = int_to_ptr.vmem [resolvable:$true] %s2743_s15 }
  0xc5   : > { %v449_v26 = vsel %vm445_vm0, %v442_v21, 0.0  ;;  %v476_v30 = vsel %vm445_vm0, %v472_v27, 0.0  ;;  %v485_v33 = vsel %vm445_vm0, %v475_v29, 0.0  ;;  %v482_v36 = vsel %vm445_vm0, %v474_v31, 0.0  ;;  %s3276_s2 = scalar_lea.vmem %s4594_s15, 128  ;;  %s3383_s7 = smov [#allocation11]  }
  0xc6   : > { %v509_v38 = vsel %vm445_vm0, %v503_v34, 0.0  ;;  %v505_v39 = vmul.f32 %v436_v35, %v3695_v10  ;;  %v506_v40 = vsel %vm445_vm0, %v502_v37, 0.0  ;;  %v504_v41 = vmul.f32 %v435_v25, %v3689_v3  ;;  %p3277_p4 = scmp.ne.s32.totalorder %s4594_s15, %s3276_s2  ;;  %s3280_s13 = sshll.u32 %s3383_s7, 4  ;;  %s3281_s13 = int_to_ptr.vmem [resolvable:$false] %s3280_s13 }
  0xc7   : > { %456 = vadd.xlane.f32.xlu1 %v455_v23  ;;  %v533_v44 = vmul.f32 %v435_v25, %v3699_v15  ;;  %v437_v45 = vunpack.c.l.bf16 %v427_v42  ;;  %v532_v47 = vmul.f32 %v434_v11, %v3691_v5  ;;  %v534_v51 = vmul.f32 %v436_v35, %v3689_v3  ;;  %v655_v11 = vld [vmem:[%s3674_s8 + $0x18] sm:$0x7]  ;;  %s3282_s17 = scalar_lea.vmem %s3281_s13, 256  ;;  %p3283_p13 = scmp.lt.s32.totalorder %s4594_s15, %s3281_s13 }
  0xc8   : > { %450 = vadd.xlane.f32.xlu0 %v449_v26  ;;  %v515_v43 = vsel %vm445_vm0, %v505_v39, 0.0  ;;  %v512_v46 = vsel %vm445_vm0, %v504_v41, 0.0  ;;  %v563_v54 = vmul.f32 %v436_v35, %v3699_v15  ;;  %v438_v55 = vunpack.c.l.bf16 %v428_v52  ;;  %p3278_p8 = pnand %p3277_p4, %p3563_p10  ;;  %p3284_p3 = scmp.lt.s32.totalorder %s3282_s17, %s3276_s2 }
  0xc9   : > { %v539_v48 = vsel %vm445_vm0, %v533_v44, 0.0  ;;  %v535_v49 = vmul.f32 %v437_v45, %v3695_v10  ;;  %v536_v50 = vsel %vm445_vm0, %v532_v47, 0.0  ;;  %v542_v56 = vsel %vm445_vm0, %v534_v51, 0.0 }
  0xca   : > { %v562_v57 = vmul.f32 %v435_v25, %v3691_v5  ;;  %v569_v58 = vsel %vm445_vm0, %v563_v54, 0.0  ;;  %v565_v59 = vmul.f32 %v438_v55, %v3695_v10  ;;  %v564_v61 = vmul.f32 %v437_v45, %v3689_v3  ;;  %v657_v54 = vld [vmem:[%s3674_s8 + $0x28] sm:$0x7]  ;;  %p3279_p2 = pneg %p3278_p8  ;;  %p3285_p5 = por %p3284_p3, %p3283_p13 }
  0xcb   : > { %480 = vadd.xlane.f32.xlu1 %v479_v28  ;;  %v545_v53 = vsel %vm445_vm0, %v535_v49, 0.0  ;;  %v593_v2 = vmul.f32 %v437_v45, %v3699_v15  ;;  %v439_v4 = vunpack.c.l.bf16 %v429_v62  ;;  %v592_v7 = vmul.f32 %v436_v35, %v3691_v5  ;;  %v656_v35 = vld [vmem:[%s3674_s8 + $0x20] sm:$0x7] }
  0xcc   : > { %477 = vadd.xlane.f32.xlu0 %v476_v30  ;;  %v566_v60 = vsel %vm445_vm0, %v562_v57, 0.0  ;;  %v575_v1 = vsel %vm445_vm0, %v565_v59, 0.0  ;;  %v572_v6 = vsel %vm445_vm0, %v564_v61, 0.0  ;;  %v663_v8 = vunpack.c.l.bf16 %v653_v63  ;;  %p3286_p11 = pnand %p3285_p5, %p3279_p2 }
  0xcd   : > { %v662_v9 = vunpack.c.l.bf16 %v652_v0  ;;  %v599_v13 = vsel %vm445_vm0, %v593_v2, 0.0  ;;  %v595_v14 = vmul.f32 %v439_v4, %v3695_v10  ;;  %v596_v16 = vsel %vm445_vm0, %v592_v7, 0.0 }
  0xce   : > { %v594_v17 = vmul.f32 %v438_v55, %v3689_v3  ;;  %v677_v19 = vcombine.high %v663_v8, %v663_v8  ;;  %v665_v20 = vunpack.c.l.bf16 %v655_v11  ;;  %v664_v22 = vunpack.c.l.bf16 %v654_v12 }
  0xcf   : > { %486 = vadd.xlane.f32.xlu1 %v485_v33  ;;  %v676_v21 = vcombine.high %v662_v9, %v662_v9  ;;  %vm681_vm2 = vcmask 1046532   ;;  %v605_v23 = vsel %vm445_vm0, %v595_v14, 0.0  ;;  %v623_v24 = vmul.f32 %v438_v55, %v3699_v15 }
  0xd0   : > { %483 = vadd.xlane.f32.xlu0 %v482_v36  ;;  %v622_v25 = vmul.f32 %v437_v45, %v3691_v5  ;;  %v440_v26 = vunpack.c.l.bf16 %v430_v18  ;;  %v602_v27 = vsel %vm445_vm0, %v594_v17, 0.0  ;;  %v2908_v28 = vrot.slane %v663_v8, 9  ;;  %vm3760_vm3 = vmor %vm680_vm1, %vm681_vm2 }
  0xd1   : > { %v689_v29 = vrot.slane %v677_v19, 5  ;;  %v679_v30 = vcombine.high %v665_v20, %v665_v20  ;;  %v2907_v32 = vrot.slane %v662_v9, 9  ;;  %v685_v33 = vrot.slane %v676_v21, 5 }
  0xd2   : > { %v678_v34 = vcombine.high %v664_v22, %v664_v22  ;;  %v629_v36 = vsel %vm445_vm0, %v623_v24, 0.0  ;;  %v626_v37 = vsel %vm445_vm0, %v622_v25, 0.0  ;;  %v624_v39 = vmul.f32 %v439_v4, %v3689_v3 }
  0xd3   : > { %510 = vadd.xlane.f32.xlu1 %v509_v38  ;;  %v625_v38 = vmul.f32 %v440_v26, %v3695_v10  ;;  %v2910_v41 = vrot.slane %v665_v20, 9  ;;  %v697_v42 = vrot.slane %v679_v30, 5  ;;  %v686_v44 = vsel %vm3760_vm3, %v2907_v32, %v685_v33 }
  0xd4   : > { %507 = vadd.xlane.f32.xlu0 %v506_v40  ;;  %v690_v40 = vsel %vm3760_vm3, %v2908_v28, %v689_v29  ;;  %v2909_v45 = vrot.slane %v664_v22, 9  ;;  %v632_v49 = vsel %vm445_vm0, %v624_v39, 0.0  ;;  %v667_v61 = vunpack.c.l.bf16 %v657_v54  ;;  %v659_v22 = vld [vmem:[%s3674_s8 + $0x38] sm:$0x7] }
  0xd5   : > { %v635_v47 = vsel %vm445_vm0, %v625_v38, 0.0  ;;  %v698_v51 = vsel %vm3760_vm3, %v2910_v41, %v697_v42  ;;  %v669_v29 = vunpack.c.l.bf16 %v659_v22  ;;  %vm983_vm4 = vcmask 1041408  }
  0xd6   : > { %v771_v4 = vcombine.high %v667_v61, %v667_v61  ;;  %v742_v12 = vmul.f32 %v698_v51, %v3689_v3  ;;  %v778_v17 = vmul.f32 %v698_v51, %v3699_v15  ;;  %v814_v33 = vmul.f32 %v698_v51, %v3691_v5 }
  0xd7   : > { %516 = vadd.xlane.f32.xlu1 %v515_v43  ;;  %v666_v43 = vunpack.c.l.bf16 %v656_v35  ;;  %v2918_v42 = vrot.slane %v669_v29, 9  ;;  %vm984_vm5 = vcmask 1045508   ;;  %vm1286_vm7 = vcmask 1040384  }
  0xd8   : > { %513 = vadd.xlane.f32.xlu0 %v512_v46  ;;  %v693_v46 = vrot.slane %v678_v34, 5  ;;  %v774_v14 = vrot.slane %v771_v4, 5  ;;  %v750_v18 = vsel %vm445_vm0, %v742_v12, 0.0  ;;  %v818_v39 = vsel %vm445_vm0, %v814_v33, 0.0  ;;  %vm3856_vm6 = vmor %vm983_vm4, %vm984_vm5 }
  0xd9   : > { %v734_v52 = vcombine.high %v666_v43, %v666_v43  ;;  %v2912_v57 = vrot.slane %v666_v43, 9  ;;  %vm1287_vm8 = vcmask 1044484   ;;  %vm2722_vm10 = vcmask 517120  }
  0xda   : > { %vm3959_vm9 = vmor %vm1286_vm7, %vm1287_vm8 }
  0xdb   : > { %540 = vadd.xlane.f32.xlu1 %v539_v48  ;;  %v704_v48 = vmul.f32 %v690_v40, %v3699_v15 }
  0xdc   : > { %537 = vadd.xlane.f32.xlu0 %v536_v50  ;;  %v703_v50 = vmul.f32 %v686_v44, %v3691_v5 }
  0xdd   : > { %v710_v55 = vsel %vm445_vm0, %v704_v48, 0.0 }
  0xdf   : > { %546 = vadd.xlane.f32.xlu1 %v545_v53  ;;  %v694_v53 = vsel %vm3760_vm3, %v2909_v45, %v693_v46 }
  0xe0   : > { %543 = vadd.xlane.f32.xlu0 %v542_v56  ;;  %v706_v56 = vmul.f32 %v698_v51, %v3695_v10  ;;  %v705_v59 = vmul.f32 %v694_v53, %v3689_v3  ;;  %v741_v63 = vmul.f32 %v694_v53, %v3699_v15  ;;  %v777_v19 = vmul.f32 %v694_v53, %v3691_v5  ;;  %v661_v51 = vld [vmem:[%s3674_s8 + $0x48] sm:$0x7] }
  0xe1   : > { %v671_v54 = vunpack.c.l.bf16 %v661_v51 }
  0xe2   : > { %v716_v62 = vsel %vm445_vm0, %v706_v56, 0.0  ;;  %v713_v0 = vsel %vm445_vm0, %v705_v59, 0.0  ;;  %v747_v7 = vsel %vm445_vm0, %v741_v63, 0.0  ;;  %v781_v26 = vsel %vm445_vm0, %v777_v19, 0.0  ;;  %v956_v59 = vld [vmem:[%s3674_s8 + $0x8] sm:$0x6] }
  0xe3   : > { %570 = vadd.xlane.f32.xlu1 %v569_v58  ;;  %v707_v58 = vsel %vm445_vm0, %v703_v50, 0.0  ;;  %v966_v4 = vunpack.c.l.bf16 %v956_v59 }
  0xe4   : > { %567 = vadd.xlane.f32.xlu0 %v566_v60  ;;  %v737_v60 = vrot.slane %v734_v52, 5 }
  0xe6   : > { %v738_v2 = vsel %vm3760_vm3, %v2912_v57, %v737_v60  ;;  %v955_v60 = vld [vmem:[%s3674_s8] sm:$0x6] }
  0xe7   : > { %576 = vadd.xlane.f32.xlu1 %v575_v1  ;;  %v740_v1 = vmul.f32 %v690_v40, %v3691_v5  ;;  %v743_v8 = vmul.f32 %v738_v2, %v3695_v10  ;;  %v779_v25 = vmul.f32 %v738_v2, %v3689_v3  ;;  %v815_v32 = vmul.f32 %v738_v2, %v3699_v15 }
  0xe8   : > { %573 = vadd.xlane.f32.xlu0 %v572_v6  ;;  %v658_v6 = vld [vmem:[%s3674_s8 + $0x30] sm:$0x7]  ;;  %v851_v48 = vmul.f32 %v738_v2, %v3691_v5  ;;  %v919_v2 = vcombine.high %v671_v54, %v671_v54 }
  0xe9   : > { %v668_v9 = vunpack.c.l.bf16 %v658_v6  ;;  %v744_v11 = vsel %vm445_vm0, %v740_v1, 0.0  ;;  %v787_v34 = vsel %vm445_vm0, %v779_v25, 0.0  ;;  %v821_v38 = vsel %vm445_vm0, %v815_v32, 0.0 }
  0xea   : > { %v965_v6 = vunpack.c.l.bf16 %v955_v60 }
  0xeb   : > { %600 = vadd.xlane.f32.xlu1 %v599_v13  ;;  %v2914_v13 = vrot.slane %v667_v61, 9  ;;  %v808_v21 = vcombine.high %v668_v9, %v668_v9 }
  0xec   : > { %597 = vadd.xlane.f32.xlu0 %v596_v16  ;;  %v753_v16 = vsel %vm445_vm0, %v743_v8, 0.0  ;;  %v957_v8 = vld [vmem:[%s3674_s8 + $0x10] sm:$0x6]  ;;  %v979_v19 = vcombine.high %v965_v6, %v965_v6 }
  0xed   : > { %v775_v20 = vsel %vm3760_vm3, %v2914_v13, %v774_v14  ;;  %v811_v28 = vrot.slane %v808_v21, 5  ;;  %v2922_v14 = vrot.slane %v671_v54, 9 }
  0xee   : > { %v780_v24 = vmul.f32 %v775_v20, %v3695_v10  ;;  %v816_v41 = vmul.f32 %v775_v20, %v3689_v3  ;;  %v852_v46 = vmul.f32 %v775_v20, %v3699_v15  ;;  %v888_v63 = vmul.f32 %v775_v20, %v3691_v5 }
  0xef   : > { %606 = vadd.xlane.f32.xlu1 %v605_v23  ;;  %v784_v23 = vsel %vm445_vm0, %v778_v17, 0.0  ;;  %v980_v17 = vcombine.high %v966_v4, %v966_v4  ;;  %v967_v20 = vunpack.c.l.bf16 %v957_v8  ;;  %v988_v32 = vrot.slane %v979_v19, 6 }
  0xf0   : > { %603 = vadd.xlane.f32.xlu0 %v602_v27  ;;  %v2916_v27 = vrot.slane %v668_v9, 9  ;;  %v790_v30 = vsel %vm445_vm0, %v780_v24, 0.0  ;;  %v858_v52 = vsel %vm445_vm0, %v852_v46, 0.0 }
  0xf1   : > { %v981_v33 = vcombine.high %v967_v20, %v967_v20 }
  0xf2   : > { %v3814_v35 = vsel %vm3760_vm3, %v2916_v27, %v811_v28  ;;  %v992_v27 = vrot.slane %v980_v17, 6 }
  0xf3   : > { %630 = vadd.xlane.f32.xlu1 %v629_v36  ;;  %v845_v36 = vcombine.high %v669_v29, %v669_v29  ;;  %v817_v40 = vmul.f32 %v3814_v35, %v3695_v10  ;;  %v853_v56 = vmul.f32 %v3814_v35, %v3689_v3  ;;  %v925_v24 = vmul.f32 %v3814_v35, %v3691_v5 }
  0xf4   : > { %627 = vadd.xlane.f32.xlu0 %v626_v37  ;;  %v660_v37 = vld [vmem:[%s3674_s8 + $0x40] sm:$0x7] }
  0xf5   : > { %v848_v43 = vrot.slane %v845_v36, 5  ;;  %v670_v44 = vunpack.c.l.bf16 %v660_v37  ;;  %v827_v45 = vsel %vm445_vm0, %v817_v40, 0.0 }
  0xf7   : > { %636 = vadd.xlane.f32.xlu1 %v635_v47  ;;  %v824_v47 = vsel %vm445_vm0, %v816_v41, 0.0  ;;  %v882_v50 = vcombine.high %v670_v44, %v670_v44  ;;  %v2920_v57 = vrot.slane %v670_v44, 9  ;;  %v2926_v44 = vrot.slane %v967_v20, 10 }
  0xf8   : > { %633 = vadd.xlane.f32.xlu0 %v632_v49  ;;  %v849_v49 = vsel %vm3760_vm3, %v2918_v42, %v848_v43 }
  0xf9   : > { %v854_v53 = vmul.f32 %v849_v49, %v3695_v10  ;;  %v890_v13 = vmul.f32 %v849_v49, %v3689_v3 }
  0xfb   : > { %711 = vadd.xlane.f32.xlu1 %v710_v55  ;;  %v855_v55 = vsel %vm445_vm0, %v851_v48, 0.0  ;;  %v864_v61 = vsel %vm445_vm0, %v854_v53, 0.0  ;;  %v898_v22 = vsel %vm445_vm0, %v890_v13, 0.0 }
  0xfc   : > { %708 = vadd.xlane.f32.xlu0 %v707_v58  ;;  %v885_v58 = vrot.slane %v882_v50, 5 }
  0xfe   : > { %v886_v1 = vsel %vm3760_vm3, %v2920_v57, %v885_v58 }
  0xff   : > { %717 = vadd.xlane.f32.xlu1 %v716_v62  ;;  %v889_v62 = vmul.f32 %v3814_v35, %v3699_v15  ;;  %v891_v12 = vmul.f32 %v886_v1, %v3695_v10  ;;  %v929_v35 = vsel %vm445_vm0, %v925_v24, 0.0 }
 0x100   : > { %714 = vadd.xlane.f32.xlu0 %v713_v0  ;;  %v861_v0 = vsel %vm445_vm0, %v853_v56, 0.0 }
 0x101   : > { %v895_v9 = vsel %vm445_vm0, %v889_v62, 0.0  ;;  %v901_v21 = vsel %vm445_vm0, %v891_v12, 0.0 }
 0x103   : > { %748 = vadd.xlane.f32.xlu1 %v747_v7  ;;  %v958_v7 = vld [vmem:[%s3674_s8 + $0x18] sm:$0x6] }
 0x104   : > { %745 = vadd.xlane.f32.xlu0 %v744_v11  ;;  %v892_v11 = vsel %vm445_vm0, %v888_v63, 0.0 }
 0x107   : > { %754 = vadd.xlane.f32.xlu1 %v753_v16  ;;  %v922_v16 = vrot.slane %v919_v2, 5 }
 0x108   : > { %751 = vadd.xlane.f32.xlu0 %v750_v18  ;;  %v968_v18 = vunpack.c.l.bf16 %v958_v7 }
 0x109   : > { %v923_v25 = vsel %vm3760_vm3, %v2922_v14, %v922_v16 }
 0x10a   : > { %v982_v28 = vcombine.high %v968_v18, %v968_v18  ;;  %v928_v37 = vmul.f32 %v923_v25, %v3695_v10  ;;  %v2927_v40 = vrot.slane %v968_v18, 10 }
 0x10b   : > { %785 = vadd.xlane.f32.xlu1 %v784_v23  ;;  %v926_v23 = vmul.f32 %v849_v49, %v3699_v15 }
 0x10c   : > { %782 = vadd.xlane.f32.xlu0 %v781_v26  ;;  %v2925_v26 = vrot.slane %v966_v4, 10  ;;  %v1000_v41 = vrot.slane %v982_v28, 6  ;;  %v938_v46 = vsel %vm445_vm0, %v928_v37, 0.0  ;;  %v961_v4 = vld [vmem:[%s3674_s8 + $0x30] sm:$0x6] }
 0x10d   : > { %v932_v36 = vsel %vm445_vm0, %v926_v23, 0.0  ;;  %v971_v8 = vunpack.c.l.bf16 %v961_v4  ;;  %v963_v37 = vld [vmem:[%s3674_s8 + $0x40] sm:$0x6] }
 0x10e   : > { %v1001_v50 = vsel %vm3856_vm6, %v2927_v40, %v1000_v41 }
 0x10f   : > { %791 = vadd.xlane.f32.xlu1 %v790_v30  ;;  %v2924_v30 = vrot.slane %v965_v6, 10  ;;  %v1081_v16 = vmul.f32 %v1001_v50, %v3699_v15  ;;  %v1111_v20 = vcombine.high %v971_v8, %v971_v8 }
 0x110   : > { %788 = vadd.xlane.f32.xlu0 %v787_v34  ;;  %v959_v34 = vld [vmem:[%s3674_s8 + $0x20] sm:$0x6] }
 0x111   : > { %v969_v42 = vunpack.c.l.bf16 %v959_v34  ;;  %v989_v43 = vsel %vm3856_vm6, %v2924_v30, %v988_v32 }
 0x112   : > { %v1006_v49 = vmul.f32 %v989_v43, %v3691_v5 }
 0x113   : > { %822 = vadd.xlane.f32.xlu1 %v821_v38  ;;  %v927_v38 = vmul.f32 %v886_v1, %v3689_v3  ;;  %v1037_v51 = vcombine.high %v969_v42, %v969_v42  ;;  %v2929_v59 = vrot.slane %v969_v42, 10 }
 0x114   : > { %819 = vadd.xlane.f32.xlu0 %v818_v39  ;;  %v993_v39 = vsel %vm3856_vm6, %v2925_v26, %v992_v27  ;;  %v1010_v57 = vsel %vm445_vm0, %v1006_v49, 0.0  ;;  %v2933_v26 = vrot.slane %v971_v8, 10  ;;  %v1114_v27 = vrot.slane %v1111_v20, 6 }
 0x115   : > { %v935_v48 = vsel %vm445_vm0, %v927_v38, 0.0  ;;  %v1040_v60 = vrot.slane %v1037_v51, 6  ;;  %v964_v51 = vld [vmem:[%s3674_s8 + $0x48] sm:$0x6] }
 0x117   : > { %828 = vadd.xlane.f32.xlu1 %v827_v45  ;;  %v996_v45 = vrot.slane %v981_v33, 6  ;;  %v1041_v1 = vsel %vm3856_vm6, %v2929_v59, %v1040_v60  ;;  %v1117_v33 = vmul.f32 %v1001_v50, %v3691_v5 }
 0x118   : > { %825 = vadd.xlane.f32.xlu0 %v824_v47  ;;  %v1007_v47 = vmul.f32 %v993_v39, %v3699_v15  ;;  %v1046_v7 = vmul.f32 %v1041_v1, %v3695_v10  ;;  %v1082_v25 = vmul.f32 %v1041_v1, %v3689_v3  ;;  %v1118_v32 = vmul.f32 %v1041_v1, %v3699_v15 }
 0x119   : > { %v997_v53 = vsel %vm3856_vm6, %v2926_v44, %v996_v45  ;;  %v973_v44 = vunpack.c.l.bf16 %v963_v37 }
 0x11a   : > { %v1013_v54 = vsel %vm445_vm0, %v1007_v47, 0.0  ;;  %v1008_v58 = vmul.f32 %v997_v53, %v3689_v3  ;;  %v1044_v62 = vmul.f32 %v997_v53, %v3699_v15  ;;  %v1056_v14 = vsel %vm445_vm0, %v1046_v7, 0.0 }
 0x11b   : > { %859 = vadd.xlane.f32.xlu1 %v858_v52  ;;  %v960_v52 = vld [vmem:[%s3674_s8 + $0x28] sm:$0x6]  ;;  %v1080_v17 = vmul.f32 %v997_v53, %v3691_v5  ;;  %v1090_v34 = vsel %vm445_vm0, %v1082_v25, 0.0  ;;  %v1124_v38 = vsel %vm445_vm0, %v1118_v32, 0.0  ;;  %v2937_v59 = vrot.slane %v973_v44, 10 }
 0x11c   : > { %856 = vadd.xlane.f32.xlu0 %v855_v55  ;;  %v1009_v55 = vmul.f32 %v1001_v50, %v3695_v10  ;;  %v970_v56 = vunpack.c.l.bf16 %v960_v52  ;;  %v1016_v63 = vsel %vm445_vm0, %v1008_v58, 0.0  ;;  %v1050_v6 = vsel %vm445_vm0, %v1044_v62, 0.0 }
 0x11d   : > { %v1084_v23 = vsel %vm445_vm0, %v1080_v17, 0.0 }
 0x11e   : > { %v1074_v2 = vcombine.high %v970_v56, %v970_v56  ;;  %v2931_v12 = vrot.slane %v970_v56, 10 }
 0x11f   : > { %865 = vadd.xlane.f32.xlu1 %v864_v61  ;;  %v1019_v61 = vsel %vm445_vm0, %v1009_v55, 0.0  ;;  %v974_v55 = vunpack.c.l.bf16 %v964_v51 }
 0x120   : > { %862 = vadd.xlane.f32.xlu0 %v861_v0  ;;  %v1043_v0 = vmul.f32 %v993_v39, %v3691_v5  ;;  %v1077_v13 = vrot.slane %v1074_v2, 6  ;;  %v1121_v39 = vsel %vm445_vm0, %v1117_v33, 0.0 }
 0x121   : > { %v1222_v4 = vcombine.high %v974_v55, %v974_v55  ;;  %v2939_v20 = vrot.slane %v974_v55, 10 }
 0x122   : > { %v1078_v19 = vsel %vm3856_vm6, %v2931_v12, %v1077_v13 }
 0x123   : > { %896 = vadd.xlane.f32.xlu1 %v895_v9  ;;  %v1047_v9 = vsel %vm445_vm0, %v1043_v0, 0.0  ;;  %v1083_v24 = vmul.f32 %v1078_v19, %v3695_v10  ;;  %v1119_v41 = vmul.f32 %v1078_v19, %v3689_v3  ;;  %v1191_v62 = vmul.f32 %v1078_v19, %v3691_v5  ;;  %v1258_v0 = vld [vmem:[%s3674_s8] sm:$0xe] }
 0x124   : > { %893 = vadd.xlane.f32.xlu0 %v892_v11  ;;  %v1045_v11 = vmul.f32 %v1001_v50, %v3689_v3  ;;  %v1185_v50 = vcombine.high %v973_v44, %v973_v44  ;;  %v3939_v13 = vunpack.c.l.bf16 %v1258_v0 }
 0x125   : > { %v1093_v30 = vsel %vm445_vm0, %v1083_v24, 0.0  ;;  %v1127_v47 = vsel %vm445_vm0, %v1119_v41, 0.0  ;;  %v1195_v12 = vsel %vm445_vm0, %v1191_v62, 0.0  ;;  %v1225_v24 = vrot.slane %v1222_v4, 6 }
 0x126   : > { %v1053_v18 = vsel %vm445_vm0, %v1045_v11, 0.0  ;;  %v1188_v60 = vrot.slane %v1185_v50, 6  ;;  %v2901_v11 = vld [vmem:[#allocation8 + $0x7] ss:$0 sm:$0xff] }
 0x127   : > { %902 = vadd.xlane.f32.xlu1 %v901_v21  ;;  %v962_v21 = vld [vmem:[%s3674_s8 + $0x38] sm:$0x6] }
 0x128   : > { %899 = vadd.xlane.f32.xlu0 %v898_v22  ;;  %v1087_v22 = vsel %vm445_vm0, %v1081_v16, 0.0  ;;  %v972_v28 = vunpack.c.l.bf16 %v962_v21  ;;  %v2900_v16 = vld [vmem:[#allocation8] ss:$0 sm:$0xff]  ;;  %v1260_v21 = vld [vmem:[%s3674_s8 + $0x10] sm:$0xe] }
 0x12a   : > { %v2935_v42 = vrot.slane %v972_v28, 10 }
 0x12b   : > { %933 = vadd.xlane.f32.xlu1 %v932_v36  ;;  %v1115_v36 = vsel %vm3856_vm6, %v2933_v26, %v1114_v27 }
 0x12c   : > { %930 = vadd.xlane.f32.xlu0 %v929_v35  ;;  %v1148_v35 = vcombine.high %v972_v28, %v972_v28  ;;  %v1120_v40 = vmul.f32 %v1115_v36, %v3695_v10  ;;  %v1156_v58 = vmul.f32 %v1115_v36, %v3689_v3 }
 0x12e   : > { %v1151_v43 = vrot.slane %v1148_v35, 6  ;;  %v1130_v45 = vsel %vm445_vm0, %v1120_v40, 0.0  ;;  %v1164_v8 = vsel %vm445_vm0, %v1156_v58, 0.0 }
 0x12f   : > { %939 = vadd.xlane.f32.xlu1 %v938_v46  ;;  %v1155_v46 = vmul.f32 %v1078_v19, %v3699_v15  ;;  %v1228_v19 = vmul.f32 %v1115_v36, %v3691_v5 }
 0x130   : > { %936 = vadd.xlane.f32.xlu0 %v935_v48  ;;  %v1154_v48 = vmul.f32 %v1041_v1, %v3691_v5  ;;  %v1152_v49 = vsel %vm3856_vm6, %v2935_v42, %v1151_v43  ;;  %v1226_v43 = vsel %vm3856_vm6, %v2939_v20, %v1225_v24 }
 0x131   : > { %v1161_v53 = vsel %vm445_vm0, %v1155_v46, 0.0 }
 0x133   : > { %1014 = vadd.xlane.f32.xlu1 %v1013_v54  ;;  %v1157_v54 = vmul.f32 %v1152_v49, %v3695_v10 }
 0x134   : > { %1011 = vadd.xlane.f32.xlu0 %v1010_v57  ;;  %v1158_v57 = vsel %vm445_vm0, %v1154_v48, 0.0 }
 0x135   : > { %v1167_v2 = vsel %vm445_vm0, %v1157_v54, 0.0  ;;  %v2902_v54 = vld [vmem:[#allocation8 + $0xe] ss:$0 sm:$0xff] }
 0x137   : > { %1020 = vadd.xlane.f32.xlu1 %v1019_v61  ;;  %v1259_v61 = vld [vmem:[%s3674_s8 + $0x8] sm:$0xe] }
 0x138   : > { %1017 = vadd.xlane.f32.xlu0 %v1016_v63  ;;  %v1192_v63 = vmul.f32 %v1115_v36, %v3699_v15  ;;  %v1270_v36 = vunpack.c.l.bf16 %v1260_v21 }
 0x13a   : > { %v1198_v17 = vsel %vm445_vm0, %v1192_v63, 0.0  ;;  %v1231_v63 = vmul.f32 %v1226_v43, %v3695_v10 }
 0x13b   : > { %1051 = vadd.xlane.f32.xlu1 %v1050_v6  ;;  %v3933_v6 = vunpack.c.l.bf16 %v1259_v61 }
 0x13c   : > { %1048 = vadd.xlane.f32.xlu0 %v1047_v9  ;;  %v1189_v9 = vsel %vm3856_vm6, %v2937_v59, %v1188_v60  ;;  %v1232_v60 = vsel %vm445_vm0, %v1228_v19, 0.0 }
 0x13d   : > { %v1283_v25 = vcombine.high %v3933_v6, %v3933_v6  ;;  %v1230_v0 = vmul.f32 %v1189_v9, %v3689_v3 }
 0x13f   : > { %1057 = vadd.xlane.f32.xlu1 %v1056_v14  ;;  %v1261_v14 = vld [vmem:[%s3674_s8 + $0x18] sm:$0xe]  ;;  %v1295_v44 = vrot.slane %v1283_v25, 7  ;;  %v1238_v19 = vsel %vm445_vm0, %v1230_v0, 0.0  ;;  %v1263_v25 = vld [vmem:[%s3674_s8 + $0x28] sm:$0xe] }
 0x140   : > { %1054 = vadd.xlane.f32.xlu0 %v1053_v18  ;;  %v1193_v18 = vmul.f32 %v1152_v49, %v3689_v3 }
 0x142   : > { %v1201_v37 = vsel %vm445_vm0, %v1193_v18, 0.0  ;;  %v1241_v18 = vsel %vm445_vm0, %v1231_v63, 0.0 }
 0x143   : > { %1088 = vadd.xlane.f32.xlu1 %v1087_v22 }
 0x144   : > { %1085 = vadd.xlane.f32.xlu0 %v1084_v23  ;;  %v1194_v23 = vmul.f32 %v1189_v9, %v3695_v10 }
 0x146   : > { %v1204_v42 = vsel %vm445_vm0, %v1194_v23, 0.0 }
 0x147   : > { %1094 = vadd.xlane.f32.xlu1 %v1093_v30  ;;  %v1271_v30 = vunpack.c.l.bf16 %v1261_v14 }
 0x148   : > { %1091 = vadd.xlane.f32.xlu0 %v1090_v34  ;;  %v1282_v34 = vcombine.high %v3939_v13, %v3939_v13 }
 0x149   : > { %v1285_v50 = vcombine.high %v1271_v30, %v1271_v30  ;;  %v2944_v4 = vrot.slane %v1271_v30, 11 }
 0x14a   : > { %v1291_v55 = vrot.slane %v1282_v34, 7 }
 0x14b   : > { %1125 = vadd.xlane.f32.xlu1 %v1124_v38  ;;  %v1229_v38 = vmul.f32 %v1152_v49, %v3699_v15  ;;  %v2941_v49 = vrot.slane %v3939_v13, 11 }
 0x14c   : > { %1122 = vadd.xlane.f32.xlu0 %v1121_v39  ;;  %v2942_v39 = vrot.slane %v3933_v6, 11  ;;  %v1303_v6 = vrot.slane %v1285_v50, 7 }
 0x14d   : > { %v1235_v59 = vsel %vm445_vm0, %v1229_v38, 0.0 }
 0x14e   : > { %v3980_v23 = vsel %vm3959_vm9, %v2944_v4, %v1303_v6 }
 0x14f   : > { %1131 = vadd.xlane.f32.xlu1 %v1130_v45 }
 0x150   : > { %1128 = vadd.xlane.f32.xlu0 %v1127_v47  ;;  %v3922_v52 = vpop.xlane.xlu1 %453 }
 0x151   : > { %v448_v56 = vpop.xlane.xlu0 %447  ;;  %v466_v51 = vmul.f32 %v2900_v16, %v3922_v52  ;;  %v1296_v52 = vsel %vm3959_vm9, %v2942_v39, %v1295_v44 }
 0x152   : > { %v464_v32 = vmul.f32 %v2900_v16, %v448_v56  ;;  %v1284_v56 = vcombine.high %v1270_v36, %v1270_v36 }
 0x153   : > { %1162 = vadd.xlane.f32.xlu1 %v1161_v53 }
 0x154   : > { %1159 = vadd.xlane.f32.xlu0 %v1158_v57  ;;  %v457_v1 = vpop.xlane.xlu1 %456  ;;  %v1262_v57 = vld [vmem:[%s3674_s8 + $0x20] sm:$0xe]  ;;  %v1299_v13 = vrot.slane %v1284_v56, 7 }
 0x155   : > { %v451_v7 = vpop.xlane.xlu0 %450  ;;  %v467_v45 = vmul.f32 %v2900_v16, %v457_v1 }
 0x156   : > { %v465_v26 = vmul.f32 %v2900_v16, %v451_v7  ;;  %v1272_v7 = vunpack.c.l.bf16 %v1262_v57  ;;  %v1310_v16 = vmul.f32 %v1296_v52, %v3699_v15 }
 0x157   : > { %1168 = vadd.xlane.f32.xlu1 %v1167_v2 }
 0x158   : > { %1165 = vadd.xlane.f32.xlu0 %v1164_v8  ;;  %v481_v22 = vpop.xlane.xlu1 %480  ;;  %v1340_v24 = vcombine.high %v1272_v7, %v1272_v7 }
 0x159   : > { %v495_v27 = vmul.f32 %v2901_v11, %v481_v22  ;;  %v478_v28 = vpop.xlane.xlu0 %477 }
 0x15a   : > { %v494_v33 = vmul.f32 %v2901_v11, %v478_v28 }
 0x15b   : > { %v499_v35 = vadd.f32 %v495_v27, %v465_v26  ;;  %1199 = vadd.xlane.f32.xlu1 %v1198_v17  ;;  %v2903_v27 = vld [vmem:[#allocation8 + $0x15] ss:$0 sm:$0xff] }
 0x15c   : > { %v498_v40 = vadd.f32 %v494_v33, %v464_v32  ;;  %1196 = vadd.xlane.f32.xlu0 %v1195_v12  ;;  %v487_v41 = vpop.xlane.xlu1 %486  ;;  %v2943_v12 = vrot.slane %v1270_v36, 11  ;;  %v1316_v32 = vsel %vm445_vm0, %v1310_v16, 0.0  ;;  %v1312_v36 = vmul.f32 %v3980_v23, %v3695_v10 }
 0x15d   : > { %v497_v46 = vmul.f32 %v2901_v11, %v487_v41  ;;  %v484_v47 = vpop.xlane.xlu0 %483 }
 0x15e   : > { %v496_v53 = vmul.f32 %v2901_v11, %v484_v47  ;;  %v1292_v11 = vsel %vm3959_vm9, %v2941_v49, %v1291_v55  ;;  %v1300_v28 = vsel %vm3959_vm9, %v2943_v12, %v1299_v13  ;;  %v1322_v49 = vsel %vm445_vm0, %v1312_v36, 0.0 }
 0x15f   : > { %v501_v58 = vadd.f32 %v497_v46, %v467_v45  ;;  %1205 = vadd.xlane.f32.xlu1 %v1204_v42  ;;  %v1309_v22 = vmul.f32 %v1292_v11, %v3691_v5  ;;  %v1311_v41 = vmul.f32 %v1300_v28, %v3689_v3  ;;  %v1343_v42 = vrot.slane %v1340_v24, 7 }
 0x160   : > { %v500_v61 = vadd.f32 %v496_v53, %v466_v51  ;;  %1202 = vadd.xlane.f32.xlu0 %v1201_v37  ;;  %v511_v62 = vpop.xlane.xlu1 %510  ;;  %v1273_v37 = vunpack.c.l.bf16 %v1263_v25  ;;  %v1346_v45 = vmul.f32 %v1296_v52, %v3691_v5  ;;  %v1347_v50 = vmul.f32 %v1300_v28, %v3699_v15  ;;  %v2905_v25 = vld [vmem:[#allocation8 + $0x23] ss:$0 sm:$0xff] }
 0x161   : > { %v525_v1 = vmul.f32 %v2902_v54, %v511_v62  ;;  %v508_v2 = vpop.xlane.xlu0 %507  ;;  %v1384_v13 = vmul.f32 %v3980_v23, %v3699_v15 }
 0x162   : > { %v524_v8 = vmul.f32 %v2902_v54, %v508_v2  ;;  %v1377_v56 = vcombine.high %v1273_v37, %v1273_v37  ;;  %v1353_v0 = vsel %vm445_vm0, %v1347_v50, 0.0  ;;  %v2948_v6 = vrot.slane %v1273_v37, 11 }
 0x163   : > { %v529_v14 = vadd.f32 %v525_v1, %v499_v35  ;;  %1236 = vadd.xlane.f32.xlu1 %v1235_v59  ;;  %v2946_v35 = vrot.slane %v1272_v7, 11  ;;  %v1264_v59 = vld [vmem:[%s3674_s8 + $0x30] sm:$0xe]  ;;  %v1348_v1 = vmul.f32 %v3980_v23, %v3689_v3 }
 0x164   : > { %v528_v9 = vadd.f32 %v524_v8, %v498_v40  ;;  %1233 = vadd.xlane.f32.xlu0 %v1232_v60  ;;  %v517_v17 = vpop.xlane.xlu1 %516  ;;  %v1313_v40 = vsel %vm445_vm0, %v1309_v22, 0.0  ;;  %v1380_v7 = vrot.slane %v1377_v56, 7  ;;  %v1274_v8 = vunpack.c.l.bf16 %v1264_v59 }
 0x165   : > { %v527_v20 = vmul.f32 %v2902_v54, %v517_v17  ;;  %v514_v21 = vpop.xlane.xlu0 %513  ;;  %v3996_v55 = vsel %vm3959_vm9, %v2946_v35, %v1343_v42  ;;  %v1383_v17 = vmul.f32 %v1300_v28, %v3691_v5 }
 0x166   : > { %v526_v26 = vmul.f32 %v2902_v54, %v514_v21  ;;  %v1319_v54 = vsel %vm445_vm0, %v1311_v41, 0.0  ;;  %v1349_v52 = vmul.f32 %v3996_v55, %v3695_v10  ;;  %v4012_v21 = vsel %vm3959_vm9, %v2948_v6, %v1380_v7 }
 0x167   : > { %v531_v30 = vadd.f32 %v527_v20, %v501_v58  ;;  %1242 = vadd.xlane.f32.xlu1 %v1241_v18  ;;  %v2904_v58 = vld [vmem:[#allocation8 + $0x1c] ss:$0 sm:$0xff]  ;;  %v1356_v20 = vsel %vm445_vm0, %v1348_v1, 0.0  ;;  %v1414_v22 = vcombine.high %v1274_v8, %v1274_v8  ;;  %v1387_v28 = vsel %vm445_vm0, %v1383_v17, 0.0 }
 0x168   : > { %v530_v33 = vadd.f32 %v526_v26, %v500_v61  ;;  %1239 = vadd.xlane.f32.xlu0 %v1238_v19  ;;  %v541_v34 = vpop.xlane.xlu1 %540  ;;  %v1350_v61 = vsel %vm445_vm0, %v1346_v45, 0.0  ;;  %v1265_v26 = vld [vmem:[%s3674_s8 + $0x38] sm:$0xe]  ;;  %v1385_v36 = vmul.f32 %v3996_v55, %v3689_v3 }
 0x169   : > { %v555_v38 = vmul.f32 %v2903_v27, %v541_v34  ;;  %v538_v39 = vpop.xlane.xlu0 %537  ;;  %v1386_v34 = vmul.f32 %v4012_v21, %v3695_v10 }
 0x16a   : > { %v554_v43 = vmul.f32 %v2903_v27, %v538_v39  ;;  %v1417_v39 = vrot.slane %v1414_v22, 7  ;;  %v1267_v22 = vld [vmem:[%s3674_s8 + $0x48] sm:$0xe] }
 0x16b   : > { %v559_v44 = vadd.f32 %v555_v38, %v529_v14  ;;  %1317 = vadd.xlane.f32.xlu1 %v1316_v32  ;;  %v2950_v38 = vrot.slane %v1274_v8, 11 }
 0x16c   : > { %v558_v46 = vadd.f32 %v554_v43, %v528_v9  ;;  %1314 = vadd.xlane.f32.xlu0 %v1313_v40  ;;  %v547_v47 = vpop.xlane.xlu1 %546  ;;  %v1359_v9 = vsel %vm445_vm0, %v1349_v52, 0.0  ;;  %v1275_v40 = vunpack.c.l.bf16 %v1265_v26  ;;  %v1421_v43 = vmul.f32 %v3996_v55, %v3699_v15 }
 0x16d   : > { %v557_v51 = vmul.f32 %v2903_v27, %v547_v47  ;;  %v544_v53 = vpop.xlane.xlu0 %543  ;;  %v1420_v47 = vmul.f32 %v3980_v23, %v3691_v5 }
 0x16e   : > { %v556_v57 = vmul.f32 %v2903_v27, %v544_v53  ;;  %v4029_v53 = vsel %vm3959_vm9, %v2950_v38, %v1417_v39 }
 0x16f   : > { %v561_v60 = vadd.f32 %v557_v51, %v531_v30  ;;  %1323 = vadd.xlane.f32.xlu1 %v1322_v49  ;;  %v1390_v30 = vsel %vm445_vm0, %v1384_v13, 0.0  ;;  %v1393_v51 = vsel %vm445_vm0, %v1385_v36, 0.0  ;;  %v1424_v23 = vsel %vm445_vm0, %v1420_v47, 0.0 }
 0x170   : > { %v560_v62 = vadd.f32 %v556_v57, %v530_v33  ;;  %1320 = vadd.xlane.f32.xlu0 %v1319_v54  ;;  %v571_v63 = vpop.xlane.xlu1 %570  ;;  %v1451_v54 = vcombine.high %v1275_v40, %v1275_v40  ;;  %v2906_v57 = vld [vmem:[#allocation8 + $0x2a] ss:$0 sm:$0xff] }
 0x171   : > { %v585_v2 = vmul.f32 %v2904_v58, %v571_v63  ;;  %v568_v4 = vpop.xlane.xlu0 %567  ;;  %v1423_v63 = vmul.f32 %v4029_v53, %v3695_v10 }
 0x172   : > { %v584_v11 = vmul.f32 %v2904_v58, %v568_v4  ;;  %v1454_v4 = vrot.slane %v1451_v54, 7 }
 0x173   : > { %v589_v12 = vadd.f32 %v585_v2, %v559_v44  ;;  %1354 = vadd.xlane.f32.xlu1 %v1353_v0  ;;  %v1422_v0 = vmul.f32 %v4012_v21, %v3689_v3  ;;  %v2952_v2 = vrot.slane %v1275_v40, 11 }
 0x174   : > { %v588_v14 = vadd.f32 %v584_v11, %v558_v46  ;;  %1351 = vadd.xlane.f32.xlu0 %v1350_v61  ;;  %v577_v16 = vpop.xlane.xlu1 %576  ;;  %v1396_v46 = vsel %vm445_vm0, %v1386_v34, 0.0  ;;  %v1458_v11 = vmul.f32 %v4012_v21, %v3699_v15 }
 0x175   : > { %v587_v18 = vmul.f32 %v2904_v58, %v577_v16  ;;  %v574_v19 = vpop.xlane.xlu0 %573  ;;  %v1457_v16 = vmul.f32 %v3996_v55, %v3691_v5 }
 0x176   : > { %v586_v24 = vmul.f32 %v2904_v58, %v574_v19  ;;  %v1266_v58 = vld [vmem:[%s3674_s8 + $0x40] sm:$0xe]  ;;  %v1455_v19 = vsel %vm3959_vm9, %v2952_v2, %v1454_v4 }
 0x177   : > { %v591_v27 = vadd.f32 %v587_v18, %v561_v60  ;;  %1360 = vadd.xlane.f32.xlu1 %v1359_v9  ;;  %v1427_v60 = vsel %vm445_vm0, %v1421_v43, 0.0  ;;  %v1276_v6 = vunpack.c.l.bf16 %v1266_v58  ;;  %v1430_v18 = vsel %vm445_vm0, %v1422_v0, 0.0  ;;  %v1561_v4 = vld [vmem:[%s3674_s8] sm:$0xc] }
 0x178   : > { %v590_v32 = vadd.f32 %v586_v24, %v560_v62  ;;  %1357 = vadd.xlane.f32.xlu0 %v1356_v20  ;;  %v601_v33 = vpop.xlane.xlu1 %600  ;;  %v1461_v55 = vsel %vm445_vm0, %v1457_v16, 0.0 }
 0x179   : > { %v615_v35 = vmul.f32 %v2905_v25, %v601_v33  ;;  %v598_v37 = vpop.xlane.xlu0 %597  ;;  %v1488_v20 = vcombine.high %v1276_v6, %v1276_v6  ;;  %v1460_v33 = vmul.f32 %v1455_v19, %v3695_v10 }
 0x17a   : > { %v614_v41 = vmul.f32 %v2905_v25, %v598_v37  ;;  %v2954_v37 = vrot.slane %v1276_v6, 11 }
 0x17b   : > { %v619_v42 = vadd.f32 %v615_v35, %v589_v12  ;;  %1391 = vadd.xlane.f32.xlu1 %v1390_v30  ;;  %v1459_v35 = vmul.f32 %v4029_v53, %v3689_v3  ;;  %v1491_v38 = vrot.slane %v1488_v20, 7  ;;  %v1470_v43 = vsel %vm445_vm0, %v1460_v33, 0.0 }
 0x17c   : > { %v618_v44 = vadd.f32 %v614_v41, %v588_v14  ;;  %1388 = vadd.xlane.f32.xlu0 %v1387_v28  ;;  %v607_v45 = vpop.xlane.xlu1 %606  ;;  %v1433_v14 = vsel %vm445_vm0, %v1423_v63, 0.0  ;;  %v1277_v28 = vunpack.c.l.bf16 %v1267_v22  ;;  %v1496_v63 = vmul.f32 %v1455_v19, %v3689_v3  ;;  %v1564_v22 = vld [vmem:[%s3674_s8 + $0x18] sm:$0xc] }
 0x17d   : > { %v617_v49 = vmul.f32 %v2905_v25, %v607_v45  ;;  %v604_v50 = vpop.xlane.xlu0 %603  ;;  %v1494_v45 = vmul.f32 %v4012_v21, %v3691_v5  ;;  %v1571_v20 = vunpack.c.l.bf16 %v1561_v4  ;;  %v1574_v48 = vunpack.c.l.bf16 %v1564_v22 }
 0x17e   : > { %v616_v56 = vmul.f32 %v2905_v25, %v604_v50  ;;  %v2911_v25 = vld [vmem:[#allocation8 + $0x1] ss:$0 sm:$0xff]  ;;  %v1492_v50 = vsel %vm3959_vm9, %v2954_v37, %v1491_v38  ;;  %v2956_v0 = vrot.slane %v1277_v28, 11 }
 0x17f   : > { %v621_v59 = vadd.f32 %v617_v49, %v591_v27  ;;  %1397 = vadd.xlane.f32.xlu1 %v1396_v46  ;;  %v1464_v27 = vsel %vm445_vm0, %v1458_v11, 0.0  ;;  %v1467_v49 = vsel %vm445_vm0, %v1459_v35, 0.0  ;;  %v1498_v21 = vsel %vm445_vm0, %v1494_v45, 0.0 }
 0x180   : > { %v620_v61 = vadd.f32 %v616_v56, %v590_v32  ;;  %1394 = vadd.xlane.f32.xlu0 %v1393_v51  ;;  %v631_v62 = vpop.xlane.xlu1 %630  ;;  %v1525_v51 = vcombine.high %v1277_v28, %v1277_v28  ;;  %v2913_v56 = vld [vmem:[#allocation8 + $0x8] ss:$0 sm:$0xff]  ;;  %v4081_v35 = vcombine.high %v1571_v20, %v1571_v20 }
 0x181   : > { %v645_v52 = vmul.f32 %v2906_v57, %v631_v62  ;;  %v628_v1 = vpop.xlane.xlu0 %627 }
 0x182   : > { %v644_v7 = vmul.f32 %v2906_v57, %v628_v1  ;;  %v1562_v1 = vld [vmem:[%s3674_s8 + $0x8] sm:$0xc] }
 0x183   : > { %v649_v8 = vadd.f32 %v645_v52, %v619_v42  ;;  %1428 = vadd.xlane.f32.xlu1 %v1427_v60  ;;  %v1528_v52 = vrot.slane %v1525_v51, 7  ;;  %v1565_v51 = vld [vmem:[%s3674_s8 + $0x20] sm:$0xc] }
 0x184   : > { %v648_v12 = vadd.f32 %v644_v7, %v618_v44  ;;  %1425 = vadd.xlane.f32.xlu0 %v1424_v23  ;;  %v637_v13 = vpop.xlane.xlu1 %636  ;;  %v1495_v44 = vmul.f32 %v4029_v53, %v3699_v15  ;;  %v1532_v7 = vmul.f32 %v1455_v19, %v3699_v15  ;;  %v2915_v19 = vld [vmem:[#allocation8 + $0xf] ss:$0 sm:$0xff] }
 0x185   : > { %v647_v9 = vmul.f32 %v2906_v57, %v637_v13  ;;  %v634_v17 = vpop.xlane.xlu0 %633 }
 0x186   : > { %v646_v24 = vmul.f32 %v2906_v57, %v634_v17  ;;  %v1501_v60 = vsel %vm445_vm0, %v1495_v44, 0.0  ;;  %v1504_v17 = vsel %vm445_vm0, %v1496_v63, 0.0  ;;  %v4086_v44 = vcombine.high %v1574_v48, %v1574_v48 }
 0x187   : > { %v651_v26 = vadd.f32 %v647_v9, %v621_v59  ;;  %1434 = vadd.xlane.f32.xlu1 %v1433_v14  ;;  %v1572_v14 = vunpack.c.l.bf16 %v1562_v1 }
 0x188   : > { %v650_v30 = vadd.f32 %v646_v24, %v620_v61  ;;  %1431 = vadd.xlane.f32.xlu0 %v1430_v18  ;;  %v712_v32 = vpop.xlane.xlu1 %711  ;;  %v1497_v61 = vmul.f32 %v1492_v50, %v3695_v10  ;;  %v1529_v18 = vsel %vm3959_vm9, %v2956_v0, %v1528_v52 }
 0x189   : > { %v726_v34 = vmul.f32 %v2911_v25, %v712_v32  ;;  %v709_v36 = vpop.xlane.xlu0 %708  ;;  %v4078_v33 = vcombine.high %v1572_v14, %v1572_v14 }
 0x18a   : > { %v725_v39 = vmul.f32 %v2911_v25, %v709_v36  ;;  %v1507_v13 = vsel %vm445_vm0, %v1497_v61, 0.0  ;;  %v1533_v36 = vmul.f32 %v1492_v50, %v3689_v3  ;;  %v1575_v61 = vunpack.c.l.bf16 %v1565_v51 }
 0x18b   : > { %v730_v40 = vadd.f32 %v726_v34, %v649_v8  ;;  %1465 = vadd.xlane.f32.xlu1 %v1464_v27  ;;  %v1531_v8 = vmul.f32 %v4029_v53, %v3691_v5  ;;  %v1538_v53 = vsel %vm445_vm0, %v1532_v7, 0.0  ;;  %v1626_v14 = vmul.f32 %v4078_v33, %v3691_v5 }
 0x18c   : > { %v729_v41 = vadd.f32 %v725_v39, %v648_v12  ;;  %1462 = vadd.xlane.f32.xlu0 %v1461_v55  ;;  %v718_v42 = vpop.xlane.xlu1 %717  ;;  %v1534_v55 = vmul.f32 %v1529_v18, %v3695_v10 }
 0x18d   : > { %v728_v46 = vmul.f32 %v2911_v25, %v718_v42  ;;  %v715_v47 = vpop.xlane.xlu0 %714  ;;  %v1535_v27 = vsel %vm445_vm0, %v1531_v8, 0.0  ;;  %v4103_v8 = vcombine.high %v1575_v61, %v1575_v61 }
 0x18e   : > { %v727_v54 = vmul.f32 %v2911_v25, %v715_v47  ;;  %v1563_v25 = vld [vmem:[%s3674_s8 + $0x10] sm:$0xc]  ;;  %v1544_v42 = vsel %vm445_vm0, %v1534_v55, 0.0  ;;  %v1541_v47 = vsel %vm445_vm0, %v1533_v36, 0.0  ;;  %v1660_v36 = vmul.f32 %v4086_v44, %v3699_v15 }
 0x18f   : > { %v732_v57 = vadd.f32 %v728_v46, %v651_v26  ;;  %1471 = vadd.xlane.f32.xlu1 %v1470_v43  ;;  %v1573_v37 = vunpack.c.l.bf16 %v1563_v25  ;;  %v1594_v43 = vmul.f32 %v4078_v33, %v3699_v15 }
 0x190   : > { %v731_v58 = vadd.f32 %v727_v54, %v650_v30  ;;  %1468 = vadd.xlane.f32.xlu0 %v1467_v49  ;;  %v749_v59 = vpop.xlane.xlu1 %748  ;;  %v1593_v49 = vmul.f32 %v4081_v35, %v3691_v5  ;;  %v1666_v51 = vsel %vm445_vm0, %v1660_v36, 0.0 }
 0x191   : > { %v763_v62 = vmul.f32 %v2913_v56, %v749_v59  ;;  %v746_v23 = vpop.xlane.xlu0 %745  ;;  %v4091_v50 = vcombine.high %v1573_v37, %v1573_v37 }
 0x192   : > { %v762_v2 = vmul.f32 %v2913_v56, %v746_v23  ;;  %v1597_v63 = vsel %vm445_vm0, %v1593_v49, 0.0 }
 0x193   : > { %v767_v6 = vadd.f32 %v763_v62, %v730_v40  ;;  %1502 = vadd.xlane.f32.xlu1 %v1501_v60  ;;  %v1600_v60 = vsel %vm445_vm0, %v1594_v43, 0.0  ;;  %v1595_v0 = vmul.f32 %v4091_v50, %v3689_v3  ;;  %v1627_v7 = vmul.f32 %v4091_v50, %v3699_v15 }
 0x194   : > { %v766_v11 = vadd.f32 %v762_v2, %v729_v41  ;;  %1499 = vadd.xlane.f32.xlu0 %v1498_v21  ;;  %v755_v12 = vpop.xlane.xlu1 %754  ;;  %v1596_v21 = vmul.f32 %v4086_v44, %v3695_v10 }
 0x195   : > { %v765_v16 = vmul.f32 %v2913_v56, %v755_v12  ;;  %v752_v9 = vpop.xlane.xlu0 %751 }
 0x196   : > { %v764_v24 = vmul.f32 %v2913_v56, %v752_v9  ;;  %v2917_v56 = vld [vmem:[#allocation8 + $0x16] ss:$0 sm:$0xff] }
 0x197   : > { %v769_v26 = vadd.f32 %v765_v16, %v732_v57  ;;  %1508 = vadd.xlane.f32.xlu1 %v1507_v13  ;;  %v1603_v13 = vsel %vm445_vm0, %v1595_v0, 0.0  ;;  %v1566_v16 = vld [vmem:[%s3674_s8 + $0x28] sm:$0xc]  ;;  %v1693_v0 = vmul.f32 %v4103_v8, %v3699_v15 }
 0x198   : > { %v768_v30 = vadd.f32 %v764_v24, %v731_v58  ;;  %1505 = vadd.xlane.f32.xlu0 %v1504_v17  ;;  %v786_v32 = vpop.xlane.xlu1 %785  ;;  %v2919_v17 = vld [vmem:[#allocation8 + $0x1d] ss:$0 sm:$0xff]  ;;  %v1633_v24 = vsel %vm445_vm0, %v1627_v7, 0.0  ;;  %v1576_v25 = vunpack.c.l.bf16 %v1566_v16  ;;  %v1568_v7 = vld [vmem:[%s3674_s8 + $0x38] sm:$0xc] }
 0x199   : > { %v800_v28 = vmul.f32 %v2915_v19, %v786_v32  ;;  %v783_v34 = vpop.xlane.xlu0 %782 }
 0x19a   : > { %v799_v38 = vmul.f32 %v2915_v19, %v783_v34  ;;  %v4118_v37 = vcombine.high %v1576_v25, %v1576_v25 }
 0x19b   : > { %v804_v39 = vadd.f32 %v800_v28, %v767_v6  ;;  %1539 = vadd.xlane.f32.xlu1 %v1538_v53  ;;  %v1606_v6 = vsel %vm445_vm0, %v1596_v21, 0.0 }
 0x19c   : > { %v803_v40 = vadd.f32 %v799_v38, %v766_v11  ;;  %1536 = vadd.xlane.f32.xlu0 %v1535_v27  ;;  %v792_v41 = vpop.xlane.xlu1 %791  ;;  %v1630_v27 = vsel %vm445_vm0, %v1626_v14, 0.0 }
 0x19d   : > { %v802_v45 = vmul.f32 %v2915_v19, %v792_v41  ;;  %v789_v46 = vpop.xlane.xlu0 %788  ;;  %v1659_v41 = vmul.f32 %v4091_v50, %v3691_v5 }
 0x19e   : > { %v801_v54 = vmul.f32 %v2915_v19, %v789_v46  ;;  %v1629_v19 = vmul.f32 %v4103_v8, %v3695_v10 }
 0x19f   : > { %v806_v57 = vadd.f32 %v802_v45, %v769_v26  ;;  %1545 = vadd.xlane.f32.xlu1 %v1544_v42  ;;  %v1567_v42 = vld [vmem:[%s3674_s8 + $0x30] sm:$0xc]  ;;  %v2921_v45 = vld [vmem:[#allocation8 + $0x24] ss:$0 sm:$0xff] }
 0x1a0   : > { %v805_v58 = vadd.f32 %v801_v54, %v768_v30  ;;  %1542 = vadd.xlane.f32.xlu0 %v1541_v47  ;;  %v823_v59 = vpop.xlane.xlu1 %822  ;;  %v1628_v30 = vmul.f32 %v4086_v44, %v3689_v3  ;;  %v1639_v34 = vsel %vm445_vm0, %v1629_v19, 0.0  ;;  %v1662_v54 = vmul.f32 %v4118_v37, %v3695_v10 }
 0x1a1   : > { %v837_v62 = vmul.f32 %v2917_v56, %v823_v59  ;;  %v820_v23 = vpop.xlane.xlu0 %819  ;;  %v1663_v59 = vsel %vm445_vm0, %v1659_v41, 0.0  ;;  %v1694_v19 = vmul.f32 %v4118_v37, %v3689_v3 }
 0x1a2   : > { %v836_v52 = vmul.f32 %v2917_v56, %v820_v23 }
 0x1a3   : > { %v841_v1 = vadd.f32 %v837_v62, %v804_v39  ;;  %1601 = vadd.xlane.f32.xlu1 %v1600_v60  ;;  %v1661_v60 = vmul.f32 %v4103_v8, %v3689_v3  ;;  %v1702_v36 = vsel %vm445_vm0, %v1694_v19, 0.0 }
 0x1a4   : > { %v840_v2 = vadd.f32 %v836_v52, %v803_v40  ;;  %1598 = vadd.xlane.f32.xlu0 %v1597_v63  ;;  %v829_v4 = vpop.xlane.xlu1 %828  ;;  %v1636_v40 = vsel %vm445_vm0, %v1628_v30, 0.0  ;;  %v1672_v63 = vsel %vm445_vm0, %v1662_v54, 0.0 }
 0x1a5   : > { %v839_v11 = vmul.f32 %v2917_v56, %v829_v4  ;;  %v826_v12 = vpop.xlane.xlu0 %825  ;;  %v1669_v4 = vsel %vm445_vm0, %v1661_v60, 0.0 }
 0x1a6   : > { %v838_v9 = vmul.f32 %v2917_v56, %v826_v12  ;;  %v1577_v56 = vunpack.c.l.bf16 %v1567_v42  ;;  %v2923_v12 = vld [vmem:[#allocation8 + $0x2b] ss:$0 sm:$0xff] }
 0x1a7   : > { %v843_v18 = vadd.f32 %v839_v11, %v806_v57  ;;  %1607 = vadd.xlane.f32.xlu1 %v1606_v6  ;;  %v1692_v6 = vmul.f32 %v4086_v44, %v3691_v5 }
 0x1a8   : > { %v842_v20 = vadd.f32 %v838_v9, %v805_v58  ;;  %1604 = vadd.xlane.f32.xlu0 %v1603_v13  ;;  %v860_v22 = vpop.xlane.xlu1 %859  ;;  %v4133_v52 = vcombine.high %v1577_v56, %v1577_v56  ;;  %v1699_v9 = vsel %vm445_vm0, %v1693_v0, 0.0 }
 0x1a9   : > { %v874_v26 = vmul.f32 %v2919_v17, %v860_v22  ;;  %v857_v53 = vpop.xlane.xlu0 %856 }
 0x1aa   : > { %v873_v32 = vmul.f32 %v2919_v17, %v857_v53  ;;  %v1727_v56 = vmul.f32 %v4133_v52, %v3689_v3 }
 0x1ab   : > { %v878_v55 = vadd.f32 %v874_v26, %v841_v1  ;;  %1634 = vadd.xlane.f32.xlu1 %v1633_v24  ;;  %v1696_v24 = vsel %vm445_vm0, %v1692_v6, 0.0 }
 0x1ac   : > { %v877_v48 = vadd.f32 %v873_v32, %v840_v2  ;;  %1631 = vadd.xlane.f32.xlu0 %v1630_v27  ;;  %v866_v28 = vpop.xlane.xlu1 %865  ;;  %v1726_v32 = vmul.f32 %v4118_v37, %v3699_v15  ;;  %v1735_v0 = vsel %vm445_vm0, %v1727_v56, 0.0 }
 0x1ad   : > { %v876_v38 = vmul.f32 %v2919_v17, %v866_v28  ;;  %v863_v39 = vpop.xlane.xlu0 %862 }
 0x1ae   : > { %v875_v43 = vmul.f32 %v2919_v17, %v863_v39  ;;  %v1695_v17 = vmul.f32 %v4133_v52, %v3695_v10 }
 0x1af   : > { %v880_v46 = vadd.f32 %v876_v38, %v843_v18  ;;  %1640 = vadd.xlane.f32.xlu1 %v1639_v34  ;;  %v1578_v18 = vunpack.c.l.bf16 %v1568_v7  ;;  %v1725_v38 = vmul.f32 %v4103_v8, %v3691_v5  ;;  %v2930_v7 = vld [vmem:[#allocation8 + $0x9] ss:$0 sm:$0xff] }
 0x1b0   : > { %v879_v47 = vadd.f32 %v875_v43, %v842_v20  ;;  %1637 = vadd.xlane.f32.xlu0 %v1636_v40  ;;  %v897_v49 = vpop.xlane.xlu1 %896  ;;  %v1705_v30 = vsel %vm445_vm0, %v1695_v17, 0.0  ;;  %v2928_v40 = vld [vmem:[#allocation8 + $0x2] ss:$0 sm:$0xff] }
 0x1b1   : > { %v911_v57 = vmul.f32 %v2921_v45, %v897_v49  ;;  %v894_v58 = vpop.xlane.xlu0 %893  ;;  %v1729_v54 = vsel %vm445_vm0, %v1725_v38, 0.0 }
 0x1b2   : > { %v910_v21 = vmul.f32 %v2921_v45, %v894_v58 }
 0x1b3   : > { %v915_v61 = vadd.f32 %v911_v57, %v878_v55  ;;  %1667 = vadd.xlane.f32.xlu1 %v1666_v51  ;;  %v4148_v55 = vcombine.high %v1578_v18, %v1578_v18 }
 0x1b4   : > { %v914_v62 = vadd.f32 %v910_v21, %v877_v48  ;;  %1664 = vadd.xlane.f32.xlu0 %v1663_v59  ;;  %v903_v23 = vpop.xlane.xlu1 %902  ;;  %v1569_v48 = vld [vmem:[%s3674_s8 + $0x40] sm:$0xc] }
 0x1b5   : > { %v913_v1 = vmul.f32 %v2921_v45, %v903_v23  ;;  %v900_v2 = vpop.xlane.xlu0 %899  ;;  %v1579_v42 = vunpack.c.l.bf16 %v1569_v48  ;;  %v1760_v19 = vmul.f32 %v4148_v55, %v3689_v3  ;;  %v1792_v48 = vmul.f32 %v4148_v55, %v3699_v15 }
 0x1b6   : > { %v912_v11 = vmul.f32 %v2921_v45, %v900_v2  ;;  %v1570_v2 = vld [vmem:[%s3674_s8 + $0x48] sm:$0xc] }
 0x1b7   : > { %v917_v13 = vadd.f32 %v913_v1, %v880_v46  ;;  %1673 = vadd.xlane.f32.xlu1 %v1672_v63  ;;  %v1732_v46 = vsel %vm445_vm0, %v1726_v32, 0.0  ;;  %v4160_v59 = vcombine.high %v1579_v42, %v1579_v42  ;;  %v1758_v1 = vmul.f32 %v4118_v37, %v3691_v5 }
 0x1b8   : > { %v916_v14 = vadd.f32 %v912_v11, %v879_v47  ;;  %1670 = vadd.xlane.f32.xlu0 %v1669_v4  ;;  %v934_v16 = vpop.xlane.xlu1 %933  ;;  %v1728_v47 = vmul.f32 %v4148_v55, %v3695_v10  ;;  %v4170_v4 = vld [vmem:[%s3674_s8 + $0xc] sm:$0x1]  ;;  %v4173_v11 = vld [vmem:[%s3674_s8 + $0x4] sm:$0x1]  ;;  %v1580_v17 = vunpack.c.l.bf16 %v1570_v2 }
 0x1b9   : > { %v948_v20 = vmul.f32 %v2923_v12, %v934_v16  ;;  %v931_v22 = vpop.xlane.xlu0 %930  ;;  %v1832_v18 = vunpack.c.l.bf16 %v4170_v4  ;;  %v2949_v4 = vld [vmem:[#allocation8 + $0x11] ss:$0 sm:$0xff] }
 0x1ba   : > { %v947_v25 = vmul.f32 %v2923_v12, %v931_v22 }
 0x1bb   : > { %v952_v26 = vadd.f32 %v948_v20, %v915_v61  ;;  %1700 = vadd.xlane.f32.xlu1 %v1699_v9  ;;  %v1738_v61 = vsel %vm445_vm0, %v1728_v47, 0.0 }
 0x1bc   : > { %v951_v53 = vadd.f32 %v947_v25, %v914_v62  ;;  %1697 = vadd.xlane.f32.xlu0 %v1696_v24  ;;  %v940_v27 = vpop.xlane.xlu1 %939  ;;  %v1759_v62 = vmul.f32 %v4133_v52, %v3699_v15  ;;  %v1762_v24 = vsel %vm445_vm0, %v1758_v1, 0.0  ;;  %v1831_v25 = vunpack.c.l.bf16 %v4173_v11 }
 0x1bd   : > { %v950_v28 = vmul.f32 %v2923_v12, %v940_v27  ;;  %v937_v34 = vpop.xlane.xlu0 %936  ;;  %v4185_v27 = vld [vmem:[%s3674_s8 + $0x1c] sm:$0x1] }
 0x1be   : > { %v949_v39 = vmul.f32 %v2923_v12, %v937_v34  ;;  %v1765_v9 = vsel %vm445_vm0, %v1759_v62, 0.0  ;;  %v4193_v34 = vld [vmem:[%s3674_s8 + $0x14] sm:$0x1] }
 0x1bf   : > { %v954_v41 = vadd.f32 %v950_v28, %v917_v13  ;;  %1706 = vadd.xlane.f32.xlu1 %v1705_v30  ;;  %v1761_v13 = vmul.f32 %v4160_v59, %v3695_v10  ;;  %v1791_v28 = vmul.f32 %v4133_v52, %v3691_v5 }
 0x1c0   : > { %v953_v43 = vadd.f32 %v949_v39, %v916_v14  ;;  %1703 = vadd.xlane.f32.xlu0 %v1702_v36  ;;  %v1015_v45 = vpop.xlane.xlu1 %1014  ;;  %v4195_v39 = vcombine.high %v1580_v17, %v1580_v17 }
 0x1c1   : > { %v1029_v49 = vmul.f32 %v2928_v40, %v1015_v45  ;;  %v1012_v51 = vpop.xlane.xlu0 %1011  ;;  %v1771_v32 = vsel %vm445_vm0, %v1761_v13, 0.0  ;;  %v1847_v45 = vrot.slane %v1831_v25, 5  ;;  %v1795_v56 = vsel %vm445_vm0, %v1791_v28, 0.0 }
 0x1c2   : > { %v1028_v57 = vmul.f32 %v2928_v40, %v1012_v51  ;;  %v1833_v51 = vunpack.c.l.bf16 %v4193_v34 }
 0x1c3   : > { %v1033_v58 = vadd.f32 %v1029_v49, %v952_v26  ;;  %1733 = vadd.xlane.f32.xlu1 %v1732_v46  ;;  %v2965_v26 = vrot.slane %v4081_v35, 9  ;;  %v2966_v35 = vrot.slane %v4078_v33, 9  ;;  %v1834_v46 = vunpack.c.l.bf16 %v4185_v27  ;;  %v2932_v49 = vld [vmem:[#allocation8 + $0x10] ss:$0 sm:$0xff] }
 0x1c4   : > { %v1032_v60 = vadd.f32 %v1028_v57, %v951_v53  ;;  %1730 = vadd.xlane.f32.xlu0 %v1729_v54  ;;  %v1021_v21 = vpop.xlane.xlu1 %1020  ;;  %v1798_v33 = vsel %vm445_vm0, %v1792_v48, 0.0 }
 0x1c5   : > { %v1031_v23 = vmul.f32 %v2928_v40, %v1021_v21  ;;  %v1018_v63 = vpop.xlane.xlu0 %1017  ;;  %v1793_v21 = vmul.f32 %v4160_v59, %v3689_v3  ;;  %v1859_v1 = vrot.slane %v1834_v46, 5 }
 0x1c6   : > { %v1030_v6 = vmul.f32 %v2928_v40, %v1018_v63  ;;  %v1851_v40 = vrot.slane %v1832_v18, 5  ;;  %v1848_v63 = vsel %vm3760_vm3, %v2965_v26, %v1847_v45 }
 0x1c7   : > { %v1035_v12 = vadd.f32 %v1031_v23, %v954_v41  ;;  %1739 = vadd.xlane.f32.xlu1 %v1738_v61  ;;  %v1865_v17 = vmul.f32 %v1848_v63, %v3691_v5 }
 0x1c8   : > { %v1034_v14 = vadd.f32 %v1030_v6, %v953_v43  ;;  %1736 = vadd.xlane.f32.xlu0 %v1735_v0  ;;  %v1052_v16 = vpop.xlane.xlu1 %1051  ;;  %v1768_v43 = vsel %vm445_vm0, %v1760_v19, 0.0  ;;  %v1852_v61 = vsel %vm3760_vm3, %v2966_v35, %v1851_v40  ;;  %v2968_v0 = vrot.slane %v4086_v44, 9 }
 0x1c9   : > { %v1066_v20 = vmul.f32 %v2930_v7, %v1052_v16  ;;  %v1049_v22 = vpop.xlane.xlu0 %1048  ;;  %v2967_v6 = vrot.slane %v4091_v50, 9  ;;  %v1866_v44 = vmul.f32 %v1852_v61, %v3699_v15  ;;  %v1801_v50 = vsel %vm445_vm0, %v1793_v21, 0.0 }
 0x1ca   : > { %v1065_v53 = vmul.f32 %v2930_v7, %v1049_v22 }
 0x1cb   : > { %v1070_v30 = vadd.f32 %v1066_v20, %v1033_v58  ;;  %1766 = vadd.xlane.f32.xlu1 %v1765_v9 }
 0x1cc   : > { %v1069_v36 = vadd.f32 %v1065_v53, %v1032_v60  ;;  %1763 = vadd.xlane.f32.xlu0 %v1762_v24  ;;  %v1058_v38 = vpop.xlane.xlu1 %1057  ;;  %v1794_v60 = vmul.f32 %v4195_v39, %v3695_v10  ;;  %v4230_v24 = vsel %vm3760_vm3, %v2968_v0, %v1859_v1  ;;  %v2934_v53 = vld [vmem:[#allocation8 + $0x17] ss:$0 sm:$0xff]  ;;  %v2936_v1 = vld [vmem:[#allocation8 + $0x1e] ss:$0 sm:$0xff] }
 0x1cd   : > { %v1068_v41 = vmul.f32 %v2930_v7, %v1058_v38  ;;  %v1055_v42 = vpop.xlane.xlu0 %1054  ;;  %v1869_v38 = vsel %vm445_vm0, %v1865_v17, 0.0  ;;  %v1868_v35 = vmul.f32 %v4230_v24, %v3695_v10  ;;  %v2972_v17 = vrot.slane %v4118_v37, 9 }
 0x1ce   : > { %v1067_v47 = vmul.f32 %v2930_v7, %v1055_v42  ;;  %v1855_v7 = vrot.slane %v1833_v51, 5  ;;  %v1804_v9 = vsel %vm445_vm0, %v1794_v60, 0.0  ;;  %v1901_v60 = vmul.f32 %v1852_v61, %v3691_v5 }
 0x1cf   : > { %v1072_v54 = vadd.f32 %v1068_v41, %v1035_v12  ;;  %1772 = vadd.xlane.f32.xlu1 %v1771_v32  ;;  %v4222_v12 = vld [vmem:[%s3674_s8 + $0x24] sm:$0x1] }
 0x1d0   : > { %v1071_v57 = vadd.f32 %v1067_v47, %v1034_v14  ;;  %1769 = vadd.xlane.f32.xlu0 %v1768_v43  ;;  %v1089_v58 = vpop.xlane.xlu1 %1088  ;;  %v1835_v19 = vunpack.c.l.bf16 %v4222_v12  ;;  %v2970_v43 = vrot.slane %v4103_v8, 9 }
 0x1d1   : > { %v1103_v62 = vmul.f32 %v2932_v49, %v1089_v58  ;;  %v1086_v23 = vpop.xlane.xlu0 %1085 }
 0x1d2   : > { %v1102_v2 = vmul.f32 %v2932_v49, %v1086_v23  ;;  %v1898_v45 = vrot.slane %v1835_v19, 5 }
 0x1d3   : > { %v1107_v13 = vadd.f32 %v1103_v62, %v1070_v30  ;;  %1799 = vadd.xlane.f32.xlu1 %v1798_v33  ;;  %v1856_v30 = vsel %vm3760_vm3, %v2967_v6, %v1855_v7 }
 0x1d4   : > { %v1106_v14 = vadd.f32 %v1102_v2, %v1069_v36  ;;  %1796 = vadd.xlane.f32.xlu0 %v1795_v56  ;;  %v1095_v16 = vpop.xlane.xlu1 %1094  ;;  %v1872_v36 = vsel %vm445_vm0, %v1866_v44, 0.0  ;;  %v1867_v42 = vmul.f32 %v1856_v30, %v3689_v3  ;;  %v1902_v58 = vmul.f32 %v1856_v30, %v3699_v15 }
 0x1d5   : > { %v1105_v20 = vmul.f32 %v2932_v49, %v1095_v16  ;;  %v1092_v22 = vpop.xlane.xlu0 %1091  ;;  %v4252_v23 = vsel %vm3760_vm3, %v2970_v43, %v1898_v45  ;;  %v1903_v44 = vmul.f32 %v4230_v24, %v3689_v3  ;;  %v2938_v43 = vld [vmem:[#allocation8 + $0x25] ss:$0 sm:$0xff] }
 0x1d6   : > { %v1104_v26 = vmul.f32 %v2932_v49, %v1092_v22  ;;  %v4244_v49 = vld [vmem:[%s3674_s8 + $0x2c] sm:$0x1]  ;;  %v1875_v8 = vsel %vm445_vm0, %v1867_v42, 0.0  ;;  %v1908_v61 = vsel %vm445_vm0, %v1902_v58, 0.0 }
 0x1d7   : > { %v1109_v32 = vadd.f32 %v1105_v20, %v1072_v54  ;;  %1805 = vadd.xlane.f32.xlu1 %v1804_v9  ;;  %v1836_v63 = vunpack.c.l.bf16 %v4244_v49 }
 0x1d8   : > { %v1108_v48 = vadd.f32 %v1104_v26, %v1071_v57  ;;  %1802 = vadd.xlane.f32.xlu0 %v1801_v50  ;;  %v1126_v28 = vpop.xlane.xlu1 %1125  ;;  %v1878_v57 = vsel %vm445_vm0, %v1868_v35, 0.0  ;;  %v4265_v50 = vld [vmem:[%s3674_s8 + $0x34] sm:$0x1]  ;;  %v1911_v35 = vsel %vm445_vm0, %v1903_v44, 0.0 }
 0x1d9   : > { %v1140_v40 = vmul.f32 %v2934_v53, %v1126_v28  ;;  %v1123_v41 = vpop.xlane.xlu0 %1122  ;;  %v1934_v20 = vrot.slane %v1836_v63, 5  ;;  %v1938_v28 = vmul.f32 %v4230_v24, %v3699_v15 }
 0x1da   : > { %v1139_v47 = vmul.f32 %v2934_v53, %v1123_v41  ;;  %v1837_v41 = vunpack.c.l.bf16 %v4265_v50 }
 0x1db   : > { %v1144_v54 = vadd.f32 %v1140_v40, %v1107_v13  ;;  %1873 = vadd.xlane.f32.xlu1 %v1872_v36  ;;  %v1905_v13 = vsel %vm445_vm0, %v1901_v60, 0.0  ;;  %v1937_v36 = vmul.f32 %v1856_v30, %v3691_v5  ;;  %v4274_v40 = vsel %vm3760_vm3, %v2972_v17, %v1934_v20  ;;  %v2940_v20 = vld [vmem:[#allocation8 + $0x2c] ss:$0 sm:$0xff] }
 0x1dc   : > { %v1143_v33 = vadd.f32 %v1139_v47, %v1106_v14  ;;  %1870 = vadd.xlane.f32.xlu0 %v1869_v38  ;;  %v1132_v56 = vpop.xlane.xlu1 %1131  ;;  %v1904_v14 = vmul.f32 %v4252_v23, %v3695_v10  ;;  %v1944_v30 = vsel %vm445_vm0, %v1938_v28, 0.0 }
 0x1dd   : > { %v1142_v21 = vmul.f32 %v2934_v53, %v1132_v56  ;;  %v1129_v62 = vpop.xlane.xlu0 %1128  ;;  %v1940_v56 = vmul.f32 %v4274_v40, %v3695_v10 }
 0x1de   : > { %v1141_v0 = vmul.f32 %v2934_v53, %v1129_v62  ;;  %v2974_v62 = vrot.slane %v4133_v52, 9 }
 0x1df   : > { %v1146_v2 = vadd.f32 %v1142_v21, %v1109_v32  ;;  %1879 = vadd.xlane.f32.xlu1 %v1878_v57  ;;  %v4282_v57 = vld [vmem:[%s3674_s8 + $0x3c] sm:$0x1]  ;;  %v1939_v21 = vmul.f32 %v4252_v23, %v3689_v3 }
 0x1e0   : > { %v1145_v6 = vadd.f32 %v1141_v0, %v1108_v48  ;;  %1876 = vadd.xlane.f32.xlu0 %v1875_v8  ;;  %v1163_v7 = vpop.xlane.xlu1 %1162  ;;  %v1914_v48 = vsel %vm445_vm0, %v1904_v14, 0.0  ;;  %v1970_v8 = vrot.slane %v1837_v41, 5 }
 0x1e1   : > { %v1177_v16 = vmul.f32 %v2936_v1, %v1163_v7  ;;  %v1160_v9 = vpop.xlane.xlu0 %1159  ;;  %v1947_v52 = vsel %vm445_vm0, %v1939_v21, 0.0 }
 0x1e2   : > { %v1176_v22 = vmul.f32 %v2936_v1, %v1160_v9  ;;  %v1973_v9 = vmul.f32 %v4230_v24, %v3691_v5  ;;  %v4298_v44 = vsel %vm3760_vm3, %v2974_v62, %v1970_v8  ;;  %v2009_v62 = vmul.f32 %v4252_v23, %v3691_v5 }
 0x1e3   : > { %v1181_v26 = vadd.f32 %v1177_v16, %v1144_v54  ;;  %1909 = vadd.xlane.f32.xlu1 %v1908_v61  ;;  %v1950_v61 = vsel %vm445_vm0, %v1940_v56, 0.0  ;;  %v1976_v24 = vmul.f32 %v4298_v44, %v3695_v10 }
 0x1e4   : > { %v1180_v53 = vadd.f32 %v1176_v22, %v1143_v33  ;;  %1906 = vadd.xlane.f32.xlu0 %v1905_v13  ;;  %v1169_v32 = vpop.xlane.xlu1 %1168  ;;  %v1941_v33 = vsel %vm445_vm0, %v1937_v36, 0.0  ;;  %v1974_v13 = vmul.f32 %v4252_v23, %v3699_v15  ;;  %v2112_v23 = vld [vmem:[%s3674_s8 + $0x8] sm:$0x8] }
 0x1e5   : > { %v1179_v37 = vmul.f32 %v2936_v1, %v1169_v32  ;;  %v1166_v38 = vpop.xlane.xlu0 %1165 }
 0x1e6   : > { %v1178_v42 = vmul.f32 %v2936_v1, %v1166_v38  ;;  %v1980_v28 = vsel %vm445_vm0, %v1974_v13, 0.0  ;;  %v1977_v38 = vsel %vm445_vm0, %v1973_v9, 0.0 }
 0x1e7   : > { %v1183_v45 = vadd.f32 %v1179_v37, %v1146_v2  ;;  %1915 = vadd.xlane.f32.xlu1 %v1914_v48  ;;  %v1838_v2 = vunpack.c.l.bf16 %v4282_v57 }
 0x1e8   : > { %v1182_v47 = vadd.f32 %v1178_v42, %v1145_v6  ;;  %1912 = vadd.xlane.f32.xlu0 %v1911_v35  ;;  %v1200_v54 = vpop.xlane.xlu1 %1199  ;;  %v1975_v35 = vmul.f32 %v4274_v40, %v3689_v3  ;;  %v4310_v42 = vld [vmem:[%s3674_s8 + $0x44] sm:$0x1] }
 0x1e9   : > { %v1214_v58 = vmul.f32 %v2938_v43, %v1200_v54  ;;  %v1197_v60 = vpop.xlane.xlu0 %1196  ;;  %v1839_v56 = vunpack.c.l.bf16 %v4310_v42 }
 0x1ea   : > { %v1213_v0 = vmul.f32 %v2938_v43, %v1197_v60  ;;  %v1983_v21 = vsel %vm445_vm0, %v1975_v35, 0.0 }
 0x1eb   : > { %v1218_v1 = vadd.f32 %v1214_v58, %v1181_v26  ;;  %1945 = vadd.xlane.f32.xlu1 %v1944_v30  ;;  %v2976_v26 = vrot.slane %v4148_v55, 9  ;;  %v1986_v30 = vsel %vm445_vm0, %v1976_v24, 0.0  ;;  %v2122_v24 = vunpack.c.l.bf16 %v2112_v23 }
 0x1ec   : > { %v1217_v6 = vadd.f32 %v1213_v0, %v1180_v53  ;;  %1942 = vadd.xlane.f32.xlu0 %v1941_v33  ;;  %v1206_v7 = vpop.xlane.xlu1 %1205  ;;  %v2006_v53 = vrot.slane %v1838_v2, 5  ;;  %v2010_v33 = vmul.f32 %v4274_v40, %v3699_v15  ;;  %v2945_v0 = vld [vmem:[#allocation8 + $0x3] ss:$0 sm:$0xff] }
 0x1ed   : > { %v1216_v14 = vmul.f32 %v2938_v43, %v1206_v7  ;;  %v1203_v16 = vpop.xlane.xlu0 %1202 }
 0x1ee   : > { %v1215_v17 = vmul.f32 %v2938_v43, %v1203_v16  ;;  %v2016_v13 = vsel %vm445_vm0, %v2010_v33, 0.0  ;;  %v2042_v16 = vrot.slane %v1839_v56, 5 }
 0x1ef   : > { %v1220_v22 = vadd.f32 %v1216_v14, %v1183_v45  ;;  %1951 = vadd.xlane.f32.xlu1 %v1950_v61  ;;  %v4314_v45 = vsel %vm3760_vm3, %v2976_v26, %v2006_v53  ;;  %v2978_v14 = vrot.slane %v4160_v59, 9  ;;  %v2111_v26 = vld [vmem:[%s3674_s8] sm:$0x8]  ;;  %v2046_v59 = vmul.f32 %v4298_v44, %v3699_v15 }
 0x1f0   : > { %v1219_v32 = vadd.f32 %v1215_v17, %v1182_v47  ;;  %1948 = vadd.xlane.f32.xlu0 %v1947_v52  ;;  %v1237_v48 = vpop.xlane.xlu1 %1236  ;;  %v2013_v17 = vsel %vm445_vm0, %v2009_v62, 0.0 }
 0x1f1   : > { %v1251_v36 = vmul.f32 %v2940_v20, %v1237_v48  ;;  %v1234_v37 = vpop.xlane.xlu0 %1233 }
 0x1f2   : > { %v1250_v55 = vmul.f32 %v2940_v20, %v1234_v37 }
 0x1f3   : > { %v1255_v43 = vadd.f32 %v1251_v36, %v1218_v1  ;;  %1981 = vadd.xlane.f32.xlu1 %v1980_v28  ;;  %v2012_v1 = vmul.f32 %v4314_v45, %v3695_v10  ;;  %v2045_v28 = vmul.f32 %v4274_v40, %v3691_v5  ;;  %v2113_v40 = vld [vmem:[%s3674_s8 + $0x10] sm:$0x8] }
 0x1f4   : > { %v1254_v47 = vadd.f32 %v1250_v55, %v1217_v6  ;;  %1978 = vadd.xlane.f32.xlu0 %v1977_v38  ;;  %v1243_v54 = vpop.xlane.xlu1 %1242  ;;  %v2043_v38 = vsel %vm3760_vm3, %v2978_v14, %v2042_v16  ;;  %v2121_v55 = vunpack.c.l.bf16 %v2111_v26 }
 0x1f5   : > { %v1253_v58 = vmul.f32 %v2940_v20, %v1243_v54  ;;  %v1240_v60 = vpop.xlane.xlu0 %1239  ;;  %v2083_v11 = vmul.f32 %v2043_v38, %v3689_v3 }
 0x1f6   : > { %v1252_v8 = vmul.f32 %v2940_v20, %v1240_v60  ;;  %v2011_v20 = vmul.f32 %v4298_v44, %v3689_v3  ;;  %v2947_v60 = vld [vmem:[#allocation8 + $0xa] ss:$0 sm:$0xff]  ;;  %v2135_v16 = vcombine.high %v2121_v55, %v2121_v55 }
 0x1f7   : > { %v1257_v6 = vadd.f32 %v1253_v58, %v1220_v22  ;;  %1987 = vadd.xlane.f32.xlu1 %v1986_v30  ;;  %v4334_v22 = vld [vmem:[%s3674_s8 + $0x4c] sm:$0x1] }
 0x1f8   : > { %v1256_v7 = vadd.f32 %v1252_v8, %v1219_v32  ;;  %1984 = vadd.xlane.f32.xlu0 %v1983_v21  ;;  %v1318_v61 = vpop.xlane.xlu1 %1317  ;;  %v2022_v32 = vsel %vm445_vm0, %v2012_v1, 0.0  ;;  %v1840_v35 = vunpack.c.l.bf16 %v4334_v22  ;;  %v2019_v33 = vsel %vm445_vm0, %v2011_v20, 0.0  ;;  %v2114_v21 = vld [vmem:[%s3674_s8 + $0x18] sm:$0x8] }
 0x1f9   : > { %v1332_v52 = vmul.f32 %v2945_v0, %v1318_v61  ;;  %v1315_v9 = vpop.xlane.xlu0 %1314  ;;  %v2048_v8 = vmul.f32 %v2043_v38, %v3695_v10  ;;  %v2136_v1 = vcombine.high %v2122_v24, %v2122_v24  ;;  %v2082_v20 = vmul.f32 %v4314_v45, %v3699_v15 }
 0x1fa   : > { %v1331_v53 = vmul.f32 %v2945_v0, %v1315_v9  ;;  %v2078_v14 = vrot.slane %v1840_v35, 5  ;;  %v2123_v9 = vunpack.c.l.bf16 %v2113_v40  ;;  %v2982_v55 = vrot.slane %v2135_v16, 10 }
 0x1fb   : > { %v1336_v48 = vadd.f32 %v1332_v52, %v1255_v43  ;;  %2017 = vadd.xlane.f32.xlu1 %v2016_v13  ;;  %v2980_v43 = vrot.slane %v4195_v39, 9  ;;  %v2049_v39 = vsel %vm445_vm0, %v2045_v28, 0.0  ;;  %v2124_v52 = vunpack.c.l.bf16 %v2114_v21  ;;  %v2115_v21 = vld [vmem:[%s3674_s8 + $0x20] sm:$0x8] }
 0x1fc   : > { %v1335_v36 = vadd.f32 %v1331_v53, %v1254_v47  ;;  %2014 = vadd.xlane.f32.xlu0 %v2013_v17  ;;  %v1324_v37 = vpop.xlane.xlu1 %1323  ;;  %v2052_v47 = vsel %vm445_vm0, %v2046_v59, 0.0  ;;  %v2058_v53 = vsel %vm445_vm0, %v2048_v8, 0.0  ;;  %v2145_v59 = vrot.slane %v1832_v18, 6 }
 0x1fd   : > { %v1334_v54 = vmul.f32 %v2945_v0, %v1324_v37  ;;  %v1321_v30 = vpop.xlane.xlu0 %1320  ;;  %v2079_v37 = vsel %vm3760_vm3, %v2980_v43, %v2078_v14  ;;  %v2088_v18 = vsel %vm445_vm0, %v2082_v20, 0.0  ;;  %v2153_v8 = vrot.slane %v1834_v46, 6 }
 0x1fe   : > { %v1333_v58 = vmul.f32 %v2945_v0, %v1321_v30  ;;  %v2138_v30 = vcombine.high %v2124_v52, %v2124_v52  ;;  %v2084_v31 = vmul.f32 %v2079_v37, %v3695_v10  ;;  %v2125_v38 = vunpack.c.l.bf16 %v2115_v21 }
 0x1ff   : > { %v1338_v62 = vadd.f32 %v1334_v54, %v1257_v6  ;;  %2023 = vadd.xlane.f32.xlu1 %v2022_v32  ;;  %v2047_v6 = vmul.f32 %v4314_v45, %v3689_v3  ;;  %v2983_v32 = vrot.slane %v2136_v1, 10  ;;  %v2141_v45 = vrot.slane %v1831_v25, 6 }
 0x200   : > { %v1337_v61 = vadd.f32 %v1333_v58, %v1256_v7  ;;  %2020 = vadd.xlane.f32.xlu0 %v2019_v33  ;;  %v1355_v13 = vpop.xlane.xlu1 %1354  ;;  %v2081_v7 = vmul.f32 %v4298_v44, %v3691_v5  ;;  %v2137_v33 = vcombine.high %v2123_v9, %v2123_v9  ;;  %v2094_v27 = vsel %vm445_vm0, %v2084_v31, 0.0 }
 0x201   : > { %v1369_v0 = vmul.f32 %v2947_v60, %v1355_v13  ;;  %v1352_v23 = vpop.xlane.xlu0 %1351  ;;  %v2055_v54 = vsel %vm445_vm0, %v2047_v6, 0.0  ;;  %v2146_v25 = vsel %vm3856_vm6, %v2983_v32, %v2145_v59  ;;  %v2091_v46 = vsel %vm445_vm0, %v2083_v11, 0.0 }
 0x202   : > { %v1368_v17 = vmul.f32 %v2947_v60, %v1352_v23  ;;  %v2984_v14 = vrot.slane %v2137_v33, 10  ;;  %v2190_v20 = vcombine.high %v2125_v38, %v2125_v38  ;;  %v2196_v31 = vmul.f32 %v2146_v25, %v3691_v5 }
 0x203   : > { %v1373_v26 = vadd.f32 %v1369_v0, %v1336_v48  ;;  %2053 = vadd.xlane.f32.xlu1 %v2052_v47 }
 0x204   : > { %v1372_v28 = vadd.f32 %v1368_v17, %v1335_v36  ;;  %2050 = vadd.xlane.f32.xlu0 %v2049_v39  ;;  %v1361_v24 = vpop.xlane.xlu1 %1360  ;;  %v2085_v36 = vsel %vm445_vm0, %v2081_v7, 0.0  ;;  %v2985_v39 = vrot.slane %v2138_v30, 10  ;;  %v2193_v30 = vrot.slane %v1835_v19, 6 }
 0x205   : > { %v1371_v44 = vmul.f32 %v2947_v60, %v1361_v24  ;;  %v1358_v48 = vpop.xlane.xlu0 %1357 }
 0x206   : > { %v1370_v58 = vmul.f32 %v2947_v60, %v1358_v48  ;;  %v2142_v60 = vsel %vm3856_vm6, %v2982_v55, %v2141_v45  ;;  %v4387_v9 = vsel %vm3856_vm6, %v2985_v39, %v2153_v8  ;;  %v2953_v8 = vld [vmem:[#allocation8 + $0x1f] ss:$0 sm:$0xff] }
 0x207   : > { %v1375_v40 = vadd.f32 %v1371_v44, %v1338_v62  ;;  %2059 = vadd.xlane.f32.xlu1 %v2058_v53  ;;  %v2149_v62 = vrot.slane %v1833_v51, 6  ;;  %v2159_v34 = vmul.f32 %v2142_v60, %v3691_v5  ;;  %v2116_v53 = vld [vmem:[%s3674_s8 + $0x28] sm:$0x8]  ;;  %v2162_v55 = vmul.f32 %v4387_v9, %v3695_v10 }
 0x208   : > { %v1374_v43 = vadd.f32 %v1370_v58, %v1337_v61  ;;  %2056 = vadd.xlane.f32.xlu0 %v2055_v54  ;;  %v1392_v47 = vpop.xlane.xlu1 %1391  ;;  %v2160_v61 = vmul.f32 %v2146_v25, %v3699_v15  ;;  %v2987_v54 = vrot.slane %v2190_v20, 10  ;;  %v2126_v33 = vunpack.c.l.bf16 %v2116_v53 }
 0x209   : > { %v1406_v1 = vmul.f32 %v2949_v4, %v1392_v47  ;;  %v1389_v13 = vpop.xlane.xlu0 %1388  ;;  %v2150_v17 = vsel %vm3856_vm6, %v2984_v14, %v2149_v62  ;;  %v2163_v37 = vsel %vm445_vm0, %v2159_v34, 0.0  ;;  %v2117_v62 = vld [vmem:[%s3674_s8 + $0x30] sm:$0x8]  ;;  %v2200_v25 = vsel %vm445_vm0, %v2196_v31, 0.0 }
 0x20a   : > { %v1405_v16 = vmul.f32 %v2949_v4, %v1389_v13  ;;  %v2166_v59 = vsel %vm445_vm0, %v2160_v61, 0.0  ;;  %v2161_v45 = vmul.f32 %v2150_v17, %v3689_v3  ;;  %v4405_v12 = vsel %vm3856_vm6, %v2987_v54, %v2193_v30 }
 0x20b   : > { %v1410_v0 = vadd.f32 %v1406_v1, %v1373_v26  ;;  %2089 = vadd.xlane.f32.xlu1 %v2088_v18  ;;  %v2951_v26 = vld [vmem:[#allocation8 + $0x18] ss:$0 sm:$0xff]  ;;  %v2197_v18 = vmul.f32 %v2150_v17, %v3699_v15  ;;  %v2227_v19 = vcombine.high %v2126_v33, %v2126_v33  ;;  %v2199_v38 = vmul.f32 %v4405_v12, %v3695_v10 }
 0x20c   : > { %v1409_v23 = vadd.f32 %v1405_v16, %v1372_v28  ;;  %2086 = vadd.xlane.f32.xlu0 %v2085_v36  ;;  %v1398_v6 = vpop.xlane.xlu1 %1397  ;;  %v2169_v47 = vsel %vm445_vm0, %v2161_v45, 0.0  ;;  %v2198_v16 = vmul.f32 %v4387_v9, %v3689_v3  ;;  %v2235_v30 = vmul.f32 %v4405_v12, %v3689_v3 }
 0x20d   : > { %v1408_v51 = vmul.f32 %v2949_v4, %v1398_v6  ;;  %v1395_v52 = vpop.xlane.xlu0 %1394  ;;  %v2203_v13 = vsel %vm445_vm0, %v2197_v18, 0.0  ;;  %v2230_v6 = vrot.slane %v1836_v63, 6  ;;  %v2267_v18 = vrot.slane %v1837_v41, 6 }
 0x20e   : > { %v1407_v7 = vmul.f32 %v2949_v4, %v1395_v52  ;;  %v2206_v49 = vsel %vm445_vm0, %v2198_v16, 0.0  ;;  %v2271_v31 = vmul.f32 %v4405_v12, %v3699_v15  ;;  %v2243_v50 = vsel %vm445_vm0, %v2235_v30, 0.0 }
 0x20f   : > { %v1412_v32 = vadd.f32 %v1408_v51, %v1375_v40  ;;  %2095 = vadd.xlane.f32.xlu1 %v2094_v27  ;;  %v2172_v40 = vsel %vm445_vm0, %v2162_v55, 0.0  ;;  %v2127_v27 = vunpack.c.l.bf16 %v2117_v62  ;;  %v2234_v51 = vmul.f32 %v4387_v9, %v3699_v15 }
 0x210   : > { %v1411_v28 = vadd.f32 %v1407_v7, %v1374_v43  ;;  %2092 = vadd.xlane.f32.xlu0 %v2091_v46  ;;  %v1429_v24 = vpop.xlane.xlu1 %1428  ;;  %v2209_v7 = vsel %vm445_vm0, %v2199_v38, 0.0 }
 0x211   : > { %v1443_v44 = vmul.f32 %v2951_v26, %v1429_v24  ;;  %v1426_v48 = vpop.xlane.xlu0 %1425  ;;  %v2955_v24 = vld [vmem:[#allocation8 + $0x26] ss:$0 sm:$0xff]  ;;  %v2240_v45 = vsel %vm445_vm0, %v2234_v51, 0.0 }
 0x212   : > { %v1442_v58 = vmul.f32 %v2951_v26, %v1426_v48 }
 0x213   : > { %v1447_v4 = vadd.f32 %v1443_v44, %v1410_v0  ;;  %2167 = vadd.xlane.f32.xlu1 %v2166_v59  ;;  %v2264_v59 = vcombine.high %v2127_v27, %v2127_v27 }
 0x214   : > { %v1446_v36 = vadd.f32 %v1442_v58, %v1409_v23  ;;  %2164 = vadd.xlane.f32.xlu0 %v2163_v37  ;;  %v1435_v21 = vpop.xlane.xlu1 %1434  ;;  %v2989_v23 = vrot.slane %v2227_v19, 10  ;;  %v2118_v37 = vld [vmem:[%s3674_s8 + $0x38] sm:$0x8]  ;;  %v2270_v19 = vmul.f32 %v4387_v9, %v3691_v5 }
 0x215   : > { %v1445_v11 = vmul.f32 %v2951_v26, %v1435_v21  ;;  %v1432_v43 = vpop.xlane.xlu0 %1431 }
 0x216   : > { %v1444_v60 = vmul.f32 %v2951_v26, %v1432_v43  ;;  %v2233_v26 = vmul.f32 %v2150_v17, %v3691_v5  ;;  %v4423_v63 = vsel %vm3856_vm6, %v2989_v23, %v2230_v6  ;;  %v2274_v9 = vsel %vm445_vm0, %v2270_v19, 0.0 }
 0x217   : > { %v1449_v1 = vadd.f32 %v1445_v11, %v1412_v32  ;;  %2173 = vadd.xlane.f32.xlu1 %v2172_v40  ;;  %v2236_v54 = vmul.f32 %v4423_v63, %v3695_v10  ;;  %v2344_v19 = vmul.f32 %v4423_v63, %v3691_v5 }
 0x218   : > { %v1448_v39 = vadd.f32 %v1444_v60, %v1411_v28  ;;  %2170 = vadd.xlane.f32.xlu0 %v2169_v47  ;;  %v1466_v14 = vpop.xlane.xlu1 %1465  ;;  %v2237_v17 = vsel %vm445_vm0, %v2233_v26, 0.0 }
 0x219   : > { %v1480_v0 = vmul.f32 %v2953_v8, %v1466_v14  ;;  %v1463_v61 = vpop.xlane.xlu0 %1462  ;;  %v2246_v47 = vsel %vm445_vm0, %v2236_v54, 0.0 }
 0x21a   : > { %v1479_v46 = vmul.f32 %v2953_v8, %v1463_v61  ;;  %v2272_v61 = vmul.f32 %v4423_v63, %v3689_v3 }
 0x21b   : > { %v1484_v34 = vadd.f32 %v1480_v0, %v1447_v4  ;;  %2204 = vadd.xlane.f32.xlu1 %v2203_v13  ;;  %v2991_v4 = vrot.slane %v2264_v59, 10  ;;  %v2957_v13 = vld [vmem:[#allocation8 + $0x2d] ss:$0 sm:$0xff] }
 0x21c   : > { %v1483_v52 = vadd.f32 %v1479_v46, %v1446_v36  ;;  %2201 = vadd.xlane.f32.xlu0 %v2200_v25  ;;  %v1472_v20 = vpop.xlane.xlu1 %1471  ;;  %v2128_v36 = vunpack.c.l.bf16 %v2118_v37  ;;  %v2277_v25 = vsel %vm445_vm0, %v2271_v31, 0.0  ;;  %v2304_v46 = vrot.slane %v1838_v2, 6  ;;  %v2958_v37 = vld [vmem:[#allocation8 + $0x4] ss:$0 sm:$0xff] }
 0x21d   : > { %v1482_v53 = vmul.f32 %v2953_v8, %v1472_v20  ;;  %v1469_v32 = vpop.xlane.xlu0 %1468  ;;  %v4442_v41 = vsel %vm3856_vm6, %v2991_v4, %v2267_v18  ;;  %v2308_v20 = vmul.f32 %v4423_v63, %v3699_v15  ;;  %v2280_v57 = vsel %vm445_vm0, %v2272_v61, 0.0 }
 0x21e   : > { %v1481_v28 = vmul.f32 %v2953_v8, %v1469_v32  ;;  %v2301_v62 = vcombine.high %v2128_v36, %v2128_v36  ;;  %v2273_v0 = vmul.f32 %v4442_v41, %v3695_v10  ;;  %v2307_v32 = vmul.f32 %v4405_v12, %v3691_v5 }
 0x21f   : > { %v1486_v55 = vadd.f32 %v1482_v53, %v1449_v1  ;;  %2210 = vadd.xlane.f32.xlu1 %v2209_v7  ;;  %v2309_v30 = vmul.f32 %v4442_v41, %v3689_v3  ;;  %v2341_v18 = vrot.slane %v1839_v56, 6 }
 0x220   : > { %v1485_v44 = vadd.f32 %v1481_v28, %v1448_v39  ;;  %2207 = vadd.xlane.f32.xlu0 %v2206_v49  ;;  %v1503_v48 = vpop.xlane.xlu1 %1502  ;;  %v2119_v39 = vld [vmem:[%s3674_s8 + $0x40] sm:$0x8]  ;;  %v2993_v27 = vrot.slane %v2301_v62, 10  ;;  %v2283_v53 = vsel %vm445_vm0, %v2273_v0, 0.0  ;;  %v2311_v12 = vsel %vm445_vm0, %v2307_v32, 0.0 }
 0x221   : > { %v1517_v33 = vmul.f32 %v2955_v24, %v1503_v48  ;;  %v1500_v58 = vpop.xlane.xlu0 %1499  ;;  %v2317_v42 = vsel %vm445_vm0, %v2309_v30, 0.0  ;;  %v2960_v32 = vld [vmem:[#allocation8 + $0x12] ss:$0 sm:$0xff] }
 0x222   : > { %v1516_v21 = vmul.f32 %v2955_v24, %v1500_v58  ;;  %v2305_v2 = vsel %vm3856_vm6, %v2993_v27, %v2304_v46 }
 0x223   : > { %v1521_v40 = vadd.f32 %v1517_v33, %v1484_v34  ;;  %2241 = vadd.xlane.f32.xlu1 %v2240_v45  ;;  %v2129_v34 = vunpack.c.l.bf16 %v2119_v39  ;;  %v2310_v54 = vmul.f32 %v2305_v2, %v3695_v10  ;;  %v2346_v0 = vmul.f32 %v2305_v2, %v3689_v3 }
 0x224   : > { %v1520_v11 = vadd.f32 %v1516_v21, %v1483_v52  ;;  %2238 = vadd.xlane.f32.xlu0 %v2237_v17  ;;  %v1509_v43 = vpop.xlane.xlu1 %1508 }
 0x225   : > { %v1519_v60 = vmul.f32 %v2955_v24, %v1509_v43  ;;  %v1506_v8 = vpop.xlane.xlu0 %1505  ;;  %v2338_v28 = vcombine.high %v2129_v34, %v2129_v34  ;;  %v2320_v43 = vsel %vm445_vm0, %v2310_v54, 0.0 }
 0x226   : > { %v1518_v1 = vmul.f32 %v2955_v24, %v1506_v8 }
 0x227   : > { %v1523_v14 = vadd.f32 %v1519_v60, %v1486_v55  ;;  %2247 = vadd.xlane.f32.xlu1 %v2246_v47  ;;  %v2120_v55 = vld [vmem:[%s3674_s8 + $0x48] sm:$0x8]  ;;  %v2995_v4 = vrot.slane %v2338_v28, 10  ;;  %v2345_v47 = vmul.f32 %v4442_v41, %v3699_v15 }
 0x228   : > { %v1522_v38 = vadd.f32 %v1518_v1, %v1485_v44  ;;  %2244 = vadd.xlane.f32.xlu0 %v2243_v50  ;;  %v1540_v16 = vpop.xlane.xlu1 %1539  ;;  %v2314_v44 = vsel %vm445_vm0, %v2308_v20, 0.0  ;;  %v2130_v36 = vunpack.c.l.bf16 %v2120_v55  ;;  %v2959_v1 = vld [vmem:[#allocation8 + $0xb] ss:$0 sm:$0xff] }
 0x229   : > { %v1554_v23 = vmul.f32 %v2957_v13, %v1540_v16  ;;  %v1537_v6 = vpop.xlane.xlu0 %1536  ;;  %v2342_v56 = vsel %vm3856_vm6, %v2995_v4, %v2341_v18 }
 0x22a   : > { %v1553_v51 = vmul.f32 %v2957_v13, %v1537_v6  ;;  %v2375_v50 = vcombine.high %v2130_v36, %v2130_v36  ;;  %v2347_v63 = vmul.f32 %v2342_v56, %v3695_v10  ;;  %v2961_v36 = vld [vmem:[#allocation8 + $0x19] ss:$0 sm:$0xff] }
 0x22b   : > { %v1558_v52 = vadd.f32 %v1554_v23, %v1521_v40  ;;  %2278 = vadd.xlane.f32.xlu1 %v2277_v25  ;;  %v2351_v25 = vsel %vm445_vm0, %v2345_v47, 0.0  ;;  %v2378_v23 = vrot.slane %v1840_v35, 6 }
 0x22c   : > { %v1557_v7 = vadd.f32 %v1553_v51, %v1520_v11  ;;  %2275 = vadd.xlane.f32.xlu0 %v2274_v9  ;;  %v1546_v26 = vpop.xlane.xlu1 %1545  ;;  %v2997_v61 = vrot.slane %v2375_v50, 10  ;;  %v2357_v51 = vsel %vm445_vm0, %v2347_v63, 0.0 }
 0x22d   : > { %v1556_v49 = vmul.f32 %v2957_v13, %v1546_v26  ;;  %v1543_v59 = vpop.xlane.xlu0 %1542  ;;  %v2354_v26 = vsel %vm445_vm0, %v2346_v0, 0.0 }
 0x22e   : > { %v1555_v24 = vmul.f32 %v2957_v13, %v1543_v59  ;;  %v2379_v22 = vsel %vm3856_vm6, %v2997_v61, %v2378_v23 }
 0x22f   : > { %v1560_v45 = vadd.f32 %v1556_v49, %v1523_v14  ;;  %2284 = vadd.xlane.f32.xlu1 %v2283_v53  ;;  %v2381_v53 = vmul.f32 %v4442_v41, %v3691_v5  ;;  %v2383_v41 = vmul.f32 %v2342_v56, %v3689_v3 }
 0x230   : > { %v1559_v48 = vadd.f32 %v1555_v24, %v1522_v38  ;;  %2281 = vadd.xlane.f32.xlu0 %v2280_v57  ;;  %v1602_v17 = vpop.xlane.xlu1 %1601  ;;  %v2348_v38 = vsel %vm445_vm0, %v2344_v19, 0.0 }
 0x231   : > { %v1616_v33 = vmul.f32 %v2958_v37, %v1602_v17  ;;  %v1599_v58 = vpop.xlane.xlu0 %1598  ;;  %v2385_v55 = vsel %vm445_vm0, %v2381_v53, 0.0 }
 0x232   : > { %v1615_v21 = vmul.f32 %v2958_v37, %v1599_v58  ;;  %v2391_v58 = vsel %vm445_vm0, %v2383_v41, 0.0 }
 0x233   : > { %v1620_v40 = vadd.f32 %v1616_v33, %v1558_v52  ;;  %2315 = vadd.xlane.f32.xlu1 %v2314_v44  ;;  %v2382_v52 = vmul.f32 %v2305_v2, %v3699_v15  ;;  %v2384_v2 = vmul.f32 %v2379_v22, %v3695_v10 }
 0x234   : > { %v1619_v31 = vadd.f32 %v1615_v21, %v1557_v7  ;;  %2312 = vadd.xlane.f32.xlu0 %v2311_v12  ;;  %v1608_v11 = vpop.xlane.xlu1 %1607 }
 0x235   : > { %v1618_v60 = vmul.f32 %v2958_v37, %v1608_v11  ;;  %v1605_v8 = vpop.xlane.xlu0 %1604  ;;  %v2388_v28 = vsel %vm445_vm0, %v2382_v52, 0.0  ;;  %v2394_v12 = vsel %vm445_vm0, %v2384_v2, 0.0 }
 0x236   : > { %v1617_v62 = vmul.f32 %v2958_v37, %v1605_v8 }
 0x237   : > { %v1622_v13 = vadd.f32 %v1618_v60, %v1560_v45  ;;  %2321 = vadd.xlane.f32.xlu1 %v2320_v43  ;;  %v2999_v45 = vld [vmem:[#allocation7] ss:$0 sm:$0xff] }
 0x238   : > { %v1621_v39 = vadd.f32 %v1617_v62, %v1559_v48  ;;  %2318 = vadd.xlane.f32.xlu0 %v2317_v42  ;;  %v1635_v14 = vpop.xlane.xlu1 %1634  ;;  %v2418_v54 = vmul.f32 %v2999_v45, %v3699_v15  ;;  %v2417_v4 = vmul.f32 %v2999_v45, %v3691_v5  ;;  %v2420_v43 = vmul.f32 %v2999_v45, %v3695_v10  ;;  %v3001_v42 = vld [vmem:[#allocation7 + $0x1] ss:$0 sm:$0xff] }
 0x239   : > { %v1649_v16 = vmul.f32 %v2959_v1, %v1635_v14  ;;  %v1632_v9 = vpop.xlane.xlu0 %1631  ;;  %v2419_v8 = vmul.f32 %v2999_v45, %v3689_v3  ;;  %v2453_v63 = vmul.f32 %v3001_v42, %v3691_v5  ;;  %v2455_v52 = vmul.f32 %v3001_v42, %v3689_v3 }
 0x23a   : > { %v1648_v6 = vmul.f32 %v2959_v1, %v1632_v9  ;;  %v2424_v11 = vsel %vm445_vm0, %v2418_v54, 0.0  ;;  %v2421_v60 = vsel %vm445_vm0, %v2417_v4, 0.0  ;;  %v2962_v9 = vld [vmem:[#allocation8 + $0x20] ss:$0 sm:$0xff]  ;;  %v3005_v54 = vld [vmem:[#allocation7 + $0x3] ss:$0 sm:$0xff] }
 0x23b   : > { %v1653_v27 = vadd.f32 %v1649_v16, %v1620_v40  ;;  %2352 = vadd.xlane.f32.xlu1 %v2351_v25 }
 0x23c   : > { %v1652_v46 = vadd.f32 %v1648_v6, %v1619_v31  ;;  %2349 = vadd.xlane.f32.xlu0 %v2348_v38  ;;  %v1641_v34 = vpop.xlane.xlu1 %1640  ;;  %v2427_v38 = vsel %vm445_vm0, %v2419_v8, 0.0 }
 0x23d   : > { %v1651_v20 = vmul.f32 %v2959_v1, %v1641_v34  ;;  %v1638_v7 = vpop.xlane.xlu0 %1637 }
 0x23e   : > { %v1650_v35 = vmul.f32 %v2959_v1, %v1638_v7 }
 0x23f   : > { %v1655_v49 = vadd.f32 %v1651_v20, %v1622_v13  ;;  %2358 = vadd.xlane.f32.xlu1 %v2357_v51  ;;  %v2430_v13 = vsel %vm445_vm0, %v2420_v43, 0.0  ;;  %v2457_v51 = vsel %vm445_vm0, %v2453_v63, 0.0  ;;  %v3003_v20 = vld [vmem:[#allocation7 + $0x2] ss:$0 sm:$0xff] }
 0x240   : > { %v1654_v59 = vadd.f32 %v1650_v35, %v1621_v39  ;;  %2355 = vadd.xlane.f32.xlu0 %v2354_v26  ;;  %v1668_v57 = vpop.xlane.xlu1 %1667  ;;  %v2454_v39 = vmul.f32 %v3001_v42, %v3699_v15 }
 0x241   : > { %v1682_v24 = vmul.f32 %v2960_v32, %v1668_v57  ;;  %v1665_v37 = vpop.xlane.xlu0 %1664  ;;  %v2463_v57 = vsel %vm445_vm0, %v2455_v52, 0.0 }
 0x242   : > { %v1681_v29 = vmul.f32 %v2960_v32, %v1665_v37  ;;  %v2460_v6 = vsel %vm445_vm0, %v2454_v39, 0.0  ;;  %v3007_v39 = vld [vmem:[#allocation7 + $0x4] ss:$0 sm:$0xff] }
 0x243   : > { %v1686_v44 = vadd.f32 %v1682_v24, %v1653_v27  ;;  %2389 = vadd.xlane.f32.xlu1 %v2388_v28  ;;  %v2456_v27 = vmul.f32 %v3001_v42, %v3695_v10  ;;  %v2489_v28 = vmul.f32 %v3003_v20, %v3691_v5  ;;  %v2963_v24 = vld [vmem:[#allocation8 + $0x27] ss:$0 sm:$0xff] }
 0x244   : > { %v1685_v48 = vadd.f32 %v1681_v29, %v1652_v46  ;;  %2386 = vadd.xlane.f32.xlu0 %v2385_v55  ;;  %v1674_v17 = vpop.xlane.xlu1 %1673  ;;  %v2492_v29 = vmul.f32 %v3003_v20, %v3695_v10 }
 0x245   : > { %v1684_v30 = vmul.f32 %v2960_v32, %v1674_v17  ;;  %v1671_v33 = vpop.xlane.xlu0 %1670  ;;  %v2466_v35 = vsel %vm445_vm0, %v2456_v27, 0.0  ;;  %v2493_v17 = vsel %vm445_vm0, %v2489_v28, 0.0 }
 0x246   : > { %v1683_v18 = vmul.f32 %v2960_v32, %v1671_v33  ;;  %v2490_v32 = vmul.f32 %v3003_v20, %v3699_v15 }
 0x247   : > { %v1688_v21 = vadd.f32 %v1684_v30, %v1655_v49  ;;  %2395 = vadd.xlane.f32.xlu1 %v2394_v12  ;;  %v2491_v12 = vmul.f32 %v3003_v20, %v3689_v3 }
 0x248   : > { %v1687_v40 = vadd.f32 %v1683_v18, %v1654_v59  ;;  %2392 = vadd.xlane.f32.xlu0 %v2391_v58  ;;  %v1701_v31 = vpop.xlane.xlu1 %1700  ;;  %v2496_v45 = vsel %vm445_vm0, %v2490_v32, 0.0  ;;  %v2502_v18 = vsel %vm445_vm0, %v2492_v29, 0.0  ;;  %v3009_v32 = vld [vmem:[#allocation7 + $0x5] ss:$0 sm:$0xff] }
 0x249   : > { %v1715_v47 = vmul.f32 %v2961_v36, %v1701_v31  ;;  %v1698_v19 = vpop.xlane.xlu0 %1697  ;;  %v2499_v31 = vsel %vm445_vm0, %v2491_v12, 0.0 }
 0x24a   : > { %v1714_v56 = vmul.f32 %v2961_v36, %v1698_v19 }
 0x24b   : > { %v1719_v50 = vadd.f32 %v1715_v47, %v1686_v44  ;;  %2425 = vadd.xlane.f32.xlu1 %v2424_v11  ;;  %v2525_v11 = vmul.f32 %v3005_v54, %v3691_v5  ;;  %v2964_v47 = vld [vmem:[#allocation8 + $0x2e] ss:$0 sm:$0xff] }
 0x24c   : > { %v1718_v62 = vadd.f32 %v1714_v56, %v1685_v48  ;;  %2422 = vadd.xlane.f32.xlu0 %v2421_v60  ;;  %v1707_v1 = vpop.xlane.xlu1 %1706  ;;  %v2528_v56 = vmul.f32 %v3005_v54, %v3695_v10 }
 0x24d   : > { %v1717_v14 = vmul.f32 %v2961_v36, %v1707_v1  ;;  %v1704_v25 = vpop.xlane.xlu0 %1703  ;;  %v2529_v1 = vsel %vm445_vm0, %v2525_v11, 0.0 }
 0x24e   : > { %v1716_v16 = vmul.f32 %v2961_v36, %v1704_v25  ;;  %v2526_v36 = vmul.f32 %v3005_v54, %v3699_v15 }
 0x24f   : > { %v1721_v0 = vadd.f32 %v1717_v14, %v1688_v21  ;;  %2431 = vadd.xlane.f32.xlu1 %v2430_v13  ;;  %v2527_v13 = vmul.f32 %v3005_v54, %v3689_v3 }
 0x250   : > { %v1720_v61 = vadd.f32 %v1716_v16, %v1687_v40  ;;  %2428 = vadd.xlane.f32.xlu0 %v2427_v38  ;;  %v1734_v23 = vpop.xlane.xlu1 %1733  ;;  %v2532_v42 = vsel %vm445_vm0, %v2526_v36, 0.0  ;;  %v2538_v16 = vsel %vm445_vm0, %v2528_v56, 0.0  ;;  %v3011_v36 = vld [vmem:[#allocation7 + $0x6] ss:$0 sm:$0xff] }
 0x251   : > { %v1748_v46 = vmul.f32 %v2962_v9, %v1734_v23  ;;  %v1731_v34 = vpop.xlane.xlu0 %1730  ;;  %v2535_v23 = vsel %vm445_vm0, %v2527_v13, 0.0 }
 0x252   : > { %v1747_v7 = vmul.f32 %v2962_v9, %v1731_v34 }
 0x253   : > { %v1752_v26 = vadd.f32 %v1748_v46, %v1719_v50  ;;  %2461 = vadd.xlane.f32.xlu1 %v2460_v6  ;;  %v2561_v6 = vmul.f32 %v3007_v39, %v3691_v5  ;;  %v2969_v46 = vld [vmem:[#allocation8 + $0x5] ss:$0 sm:$0xff] }
 0x254   : > { %v1751_v53 = vadd.f32 %v1747_v7, %v1718_v62  ;;  %2458 = vadd.xlane.f32.xlu0 %v2457_v51  ;;  %v1740_v22 = vpop.xlane.xlu1 %1739  ;;  %v2564_v7 = vmul.f32 %v3007_v39, %v3695_v10 }
 0x255   : > { %v1750_v49 = vmul.f32 %v2962_v9, %v1740_v22  ;;  %v1737_v59 = vpop.xlane.xlu0 %1736  ;;  %v2565_v22 = vsel %vm445_vm0, %v2561_v6, 0.0 }
 0x256   : > { %v1749_v2 = vmul.f32 %v2962_v9, %v1737_v59  ;;  %v2562_v9 = vmul.f32 %v3007_v39, %v3699_v15 }
 0x257   : > { %v1754_v37 = vadd.f32 %v1750_v49, %v1721_v0  ;;  %2467 = vadd.xlane.f32.xlu1 %v2466_v35  ;;  %v2563_v35 = vmul.f32 %v3007_v39, %v3689_v3 }
 0x258   : > { %v1753_v55 = vadd.f32 %v1749_v2, %v1720_v61  ;;  %2464 = vadd.xlane.f32.xlu0 %v2463_v57  ;;  %v1767_v41 = vpop.xlane.xlu1 %1766  ;;  %v2568_v20 = vsel %vm445_vm0, %v2562_v9, 0.0  ;;  %v2574_v2 = vsel %vm445_vm0, %v2564_v7, 0.0  ;;  %v3013_v9 = vld [vmem:[#allocation7 + $0x7] ss:$0 sm:$0xff] }
 0x259   : > { %v1781_v44 = vmul.f32 %v2963_v24, %v1767_v41  ;;  %v1764_v48 = vpop.xlane.xlu0 %1763  ;;  %v2571_v41 = vsel %vm445_vm0, %v2563_v35, 0.0 }
 0x25a   : > { %v1780_v30 = vmul.f32 %v2963_v24, %v1764_v48 }
 0x25b   : > { %v1785_v33 = vadd.f32 %v1781_v44, %v1752_v26  ;;  %2497 = vadd.xlane.f32.xlu1 %v2496_v45  ;;  %v2597_v45 = vmul.f32 %v3009_v32, %v3691_v5  ;;  %v2971_v44 = vld [vmem:[#allocation8 + $0xc] ss:$0 sm:$0xff] }
 0x25c   : > { %v1784_v58 = vadd.f32 %v1780_v30, %v1751_v53  ;;  %2494 = vadd.xlane.f32.xlu0 %v2493_v17  ;;  %v1773_v4 = vpop.xlane.xlu1 %1772  ;;  %v2600_v30 = vmul.f32 %v3009_v32, %v3695_v10 }
 0x25d   : > { %v1783_v21 = vmul.f32 %v2963_v24, %v1773_v4  ;;  %v1770_v40 = vpop.xlane.xlu0 %1769  ;;  %v2601_v4 = vsel %vm445_vm0, %v2597_v45, 0.0 }
 0x25e   : > { %v1782_v43 = vmul.f32 %v2963_v24, %v1770_v40  ;;  %v2598_v24 = vmul.f32 %v3009_v32, %v3699_v15 }
 0x25f   : > { %v1787_v19 = vadd.f32 %v1783_v21, %v1754_v37  ;;  %2503 = vadd.xlane.f32.xlu1 %v2502_v18  ;;  %v2599_v18 = vmul.f32 %v3009_v32, %v3689_v3 }
 0x260   : > { %v1786_v60 = vadd.f32 %v1782_v43, %v1753_v55  ;;  %2500 = vadd.xlane.f32.xlu0 %v2499_v31  ;;  %v1800_v8 = vpop.xlane.xlu1 %1799  ;;  %v2604_v54 = vsel %vm445_vm0, %v2598_v24, 0.0  ;;  %v2610_v43 = vsel %vm445_vm0, %v2600_v30, 0.0 }
 0x261   : > { %v1814_v50 = vmul.f32 %v2964_v47, %v1800_v8  ;;  %v1797_v62 = vpop.xlane.xlu0 %1796  ;;  %v2607_v8 = vsel %vm445_vm0, %v2599_v18, 0.0 }
 0x262   : > { %v1813_v14 = vmul.f32 %v2964_v47, %v1797_v62 }
 0x263   : > { %v1818_v25 = vadd.f32 %v1814_v50, %v1785_v33  ;;  %2533 = vadd.xlane.f32.xlu1 %v2532_v42  ;;  %v2633_v42 = vmul.f32 %v3011_v36, %v3691_v5  ;;  %v2973_v50 = vld [vmem:[#allocation8 + $0x13] ss:$0 sm:$0xff] }
 0x264   : > { %v1817_v38 = vadd.f32 %v1813_v14, %v1784_v58  ;;  %2530 = vadd.xlane.f32.xlu0 %v2529_v1  ;;  %v1806_v63 = vpop.xlane.xlu1 %1805  ;;  %v2636_v14 = vmul.f32 %v3011_v36, %v3695_v10 }
 0x265   : > { %v1816_v0 = vmul.f32 %v2964_v47, %v1806_v63  ;;  %v1803_v61 = vpop.xlane.xlu0 %1802  ;;  %v2637_v63 = vsel %vm445_vm0, %v2633_v42, 0.0 }
 0x266   : > { %v1815_v27 = vmul.f32 %v2964_v47, %v1803_v61  ;;  %v2634_v47 = vmul.f32 %v3011_v36, %v3699_v15 }
 0x267   : > { %v1820_v34 = vadd.f32 %v1816_v0, %v1787_v19  ;;  %2539 = vadd.xlane.f32.xlu1 %v2538_v16  ;;  %v2635_v16 = vmul.f32 %v3011_v36, %v3689_v3 }
 0x268   : > { %v1819_v51 = vadd.f32 %v1815_v27, %v1786_v60  ;;  %2536 = vadd.xlane.f32.xlu0 %v2535_v23  ;;  %v1874_v52 = vpop.xlane.xlu1 %1873  ;;  %v2640_v39 = vsel %vm445_vm0, %v2634_v47, 0.0  ;;  %v2646_v27 = vsel %vm445_vm0, %v2636_v14, 0.0 }
 0x269   : > { %v1888_v26 = vmul.f32 %v2969_v46, %v1874_v52  ;;  %v1871_v53 = vpop.xlane.xlu0 %1870  ;;  %v2643_v52 = vsel %vm445_vm0, %v2635_v16, 0.0 }
 0x26a   : > { %v1887_v49 = vmul.f32 %v2969_v46, %v1871_v53 }
 0x26b   : > { %v1892_v59 = vadd.f32 %v1888_v26, %v1818_v25  ;;  %2569 = vadd.xlane.f32.xlu1 %v2568_v20  ;;  %v2669_v20 = vmul.f32 %v3013_v9, %v3691_v5  ;;  %v2975_v26 = vld [vmem:[#allocation8 + $0x1a] ss:$0 sm:$0xff] }
 0x26c   : > { %v1891_v57 = vadd.f32 %v1887_v49, %v1817_v38  ;;  %2566 = vadd.xlane.f32.xlu0 %v2565_v22  ;;  %v1880_v28 = vpop.xlane.xlu1 %1879  ;;  %v2672_v49 = vmul.f32 %v3013_v9, %v3695_v10  ;;  %v2977_v10 = vld [vmem:[#allocation8 + $0x21] ss:$0 sm:$0xff] }
 0x26d   : > { %v1890_v37 = vmul.f32 %v2969_v46, %v1880_v28  ;;  %v1877_v55 = vpop.xlane.xlu0 %1876  ;;  %v2671_v28 = vmul.f32 %v3013_v9, %v3689_v3 }
 0x26e   : > { %v1889_v29 = vmul.f32 %v2969_v46, %v1877_v55  ;;  %v2670_v46 = vmul.f32 %v3013_v9, %v3699_v15  ;;  %v2673_v15 = vsel %vm445_vm0, %v2669_v20, 0.0  ;;  %v2682_v55 = vsel %vm445_vm0, %v2672_v49, 0.0 }
 0x26f   : > { %v1894_v48 = vadd.f32 %v1890_v37, %v1820_v34  ;;  %2575 = vadd.xlane.f32.xlu1 %v2574_v2 }
 0x270   : > { %v1893_v17 = vadd.f32 %v1889_v29, %v1819_v51  ;;  %2572 = vadd.xlane.f32.xlu0 %v2571_v41  ;;  %v1910_v12 = vpop.xlane.xlu1 %1909  ;;  %v2676_v32 = vsel %vm445_vm0, %v2670_v46, 0.0  ;;  %v2679_v29 = vsel %vm445_vm0, %v2671_v28, 0.0  ;;  %v2986_v46 = vld [vmem:[#allocation8 + $0x6] ss:$0 sm:$0xff] }
 0x271   : > { %v1924_v33 = vmul.f32 %v2971_v44, %v1910_v12  ;;  %v1907_v58 = vpop.xlane.xlu0 %1906 }
 0x272   : > { %v1923_v21 = vmul.f32 %v2971_v44, %v1907_v58 }
 0x273   : > { %v1928_v40 = vadd.f32 %v1924_v33, %v1892_v59  ;;  %2605 = vadd.xlane.f32.xlu1 %v2604_v54 }
 0x274   : > { %v1927_v31 = vadd.f32 %v1923_v21, %v1891_v57  ;;  %2602 = vadd.xlane.f32.xlu0 %v2601_v4  ;;  %v1916_v11 = vpop.xlane.xlu1 %1915 }
 0x275   : > { %v1926_v19 = vmul.f32 %v2971_v44, %v1916_v11  ;;  %v1913_v60 = vpop.xlane.xlu0 %1912 }
 0x276   : > { %v1925_v56 = vmul.f32 %v2971_v44, %v1913_v60 }
 0x277   : > { %v1930_v62 = vadd.f32 %v1926_v19, %v1894_v48  ;;  %2611 = vadd.xlane.f32.xlu1 %v2610_v43 }
 0x278   : > { %v1929_v1 = vadd.f32 %v1925_v56, %v1893_v17  ;;  %2608 = vadd.xlane.f32.xlu0 %v2607_v8  ;;  %v1946_v13 = vpop.xlane.xlu1 %1945 }
 0x279   : > { %v1960_v25 = vmul.f32 %v2973_v50, %v1946_v13  ;;  %v1943_v38 = vpop.xlane.xlu0 %1942  ;;  %v2981_v13 = vld [vmem:[#allocation8 + $0x2f] ss:$0 sm:$0xff] }
 0x27a   : > { %v1959_v0 = vmul.f32 %v2973_v50, %v1943_v38 }
 0x27b   : > { %v1964_v61 = vadd.f32 %v1960_v25, %v1928_v40  ;;  %2641 = vadd.xlane.f32.xlu1 %v2640_v39  ;;  %v2979_v40 = vld [vmem:[#allocation8 + $0x28] ss:$0 sm:$0xff] }
 0x27c   : > { %v1963_v23 = vadd.f32 %v1959_v0, %v1927_v31  ;;  %2638 = vadd.xlane.f32.xlu0 %v2637_v63  ;;  %v1952_v6 = vpop.xlane.xlu1 %1951 }
 0x27d   : > { %v1962_v34 = vmul.f32 %v2973_v50, %v1952_v6  ;;  %v1949_v51 = vpop.xlane.xlu0 %1948 }
 0x27e   : > { %v1961_v7 = vmul.f32 %v2973_v50, %v1949_v51 }
 0x27f   : > { %v1966_v53 = vadd.f32 %v1962_v34, %v1930_v62  ;;  %2647 = vadd.xlane.f32.xlu1 %v2646_v27 }
 0x280   : > { %v1965_v22 = vadd.f32 %v1961_v7, %v1929_v1  ;;  %2644 = vadd.xlane.f32.xlu0 %v2643_v52  ;;  %v1982_v35 = vpop.xlane.xlu1 %1981 }
 0x281   : > { %v1996_v59 = vmul.f32 %v2975_v26, %v1982_v35  ;;  %v1979_v57 = vpop.xlane.xlu0 %1978 }
 0x282   : > { %v1995_v2 = vmul.f32 %v2975_v26, %v1979_v57  ;;  %v2988_v57 = vld [vmem:[#allocation8 + $0xd] ss:$0 sm:$0xff] }
 0x283   : > { %v2000_v24 = vadd.f32 %v1996_v59, %v1964_v61  ;;  %2677 = vadd.xlane.f32.xlu1 %v2676_v32 }
 0x284   : > { %v1999_v5 = vadd.f32 %v1995_v2, %v1963_v23  ;;  %2674 = vadd.xlane.f32.xlu0 %v2673_v15  ;;  %v1988_v37 = vpop.xlane.xlu1 %1987 }
 0x285   : > { %v1998_v41 = vmul.f32 %v2975_v26, %v1988_v37  ;;  %v1985_v45 = vpop.xlane.xlu0 %1984 }
 0x286   : > { %v1997_v44 = vmul.f32 %v2975_v26, %v1985_v45 }
 0x287   : > { %v2002_v48 = vadd.f32 %v1998_v41, %v1966_v53  ;;  %2683 = vadd.xlane.f32.xlu1 %v2682_v55 }
 0x288   : > { %v2001_v17 = vadd.f32 %v1997_v44, %v1965_v22  ;;  %2680 = vadd.xlane.f32.xlu0 %v2679_v29  ;;  %v2018_v12 = vpop.xlane.xlu1 %2017 }
 0x289   : > { %v2032_v3 = vmul.f32 %v2977_v10, %v2018_v12  ;;  %v2015_v54 = vpop.xlane.xlu0 %2014 }
 0x28a   : > { %v2031_v30 = vmul.f32 %v2977_v10, %v2015_v54 }
 0x28b   : > { %v2036_v33 = vadd.f32 %v2032_v3, %v2000_v24 }
 0x28c   : > { %v2035_v58 = vadd.f32 %v2031_v30, %v1999_v5  ;;  %v2024_v4 = vpop.xlane.xlu1 %2023 }
 0x28d   : > { %v2034_v18 = vmul.f32 %v2977_v10, %v2024_v4  ;;  %v2021_v36 = vpop.xlane.xlu0 %2020 }
 0x28e   : > { %v2033_v21 = vmul.f32 %v2977_v10, %v2021_v36 }
 0x28f   : > { %v2038_v31 = vadd.f32 %v2034_v18, %v2002_v48  ;;  %v2990_v48 = vld [vmem:[#allocation8 + $0x14] ss:$0 sm:$0xff] }
 0x290   : > { %v2037_v11 = vadd.f32 %v2033_v21, %v2001_v17  ;;  %v2054_v43 = vpop.xlane.xlu1 %2053 }
 0x291   : > { %v2068_v47 = vmul.f32 %v2979_v40, %v2054_v43  ;;  %v2051_v19 = vpop.xlane.xlu0 %2050 }
 0x292   : > { %v2067_v60 = vmul.f32 %v2979_v40, %v2051_v19 }
 0x293   : > { %v2072_v8 = vadd.f32 %v2068_v47, %v2036_v33 }
 0x294   : > { %v2071_v42 = vadd.f32 %v2067_v60, %v2035_v58  ;;  %v2060_v56 = vpop.xlane.xlu1 %2059 }
 0x295   : > { %v2070_v50 = vmul.f32 %v2979_v40, %v2060_v56  ;;  %v2057_v62 = vpop.xlane.xlu0 %2056 }
 0x296   : > { %v2069_v1 = vmul.f32 %v2979_v40, %v2057_v62 }
 0x297   : > { %v2074_v39 = vadd.f32 %v2070_v50, %v2038_v31  ;;  %v2992_v31 = vld [vmem:[#allocation8 + $0x1b] ss:$0 sm:$0xff] }
 0x298   : > { %v2073_v14 = vadd.f32 %v2069_v1, %v2037_v11  ;;  %v2090_v25 = vpop.xlane.xlu1 %2089 }
 0x299   : > { %v2104_v38 = vmul.f32 %v2981_v13, %v2090_v25  ;;  %v2087_v63 = vpop.xlane.xlu0 %2086 }
 0x29a   : > { %v2103_v16 = vmul.f32 %v2981_v13, %v2087_v63 }
 0x29b   : > { %v2108_v9 = vadd.f32 %v2104_v38, %v2072_v8 }
 0x29c   : > { %v2107_v0 = vadd.f32 %v2103_v16, %v2071_v42  ;;  %v2096_v61 = vpop.xlane.xlu1 %2095 }
 0x29d   : > { %v2106_v23 = vmul.f32 %v2981_v13, %v2096_v61  ;;  %v2093_v6 = vpop.xlane.xlu0 %2092 }
 0x29e   : > { %v2105_v27 = vmul.f32 %v2981_v13, %v2093_v6 }
 0x29f   : > { %v2110_v34 = vadd.f32 %v2106_v23, %v2074_v39 }
 0x2a0   : > { %v2109_v51 = vadd.f32 %v2105_v27, %v2073_v14  ;;  %v2168_v52 = vpop.xlane.xlu1 %2167 }
 0x2a1   : > { %v2182_v20 = vmul.f32 %v2986_v46, %v2168_v52  ;;  %v2165_v7 = vpop.xlane.xlu0 %2164 }
 0x2a2   : > { %v2181_v26 = vmul.f32 %v2986_v46, %v2165_v7 }
 0x2a3   : > { %v2186_v53 = vadd.f32 %v2182_v20, %v2108_v9 }
 0x2a4   : > { %v2185_v22 = vadd.f32 %v2181_v26, %v2107_v0  ;;  %v2174_v35 = vpop.xlane.xlu1 %2173 }
 0x2a5   : > { %v2184_v32 = vmul.f32 %v2986_v46, %v2174_v35  ;;  %v2171_v49 = vpop.xlane.xlu0 %2170 }
 0x2a6   : > { %v2183_v59 = vmul.f32 %v2986_v46, %v2171_v49 }
 0x2a7   : > { %v2188_v15 = vadd.f32 %v2184_v32, %v2110_v34 }
 0x2a8   : > { %v2187_v28 = vadd.f32 %v2183_v59, %v2109_v51  ;;  %v2205_v2 = vpop.xlane.xlu1 %2204 }
 0x2a9   : > { %v2219_v24 = vmul.f32 %v2988_v57, %v2205_v2  ;;  %v2202_v5 = vpop.xlane.xlu0 %2201 }
 0x2aa   : > { %v2218_v37 = vmul.f32 %v2988_v57, %v2202_v5  ;;  %v2994_v5 = vld [vmem:[#allocation8 + $0x22] ss:$0 sm:$0xff] }
 0x2ab   : > { %v2223_v55 = vadd.f32 %v2219_v24, %v2186_v53 }
 0x2ac   : > { %v2222_v41 = vadd.f32 %v2218_v37, %v2185_v22  ;;  %v2211_v45 = vpop.xlane.xlu1 %2210 }
 0x2ad   : > { %v2221_v29 = vmul.f32 %v2988_v57, %v2211_v45  ;;  %v2208_v44 = vpop.xlane.xlu0 %2207 }
 0x2ae   : > { %v2220_v10 = vmul.f32 %v2988_v57, %v2208_v44  ;;  %v2998_v44 = vld [vmem:[#allocation8 + $0x30] ss:$0 sm:$0xff] }
 0x2af   : > { %v2225_v17 = vadd.f32 %v2221_v29, %v2188_v15 }
 0x2b0   : > { %v2224_v12 = vadd.f32 %v2220_v10, %v2187_v28  ;;  %v2242_v3 = vpop.xlane.xlu1 %2241 }
 0x2b1   : > { %v2256_v54 = vmul.f32 %v2990_v48, %v2242_v3  ;;  %v2239_v30 = vpop.xlane.xlu0 %2238  ;;  %v3000_v3 = vld [vmem:[#allocation8 + $0x31] ss:$0 sm:$0xff] }
 0x2b2   : > { %v2255_v33 = vmul.f32 %v2990_v48, %v2239_v30 }
 0x2b3   : > { %v2260_v58 = vadd.f32 %v2256_v54, %v2223_v55 }
 0x2b4   : > { %v2259_v4 = vadd.f32 %v2255_v33, %v2222_v41  ;;  %v2248_v18 = vpop.xlane.xlu1 %2247  ;;  %v2996_v41 = vld [vmem:[#allocation8 + $0x29] ss:$0 sm:$0xff] }
 0x2b5   : > { %v2258_v36 = vmul.f32 %v2990_v48, %v2248_v18  ;;  %v2245_v21 = vpop.xlane.xlu0 %2244 }
 0x2b6   : > { %v2257_v40 = vmul.f32 %v2990_v48, %v2245_v21 }
 0x2b7   : > { %v2262_v11 = vadd.f32 %v2258_v36, %v2225_v17  ;;  %v3002_v36 = vld [vmem:[#allocation8 + $0x32] ss:$0 sm:$0xff] }
 0x2b8   : > { %v2261_v43 = vadd.f32 %v2257_v40, %v2224_v12  ;;  %v2279_v47 = vpop.xlane.xlu1 %2278 }
 0x2b9   : > { %v2293_v19 = vmul.f32 %v2992_v31, %v2279_v47  ;;  %v2276_v60 = vpop.xlane.xlu0 %2275 }
 0x2ba   : > { %v2292_v8 = vmul.f32 %v2992_v31, %v2276_v60 }
 0x2bb   : > { %v2297_v42 = vadd.f32 %v2293_v19, %v2260_v58 }
 0x2bc   : > { %v2296_v56 = vadd.f32 %v2292_v8, %v2259_v4  ;;  %v2285_v50 = vpop.xlane.xlu1 %2284  ;;  %v3004_v8 = vld [vmem:[#allocation8 + $0x33] ss:$0 sm:$0xff] }
 0x2bd   : > { %v2295_v62 = vmul.f32 %v2992_v31, %v2285_v50  ;;  %v2282_v1 = vpop.xlane.xlu0 %2281 }
 0x2be   : > { %v2294_v13 = vmul.f32 %v2992_v31, %v2282_v1 }
 0x2bf   : > { %v2299_v39 = vadd.f32 %v2295_v62, %v2262_v11 }
 0x2c0   : > { %v2298_v14 = vadd.f32 %v2294_v13, %v2261_v43  ;;  %v2316_v25 = vpop.xlane.xlu1 %2315 }
 0x2c1   : > { %v2313_v38 = vpop.xlane.xlu0 %2312  ;;  %v2330_v45 = vmul.f32 %v2994_v5, %v2316_v25 }
 0x2c2   : > { %v2329_v29 = vmul.f32 %v2994_v5, %v2313_v38 }
 0x2c3   : > { %v2334_v54 = vadd.f32 %v2330_v45, %v2297_v42 }
 0x2c4   : > { %v2322_v63 = vpop.xlane.xlu1 %2321  ;;  %v2333_v58 = vadd.f32 %v2329_v29, %v2296_v56 }
 0x2c5   : > { %v2319_v16 = vpop.xlane.xlu0 %2318  ;;  %v2332_v30 = vmul.f32 %v2994_v5, %v2322_v63  ;;  %v3006_v63 = vld [vmem:[#allocation8 + $0x34] ss:$0 sm:$0xff] }
 0x2c6   : > { %v2331_v4 = vmul.f32 %v2994_v5, %v2319_v16 }
 0x2c7   : > { %v2336_v50 = vadd.f32 %v2332_v30, %v2299_v39 }
 0x2c8   : > { %v2353_v9 = vpop.xlane.xlu1 %2352  ;;  %v2335_v42 = vadd.f32 %v2331_v4, %v2298_v14 }
 0x2c9   : > { %v2350_v0 = vpop.xlane.xlu0 %2349  ;;  %v2367_v48 = vmul.f32 %v2996_v41, %v2353_v9 }
 0x2ca   : > { %v2366_v12 = vmul.f32 %v2996_v41, %v2350_v0 }
 0x2cb   : > { %v2371_v40 = vadd.f32 %v2367_v48, %v2334_v54 }
 0x2cc   : > { %v2359_v61 = vpop.xlane.xlu1 %2358  ;;  %v2370_v47 = vadd.f32 %v2366_v12, %v2333_v58 }
 0x2cd   : > { %v2356_v23 = vpop.xlane.xlu0 %2355  ;;  %v2369_v31 = vmul.f32 %v2996_v41, %v2359_v61 }
 0x2ce   : > { %v2368_v19 = vmul.f32 %v2996_v41, %v2356_v23  ;;  %v3008_v41 = vld [vmem:[#allocation8 + $0x35] ss:$0 sm:$0xff] }
 0x2cf   : > { %v2373_v9 = vadd.f32 %v2369_v31, %v2336_v50  ;;  %v3014_v50 = vld [vmem:[#allocation8 + $0x38] ss:$0 sm:$0xff] }
 0x2d0   : > { %v2390_v6 = vpop.xlane.xlu1 %2389 }
 0x2d1   : > { %v2387_v27 = vpop.xlane.xlu0 %2386  ;;  %v2404_v33 = vmul.f32 %v2998_v44, %v2390_v6 }
 0x2d2   : > { %v2403_v18 = vmul.f32 %v2998_v44, %v2387_v27 }
 0x2d3   : > { %v2408_v62 = vadd.f32 %v2404_v33, %v2371_v40 }
 0x2d4   : > { %v2396_v46 = vpop.xlane.xlu1 %2395  ;;  %v2407_v25 = vadd.f32 %v2403_v18, %v2370_v47 }
 0x2d5   : > { %v2393_v34 = vpop.xlane.xlu0 %2392  ;;  %v2406_v1 = vmul.f32 %v2998_v44, %v2396_v46 }
 0x2d6   : > { %v2405_v38 = vmul.f32 %v2998_v44, %v2393_v34  ;;  %v3010_v44 = vld [vmem:[#allocation8 + $0x36] ss:$0 sm:$0xff] }
 0x2d7   : > { %v2410_v39 = vadd.f32 %v2406_v1, %v2373_v9 }
 0x2d8   : > { %v2426_v51 = vpop.xlane.xlu1 %2425 }
 0x2d9   : > { %v2423_v52 = vpop.xlane.xlu0 %2422  ;;  %v2440_v11 = vmul.f32 %v3000_v3, %v2426_v51  ;;  %v2372_v51 = vadd.f32 %v2368_v19, %v2335_v42 }
 0x2da   : > { %v2439_v60 = vmul.f32 %v3000_v3, %v2423_v52 }
 0x2db   : > { %v2444_v0 = vadd.f32 %v2440_v11, %v2408_v62  ;;  %v2409_v14 = vadd.f32 %v2405_v38, %v2372_v51 }
 0x2dc   : > { %v2432_v20 = vpop.xlane.xlu1 %2431  ;;  %v2443_v5 = vadd.f32 %v2439_v60, %v2407_v25 }
 0x2dd   : > { %v2429_v7 = vpop.xlane.xlu0 %2428  ;;  %v2442_v6 = vmul.f32 %v3000_v3, %v2432_v20 }
 0x2de   : > { %v2441_v23 = vmul.f32 %v3000_v3, %v2429_v7 }
 0x2df   : > { %v2446_v12 = vadd.f32 %v2442_v6, %v2410_v39  ;;  %v3015_v6 = vld [vmem:[#allocation10] ss:$0 sm:$0xff] }
 0x2e0   : > { %v2462_v26 = vpop.xlane.xlu1 %2461  ;;  %v2445_v7 = vadd.f32 %v2441_v23, %v2409_v14 }
 0x2e1   : > { %v2459_v53 = vpop.xlane.xlu0 %2458  ;;  %v2476_v13 = vmul.f32 %v3002_v36, %v2462_v26 }
 0x2e2   : > { %v2475_v56 = vmul.f32 %v3002_v36, %v2459_v53 }
 0x2e3   : > { %v2480_v45 = vadd.f32 %v2476_v13, %v2444_v0 }
 0x2e4   : > { %v2468_v22 = vpop.xlane.xlu1 %2467  ;;  %v2479_v29 = vadd.f32 %v2475_v56, %v2443_v5 }
 0x2e5   : > { %v4560_v35 = vpop.xlane.xlu0 %2464  ;;  %v2478_v46 = vmul.f32 %v3002_v36, %v2468_v22 }
 0x2e6   : > { %v2477_v34 = vmul.f32 %v3002_v36, %v4560_v35 }
 0x2e7   : > { %v2482_v33 = vadd.f32 %v2478_v46, %v2446_v12 }
 0x2e8   : > { %v2498_v32 = vpop.xlane.xlu1 %2497  ;;  %v2481_v4 = vadd.f32 %v2477_v34, %v2445_v7 }
 0x2e9   : > { %v2495_v49 = vpop.xlane.xlu0 %2494  ;;  %v2512_v61 = vmul.f32 %v3004_v8, %v2498_v32 }
 0x2ea   : > { %v2511_v52 = vmul.f32 %v3004_v8, %v2495_v49 }
 0x2eb   : > { %v2516_v20 = vadd.f32 %v2512_v61, %v2480_v45 }
 0x2ec   : > { %v4562_v59 = vpop.xlane.xlu1 %2503  ;;  %v2515_v49 = vadd.f32 %v2511_v52, %v2479_v29 }
 0x2ed   : > { %v4564_v57 = vpop.xlane.xlu0 %2500  ;;  %v2514_v32 = vmul.f32 %v3004_v8, %v4562_v59 }
 0x2ee   : > { %v2513_v3 = vmul.f32 %v3004_v8, %v4564_v57 }
 0x2f0   : > { %v2534_v15 = vpop.xlane.xlu1 %2533  ;;  %v2517_v19 = vadd.f32 %v2513_v3, %v2481_v4 }
 0x2f1   : > { %v2531_v28 = vpop.xlane.xlu0 %2530  ;;  %v2548_v26 = vmul.f32 %v3006_v63, %v2534_v15  ;;  %v3012_v15 = vld [vmem:[#allocation8 + $0x37] ss:$0 sm:$0xff] }
 0x2f2   : > { %v2547_v53 = vmul.f32 %v3006_v63, %v2531_v28 }
 0x2f3   : > { %v2552_v58 = vadd.f32 %v2548_v26, %v2516_v20 }
 0x2f4   : > { %v4566_v2 = vpop.xlane.xlu1 %2539  ;;  %v2551_v18 = vadd.f32 %v2547_v53, %v2515_v49 }
 0x2f5   : > { %v4568_v24 = vpop.xlane.xlu0 %2536  ;;  %v2550_v35 = vmul.f32 %v3006_v63, %v4566_v2 }
 0x2f6   : > { %v2549_v36 = vmul.f32 %v3006_v63, %v4568_v24 }
 0x2f8   : > { %v2570_v37 = vpop.xlane.xlu1 %2569  ;;  %v2553_v1 = vadd.f32 %v2549_v36, %v2517_v19 }
 0x2f9   : > { %v4570_v55 = vpop.xlane.xlu0 %2566  ;;  %v2584_v54 = vmul.f32 %v3008_v41, %v2570_v37  ;;  %v2518_v37 = vadd.f32 %v2514_v32, %v2482_v33 }
 0x2fa   : > { %v2583_v22 = vmul.f32 %v3008_v41, %v4570_v55 }
 0x2fb   : > { %v2588_v31 = vadd.f32 %v2584_v54, %v2552_v58  ;;  %v2554_v2 = vadd.f32 %v2550_v35, %v2518_v37 }
 0x2fc   : > { %v4572_v10 = vpop.xlane.xlu1 %2575  ;;  %v2587_v55 = vadd.f32 %v2583_v22, %v2551_v18 }
 0x2fd   : > { %v4574_v17 = vpop.xlane.xlu0 %2572  ;;  %v2586_v11 = vmul.f32 %v3008_v41, %v4572_v10 }
 0x2fe   : > { %v2585_v60 = vmul.f32 %v3008_v41, %v4574_v17 }
 0x2ff   : > { %v2590_v42 = vadd.f32 %v2586_v11, %v2554_v2 }
 0x300   : > { %v2606_v21 = vpop.xlane.xlu1 %2605  ;;  %v2589_v63 = vadd.f32 %v2585_v60, %v2553_v1 }
 0x301   : > { %v2603_v43 = vpop.xlane.xlu0 %2602  ;;  %v2620_v28 = vmul.f32 %v3010_v44, %v2606_v21 }
 0x302   : > { %v2619_v40 = vmul.f32 %v3010_v44, %v2603_v43 }
 0x303   : > { %v2624_v21 = vadd.f32 %v2620_v28, %v2588_v31 }
 0x304   : > { %v2612_v16 = vpop.xlane.xlu1 %2611  ;;  %v2623_v13 = vadd.f32 %v2619_v40, %v2587_v55 }
 0x305   : > { %v2609_v27 = vpop.xlane.xlu0 %2608  ;;  %v2622_v62 = vmul.f32 %v3010_v44, %v2612_v16 }
 0x306   : > { %v2621_v24 = vmul.f32 %v3010_v44, %v2609_v27 }
 0x307   : > { %v2626_v17 = vadd.f32 %v2622_v62, %v2590_v42 }
 0x308   : > { %v2642_v48 = vpop.xlane.xlu1 %2641  ;;  %v2625_v5 = vadd.f32 %v2621_v24, %v2589_v63 }
 0x309   : > { %v2639_v30 = vpop.xlane.xlu0 %2638  ;;  %v2656_v47 = vmul.f32 %v3012_v15, %v2642_v48 }
 0x30a   : > { %v2655_v8 = vmul.f32 %v3012_v15, %v2639_v30 }
 0x30b   : > { %v2660_v25 = vadd.f32 %v2656_v47, %v2624_v21 }
 0x30c   : > { %v2648_v59 = vpop.xlane.xlu1 %2647  ;;  %v2659_v9 = vadd.f32 %v2655_v8, %v2623_v13 }
 0x30d   : > { %v2645_v57 = vpop.xlane.xlu0 %2644  ;;  %v2658_v38 = vmul.f32 %v3012_v15, %v2648_v59 }
 0x30e   : > { %v2657_v0 = vmul.f32 %v3012_v15, %v2645_v57 }
 0x30f   : > { %v2662_v16 = vadd.f32 %v2658_v38, %v2626_v17 }
 0x310   : > { %v2678_v43 = vpop.xlane.xlu1 %2677  ;;  %v2661_v45 = vadd.f32 %v2657_v0, %v2625_v5 }
 0x311   : > { %v2692_v56 = vmul.f32 %v3014_v50, %v2678_v43  ;;  %v2675_v10 = vpop.xlane.xlu0 %2674 }
 0x312   : > { %v2691_v61 = vmul.f32 %v3014_v50, %v2675_v10 }
 0x313   : > { %v2696_v51 = vadd.f32 %v2692_v56, %v2660_v25 }
 0x314   : > { %v2695_v23 = vadd.f32 %v2691_v61, %v2659_v9  ;;  %v2684_v52 = vpop.xlane.xlu1 %2683 }
 0x315   : > { %v2707_v41 = vadd.f32 %v3015_v6, %v2696_v51  ;;  %v2694_v39 = vmul.f32 %v3014_v50, %v2684_v52  ;;  %v2681_v27 = vpop.xlane.xlu0 %2680 }
 0x316   : > { %v2706_v46 = vadd.f32 %v3015_v6, %v2695_v23  ;;  %v2693_v26 = vmul.f32 %v3014_v50, %v2681_v27 }
 0x317   : > { %v2711_v14 = vmul.f32 0.1, %v2707_v41  ;;  %v2698_v29 = vadd.f32 %v2694_v39, %v2662_v16 }
 0x318   : > { %v2710_v34 = vmul.f32 0.1, %v2706_v46  ;;  %v2697_v53 = vadd.f32 %v2693_v26, %v2661_v45 }
 0x319   : > { %v2715_v44 = vmax.f32 %v2707_v41, %v2711_v14  ;;  %v2709_v48 = vadd.f32 %v3015_v6, %v2698_v29 }
 0x31a   : > { %v2714_v12 = vmax.f32 %v2706_v46, %v2710_v34  ;;  %v2708_v20 = vadd.f32 %v3015_v6, %v2697_v53 }
 0x31b   : > { %v2719_v32 = vpack.c.bf16 %v2715_v44, %v2715_v44  ;;  %v2713_v54 = vmul.f32 0.1, %v2709_v48 }
 0x31c   : > { %v2718_v30 = vpack.c.bf16 %v2714_v12, %v2714_v12  ;;  %v2712_v7 = vmul.f32 0.1, %v2708_v20 }
 0x31d   : > { %2724 = vst.msk [vmem:[%s341_s26 + $0x2] sm:$0x3] %vm2722_vm10, %v2719_v32  ;;  %v2717_v49 = vmax.f32 %v2709_v48, %v2713_v54 }
 0x31e   : > { %2723 = vst.msk [vmem:[%s341_s26] sm:$0x3] %vm2722_vm10, %v2718_v30  ;;  %v2716_v3 = vmax.f32 %v2708_v20, %v2712_v7 }
 0x31f   : > { %v2721_v22 = vpack.c.bf16 %v2717_v49, %v2717_v49 }
 0x320   : > { %v2720_v15 = vpack.c.bf16 %v2716_v3, %v2716_v3 }
 0x321   : > { %2726 = vst.msk [vmem:[%s341_s26 + $0x6] sm:$0x3] %vm2722_vm10, %v2721_v22 }
 0x322   : > { %2725 = vst.msk [vmem:[%s341_s26 + $0x4] sm:$0x3] %vm2722_vm10, %v2720_v15 }
 0x323   : > { %3289 = shalt.err (!%p3286_p11)
}
 0x324   : > { %s3290_s4 = scalar_lea.hbm %s4592_s16, 128  ;;  %s3294_s11 = scalar_lea.hbm %s4650_s5, 256 }
 0x325   : > { %p3291_p12 = scmp.ne.s32.totalorder %s4592_s16, %s3290_s4  ;;  %p3295_p9 = scmp.lt.u32.totalorder %s4592_s16, %s4650_s5 }
 0x326   : > { %p3296_p0 = scmp.lt.u32.totalorder %s3294_s11, %s3290_s4  ;;  %p3298_p4 = scmp.lt.u32.totalorder %s3290_s4, %s4592_s16 }
 0x327   : > { %p3292_p6 = pnand %p3291_p12, %p3563_p10 }
 0x328   : > { %p3297_p1 = por %p3296_p0, %p3295_p9 }
 0x329   : > { %p3293_p7 = pneg %p3292_p6 }
 0x32a   : > { %p3299_p8 = por %p3298_p4, %p3297_p1 }
 0x32c   : > { %p3300_p2 = pnand %p3299_p8, %p3293_p7 }
 0x32e   : > { %3303 = shalt.err (!%p3300_p2)
}
 0x32f   : > { %s3384_s3 = smov 32   ;;  %s3385_s28 = smov 2  }
 0x330   : > { %3042 = dma.vmem_to_hbm [thread:$0]  (%p3563_p10), %s4594_s15, 128, %s4592_s16, %s2728_s21, %s3384_s3, %s3384_s3, %s3385_s28  }
 0x331 PF: > { %s4685_s8 = sld [smem:[#allocation17_spill]]  ;;  %s2758_s24 = sand.u32 1, %s3350_s18  }
 0x332   : > { %p4687_p3 = scmp.ge.s32.totalorder %s3370_s23, 2  ;;  %s2759_s26 = scalar_lea.sflag [#allocation4], %s2758_s24 }
 0x337   : > { %p4686_p13 = scmp.ne.s32.totalorder %s4685_s8, 0 }
 0x339   : > { %p3062_p5 = pnand %p4687_p3, %p4686_p13 }
 0x33b   : > { %3345 = dma.done.wait (!%p3062_p5), %s2759_s26, 128  }
 0x33c   : > { %3347 = vsyncadd (!%p3062_p5), %s2759_s26, 4294967168  ;;  %s25_s23 = sadd.s32 1, %s3370_s23   ;;  %s4688_s18 = smov %s3354_s19 }
 0x33d   : > { %p22_p11 = scmp.ge.s32.totalorder %s25_s23, 4   ;;  %s4689_s19 = smov %s3358_s20 }
 0x33e   : > { %s4690_s20 = smov %s3578_s14  ;;  %s4691_s21 = smov %s3366_s22 }
 0x33f   : > { %s4692_s22 = smov %s4694_s27  ;;  %24 = sbr.rel (!%p22_p11) target bundleno = 14 (0xe), region = 111 }
 0x346   :  { %2764 = vsyncpa [#allocation3], 1 }
 0x347   :  { %2766 = vsyncpa [#allocation3 + $0x1], 1 }
 0x348   :  { %2767 = vsyncpa [#allocation6], 1 }
 0x349   :  { %2769 = vsyncpa [#allocation6 + $0x1], 1 }
 0x34a   :  { %2770 = vsyncpa [#allocation9], 1 }
 0x34b   :  { %2771 = vsyncpa [#allocation4], 1 }
 0x34c   :  { %2773 = vsyncpa [#allocation4 + $0x1], 1 }

</bundles_post_ra>
